<compile_context>
chip_gen: v7x
topology: tpu7x:2x2x1
jax: 0.10.0
libtpu: 0.0.40
codegen_flags: <defaults>
</compile_context>

<pallas_src>
import functools

import jax
import jax.numpy as jnp
from jax.experimental import pallas as pl
from jax.experimental.pallas import tpu as pltpu

EPS = 1e-5                       # PyTorch InstanceNorm2d default
VMEM_LIMIT = 32 * 1024 * 1024    # safe across v5e / v6e / v7x


# ----------------------------------------------------------------------------
# Kernels
# ----------------------------------------------------------------------------
def _sample_masks(shape, n_samples, m):
    """Lane masks selecting each sample's contiguous M-lane segment."""
    lane = jax.lax.broadcasted_iota(jnp.int32, shape, len(shape) - 1)
    return [jnp.logical_and(lane >= s * m, lane < (s + 1) * m).astype(jnp.float32)
            for s in range(n_samples)]


def _conv_fused_kernel(w_ref, p_ref, eb_ref, o_ref, *, n_samples, norm, act):
    """(Cout,K)@(K,N*M) conv + bias, fused per-sample InstanceNorm + act.

    eb_ref columns: [bias, gamma, beta]."""
    acc = jnp.dot(w_ref[...], p_ref[...], preferred_element_type=jnp.float32)
    eb = eb_ref[...]
    acc = acc + eb[:, 0:1]
    if norm:
        nm = acc.shape[-1]
        m = nm // n_samples
        inv_m = 1.0 / m
        masks = _sample_masks(acc.shape, n_samples, m)
        mean_full = jnp.zeros_like(acc)
        for s in range(n_samples):
            mean_full = mean_full + (
                jnp.sum(acc * masks[s], axis=-1, keepdims=True) * inv_m) * masks[s]
        xc = acc - mean_full
        var_full = jnp.zeros_like(acc)
        for s in range(n_samples):
            var_full = var_full + (
                jnp.sum(xc * xc * masks[s], axis=-1, keepdims=True) * inv_m) * masks[s]
        acc = xc * jax.lax.rsqrt(var_full + EPS) * eb[:, 1:2] + eb[:, 2:3]
    if act == "relu":
        acc = jnp.maximum(acc, 0.0)
    elif act == "tanh":
        acc = jnp.tanh(acc)
    o_ref[...] = acc.astype(o_ref.dtype)


def _res_stack_kernel(x_ref, w1_ref, w2_ref, s_ref, eb_ref, *rest,
                      n_blocks, n_samples, enable_se):
    """The ENTIRE shared-weight residual block stack in one kernel.

    Per block iteration: conv1(3x3,pad1) + IN + ReLU; conv2 + IN; SE
    (global avg pool, two tiny FCs on the VPU, sigmoid scale); residual add;
    ReLU.  The 3x3 conv uses in-kernel im2col: 9 constant shift matrices
    (s_ref) move the (C, N*M) activation per tap into a (9C, N*M) patch
    scratch, followed by one (C, 9C)@(9C, N*M) MXU matmul.

    eb_ref columns: [conv1 bias, conv2 bias, se_conv2 bias]."""
    if enable_se:
        sew1t_ref, seb1_ref, sew2_ref, y_ref, cur_ref, patch_ref = rest
    else:
        y_ref, cur_ref, patch_ref = rest

    c = x_ref.shape[0]
    nm = x_ref.shape[1]
    m = nm // n_samples
    inv_m = 1.0 / m
    n_taps = s_ref.shape[0]

    cur_ref[...] = x_ref[...].astype(jnp.float32)

    masks = _sample_masks((c, nm), n_samples, m)           # hoisted (no re-bcast)
    eb = eb_ref[...]
    b1 = eb[:, 0:1]
    b2 = eb[:, 1:2]
    se_b2 = eb[:, 2:3]

    def conv3x3(v, w_ref, bias):
        vb = v.astype(jnp.bfloat16)
        for t in range(n_taps):                            # in-kernel im2col
            shifted = jnp.dot(vb, s_ref[t], preferred_element_type=jnp.float32)
            patch_ref[pl.ds(t * c, c), :] = shifted.astype(jnp.bfloat16)
        return jnp.dot(w_ref[...], patch_ref[...],
                       preferred_element_type=jnp.float32) + bias

    def inorm(a):                                          # per-sample, non-affine
        mean_full = jnp.zeros_like(a)
        for s in range(n_samples):
            mean_full = mean_full + (
                jnp.sum(a * masks[s], axis=-1, keepdims=True) * inv_m) * masks[s]
        xc = a - mean_full
        var_full = jnp.zeros_like(a)
        for s in range(n_samples):
            var_full = var_full + (
                jnp.sum(xc * xc * masks[s], axis=-1, keepdims=True) * inv_m) * masks[s]
        return xc * jax.lax.rsqrt(var_full + EPS)

    for _ in range(n_blocks):                              # shared weights
        h = jnp.maximum(inorm(conv3x3(cur_ref[...], w1_ref, b1)), 0.0)
        o = inorm(conv3x3(h, w2_ref, b2))
        if enable_se:
            s_full = jnp.zeros_like(o)
            for s in range(n_samples):
                pool = jnp.sum(o * masks[s], axis=-1, keepdims=True) * inv_m  # (C,1)
                hfc = jnp.maximum(
                    jnp.sum(sew1t_ref[...] * pool, axis=0, keepdims=True)
                    + seb1_ref[...], 0.0)                                     # (1,C16)
                sv = jax.nn.sigmoid(
                    jnp.sum(sew2_ref[...] * hfc, axis=-1, keepdims=True) + se_b2)
                s_full = s_full + sv * masks[s]
            o = o * s_full
        cur_ref[...] = jnp.maximum(o + cur_ref[...], 0.0)

    y_ref[...] = cur_ref[...].astype(y_ref.dtype)


def _deconv_fused_kernel(wp_ref, p_ref, eb_ref, o_ref, *, n_samples, n_phases, cout):
    """Phase-split ConvTranspose2d(k=3,s=2,p=1,op=1) + affine IN + ReLU.

    One (4*Cout, Cin*4)@(Cin*4, N*M) matmul produces all 4 sub-pixel phases;
    per-(channel,sample) IN stats are aggregated over the 4 phase row-groups
    with the centered (x - mean)^2 form.  eb_ref columns: [bias, gamma, beta],
    tiled per phase."""
    acc = jnp.dot(wp_ref[...], p_ref[...], preferred_element_type=jnp.float32)
    eb = eb_ref[...]
    acc = acc + eb[:, 0:1]

    nm = acc.shape[-1]
    m = nm // n_samples
    inv = 1.0 / (n_phases * m)
    masks = _sample_masks(acc.shape, n_samples, m)

    def fold_phases(v):                   # (P*Cout,1) -> per-channel sum, re-tiled
        tot = v[0:cout, :]
        for ph in range(1, n_phases):
            tot = tot + v[ph * cout:(ph + 1) * cout, :]
        return jnp.concatenate([tot] * n_phases, axis=0)

    mean_full = jnp.zeros_like(acc)
    for s in range(n_samples):
        mean_full = mean_full + fold_phases(
            jnp.sum(acc * masks[s], axis=-1, keepdims=True)) * inv * masks[s]
    xc = acc - mean_full
    var_full = jnp.zeros_like(acc)
    for s in range(n_samples):
        var_full = var_full + fold_phases(
            jnp.sum(xc * xc * masks[s], axis=-1, keepdims=True)) * inv * masks[s]
    o = xc * jax.lax.rsqrt(var_full + EPS) * eb[:, 1:2] + eb[:, 2:3]
    o_ref[...] = jnp.maximum(o, 0.0).astype(o_ref.dtype)


# ----------------------------------------------------------------------------
# Host-side glue (channel-major im2col, shift matrices, phase-split weights)
# ----------------------------------------------------------------------------
def _im2col_cm(xp, kh, kw, stride):
    """Channel-major im2col: padded (C, N, H, W) -> bf16 (C*KH*KW, N*OH*OW)."""
    c, n, h, w = xp.shape
    oh = (h - kh) // stride + 1
    ow = (w - kw) // stride + 1
    cols = []
    for ki in range(kh):
        for kj in range(kw):
            cols.append(xp[:, :, ki:ki + stride * oh:stride,
                           kj:kj + stride * ow:stride])
    p = jnp.stack(cols, axis=1)                    # (C, KH*KW, N, OH, OW)
    p = p.reshape(c * kh * kw, n * oh * ow)        # rows ordered (c, kh, kw)
    return p.astype(jnp.bfloat16), oh, ow


def _shift_matrices(n, h, w):
    """(9, N*H*W, N*H*W) bf16 0/1 matrices: column m selects its 3x3-tap source
    pixel (zero at the pad-1 boundary, no cross-sample leakage)."""
    hw = h * w
    nm = n * hw
    m_idx = jnp.arange(nm)
    nn = m_idx // hw
    ii = (m_idx % hw) // w
    jj = m_idx % w
    mats = []
    for ki in range(3):
        for kj in range(3):
            si = ii + ki - 1
            sj = jj + kj - 1
            valid = (si >= 0) & (si < h) & (sj >= 0) & (sj < w)
            src = jnp.where(valid, nn * hw + si * w + sj, -1)
            eq = jnp.arange(nm)[:, None] == src[None, :]   # [m_src, m_out]
            mats.append(eq.astype(jnp.float32))
    return jnp.stack(mats).astype(jnp.bfloat16)


def _wflat3x3(w):
    """(Cout, Cin, 3, 3) -> (Cout, 9*Cin) bf16, column order (tap, ci) to match
    the in-kernel patch scratch layout."""
    cout, cin = w.shape[0], w.shape[1]
    return (w.reshape(cout, cin, 9).transpose(0, 2, 1)
            .reshape(cout, 9 * cin).astype(jnp.bfloat16))


def _phase_weights(w):
    """ConvTranspose2d (Cin,Cout,3,3), s=2, p=1, op=1 -> (4, Cout, Cin*4)
    per-phase sub-pixel weights over a 2x2 tap window of the (bottom/right
    zero-padded) input."""
    cin, cout = w.shape[0], w.shape[1]

    def tap2k(a, d):               # output phase parity a, input tap offset d
        if a == 0 and d == 0:
            return 1
        if a == 1 and d == 1:
            return 0
        if a == 1 and d == 0:
            return 2
        return None                # (even phase, +1 tap) never contributes

    wp = jnp.zeros((4, cout, cin * 4), jnp.float32)
    for a in range(2):
        for bb in range(2):
            phase = a * 2 + bb
            for di in range(2):
                for dj in range(2):
                    p, q = tap2k(a, di), tap2k(bb, dj)
                    if p is None or q is None:
                        continue
                    tap = di * 2 + dj
                    wp = wp.at[phase, :, tap::4].set(w[:, :, p, q].T)
    return wp


def _full_spec(shape):
    nd = len(shape)
    return pl.BlockSpec(shape, lambda i, _nd=nd: (0,) * _nd)


def _cparams():
    # TODO(synk): at large resolutions, grid over M tiles (both for v7x's
    # 64 MiB VMEM and to feed both v7x TensorCores); a 1-step grid is optimal
    # at this model size.
    return pltpu.CompilerParams(dimension_semantics=("arbitrary",),
                                vmem_limit_bytes=VMEM_LIMIT)


# ----------------------------------------------------------------------------
# Layer wrappers (all activations are channel-major (C, N, H, W))
# ----------------------------------------------------------------------------
def _conv_in_act(x_cm, wt, b, gamma, beta, *, stride, padding, norm, act,
                 out_dtype):
    """Conv2d (PyTorch semantics) + fused per-sample InstanceNorm + activation.
    x_cm: (Cin, N, H, W); returns (Cout, N, OH, OW)."""
    _, n, _, _ = x_cm.shape
    cout, cin, kh, kw = wt.shape
    if padding:
        x_cm = jnp.pad(x_cm, ((0, 0), (0, 0), (padding,) * 2, (padding,) * 2))
    patches, oh, ow = _im2col_cm(x_cm, kh, kw, stride)     # (K, N*M)
    k, m = cin * kh * kw, oh * ow
    wmat = wt.reshape(cout, k).astype(jnp.bfloat16)
    eb = jnp.stack([b, gamma, beta], axis=1).astype(jnp.float32)   # (Cout, 3)
    out = pl.pallas_call(
        functools.partial(_conv_fused_kernel, n_samples=n, norm=norm, act=act),
        out_shape=jax.ShapeDtypeStruct((cout, n * m), out_dtype),
        grid=(1,),
        in_specs=[_full_spec((cout, k)),
                  _full_spec((k, n * m)),
                  _full_spec((cout, 3))],
        out_specs=_full_spec((cout, n * m)),
        compiler_params=_cparams(),
    )(wmat, patches, eb)
    return out.reshape(cout, n, oh, ow)


def _res_stack(x_cm, blk, *, enable_se, n_blocks):
    """All G_block repetitions of the shared se_block_conv in one pallas_call."""
    c, n, h, w = x_cm.shape
    nm = n * h * w
    x2 = x_cm.reshape(c, nm).astype(jnp.bfloat16)
    smats = _shift_matrices(n, h, w)                       # (9, nm, nm)
    w1 = _wflat3x3(blk["conv1"]["w"])
    w2 = _wflat3x3(blk["conv2"]["w"])
    c16 = max(c // 16, 1)
    se_b2 = blk["se2"]["b"] if enable_se else jnp.zeros((c,), jnp.float32)
    eb = jnp.stack([blk["conv1"]["b"], blk["conv2"]["b"], se_b2],
                   axis=1).astype(jnp.float32)             # (C, 3)

    inputs = [x2, w1, w2, smats, eb]
    in_specs = [_full_spec((c, nm)),
                _full_spec((c, 9 * c)),
                _full_spec((c, 9 * c)),
                _full_spec((9, nm, nm)),
                _full_spec((c, 3))]
    if enable_se:
        sew1t = blk["se1"]["w"].reshape(c16, c).T.astype(jnp.float32)  # (C, C16)
        seb1 = blk["se1"]["b"].reshape(1, c16).astype(jnp.float32)
        sew2 = blk["se2"]["w"].reshape(c, c16).astype(jnp.float32)
        inputs += [sew1t, seb1, sew2]
        in_specs += [_full_spec((c, c16)),
                     _full_spec((1, c16)),
                     _full_spec((c, c16))]

    y = pl.pallas_call(
        functools.partial(_res_stack_kernel, n_blocks=n_blocks,
                          n_samples=n, enable_se=enable_se),
        out_shape=jax.ShapeDtypeStruct((c, nm), jnp.bfloat16),
        grid=(1,),
        in_specs=in_specs,
        out_specs=_full_spec((c, nm)),
        scratch_shapes=[pltpu.VMEM((c, nm), jnp.float32),        # running act
                        pltpu.VMEM((9 * c, nm), jnp.bfloat16)],  # patch scratch
        compiler_params=_cparams(),
    )(*inputs)
    return y.reshape(c, n, h, w)


def _deconv_in_relu(x_cm, w, b, gamma, beta):
    """ConvTranspose2d(k=3, s=2, p=1, op=1) + affine InstanceNorm + ReLU,
    phase-split, single matmul, fully fused.  x_cm: (Cin, N, H, W)."""
    assert w.shape[2] == 3 and w.shape[3] == 3
    cin, n, h, ww = x_cm.shape
    cout = w.shape[1]
    xp = jnp.pad(x_cm, ((0, 0), (0, 0), (0, 1), (0, 1)))   # bottom/right zero
    patches, oh, ow = _im2col_cm(xp, 2, 2, 1)              # (Cin*4, N*H*W)
    assert (oh, ow) == (h, ww)
    nm = n * h * ww
    wp = _phase_weights(w).reshape(4 * cout, cin * 4).astype(jnp.bfloat16)
    ebc = jnp.stack([b, gamma, beta], axis=1).astype(jnp.float32)
    eb = jnp.tile(ebc, (4, 1))                             # (4*Cout, 3)
    out = pl.pallas_call(
        functools.partial(_deconv_fused_kernel, n_samples=n, n_phases=4,
                          cout=cout),
        out_shape=jax.ShapeDtypeStruct((4 * cout, nm), jnp.bfloat16),
        grid=(1,),
        in_specs=[_full_spec((4 * cout, cin * 4)),
                  _full_spec((cin * 4, nm)),
                  _full_spec((4 * cout, 3))],
        out_specs=_full_spec((4 * cout, nm)),
        compiler_params=_cparams(),
    )(wp, patches, eb)
    # phase de-interleave: rows (a*2+b)*Cout + c, lanes n*M + i*W + j.
    # TODO(synk): fold this de-interleave into the next layer's im2col gather.
    o = out.reshape(2, 2, cout, n, h, ww).transpose(2, 3, 4, 0, 5, 1)
    return o.reshape(cout, n, 2 * h, 2 * ww)


# ----------------------------------------------------------------------------
# Generator ('conv' block type, as in the config)
# ----------------------------------------------------------------------------
class Config:
    G_input = 3
    G_output = 3
    G_downsample = 2
    G_channel = 8        # ngf
    G_block = 2
    G_enable_se = True
    G_block_type = "conv"   # TODO(synk): 'deconv' block type not exercised here


def init_params(cfg, key):
    def nxt():
        nonlocal key
        key, sub = jax.random.split(key)
        return sub

    def conv_p(cout, cin, k):
        return {"w": jax.random.normal(nxt(), (cout, cin, k, k), jnp.float32) * 0.1,
                "b": jax.random.normal(nxt(), (cout,), jnp.float32) * 0.05}

    def deconv_p(cin, cout, k):
        return {"w": jax.random.normal(nxt(), (cin, cout, k, k), jnp.float32) * 0.1,
                "b": jax.random.normal(nxt(), (cout,), jnp.float32) * 0.05}

    def norm_p(c):
        return {"gamma": jnp.ones((c,), jnp.float32),
                "beta": jnp.zeros((c,), jnp.float32)}

    ngf, nds = cfg.G_channel, cfg.G_downsample
    p = {"stem_conv": conv_p(ngf, cfg.G_input, 7), "stem_norm": norm_p(ngf)}
    p["down"] = []
    for i in range(nds):
        mult = 2 ** i
        p["down"].append({"conv": conv_p(ngf * mult * 2, ngf * mult, 3),
                          "norm": norm_p(ngf * mult * 2)})
    cb = ngf * 2 ** nds
    # NOTE: the PyTorch module reuses the SAME se_block instance nb times,
    # so the residual-block weights are shared.
    blk = {"conv1": conv_p(cb, cb, 3), "conv2": conv_p(cb, cb, 3)}
    if cfg.G_enable_se:
        blk["se1"] = conv_p(cb // 16, cb, 1)
        blk["se2"] = conv_p(cb, cb // 16, 1)
    p["block"] = blk
    p["up"] = []
    for i in range(nds):
        mult = 2 ** (nds - i)
        p["up"].append({"conv": deconv_p(ngf * mult, ngf * mult // 2, 3),
                        "norm": norm_p(ngf * mult // 2)})
    p["final_conv"] = conv_p(cfg.G_output, ngf, 7)
    return p


def generator_forward(params, x, cfg):
    # NCHW -> channel-major (C, N, H, W); everything stays channel-major so
    # every conv's matmul output is (Cout, N*M) with batch folded into lanes.
    out = jnp.transpose(x, (1, 0, 2, 3))
    # reflect pad + 7x7 stem (+ affine IN + ReLU, fused)
    out = jnp.pad(out, ((0, 0), (0, 0), (3, 3), (3, 3)), mode="reflect")
    out = _conv_in_act(out, params["stem_conv"]["w"], params["stem_conv"]["b"],
                       params["stem_norm"]["gamma"], params["stem_norm"]["beta"],
                       stride=1, padding=0, norm=True, act="relu",
                       out_dtype=jnp.bfloat16)
    # downsample
    for d in params["down"]:
        out = _conv_in_act(out, d["conv"]["w"], d["conv"]["b"],
                           d["norm"]["gamma"], d["norm"]["beta"],
                           stride=2, padding=1, norm=True, act="relu",
                           out_dtype=jnp.bfloat16)
    # shared SE residual block repeated G_block times -> ONE pallas_call
    out = _res_stack(out, params["block"], enable_se=cfg.G_enable_se,
                     n_blocks=cfg.G_block)
    # upsample (phase-split ConvTranspose + affine IN + ReLU, single matmul)
    for u in params["up"]:
        out = _deconv_in_relu(out, u["conv"]["w"], u["conv"]["b"],
                              u["norm"]["gamma"], u["norm"]["beta"])
    # reflect pad + 7x7 head + tanh (fused epilogue, f32 output)
    out = jnp.pad(out, ((0, 0), (0, 0), (3, 3), (3, 3)), mode="reflect")
    zeros_o = jnp.zeros((cfg.G_output,), jnp.float32)
    out = _conv_in_act(out, params["final_conv"]["w"], params["final_conv"]["b"],
                       zeros_o, zeros_o, stride=1, padding=0, norm=False,
                       act="tanh", out_dtype=jnp.float32)
    # back to NCHW
    return jnp.transpose(out, (1, 0, 2, 3))


if __name__ == "__main__":
    cfg = Config()
    key = jax.random.PRNGKey(0)
    pkey, xkey = jax.random.split(key)
    params = init_params(cfg, pkey)

    x = jax.random.normal(xkey, (2, cfg.G_input, 16, 16), jnp.float32)

    fwd = jax.jit(functools.partial(generator_forward, cfg=cfg))
    y = fwd(params, x)
    jax.block_until_ready(y)

    assert y.shape == (2, cfg.G_output, 16, 16), y.shape
    assert bool(jnp.all(jnp.isfinite(y)))
    print("KERNEL_OK")
</pallas_src>

<mosaic_0001>
module attributes {stable_mosaic.version = 11 : i64} {
  func.func @_conv_fused_kernel(%arg0: i32, %arg1: memref<8x147xbf16, #tpu.memory_space<vmem>>, %arg2: memref<147x512xbf16, #tpu.memory_space<vmem>>, %arg3: memref<8x3xf32, #tpu.memory_space<vmem>>, %arg4: memref<8x512xbf16, #tpu.memory_space<vmem>>) attributes {dimension_semantics = [#tpu.dimension_semantics<arbitrary>], iteration_bounds = array<i64: 1>, scalar_prefetch = 0 : i64, scratch_operands = 0 : i64, tpu.core_type = #tpu.core_type<tc>, window_params = [{pipeline_mode = #tpu.pipeline_mode<synchronous>, transform_indices = @transform_0, window_bounds = array<i64: 8, 147>}, {pipeline_mode = #tpu.pipeline_mode<synchronous>, transform_indices = @transform_1, window_bounds = array<i64: 147, 512>}, {pipeline_mode = #tpu.pipeline_mode<synchronous>, transform_indices = @transform_2, window_bounds = array<i64: 8, 3>}, {pipeline_mode = #tpu.pipeline_mode<synchronous>, transform_indices = @transform_3, window_bounds = array<i64: 8, 512>}]} {
    %c0 = arith.constant 0 : index
    %c0_0 = arith.constant 0 : index
    %0 = vector.load %arg1[%c0, %c0_0] : memref<8x147xbf16, #tpu.memory_space<vmem>>, vector<8x147xbf16>
    %c0_1 = arith.constant 0 : index
    %c0_2 = arith.constant 0 : index
    %1 = vector.load %arg2[%c0_1, %c0_2] : memref<147x512xbf16, #tpu.memory_space<vmem>>, vector<147x512xbf16>
    %cst = arith.constant dense<0.000000e+00> : vector<8x512xf32>
    %2 = tpu.matmul %0, %1, %cst {dimension_numbers = #tpu.dot_dimension_numbers<[1], [0], [0], [1], [0, 0, 1, 1], [], []>} : vector<8x147xbf16>, vector<147x512xbf16>, vector<8x512xf32> -> vector<8x512xf32>
    %c0_3 = arith.constant 0 : index
    %c0_4 = arith.constant 0 : index
    %3 = vector.load %arg3[%c0_3, %c0_4] : memref<8x3xf32, #tpu.memory_space<vmem>>, vector<8x3xf32>
    %4 = vector.extract_strided_slice %3 {offsets = [0, 0], sizes = [8, 1], strides = [1, 1]} : vector<8x3xf32> to vector<8x1xf32>
    %5 = vector.broadcast %4 : vector<8x1xf32> to vector<8x512xf32>
    %6 = arith.addf %2, %5 : vector<8x512xf32>
    %7 = tpu.iota {dimensions = array<i32: 1>} : vector<8x512xi32>
    %c0_i32 = arith.constant 0 : i32
    %8 = vector.broadcast %c0_i32 : i32 to vector<8x512xi32>
    %9 = arith.cmpi sge, %7, %8 : vector<8x512xi32>
    %c256_i32 = arith.constant 256 : i32
    %10 = vector.broadcast %c256_i32 : i32 to vector<8x512xi32>
    %11 = arith.cmpi slt, %7, %10 : vector<8x512xi32>
    %12 = arith.andi %9, %11 : vector<8x512xi1>
    %13 = arith.extui %12 : vector<8x512xi1> to vector<8x512xi32>
    %14 = arith.sitofp %13 : vector<8x512xi32> to vector<8x512xf32>
    %c256_i32_5 = arith.constant 256 : i32
    %15 = vector.broadcast %c256_i32_5 : i32 to vector<8x512xi32>
    %16 = arith.cmpi sge, %7, %15 : vector<8x512xi32>
    %c512_i32 = arith.constant 512 : i32
    %17 = vector.broadcast %c512_i32 : i32 to vector<8x512xi32>
    %18 = arith.cmpi slt, %7, %17 : vector<8x512xi32>
    %19 = arith.andi %16, %18 : vector<8x512xi1>
    %20 = arith.extui %19 : vector<8x512xi1> to vector<8x512xi32>
    %21 = arith.sitofp %20 : vector<8x512xi32> to vector<8x512xf32>
    %cst_6 = arith.constant 0.000000e+00 : f32
    %22 = vector.broadcast %cst_6 : f32 to vector<8x512xf32>
    %23 = arith.mulf %6, %14 : vector<8x512xf32>
    %cst_7 = arith.constant dense<0.000000e+00> : vector<8xf32>
    %24 = vector.multi_reduction <add>, %23, %cst_7 [1] : vector<8x512xf32> to vector<8xf32>
    %25 = vector.shape_cast %24 : vector<8xf32> to vector<8x1xf32>
    %cst_8 = arith.constant 3.906250e-03 : f32
    %26 = vector.broadcast %cst_8 : f32 to vector<8x1xf32>
    %27 = arith.mulf %25, %26 : vector<8x1xf32>
    %28 = vector.broadcast %27 : vector<8x1xf32> to vector<8x512xf32>
    %29 = arith.mulf %28, %14 : vector<8x512xf32>
    %30 = arith.addf %22, %29 : vector<8x512xf32>
    %31 = arith.mulf %6, %21 : vector<8x512xf32>
    %cst_9 = arith.constant dense<0.000000e+00> : vector<8xf32>
    %32 = vector.multi_reduction <add>, %31, %cst_9 [1] : vector<8x512xf32> to vector<8xf32>
    %33 = vector.shape_cast %32 : vector<8xf32> to vector<8x1xf32>
    %cst_10 = arith.constant 3.906250e-03 : f32
    %34 = vector.broadcast %cst_10 : f32 to vector<8x1xf32>
    %35 = arith.mulf %33, %34 : vector<8x1xf32>
    %36 = vector.broadcast %35 : vector<8x1xf32> to vector<8x512xf32>
    %37 = arith.mulf %36, %21 : vector<8x512xf32>
    %38 = arith.addf %30, %37 : vector<8x512xf32>
    %39 = arith.subf %6, %38 : vector<8x512xf32>
    %cst_11 = arith.constant 0.000000e+00 : f32
    %40 = vector.broadcast %cst_11 : f32 to vector<8x512xf32>
    %41 = arith.mulf %39, %39 : vector<8x512xf32>
    %42 = arith.mulf %41, %14 : vector<8x512xf32>
    %cst_12 = arith.constant dense<0.000000e+00> : vector<8xf32>
    %43 = vector.multi_reduction <add>, %42, %cst_12 [1] : vector<8x512xf32> to vector<8xf32>
    %44 = vector.shape_cast %43 : vector<8xf32> to vector<8x1xf32>
    %cst_13 = arith.constant 3.906250e-03 : f32
    %45 = vector.broadcast %cst_13 : f32 to vector<8x1xf32>
    %46 = arith.mulf %44, %45 : vector<8x1xf32>
    %47 = vector.broadcast %46 : vector<8x1xf32> to vector<8x512xf32>
    %48 = arith.mulf %47, %14 : vector<8x512xf32>
    %49 = arith.addf %40, %48 : vector<8x512xf32>
    %50 = arith.mulf %39, %39 : vector<8x512xf32>
    %51 = arith.mulf %50, %21 : vector<8x512xf32>
    %cst_14 = arith.constant dense<0.000000e+00> : vector<8xf32>
    %52 = vector.multi_reduction <add>, %51, %cst_14 [1] : vector<8x512xf32> to vector<8xf32>
    %53 = vector.shape_cast %52 : vector<8xf32> to vector<8x1xf32>
    %cst_15 = arith.constant 3.906250e-03 : f32
    %54 = vector.broadcast %cst_15 : f32 to vector<8x1xf32>
    %55 = arith.mulf %53, %54 : vector<8x1xf32>
    %56 = vector.broadcast %55 : vector<8x1xf32> to vector<8x512xf32>
    %57 = arith.mulf %56, %21 : vector<8x512xf32>
    %58 = arith.addf %49, %57 : vector<8x512xf32>
    %cst_16 = arith.constant 9.99999974E-6 : f32
    %59 = vector.broadcast %cst_16 : f32 to vector<8x512xf32>
    %60 = arith.addf %58, %59 : vector<8x512xf32>
    %61 = math.rsqrt %60 : vector<8x512xf32>
    %62 = arith.mulf %39, %61 : vector<8x512xf32>
    %63 = vector.extract_strided_slice %3 {offsets = [0, 1], sizes = [8, 1], strides = [1, 1]} : vector<8x3xf32> to vector<8x1xf32>
    %64 = vector.broadcast %63 : vector<8x1xf32> to vector<8x512xf32>
    %65 = arith.mulf %62, %64 : vector<8x512xf32>
    %66 = vector.extract_strided_slice %3 {offsets = [0, 2], sizes = [8, 1], strides = [1, 1]} : vector<8x3xf32> to vector<8x1xf32>
    %67 = vector.broadcast %66 : vector<8x1xf32> to vector<8x512xf32>
    %68 = arith.addf %65, %67 : vector<8x512xf32>
    %cst_17 = arith.constant 0.000000e+00 : f32
    %69 = vector.broadcast %cst_17 : f32 to vector<8x512xf32>
    %70 = arith.maximumf %68, %69 : vector<8x512xf32>
    %71 = arith.truncf %70 : vector<8x512xf32> to vector<8x512xbf16>
    %c0_18 = arith.constant 0 : index
    %c0_19 = arith.constant 0 : index
    %72 = vector.load %arg4[%c0_18, %c0_19] : memref<8x512xbf16, #tpu.memory_space<vmem>>, vector<8x512xbf16>
    tpu.vector_store %arg4[%c0_18, %c0_19], %71 {strides = array<i32>} : memref<8x512xbf16, #tpu.memory_space<vmem>>, vector<8x512xbf16>,
    return
  }
  func.func @transform_0(%arg0: i32) -> (i32, i32) {
    %c0_i32 = arith.constant 0 : i32
    %c0_i32_0 = arith.constant 0 : i32
    %c0_i32_1 = arith.constant 0 : i32
    return %c0_i32, %c0_i32_0 : i32, i32
  }
  func.func @transform_1(%arg0: i32) -> (i32, i32) {
    %c0_i32 = arith.constant 0 : i32
    %c0_i32_0 = arith.constant 0 : i32
    %c0_i32_1 = arith.constant 0 : i32
    return %c0_i32, %c0_i32_0 : i32, i32
  }
  func.func @transform_2(%arg0: i32) -> (i32, i32) {
    %c0_i32 = arith.constant 0 : i32
    %c0_i32_0 = arith.constant 0 : i32
    %c0_i32_1 = arith.constant 0 : i32
    return %c0_i32, %c0_i32_0 : i32, i32
  }
  func.func @transform_3(%arg0: i32) -> (i32, i32) {
    %c0_i32 = arith.constant 0 : i32
    %c0_i32_0 = arith.constant 0 : i32
    %c0_i32_1 = arith.constant 0 : i32
    return %c0_i32, %c0_i32_0 : i32, i32
  }
}

module attributes {stable_mosaic.version = 11 : i64} {
  func.func @_conv_fused_kernel(%arg0: i32, %arg1: memref<16x72xbf16, #tpu.memory_space<vmem>>, %arg2: memref<72x128xbf16, #tpu.memory_space<vmem>>, %arg3: memref<16x3xf32, #tpu.memory_space<vmem>>, %arg4: memref<16x128xbf16, #tpu.memory_space<vmem>>) attributes {dimension_semantics = [#tpu.dimension_semantics<arbitrary>], iteration_bounds = array<i64: 1>, scalar_prefetch = 0 : i64, scratch_operands = 0 : i64, tpu.core_type = #tpu.core_type<tc>, window_params = [{pipeline_mode = #tpu.pipeline_mode<synchronous>, transform_indices = @transform_0, window_bounds = array<i64: 16, 72>}, {pipeline_mode = #tpu.pipeline_mode<synchronous>, transform_indices = @transform_1, window_bounds = array<i64: 72, 128>}, {pipeline_mode = #tpu.pipeline_mode<synchronous>, transform_indices = @transform_2, window_bounds = array<i64: 16, 3>}, {pipeline_mode = #tpu.pipeline_mode<synchronous>, transform_indices = @transform_3, window_bounds = array<i64: 16, 128>}]} {
    %c0 = arith.constant 0 : index
    %c0_0 = arith.constant 0 : index
    %0 = vector.load %arg1[%c0, %c0_0] : memref<16x72xbf16, #tpu.memory_space<vmem>>, vector<16x72xbf16>
    %c0_1 = arith.constant 0 : index
    %c0_2 = arith.constant 0 : index
    %1 = vector.load %arg2[%c0_1, %c0_2] : memref<72x128xbf16, #tpu.memory_space<vmem>>, vector<72x128xbf16>
    %cst = arith.constant dense<0.000000e+00> : vector<16x128xf32>
    %2 = tpu.matmul %0, %1, %cst {dimension_numbers = #tpu.dot_dimension_numbers<[1], [0], [0], [1], [0, 0, 1, 1], [], []>} : vector<16x72xbf16>, vector<72x128xbf16>, vector<16x128xf32> -> vector<16x128xf32>
    %c0_3 = arith.constant 0 : index
    %c0_4 = arith.constant 0 : index
    %3 = vector.load %arg3[%c0_3, %c0_4] : memref<16x3xf32, #tpu.memory_space<vmem>>, vector<16x3xf32>
    %4 = vector.extract_strided_slice %3 {offsets = [0, 0], sizes = [16, 1], strides = [1, 1]} : vector<16x3xf32> to vector<16x1xf32>
    %5 = vector.broadcast %4 : vector<16x1xf32> to vector<16x128xf32>
    %6 = arith.addf %2, %5 : vector<16x128xf32>
    %7 = tpu.iota {dimensions = array<i32: 1>} : vector<16x128xi32>
    %c0_i32 = arith.constant 0 : i32
    %8 = vector.broadcast %c0_i32 : i32 to vector<16x128xi32>
    %9 = arith.cmpi sge, %7, %8 : vector<16x128xi32>
    %c64_i32 = arith.constant 64 : i32
    %10 = vector.broadcast %c64_i32 : i32 to vector<16x128xi32>
    %11 = arith.cmpi slt, %7, %10 : vector<16x128xi32>
    %12 = arith.andi %9, %11 : vector<16x128xi1>
    %13 = arith.extui %12 : vector<16x128xi1> to vector<16x128xi32>
    %14 = arith.sitofp %13 : vector<16x128xi32> to vector<16x128xf32>
    %c64_i32_5 = arith.constant 64 : i32
    %15 = vector.broadcast %c64_i32_5 : i32 to vector<16x128xi32>
    %16 = arith.cmpi sge, %7, %15 : vector<16x128xi32>
    %c128_i32 = arith.constant 128 : i32
    %17 = vector.broadcast %c128_i32 : i32 to vector<16x128xi32>
    %18 = arith.cmpi slt, %7, %17 : vector<16x128xi32>
    %19 = arith.andi %16, %18 : vector<16x128xi1>
    %20 = arith.extui %19 : vector<16x128xi1> to vector<16x128xi32>
    %21 = arith.sitofp %20 : vector<16x128xi32> to vector<16x128xf32>
    %cst_6 = arith.constant 0.000000e+00 : f32
    %22 = vector.broadcast %cst_6 : f32 to vector<16x128xf32>
    %23 = arith.mulf %6, %14 : vector<16x128xf32>
    %cst_7 = arith.constant dense<0.000000e+00> : vector<16xf32>
    %24 = vector.multi_reduction <add>, %23, %cst_7 [1] : vector<16x128xf32> to vector<16xf32>
    %25 = vector.shape_cast %24 : vector<16xf32> to vector<16x1xf32>
    %cst_8 = arith.constant 1.562500e-02 : f32
    %26 = vector.broadcast %cst_8 : f32 to vector<16x1xf32>
    %27 = arith.mulf %25, %26 : vector<16x1xf32>
    %28 = vector.broadcast %27 : vector<16x1xf32> to vector<16x128xf32>
    %29 = arith.mulf %28, %14 : vector<16x128xf32>
    %30 = arith.addf %22, %29 : vector<16x128xf32>
    %31 = arith.mulf %6, %21 : vector<16x128xf32>
    %cst_9 = arith.constant dense<0.000000e+00> : vector<16xf32>
    %32 = vector.multi_reduction <add>, %31, %cst_9 [1] : vector<16x128xf32> to vector<16xf32>
    %33 = vector.shape_cast %32 : vector<16xf32> to vector<16x1xf32>
    %cst_10 = arith.constant 1.562500e-02 : f32
    %34 = vector.broadcast %cst_10 : f32 to vector<16x1xf32>
    %35 = arith.mulf %33, %34 : vector<16x1xf32>
    %36 = vector.broadcast %35 : vector<16x1xf32> to vector<16x128xf32>
    %37 = arith.mulf %36, %21 : vector<16x128xf32>
    %38 = arith.addf %30, %37 : vector<16x128xf32>
    %39 = arith.subf %6, %38 : vector<16x128xf32>
    %cst_11 = arith.constant 0.000000e+00 : f32
    %40 = vector.broadcast %cst_11 : f32 to vector<16x128xf32>
    %41 = arith.mulf %39, %39 : vector<16x128xf32>
    %42 = arith.mulf %41, %14 : vector<16x128xf32>
    %cst_12 = arith.constant dense<0.000000e+00> : vector<16xf32>
    %43 = vector.multi_reduction <add>, %42, %cst_12 [1] : vector<16x128xf32> to vector<16xf32>
    %44 = vector.shape_cast %43 : vector<16xf32> to vector<16x1xf32>
    %cst_13 = arith.constant 1.562500e-02 : f32
    %45 = vector.broadcast %cst_13 : f32 to vector<16x1xf32>
    %46 = arith.mulf %44, %45 : vector<16x1xf32>
    %47 = vector.broadcast %46 : vector<16x1xf32> to vector<16x128xf32>
    %48 = arith.mulf %47, %14 : vector<16x128xf32>
    %49 = arith.addf %40, %48 : vector<16x128xf32>
    %50 = arith.mulf %39, %39 : vector<16x128xf32>
    %51 = arith.mulf %50, %21 : vector<16x128xf32>
    %cst_14 = arith.constant dense<0.000000e+00> : vector<16xf32>
    %52 = vector.multi_reduction <add>, %51, %cst_14 [1] : vector<16x128xf32> to vector<16xf32>
    %53 = vector.shape_cast %52 : vector<16xf32> to vector<16x1xf32>
    %cst_15 = arith.constant 1.562500e-02 : f32
    %54 = vector.broadcast %cst_15 : f32 to vector<16x1xf32>
    %55 = arith.mulf %53, %54 : vector<16x1xf32>
    %56 = vector.broadcast %55 : vector<16x1xf32> to vector<16x128xf32>
    %57 = arith.mulf %56, %21 : vector<16x128xf32>
    %58 = arith.addf %49, %57 : vector<16x128xf32>
    %cst_16 = arith.constant 9.99999974E-6 : f32
    %59 = vector.broadcast %cst_16 : f32 to vector<16x128xf32>
    %60 = arith.addf %58, %59 : vector<16x128xf32>
    %61 = math.rsqrt %60 : vector<16x128xf32>
    %62 = arith.mulf %39, %61 : vector<16x128xf32>
    %63 = vector.extract_strided_slice %3 {offsets = [0, 1], sizes = [16, 1], strides = [1, 1]} : vector<16x3xf32> to vector<16x1xf32>
    %64 = vector.broadcast %63 : vector<16x1xf32> to vector<16x128xf32>
    %65 = arith.mulf %62, %64 : vector<16x128xf32>
    %66 = vector.extract_strided_slice %3 {offsets = [0, 2], sizes = [16, 1], strides = [1, 1]} : vector<16x3xf32> to vector<16x1xf32>
    %67 = vector.broadcast %66 : vector<16x1xf32> to vector<16x128xf32>
    %68 = arith.addf %65, %67 : vector<16x128xf32>
    %cst_17 = arith.constant 0.000000e+00 : f32
    %69 = vector.broadcast %cst_17 : f32 to vector<16x128xf32>
    %70 = arith.maximumf %68, %69 : vector<16x128xf32>
    %71 = arith.truncf %70 : vector<16x128xf32> to vector<16x128xbf16>
    %c0_18 = arith.constant 0 : index
    %c0_19 = arith.constant 0 : index
    %72 = vector.load %arg4[%c0_18, %c0_19] : memref<16x128xbf16, #tpu.memory_space<vmem>>, vector<16x128xbf16>
    tpu.vector_store %arg4[%c0_18, %c0_19], %71 {strides = array<i32>} : memref<16x128xbf16, #tpu.memory_space<vmem>>, vector<16x128xbf16>,
    return
  }
  func.func @transform_0(%arg0: i32) -> (i32, i32) {
    %c0_i32 = arith.constant 0 : i32
    %c0_i32_0 = arith.constant 0 : i32
    %c0_i32_1 = arith.constant 0 : i32
    return %c0_i32, %c0_i32_0 : i32, i32
  }
  func.func @transform_1(%arg0: i32) -> (i32, i32) {
    %c0_i32 = arith.constant 0 : i32
    %c0_i32_0 = arith.constant 0 : i32
    %c0_i32_1 = arith.constant 0 : i32
    return %c0_i32, %c0_i32_0 : i32, i32
  }
  func.func @transform_2(%arg0: i32) -> (i32, i32) {
    %c0_i32 = arith.constant 0 : i32
    %c0_i32_0 = arith.constant 0 : i32
    %c0_i32_1 = arith.constant 0 : i32
    return %c0_i32, %c0_i32_0 : i32, i32
  }
  func.func @transform_3(%arg0: i32) -> (i32, i32) {
    %c0_i32 = arith.constant 0 : i32
    %c0_i32_0 = arith.constant 0 : i32
    %c0_i32_1 = arith.constant 0 : i32
    return %c0_i32, %c0_i32_0 : i32, i32
  }
}

module attributes {stable_mosaic.version = 11 : i64} {
  func.func @_conv_fused_kernel(%arg0: i32, %arg1: memref<32x144xbf16, #tpu.memory_space<vmem>>, %arg2: memref<144x32xbf16, #tpu.memory_space<vmem>>, %arg3: memref<32x3xf32, #tpu.memory_space<vmem>>, %arg4: memref<32x32xbf16, #tpu.memory_space<vmem>>) attributes {dimension_semantics = [#tpu.dimension_semantics<arbitrary>], iteration_bounds = array<i64: 1>, scalar_prefetch = 0 : i64, scratch_operands = 0 : i64, tpu.core_type = #tpu.core_type<tc>, window_params = [{pipeline_mode = #tpu.pipeline_mode<synchronous>, transform_indices = @transform_0, window_bounds = array<i64: 32, 144>}, {pipeline_mode = #tpu.pipeline_mode<synchronous>, transform_indices = @transform_1, window_bounds = array<i64: 144, 32>}, {pipeline_mode = #tpu.pipeline_mode<synchronous>, transform_indices = @transform_2, window_bounds = array<i64: 32, 3>}, {pipeline_mode = #tpu.pipeline_mode<synchronous>, transform_indices = @transform_3, window_bounds = array<i64: 32, 32>}]} {
    %c0 = arith.constant 0 : index
    %c0_0 = arith.constant 0 : index
    %0 = vector.load %arg1[%c0, %c0_0] : memref<32x144xbf16, #tpu.memory_space<vmem>>, vector<32x144xbf16>
    %c0_1 = arith.constant 0 : index
    %c0_2 = arith.constant 0 : index
    %1 = vector.load %arg2[%c0_1, %c0_2] : memref<144x32xbf16, #tpu.memory_space<vmem>>, vector<144x32xbf16>
    %cst = arith.constant dense<0.000000e+00> : vector<32x32xf32>
    %2 = tpu.matmul %0, %1, %cst {dimension_numbers = #tpu.dot_dimension_numbers<[1], [0], [0], [1], [0, 0, 1, 1], [], []>} : vector<32x144xbf16>, vector<144x32xbf16>, vector<32x32xf32> -> vector<32x32xf32>
    %c0_3 = arith.constant 0 : index
    %c0_4 = arith.constant 0 : index
    %3 = vector.load %arg3[%c0_3, %c0_4] : memref<32x3xf32, #tpu.memory_space<vmem>>, vector<32x3xf32>
    %4 = vector.extract_strided_slice %3 {offsets = [0, 0], sizes = [32, 1], strides = [1, 1]} : vector<32x3xf32> to vector<32x1xf32>
    %5 = vector.broadcast %4 : vector<32x1xf32> to vector<32x32xf32>
    %6 = arith.addf %2, %5 : vector<32x32xf32>
    %7 = tpu.iota {dimensions = array<i32: 1>} : vector<32x32xi32>
    %c0_i32 = arith.constant 0 : i32
    %8 = vector.broadcast %c0_i32 : i32 to vector<32x32xi32>
    %9 = arith.cmpi sge, %7, %8 : vector<32x32xi32>
    %c16_i32 = arith.constant 16 : i32
    %10 = vector.broadcast %c16_i32 : i32 to vector<32x32xi32>
    %11 = arith.cmpi slt, %7, %10 : vector<32x32xi32>
    %12 = arith.andi %9, %11 : vector<32x32xi1>
    %13 = arith.extui %12 : vector<32x32xi1> to vector<32x32xi32>
    %14 = arith.sitofp %13 : vector<32x32xi32> to vector<32x32xf32>
    %c16_i32_5 = arith.constant 16 : i32
    %15 = vector.broadcast %c16_i32_5 : i32 to vector<32x32xi32>
    %16 = arith.cmpi sge, %7, %15 : vector<32x32xi32>
    %c32_i32 = arith.constant 32 : i32
    %17 = vector.broadcast %c32_i32 : i32 to vector<32x32xi32>
    %18 = arith.cmpi slt, %7, %17 : vector<32x32xi32>
    %19 = arith.andi %16, %18 : vector<32x32xi1>
    %20 = arith.extui %19 : vector<32x32xi1> to vector<32x32xi32>
    %21 = arith.sitofp %20 : vector<32x32xi32> to vector<32x32xf32>
    %cst_6 = arith.constant 0.000000e+00 : f32
    %22 = vector.broadcast %cst_6 : f32 to vector<32x32xf32>
    %23 = arith.mulf %6, %14 : vector<32x32xf32>
    %cst_7 = arith.constant dense<0.000000e+00> : vector<32xf32>
    %24 = vector.multi_reduction <add>, %23, %cst_7 [1] : vector<32x32xf32> to vector<32xf32>
    %25 = vector.shape_cast %24 : vector<32xf32> to vector<32x1xf32>
    %cst_8 = arith.constant 6.250000e-02 : f32
    %26 = vector.broadcast %cst_8 : f32 to vector<32x1xf32>
    %27 = arith.mulf %25, %26 : vector<32x1xf32>
    %28 = vector.broadcast %27 : vector<32x1xf32> to vector<32x32xf32>
    %29 = arith.mulf %28, %14 : vector<32x32xf32>
    %30 = arith.addf %22, %29 : vector<32x32xf32>
    %31 = arith.mulf %6, %21 : vector<32x32xf32>
    %cst_9 = arith.constant dense<0.000000e+00> : vector<32xf32>
    %32 = vector.multi_reduction <add>, %31, %cst_9 [1] : vector<32x32xf32> to vector<32xf32>
    %33 = vector.shape_cast %32 : vector<32xf32> to vector<32x1xf32>
    %cst_10 = arith.constant 6.250000e-02 : f32
    %34 = vector.broadcast %cst_10 : f32 to vector<32x1xf32>
    %35 = arith.mulf %33, %34 : vector<32x1xf32>
    %36 = vector.broadcast %35 : vector<32x1xf32> to vector<32x32xf32>
    %37 = arith.mulf %36, %21 : vector<32x32xf32>
    %38 = arith.addf %30, %37 : vector<32x32xf32>
    %39 = arith.subf %6, %38 : vector<32x32xf32>
    %cst_11 = arith.constant 0.000000e+00 : f32
    %40 = vector.broadcast %cst_11 : f32 to vector<32x32xf32>
    %41 = arith.mulf %39, %39 : vector<32x32xf32>
    %42 = arith.mulf %41, %14 : vector<32x32xf32>
    %cst_12 = arith.constant dense<0.000000e+00> : vector<32xf32>
    %43 = vector.multi_reduction <add>, %42, %cst_12 [1] : vector<32x32xf32> to vector<32xf32>
    %44 = vector.shape_cast %43 : vector<32xf32> to vector<32x1xf32>
    %cst_13 = arith.constant 6.250000e-02 : f32
    %45 = vector.broadcast %cst_13 : f32 to vector<32x1xf32>
    %46 = arith.mulf %44, %45 : vector<32x1xf32>
    %47 = vector.broadcast %46 : vector<32x1xf32> to vector<32x32xf32>
    %48 = arith.mulf %47, %14 : vector<32x32xf32>
    %49 = arith.addf %40, %48 : vector<32x32xf32>
    %50 = arith.mulf %39, %39 : vector<32x32xf32>
    %51 = arith.mulf %50, %21 : vector<32x32xf32>
    %cst_14 = arith.constant dense<0.000000e+00> : vector<32xf32>
    %52 = vector.multi_reduction <add>, %51, %cst_14 [1] : vector<32x32xf32> to vector<32xf32>
    %53 = vector.shape_cast %52 : vector<32xf32> to vector<32x1xf32>
    %cst_15 = arith.constant 6.250000e-02 : f32
    %54 = vector.broadcast %cst_15 : f32 to vector<32x1xf32>
    %55 = arith.mulf %53, %54 : vector<32x1xf32>
    %56 = vector.broadcast %55 : vector<32x1xf32> to vector<32x32xf32>
    %57 = arith.mulf %56, %21 : vector<32x32xf32>
    %58 = arith.addf %49, %57 : vector<32x32xf32>
    %cst_16 = arith.constant 9.99999974E-6 : f32
    %59 = vector.broadcast %cst_16 : f32 to vector<32x32xf32>
    %60 = arith.addf %58, %59 : vector<32x32xf32>
    %61 = math.rsqrt %60 : vector<32x32xf32>
    %62 = arith.mulf %39, %61 : vector<32x32xf32>
    %63 = vector.extract_strided_slice %3 {offsets = [0, 1], sizes = [32, 1], strides = [1, 1]} : vector<32x3xf32> to vector<32x1xf32>
    %64 = vector.broadcast %63 : vector<32x1xf32> to vector<32x32xf32>
    %65 = arith.mulf %62, %64 : vector<32x32xf32>
    %66 = vector.extract_strided_slice %3 {offsets = [0, 2], sizes = [32, 1], strides = [1, 1]} : vector<32x3xf32> to vector<32x1xf32>
    %67 = vector.broadcast %66 : vector<32x1xf32> to vector<32x32xf32>
    %68 = arith.addf %65, %67 : vector<32x32xf32>
    %cst_17 = arith.constant 0.000000e+00 : f32
    %69 = vector.broadcast %cst_17 : f32 to vector<32x32xf32>
    %70 = arith.maximumf %68, %69 : vector<32x32xf32>
    %71 = arith.truncf %70 : vector<32x32xf32> to vector<32x32xbf16>
    %c0_18 = arith.constant 0 : index
    %c0_19 = arith.constant 0 : index
    %72 = vector.load %arg4[%c0_18, %c0_19] : memref<32x32xbf16, #tpu.memory_space<vmem>>, vector<32x32xbf16>
    tpu.vector_store %arg4[%c0_18, %c0_19], %71 {strides = array<i32>} : memref<32x32xbf16, #tpu.memory_space<vmem>>, vector<32x32xbf16>,
    return
  }
  func.func @transform_0(%arg0: i32) -> (i32, i32) {
    %c0_i32 = arith.constant 0 : i32
    %c0_i32_0 = arith.constant 0 : i32
    %c0_i32_1 = arith.constant 0 : i32
    return %c0_i32, %c0_i32_0 : i32, i32
  }
  func.func @transform_1(%arg0: i32) -> (i32, i32) {
    %c0_i32 = arith.constant 0 : i32
    %c0_i32_0 = arith.constant 0 : i32
    %c0_i32_1 = arith.constant 0 : i32
    return %c0_i32, %c0_i32_0 : i32, i32
  }
  func.func @transform_2(%arg0: i32) -> (i32, i32) {
    %c0_i32 = arith.constant 0 : i32
    %c0_i32_0 = arith.constant 0 : i32
    %c0_i32_1 = arith.constant 0 : i32
    return %c0_i32, %c0_i32_0 : i32, i32
  }
  func.func @transform_3(%arg0: i32) -> (i32, i32) {
    %c0_i32 = arith.constant 0 : i32
    %c0_i32_0 = arith.constant 0 : i32
    %c0_i32_1 = arith.constant 0 : i32
    return %c0_i32, %c0_i32_0 : i32, i32
  }
}

module attributes {stable_mosaic.version = 11 : i64} {
  func.func @_res_stack_kernel(%arg0: i32, %arg1: memref<32x32xbf16, #tpu.memory_space<vmem>>, %arg2: memref<32x288xbf16, #tpu.memory_space<vmem>>, %arg3: memref<32x288xbf16, #tpu.memory_space<vmem>>, %arg4: memref<9x32x32xbf16, #tpu.memory_space<vmem>>, %arg5: memref<32x3xf32, #tpu.memory_space<vmem>>, %arg6: memref<32x2xf32, #tpu.memory_space<vmem>>, %arg7: memref<1x2xf32, #tpu.memory_space<vmem>>, %arg8: memref<32x2xf32, #tpu.memory_space<vmem>>, %arg9: memref<32x32xbf16, #tpu.memory_space<vmem>>, %arg10: memref<32x32xf32, #tpu.memory_space<vmem>>, %arg11: memref<288x32xbf16, #tpu.memory_space<vmem>>) attributes {dimension_semantics = [#tpu.dimension_semantics<arbitrary>], iteration_bounds = array<i64: 1>, scalar_prefetch = 0 : i64, scratch_operands = 2 : i64, tpu.core_type = #tpu.core_type<tc>, window_params = [{pipeline_mode = #tpu.pipeline_mode<synchronous>, transform_indices = @transform_0, window_bounds = array<i64: 32, 32>}, {pipeline_mode = #tpu.pipeline_mode<synchronous>, transform_indices = @transform_1, window_bounds = array<i64: 32, 288>}, {pipeline_mode = #tpu.pipeline_mode<synchronous>, transform_indices = @transform_2, window_bounds = array<i64: 32, 288>}, {pipeline_mode = #tpu.pipeline_mode<synchronous>, transform_indices = @transform_3, window_bounds = array<i64: 9, 32, 32>}, {pipeline_mode = #tpu.pipeline_mode<synchronous>, transform_indices = @transform_4, window_bounds = array<i64: 32, 3>}, {pipeline_mode = #tpu.pipeline_mode<synchronous>, transform_indices = @transform_5, window_bounds = array<i64: 32, 2>}, {pipeline_mode = #tpu.pipeline_mode<synchronous>, transform_indices = @transform_6, window_bounds = array<i64: 1, 2>}, {pipeline_mode = #tpu.pipeline_mode<synchronous>, transform_indices = @transform_7, window_bounds = array<i64: 32, 2>}, {pipeline_mode = #tpu.pipeline_mode<synchronous>, transform_indices = @transform_8, window_bounds = array<i64: 32, 32>}]} {
    %c0 = arith.constant 0 : index
    %c0_0 = arith.constant 0 : index
    %0 = vector.load %arg1[%c0, %c0_0] : memref<32x32xbf16, #tpu.memory_space<vmem>>, vector<32x32xbf16>
    %1 = arith.extf %0 : vector<32x32xbf16> to vector<32x32xf32>
    %c0_1 = arith.constant 0 : index
    %c0_2 = arith.constant 0 : index
    %2 = vector.load %arg10[%c0_1, %c0_2] : memref<32x32xf32, #tpu.memory_space<vmem>>, vector<32x32xf32>
    tpu.vector_store %arg10[%c0_1, %c0_2], %1 {strides = array<i32>} : memref<32x32xf32, #tpu.memory_space<vmem>>, vector<32x32xf32>,
    %3 = tpu.iota {dimensions = array<i32: 1>} : vector<32x32xi32>
    %c0_i32 = arith.constant 0 : i32
    %4 = vector.broadcast %c0_i32 : i32 to vector<32x32xi32>
    %5 = arith.cmpi sge, %3, %4 : vector<32x32xi32>
    %c16_i32 = arith.constant 16 : i32
    %6 = vector.broadcast %c16_i32 : i32 to vector<32x32xi32>
    %7 = arith.cmpi slt, %3, %6 : vector<32x32xi32>
    %8 = arith.andi %5, %7 : vector<32x32xi1>
    %9 = arith.extui %8 : vector<32x32xi1> to vector<32x32xi32>
    %10 = arith.sitofp %9 : vector<32x32xi32> to vector<32x32xf32>
    %c16_i32_3 = arith.constant 16 : i32
    %11 = vector.broadcast %c16_i32_3 : i32 to vector<32x32xi32>
    %12 = arith.cmpi sge, %3, %11 : vector<32x32xi32>
    %c32_i32 = arith.constant 32 : i32
    %13 = vector.broadcast %c32_i32 : i32 to vector<32x32xi32>
    %14 = arith.cmpi slt, %3, %13 : vector<32x32xi32>
    %15 = arith.andi %12, %14 : vector<32x32xi1>
    %16 = arith.extui %15 : vector<32x32xi1> to vector<32x32xi32>
    %17 = arith.sitofp %16 : vector<32x32xi32> to vector<32x32xf32>
    %c0_4 = arith.constant 0 : index
    %c0_5 = arith.constant 0 : index
    %18 = vector.load %arg5[%c0_4, %c0_5] : memref<32x3xf32, #tpu.memory_space<vmem>>, vector<32x3xf32>
    %19 = vector.extract_strided_slice %18 {offsets = [0, 0], sizes = [32, 1], strides = [1, 1]} : vector<32x3xf32> to vector<32x1xf32>
    %20 = vector.extract_strided_slice %18 {offsets = [0, 1], sizes = [32, 1], strides = [1, 1]} : vector<32x3xf32> to vector<32x1xf32>
    %21 = vector.extract_strided_slice %18 {offsets = [0, 2], sizes = [32, 1], strides = [1, 1]} : vector<32x3xf32> to vector<32x1xf32>
    %c0_6 = arith.constant 0 : index
    %c0_7 = arith.constant 0 : index
    %22 = vector.load %arg10[%c0_6, %c0_7] : memref<32x32xf32, #tpu.memory_space<vmem>>, vector<32x32xf32>
    %23 = arith.truncf %22 : vector<32x32xf32> to vector<32x32xbf16>
    %c0_8 = arith.constant 0 : index
    %c0_9 = arith.constant 0 : index
    %c0_10 = arith.constant 0 : index
    %24 = vector.load %arg4[%c0_8, %c0_9, %c0_10] : memref<9x32x32xbf16, #tpu.memory_space<vmem>>, vector<1x32x32xbf16>
    %25 = vector.shape_cast %24 : vector<1x32x32xbf16> to vector<32x32xbf16>
    %cst = arith.constant dense<0.000000e+00> : vector<32x32xf32>
    %26 = tpu.matmul %23, %25, %cst {dimension_numbers = #tpu.dot_dimension_numbers<[1], [0], [0], [1], [0, 0, 1, 1], [], []>} : vector<32x32xbf16>, vector<32x32xbf16>, vector<32x32xf32> -> vector<32x32xf32>
    %27 = arith.truncf %26 : vector<32x32xf32> to vector<32x32xbf16>
    %c0_11 = arith.constant 0 : index
    %c0_12 = arith.constant 0 : index
    %28 = vector.load %arg11[%c0_11, %c0_12] : memref<288x32xbf16, #tpu.memory_space<vmem>>, vector<32x32xbf16>
    tpu.vector_store %arg11[%c0_11, %c0_12], %27 {strides = array<i32>} : memref<288x32xbf16, #tpu.memory_space<vmem>>, vector<32x32xbf16>,
    %c1 = arith.constant 1 : index
    %c0_13 = arith.constant 0 : index
    %c0_14 = arith.constant 0 : index
    %29 = vector.load %arg4[%c1, %c0_13, %c0_14] : memref<9x32x32xbf16, #tpu.memory_space<vmem>>, vector<1x32x32xbf16>
    %30 = vector.shape_cast %29 : vector<1x32x32xbf16> to vector<32x32xbf16>
    %cst_15 = arith.constant dense<0.000000e+00> : vector<32x32xf32>
    %31 = tpu.matmul %23, %30, %cst_15 {dimension_numbers = #tpu.dot_dimension_numbers<[1], [0], [0], [1], [0, 0, 1, 1], [], []>} : vector<32x32xbf16>, vector<32x32xbf16>, vector<32x32xf32> -> vector<32x32xf32>
    %32 = arith.truncf %31 : vector<32x32xf32> to vector<32x32xbf16>
    %c32 = arith.constant 32 : index
    %c0_16 = arith.constant 0 : index
    %33 = vector.load %arg11[%c32, %c0_16] : memref<288x32xbf16, #tpu.memory_space<vmem>>, vector<32x32xbf16>
    tpu.vector_store %arg11[%c32, %c0_16], %32 {strides = array<i32>} : memref<288x32xbf16, #tpu.memory_space<vmem>>, vector<32x32xbf16>,
    %c2 = arith.constant 2 : index
    %c0_17 = arith.constant 0 : index
    %c0_18 = arith.constant 0 : index
    %34 = vector.load %arg4[%c2, %c0_17, %c0_18] : memref<9x32x32xbf16, #tpu.memory_space<vmem>>, vector<1x32x32xbf16>
    %35 = vector.shape_cast %34 : vector<1x32x32xbf16> to vector<32x32xbf16>
    %cst_19 = arith.constant dense<0.000000e+00> : vector<32x32xf32>
    %36 = tpu.matmul %23, %35, %cst_19 {dimension_numbers = #tpu.dot_dimension_numbers<[1], [0], [0], [1], [0, 0, 1, 1], [], []>} : vector<32x32xbf16>, vector<32x32xbf16>, vector<32x32xf32> -> vector<32x32xf32>
    %37 = arith.truncf %36 : vector<32x32xf32> to vector<32x32xbf16>
    %c64 = arith.constant 64 : index
    %c0_20 = arith.constant 0 : index
    %38 = vector.load %arg11[%c64, %c0_20] : memref<288x32xbf16, #tpu.memory_space<vmem>>, vector<32x32xbf16>
    tpu.vector_store %arg11[%c64, %c0_20], %37 {strides = array<i32>} : memref<288x32xbf16, #tpu.memory_space<vmem>>, vector<32x32xbf16>,
    %c3 = arith.constant 3 : index
    %c0_21 = arith.constant 0 : index
    %c0_22 = arith.constant 0 : index
    %39 = vector.load %arg4[%c3, %c0_21, %c0_22] : memref<9x32x32xbf16, #tpu.memory_space<vmem>>, vector<1x32x32xbf16>
    %40 = vector.shape_cast %39 : vector<1x32x32xbf16> to vector<32x32xbf16>
    %cst_23 = arith.constant dense<0.000000e+00> : vector<32x32xf32>
    %41 = tpu.matmul %23, %40, %cst_23 {dimension_numbers = #tpu.dot_dimension_numbers<[1], [0], [0], [1], [0, 0, 1, 1], [], []>} : vector<32x32xbf16>, vector<32x32xbf16>, vector<32x32xf32> -> vector<32x32xf32>
    %42 = arith.truncf %41 : vector<32x32xf32> to vector<32x32xbf16>
    %c96 = arith.constant 96 : index
    %c0_24 = arith.constant 0 : index
    %43 = vector.load %arg11[%c96, %c0_24] : memref<288x32xbf16, #tpu.memory_space<vmem>>, vector<32x32xbf16>
    tpu.vector_store %arg11[%c96, %c0_24], %42 {strides = array<i32>} : memref<288x32xbf16, #tpu.memory_space<vmem>>, vector<32x32xbf16>,
    %c4 = arith.constant 4 : index
    %c0_25 = arith.constant 0 : index
    %c0_26 = arith.constant 0 : index
    %44 = vector.load %arg4[%c4, %c0_25, %c0_26] : memref<9x32x32xbf16, #tpu.memory_space<vmem>>, vector<1x32x32xbf16>
    %45 = vector.shape_cast %44 : vector<1x32x32xbf16> to vector<32x32xbf16>
    %cst_27 = arith.constant dense<0.000000e+00> : vector<32x32xf32>
    %46 = tpu.matmul %23, %45, %cst_27 {dimension_numbers = #tpu.dot_dimension_numbers<[1], [0], [0], [1], [0, 0, 1, 1], [], []>} : vector<32x32xbf16>, vector<32x32xbf16>, vector<32x32xf32> -> vector<32x32xf32>
    %47 = arith.truncf %46 : vector<32x32xf32> to vector<32x32xbf16>
    %c128 = arith.constant 128 : index
    %c0_28 = arith.constant 0 : index
    %48 = vector.load %arg11[%c128, %c0_28] : memref<288x32xbf16, #tpu.memory_space<vmem>>, vector<32x32xbf16>
    tpu.vector_store %arg11[%c128, %c0_28], %47 {strides = array<i32>} : memref<288x32xbf16, #tpu.memory_space<vmem>>, vector<32x32xbf16>,
    %c5 = arith.constant 5 : index
    %c0_29 = arith.constant 0 : index
    %c0_30 = arith.constant 0 : index
    %49 = vector.load %arg4[%c5, %c0_29, %c0_30] : memref<9x32x32xbf16, #tpu.memory_space<vmem>>, vector<1x32x32xbf16>
    %50 = vector.shape_cast %49 : vector<1x32x32xbf16> to vector<32x32xbf16>
    %cst_31 = arith.constant dense<0.000000e+00> : vector<32x32xf32>
    %51 = tpu.matmul %23, %50, %cst_31 {dimension_numbers = #tpu.dot_dimension_numbers<[1], [0], [0], [1], [0, 0, 1, 1], [], []>} : vector<32x32xbf16>, vector<32x32xbf16>, vector<32x32xf32> -> vector<32x32xf32>
    %52 = arith.truncf %51 : vector<32x32xf32> to vector<32x32xbf16>
    %c160 = arith.constant 160 : index
    %c0_32 = arith.constant 0 : index
    %53 = vector.load %arg11[%c160, %c0_32] : memref<288x32xbf16, #tpu.memory_space<vmem>>, vector<32x32xbf16>
    tpu.vector_store %arg11[%c160, %c0_32], %52 {strides = array<i32>} : memref<288x32xbf16, #tpu.memory_space<vmem>>, vector<32x32xbf16>,
    %c6 = arith.constant 6 : index
    %c0_33 = arith.constant 0 : index
    %c0_34 = arith.constant 0 : index
    %54 = vector.load %arg4[%c6, %c0_33, %c0_34] : memref<9x32x32xbf16, #tpu.memory_space<vmem>>, vector<1x32x32xbf16>
    %55 = vector.shape_cast %54 : vector<1x32x32xbf16> to vector<32x32xbf16>
    %cst_35 = arith.constant dense<0.000000e+00> : vector<32x32xf32>
    %56 = tpu.matmul %23, %55, %cst_35 {dimension_numbers = #tpu.dot_dimension_numbers<[1], [0], [0], [1], [0, 0, 1, 1], [], []>} : vector<32x32xbf16>, vector<32x32xbf16>, vector<32x32xf32> -> vector<32x32xf32>
    %57 = arith.truncf %56 : vector<32x32xf32> to vector<32x32xbf16>
    %c192 = arith.constant 192 : index
    %c0_36 = arith.constant 0 : index
    %58 = vector.load %arg11[%c192, %c0_36] : memref<288x32xbf16, #tpu.memory_space<vmem>>, vector<32x32xbf16>
    tpu.vector_store %arg11[%c192, %c0_36], %57 {strides = array<i32>} : memref<288x32xbf16, #tpu.memory_space<vmem>>, vector<32x32xbf16>,
    %c7 = arith.constant 7 : index
    %c0_37 = arith.constant 0 : index
    %c0_38 = arith.constant 0 : index
    %59 = vector.load %arg4[%c7, %c0_37, %c0_38] : memref<9x32x32xbf16, #tpu.memory_space<vmem>>, vector<1x32x32xbf16>
    %60 = vector.shape_cast %59 : vector<1x32x32xbf16> to vector<32x32xbf16>
    %cst_39 = arith.constant dense<0.000000e+00> : vector<32x32xf32>
    %61 = tpu.matmul %23, %60, %cst_39 {dimension_numbers = #tpu.dot_dimension_numbers<[1], [0], [0], [1], [0, 0, 1, 1], [], []>} : vector<32x32xbf16>, vector<32x32xbf16>, vector<32x32xf32> -> vector<32x32xf32>
    %62 = arith.truncf %61 : vector<32x32xf32> to vector<32x32xbf16>
    %c224 = arith.constant 224 : index
    %c0_40 = arith.constant 0 : index
    %63 = vector.load %arg11[%c224, %c0_40] : memref<288x32xbf16, #tpu.memory_space<vmem>>, vector<32x32xbf16>
    tpu.vector_store %arg11[%c224, %c0_40], %62 {strides = array<i32>} : memref<288x32xbf16, #tpu.memory_space<vmem>>, vector<32x32xbf16>,
    %c8 = arith.constant 8 : index
    %c0_41 = arith.constant 0 : index
    %c0_42 = arith.constant 0 : index
    %64 = vector.load %arg4[%c8, %c0_41, %c0_42] : memref<9x32x32xbf16, #tpu.memory_space<vmem>>, vector<1x32x32xbf16>
    %65 = vector.shape_cast %64 : vector<1x32x32xbf16> to vector<32x32xbf16>
    %cst_43 = arith.constant dense<0.000000e+00> : vector<32x32xf32>
    %66 = tpu.matmul %23, %65, %cst_43 {dimension_numbers = #tpu.dot_dimension_numbers<[1], [0], [0], [1], [0, 0, 1, 1], [], []>} : vector<32x32xbf16>, vector<32x32xbf16>, vector<32x32xf32> -> vector<32x32xf32>
    %67 = arith.truncf %66 : vector<32x32xf32> to vector<32x32xbf16>
    %c256 = arith.constant 256 : index
    %c0_44 = arith.constant 0 : index
    %68 = vector.load %arg11[%c256, %c0_44] : memref<288x32xbf16, #tpu.memory_space<vmem>>, vector<32x32xbf16>
    tpu.vector_store %arg11[%c256, %c0_44], %67 {strides = array<i32>} : memref<288x32xbf16, #tpu.memory_space<vmem>>, vector<32x32xbf16>,
    %c0_45 = arith.constant 0 : index
    %c0_46 = arith.constant 0 : index
    %69 = vector.load %arg2[%c0_45, %c0_46] : memref<32x288xbf16, #tpu.memory_space<vmem>>, vector<32x288xbf16>
    %c0_47 = arith.constant 0 : index
    %c0_48 = arith.constant 0 : index
    %70 = vector.load %arg11[%c0_47, %c0_48] : memref<288x32xbf16, #tpu.memory_space<vmem>>, vector<288x32xbf16>
    %cst_49 = arith.constant dense<0.000000e+00> : vector<32x32xf32>
    %71 = tpu.matmul %69, %70, %cst_49 {dimension_numbers = #tpu.dot_dimension_numbers<[1], [0], [0], [1], [0, 0, 1, 1], [], []>} : vector<32x288xbf16>, vector<288x32xbf16>, vector<32x32xf32> -> vector<32x32xf32>
    %72 = vector.broadcast %19 : vector<32x1xf32> to vector<32x32xf32>
    %73 = arith.addf %71, %72 : vector<32x32xf32>
    %cst_50 = arith.constant 0.000000e+00 : f32
    %74 = vector.broadcast %cst_50 : f32 to vector<32x32xf32>
    %75 = arith.mulf %73, %10 : vector<32x32xf32>
    %cst_51 = arith.constant dense<0.000000e+00> : vector<32xf32>
    %76 = vector.multi_reduction <add>, %75, %cst_51 [1] : vector<32x32xf32> to vector<32xf32>
    %77 = vector.shape_cast %76 : vector<32xf32> to vector<32x1xf32>
    %cst_52 = arith.constant 6.250000e-02 : f32
    %78 = vector.broadcast %cst_52 : f32 to vector<32x1xf32>
    %79 = arith.mulf %77, %78 : vector<32x1xf32>
    %80 = vector.broadcast %79 : vector<32x1xf32> to vector<32x32xf32>
    %81 = arith.mulf %80, %10 : vector<32x32xf32>
    %82 = arith.addf %74, %81 : vector<32x32xf32>
    %83 = arith.mulf %73, %17 : vector<32x32xf32>
    %cst_53 = arith.constant dense<0.000000e+00> : vector<32xf32>
    %84 = vector.multi_reduction <add>, %83, %cst_53 [1] : vector<32x32xf32> to vector<32xf32>
    %85 = vector.shape_cast %84 : vector<32xf32> to vector<32x1xf32>
    %cst_54 = arith.constant 6.250000e-02 : f32
    %86 = vector.broadcast %cst_54 : f32 to vector<32x1xf32>
    %87 = arith.mulf %85, %86 : vector<32x1xf32>
    %88 = vector.broadcast %87 : vector<32x1xf32> to vector<32x32xf32>
    %89 = arith.mulf %88, %17 : vector<32x32xf32>
    %90 = arith.addf %82, %89 : vector<32x32xf32>
    %91 = arith.subf %73, %90 : vector<32x32xf32>
    %cst_55 = arith.constant 0.000000e+00 : f32
    %92 = vector.broadcast %cst_55 : f32 to vector<32x32xf32>
    %93 = arith.mulf %91, %91 : vector<32x32xf32>
    %94 = arith.mulf %93, %10 : vector<32x32xf32>
    %cst_56 = arith.constant dense<0.000000e+00> : vector<32xf32>
    %95 = vector.multi_reduction <add>, %94, %cst_56 [1] : vector<32x32xf32> to vector<32xf32>
    %96 = vector.shape_cast %95 : vector<32xf32> to vector<32x1xf32>
    %cst_57 = arith.constant 6.250000e-02 : f32
    %97 = vector.broadcast %cst_57 : f32 to vector<32x1xf32>
    %98 = arith.mulf %96, %97 : vector<32x1xf32>
    %99 = vector.broadcast %98 : vector<32x1xf32> to vector<32x32xf32>
    %100 = arith.mulf %99, %10 : vector<32x32xf32>
    %101 = arith.addf %92, %100 : vector<32x32xf32>
    %102 = arith.mulf %91, %91 : vector<32x32xf32>
    %103 = arith.mulf %102, %17 : vector<32x32xf32>
    %cst_58 = arith.constant dense<0.000000e+00> : vector<32xf32>
    %104 = vector.multi_reduction <add>, %103, %cst_58 [1] : vector<32x32xf32> to vector<32xf32>
    %105 = vector.shape_cast %104 : vector<32xf32> to vector<32x1xf32>
    %cst_59 = arith.constant 6.250000e-02 : f32
    %106 = vector.broadcast %cst_59 : f32 to vector<32x1xf32>
    %107 = arith.mulf %105, %106 : vector<32x1xf32>
    %108 = vector.broadcast %107 : vector<32x1xf32> to vector<32x32xf32>
    %109 = arith.mulf %108, %17 : vector<32x32xf32>
    %110 = arith.addf %101, %109 : vector<32x32xf32>
    %cst_60 = arith.constant 9.99999974E-6 : f32
    %111 = vector.broadcast %cst_60 : f32 to vector<32x32xf32>
    %112 = arith.addf %110, %111 : vector<32x32xf32>
    %113 = math.rsqrt %112 : vector<32x32xf32>
    %114 = arith.mulf %91, %113 : vector<32x32xf32>
    %cst_61 = arith.constant 0.000000e+00 : f32
    %115 = vector.broadcast %cst_61 : f32 to vector<32x32xf32>
    %116 = arith.maximumf %114, %115 : vector<32x32xf32>
    %117 = arith.truncf %116 : vector<32x32xf32> to vector<32x32xbf16>
    %c0_62 = arith.constant 0 : index
    %c0_63 = arith.constant 0 : index
    %c0_64 = arith.constant 0 : index
    %118 = vector.load %arg4[%c0_62, %c0_63, %c0_64] : memref<9x32x32xbf16, #tpu.memory_space<vmem>>, vector<1x32x32xbf16>
    %119 = vector.shape_cast %118 : vector<1x32x32xbf16> to vector<32x32xbf16>
    %cst_65 = arith.constant dense<0.000000e+00> : vector<32x32xf32>
    %120 = tpu.matmul %117, %119, %cst_65 {dimension_numbers = #tpu.dot_dimension_numbers<[1], [0], [0], [1], [0, 0, 1, 1], [], []>} : vector<32x32xbf16>, vector<32x32xbf16>, vector<32x32xf32> -> vector<32x32xf32>
    %121 = arith.truncf %120 : vector<32x32xf32> to vector<32x32xbf16>
    %c0_66 = arith.constant 0 : index
    %c0_67 = arith.constant 0 : index
    %122 = vector.load %arg11[%c0_66, %c0_67] : memref<288x32xbf16, #tpu.memory_space<vmem>>, vector<32x32xbf16>
    tpu.vector_store %arg11[%c0_66, %c0_67], %121 {strides = array<i32>} : memref<288x32xbf16, #tpu.memory_space<vmem>>, vector<32x32xbf16>,
    %c1_68 = arith.constant 1 : index
    %c0_69 = arith.constant 0 : index
    %c0_70 = arith.constant 0 : index
    %123 = vector.load %arg4[%c1_68, %c0_69, %c0_70] : memref<9x32x32xbf16, #tpu.memory_space<vmem>>, vector<1x32x32xbf16>
    %124 = vector.shape_cast %123 : vector<1x32x32xbf16> to vector<32x32xbf16>
    %cst_71 = arith.constant dense<0.000000e+00> : vector<32x32xf32>
    %125 = tpu.matmul %117, %124, %cst_71 {dimension_numbers = #tpu.dot_dimension_numbers<[1], [0], [0], [1], [0, 0, 1, 1], [], []>} : vector<32x32xbf16>, vector<32x32xbf16>, vector<32x32xf32> -> vector<32x32xf32>
    %126 = arith.truncf %125 : vector<32x32xf32> to vector<32x32xbf16>
    %c32_72 = arith.constant 32 : index
    %c0_73 = arith.constant 0 : index
    %127 = vector.load %arg11[%c32_72, %c0_73] : memref<288x32xbf16, #tpu.memory_space<vmem>>, vector<32x32xbf16>
    tpu.vector_store %arg11[%c32_72, %c0_73], %126 {strides = array<i32>} : memref<288x32xbf16, #tpu.memory_space<vmem>>, vector<32x32xbf16>,
    %c2_74 = arith.constant 2 : index
    %c0_75 = arith.constant 0 : index
    %c0_76 = arith.constant 0 : index
    %128 = vector.load %arg4[%c2_74, %c0_75, %c0_76] : memref<9x32x32xbf16, #tpu.memory_space<vmem>>, vector<1x32x32xbf16>
    %129 = vector.shape_cast %128 : vector<1x32x32xbf16> to vector<32x32xbf16>
    %cst_77 = arith.constant dense<0.000000e+00> : vector<32x32xf32>
    %130 = tpu.matmul %117, %129, %cst_77 {dimension_numbers = #tpu.dot_dimension_numbers<[1], [0], [0], [1], [0, 0, 1, 1], [], []>} : vector<32x32xbf16>, vector<32x32xbf16>, vector<32x32xf32> -> vector<32x32xf32>
    %131 = arith.truncf %130 : vector<32x32xf32> to vector<32x32xbf16>
    %c64_78 = arith.constant 64 : index
    %c0_79 = arith.constant 0 : index
    %132 = vector.load %arg11[%c64_78, %c0_79] : memref<288x32xbf16, #tpu.memory_space<vmem>>, vector<32x32xbf16>
    tpu.vector_store %arg11[%c64_78, %c0_79], %131 {strides = array<i32>} : memref<288x32xbf16, #tpu.memory_space<vmem>>, vector<32x32xbf16>,
    %c3_80 = arith.constant 3 : index
    %c0_81 = arith.constant 0 : index
    %c0_82 = arith.constant 0 : index
    %133 = vector.load %arg4[%c3_80, %c0_81, %c0_82] : memref<9x32x32xbf16, #tpu.memory_space<vmem>>, vector<1x32x32xbf16>
    %134 = vector.shape_cast %133 : vector<1x32x32xbf16> to vector<32x32xbf16>
    %cst_83 = arith.constant dense<0.000000e+00> : vector<32x32xf32>
    %135 = tpu.matmul %117, %134, %cst_83 {dimension_numbers = #tpu.dot_dimension_numbers<[1], [0], [0], [1], [0, 0, 1, 1], [], []>} : vector<32x32xbf16>, vector<32x32xbf16>, vector<32x32xf32> -> vector<32x32xf32>
    %136 = arith.truncf %135 : vector<32x32xf32> to vector<32x32xbf16>
    %c96_84 = arith.constant 96 : index
    %c0_85 = arith.constant 0 : index
    %137 = vector.load %arg11[%c96_84, %c0_85] : memref<288x32xbf16, #tpu.memory_space<vmem>>, vector<32x32xbf16>
    tpu.vector_store %arg11[%c96_84, %c0_85], %136 {strides = array<i32>} : memref<288x32xbf16, #tpu.memory_space<vmem>>, vector<32x32xbf16>,
    %c4_86 = arith.constant 4 : index
    %c0_87 = arith.constant 0 : index
    %c0_88 = arith.constant 0 : index
    %138 = vector.load %arg4[%c4_86, %c0_87, %c0_88] : memref<9x32x32xbf16, #tpu.memory_space<vmem>>, vector<1x32x32xbf16>
    %139 = vector.shape_cast %138 : vector<1x32x32xbf16> to vector<32x32xbf16>
    %cst_89 = arith.constant dense<0.000000e+00> : vector<32x32xf32>
    %140 = tpu.matmul %117, %139, %cst_89 {dimension_numbers = #tpu.dot_dimension_numbers<[1], [0], [0], [1], [0, 0, 1, 1], [], []>} : vector<32x32xbf16>, vector<32x32xbf16>, vector<32x32xf32> -> vector<32x32xf32>
    %141 = arith.truncf %140 : vector<32x32xf32> to vector<32x32xbf16>
    %c128_90 = arith.constant 128 : index
    %c0_91 = arith.constant 0 : index
    %142 = vector.load %arg11[%c128_90, %c0_91] : memref<288x32xbf16, #tpu.memory_space<vmem>>, vector<32x32xbf16>
    tpu.vector_store %arg11[%c128_90, %c0_91], %141 {strides = array<i32>} : memref<288x32xbf16, #tpu.memory_space<vmem>>, vector<32x32xbf16>,
    %c5_92 = arith.constant 5 : index
    %c0_93 = arith.constant 0 : index
    %c0_94 = arith.constant 0 : index
    %143 = vector.load %arg4[%c5_92, %c0_93, %c0_94] : memref<9x32x32xbf16, #tpu.memory_space<vmem>>, vector<1x32x32xbf16>
    %144 = vector.shape_cast %143 : vector<1x32x32xbf16> to vector<32x32xbf16>
    %cst_95 = arith.constant dense<0.000000e+00> : vector<32x32xf32>
    %145 = tpu.matmul %117, %144, %cst_95 {dimension_numbers = #tpu.dot_dimension_numbers<[1], [0], [0], [1], [0, 0, 1, 1], [], []>} : vector<32x32xbf16>, vector<32x32xbf16>, vector<32x32xf32> -> vector<32x32xf32>
    %146 = arith.truncf %145 : vector<32x32xf32> to vector<32x32xbf16>
    %c160_96 = arith.constant 160 : index
    %c0_97 = arith.constant 0 : index
    %147 = vector.load %arg11[%c160_96, %c0_97] : memref<288x32xbf16, #tpu.memory_space<vmem>>, vector<32x32xbf16>
    tpu.vector_store %arg11[%c160_96, %c0_97], %146 {strides = array<i32>} : memref<288x32xbf16, #tpu.memory_space<vmem>>, vector<32x32xbf16>,
    %c6_98 = arith.constant 6 : index
    %c0_99 = arith.constant 0 : index
    %c0_100 = arith.constant 0 : index
    %148 = vector.load %arg4[%c6_98, %c0_99, %c0_100] : memref<9x32x32xbf16, #tpu.memory_space<vmem>>, vector<1x32x32xbf16>
    %149 = vector.shape_cast %148 : vector<1x32x32xbf16> to vector<32x32xbf16>
    %cst_101 = arith.constant dense<0.000000e+00> : vector<32x32xf32>
    %150 = tpu.matmul %117, %149, %cst_101 {dimension_numbers = #tpu.dot_dimension_numbers<[1], [0], [0], [1], [0, 0, 1, 1], [], []>} : vector<32x32xbf16>, vector<32x32xbf16>, vector<32x32xf32> -> vector<32x32xf32>
    %151 = arith.truncf %150 : vector<32x32xf32> to vector<32x32xbf16>
    %c192_102 = arith.constant 192 : index
    %c0_103 = arith.constant 0 : index
    %152 = vector.load %arg11[%c192_102, %c0_103] : memref<288x32xbf16, #tpu.memory_space<vmem>>, vector<32x32xbf16>
    tpu.vector_store %arg11[%c192_102, %c0_103], %151 {strides = array<i32>} : memref<288x32xbf16, #tpu.memory_space<vmem>>, vector<32x32xbf16>,
    %c7_104 = arith.constant 7 : index
    %c0_105 = arith.constant 0 : index
    %c0_106 = arith.constant 0 : index
    %153 = vector.load %arg4[%c7_104, %c0_105, %c0_106] : memref<9x32x32xbf16, #tpu.memory_space<vmem>>, vector<1x32x32xbf16>
    %154 = vector.shape_cast %153 : vector<1x32x32xbf16> to vector<32x32xbf16>
    %cst_107 = arith.constant dense<0.000000e+00> : vector<32x32xf32>
    %155 = tpu.matmul %117, %154, %cst_107 {dimension_numbers = #tpu.dot_dimension_numbers<[1], [0], [0], [1], [0, 0, 1, 1], [], []>} : vector<32x32xbf16>, vector<32x32xbf16>, vector<32x32xf32> -> vector<32x32xf32>
    %156 = arith.truncf %155 : vector<32x32xf32> to vector<32x32xbf16>
    %c224_108 = arith.constant 224 : index
    %c0_109 = arith.constant 0 : index
    %157 = vector.load %arg11[%c224_108, %c0_109] : memref<288x32xbf16, #tpu.memory_space<vmem>>, vector<32x32xbf16>
    tpu.vector_store %arg11[%c224_108, %c0_109], %156 {strides = array<i32>} : memref<288x32xbf16, #tpu.memory_space<vmem>>, vector<32x32xbf16>,
    %c8_110 = arith.constant 8 : index
    %c0_111 = arith.constant 0 : index
    %c0_112 = arith.constant 0 : index
    %158 = vector.load %arg4[%c8_110, %c0_111, %c0_112] : memref<9x32x32xbf16, #tpu.memory_space<vmem>>, vector<1x32x32xbf16>
    %159 = vector.shape_cast %158 : vector<1x32x32xbf16> to vector<32x32xbf16>
    %cst_113 = arith.constant dense<0.000000e+00> : vector<32x32xf32>
    %160 = tpu.matmul %117, %159, %cst_113 {dimension_numbers = #tpu.dot_dimension_numbers<[1], [0], [0], [1], [0, 0, 1, 1], [], []>} : vector<32x32xbf16>, vector<32x32xbf16>, vector<32x32xf32> -> vector<32x32xf32>
    %161 = arith.truncf %160 : vector<32x32xf32> to vector<32x32xbf16>
    %c256_114 = arith.constant 256 : index
    %c0_115 = arith.constant 0 : index
    %162 = vector.load %arg11[%c256_114, %c0_115] : memref<288x32xbf16, #tpu.memory_space<vmem>>, vector<32x32xbf16>
    tpu.vector_store %arg11[%c256_114, %c0_115], %161 {strides = array<i32>} : memref<288x32xbf16, #tpu.memory_space<vmem>>, vector<32x32xbf16>,
    %c0_116 = arith.constant 0 : index
    %c0_117 = arith.constant 0 : index
    %163 = vector.load %arg3[%c0_116, %c0_117] : memref<32x288xbf16, #tpu.memory_space<vmem>>, vector<32x288xbf16>
    %c0_118 = arith.constant 0 : index
    %c0_119 = arith.constant 0 : index
    %164 = vector.load %arg11[%c0_118, %c0_119] : memref<288x32xbf16, #tpu.memory_space<vmem>>, vector<288x32xbf16>
    %cst_120 = arith.constant dense<0.000000e+00> : vector<32x32xf32>
    %165 = tpu.matmul %163, %164, %cst_120 {dimension_numbers = #tpu.dot_dimension_numbers<[1], [0], [0], [1], [0, 0, 1, 1], [], []>} : vector<32x288xbf16>, vector<288x32xbf16>, vector<32x32xf32> -> vector<32x32xf32>
    %166 = vector.broadcast %20 : vector<32x1xf32> to vector<32x32xf32>
    %167 = arith.addf %165, %166 : vector<32x32xf32>
    %cst_121 = arith.constant 0.000000e+00 : f32
    %168 = vector.broadcast %cst_121 : f32 to vector<32x32xf32>
    %169 = arith.mulf %167, %10 : vector<32x32xf32>
    %cst_122 = arith.constant dense<0.000000e+00> : vector<32xf32>
    %170 = vector.multi_reduction <add>, %169, %cst_122 [1] : vector<32x32xf32> to vector<32xf32>
    %171 = vector.shape_cast %170 : vector<32xf32> to vector<32x1xf32>
    %cst_123 = arith.constant 6.250000e-02 : f32
    %172 = vector.broadcast %cst_123 : f32 to vector<32x1xf32>
    %173 = arith.mulf %171, %172 : vector<32x1xf32>
    %174 = vector.broadcast %173 : vector<32x1xf32> to vector<32x32xf32>
    %175 = arith.mulf %174, %10 : vector<32x32xf32>
    %176 = arith.addf %168, %175 : vector<32x32xf32>
    %177 = arith.mulf %167, %17 : vector<32x32xf32>
    %cst_124 = arith.constant dense<0.000000e+00> : vector<32xf32>
    %178 = vector.multi_reduction <add>, %177, %cst_124 [1] : vector<32x32xf32> to vector<32xf32>
    %179 = vector.shape_cast %178 : vector<32xf32> to vector<32x1xf32>
    %cst_125 = arith.constant 6.250000e-02 : f32
    %180 = vector.broadcast %cst_125 : f32 to vector<32x1xf32>
    %181 = arith.mulf %179, %180 : vector<32x1xf32>
    %182 = vector.broadcast %181 : vector<32x1xf32> to vector<32x32xf32>
    %183 = arith.mulf %182, %17 : vector<32x32xf32>
    %184 = arith.addf %176, %183 : vector<32x32xf32>
    %185 = arith.subf %167, %184 : vector<32x32xf32>
    %cst_126 = arith.constant 0.000000e+00 : f32
    %186 = vector.broadcast %cst_126 : f32 to vector<32x32xf32>
    %187 = arith.mulf %185, %185 : vector<32x32xf32>
    %188 = arith.mulf %187, %10 : vector<32x32xf32>
    %cst_127 = arith.constant dense<0.000000e+00> : vector<32xf32>
    %189 = vector.multi_reduction <add>, %188, %cst_127 [1] : vector<32x32xf32> to vector<32xf32>
    %190 = vector.shape_cast %189 : vector<32xf32> to vector<32x1xf32>
    %cst_128 = arith.constant 6.250000e-02 : f32
    %191 = vector.broadcast %cst_128 : f32 to vector<32x1xf32>
    %192 = arith.mulf %190, %191 : vector<32x1xf32>
    %193 = vector.broadcast %192 : vector<32x1xf32> to vector<32x32xf32>
    %194 = arith.mulf %193, %10 : vector<32x32xf32>
    %195 = arith.addf %186, %194 : vector<32x32xf32>
    %196 = arith.mulf %185, %185 : vector<32x32xf32>
    %197 = arith.mulf %196, %17 : vector<32x32xf32>
    %cst_129 = arith.constant dense<0.000000e+00> : vector<32xf32>
    %198 = vector.multi_reduction <add>, %197, %cst_129 [1] : vector<32x32xf32> to vector<32xf32>
    %199 = vector.shape_cast %198 : vector<32xf32> to vector<32x1xf32>
    %cst_130 = arith.constant 6.250000e-02 : f32
    %200 = vector.broadcast %cst_130 : f32 to vector<32x1xf32>
    %201 = arith.mulf %199, %200 : vector<32x1xf32>
    %202 = vector.broadcast %201 : vector<32x1xf32> to vector<32x32xf32>
    %203 = arith.mulf %202, %17 : vector<32x32xf32>
    %204 = arith.addf %195, %203 : vector<32x32xf32>
    %cst_131 = arith.constant 9.99999974E-6 : f32
    %205 = vector.broadcast %cst_131 : f32 to vector<32x32xf32>
    %206 = arith.addf %204, %205 : vector<32x32xf32>
    %207 = math.rsqrt %206 : vector<32x32xf32>
    %208 = arith.mulf %185, %207 : vector<32x32xf32>
    %cst_132 = arith.constant 0.000000e+00 : f32
    %209 = vector.broadcast %cst_132 : f32 to vector<32x32xf32>
    %210 = arith.mulf %208, %10 : vector<32x32xf32>
    %cst_133 = arith.constant dense<0.000000e+00> : vector<32xf32>
    %211 = vector.multi_reduction <add>, %210, %cst_133 [1] : vector<32x32xf32> to vector<32xf32>
    %212 = vector.shape_cast %211 : vector<32xf32> to vector<32x1xf32>
    %cst_134 = arith.constant 6.250000e-02 : f32
    %213 = vector.broadcast %cst_134 : f32 to vector<32x1xf32>
    %214 = arith.mulf %212, %213 : vector<32x1xf32>
    %c0_135 = arith.constant 0 : index
    %c0_136 = arith.constant 0 : index
    %215 = vector.load %arg6[%c0_135, %c0_136] : memref<32x2xf32, #tpu.memory_space<vmem>>, vector<32x2xf32>
    %216 = vector.broadcast %214 : vector<32x1xf32> to vector<32x2xf32>
    %217 = arith.mulf %215, %216 : vector<32x2xf32>
    %cst_137 = arith.constant dense<0.000000e+00> : vector<2xf32>
    %218 = vector.multi_reduction <add>, %217, %cst_137 [0] : vector<32x2xf32> to vector<2xf32>
    %219 = vector.shape_cast %218 : vector<2xf32> to vector<1x2xf32>
    %c0_138 = arith.constant 0 : index
    %c0_139 = arith.constant 0 : index
    %220 = vector.load %arg7[%c0_138, %c0_139] : memref<1x2xf32, #tpu.memory_space<vmem>>, vector<1x2xf32>
    %221 = arith.addf %219, %220 : vector<1x2xf32>
    %cst_140 = arith.constant 0.000000e+00 : f32
    %222 = vector.broadcast %cst_140 : f32 to vector<1x2xf32>
    %223 = arith.maximumf %221, %222 : vector<1x2xf32>
    %c0_141 = arith.constant 0 : index
    %c0_142 = arith.constant 0 : index
    %224 = vector.load %arg8[%c0_141, %c0_142] : memref<32x2xf32, #tpu.memory_space<vmem>>, vector<32x2xf32>
    %225 = vector.broadcast %223 : vector<1x2xf32> to vector<32x2xf32>
    %226 = arith.mulf %224, %225 : vector<32x2xf32>
    %cst_143 = arith.constant dense<0.000000e+00> : vector<32xf32>
    %227 = vector.multi_reduction <add>, %226, %cst_143 [1] : vector<32x2xf32> to vector<32xf32>
    %228 = vector.shape_cast %227 : vector<32xf32> to vector<32x1xf32>
    %229 = arith.addf %228, %21 : vector<32x1xf32>
    %230 = arith.negf %229 : vector<32x1xf32>
    %231 = math.exp %230 : vector<32x1xf32>
    %cst_144 = arith.constant 1.000000e+00 : f32
    %232 = vector.broadcast %cst_144 : f32 to vector<32x1xf32>
    %233 = arith.addf %232, %231 : vector<32x1xf32>
    %234 = arith.divf %232, %233 : vector<32x1xf32>
    %235 = vector.broadcast %234 : vector<32x1xf32> to vector<32x32xf32>
    %236 = arith.mulf %235, %10 : vector<32x32xf32>
    %237 = arith.addf %209, %236 : vector<32x32xf32>
    %238 = arith.mulf %208, %17 : vector<32x32xf32>
    %cst_145 = arith.constant dense<0.000000e+00> : vector<32xf32>
    %239 = vector.multi_reduction <add>, %238, %cst_145 [1] : vector<32x32xf32> to vector<32xf32>
    %240 = vector.shape_cast %239 : vector<32xf32> to vector<32x1xf32>
    %cst_146 = arith.constant 6.250000e-02 : f32
    %241 = vector.broadcast %cst_146 : f32 to vector<32x1xf32>
    %242 = arith.mulf %240, %241 : vector<32x1xf32>
    %c0_147 = arith.constant 0 : index
    %c0_148 = arith.constant 0 : index
    %243 = vector.load %arg6[%c0_147, %c0_148] : memref<32x2xf32, #tpu.memory_space<vmem>>, vector<32x2xf32>
    %244 = vector.broadcast %242 : vector<32x1xf32> to vector<32x2xf32>
    %245 = arith.mulf %243, %244 : vector<32x2xf32>
    %cst_149 = arith.constant dense<0.000000e+00> : vector<2xf32>
    %246 = vector.multi_reduction <add>, %245, %cst_149 [0] : vector<32x2xf32> to vector<2xf32>
    %247 = vector.shape_cast %246 : vector<2xf32> to vector<1x2xf32>
    %c0_150 = arith.constant 0 : index
    %c0_151 = arith.constant 0 : index
    %248 = vector.load %arg7[%c0_150, %c0_151] : memref<1x2xf32, #tpu.memory_space<vmem>>, vector<1x2xf32>
    %249 = arith.addf %247, %248 : vector<1x2xf32>
    %cst_152 = arith.constant 0.000000e+00 : f32
    %250 = vector.broadcast %cst_152 : f32 to vector<1x2xf32>
    %251 = arith.maximumf %249, %250 : vector<1x2xf32>
    %c0_153 = arith.constant 0 : index
    %c0_154 = arith.constant 0 : index
    %252 = vector.load %arg8[%c0_153, %c0_154] : memref<32x2xf32, #tpu.memory_space<vmem>>, vector<32x2xf32>
    %253 = vector.broadcast %251 : vector<1x2xf32> to vector<32x2xf32>
    %254 = arith.mulf %252, %253 : vector<32x2xf32>
    %cst_155 = arith.constant dense<0.000000e+00> : vector<32xf32>
    %255 = vector.multi_reduction <add>, %254, %cst_155 [1] : vector<32x2xf32> to vector<32xf32>
    %256 = vector.shape_cast %255 : vector<32xf32> to vector<32x1xf32>
    %257 = arith.addf %256, %21 : vector<32x1xf32>
    %258 = arith.negf %257 : vector<32x1xf32>
    %259 = math.exp %258 : vector<32x1xf32>
    %cst_156 = arith.constant 1.000000e+00 : f32
    %260 = vector.broadcast %cst_156 : f32 to vector<32x1xf32>
    %261 = arith.addf %260, %259 : vector<32x1xf32>
    %262 = arith.divf %260, %261 : vector<32x1xf32>
    %263 = vector.broadcast %262 : vector<32x1xf32> to vector<32x32xf32>
    %264 = arith.mulf %263, %17 : vector<32x32xf32>
    %265 = arith.addf %237, %264 : vector<32x32xf32>
    %266 = arith.mulf %208, %265 : vector<32x32xf32>
    %c0_157 = arith.constant 0 : index
    %c0_158 = arith.constant 0 : index
    %267 = vector.load %arg10[%c0_157, %c0_158] : memref<32x32xf32, #tpu.memory_space<vmem>>, vector<32x32xf32>
    %268 = arith.addf %266, %267 : vector<32x32xf32>
    %cst_159 = arith.constant 0.000000e+00 : f32
    %269 = vector.broadcast %cst_159 : f32 to vector<32x32xf32>
    %270 = arith.maximumf %268, %269 : vector<32x32xf32>
    %c0_160 = arith.constant 0 : index
    %c0_161 = arith.constant 0 : index
    %271 = vector.load %arg10[%c0_160, %c0_161] : memref<32x32xf32, #tpu.memory_space<vmem>>, vector<32x32xf32>
    tpu.vector_store %arg10[%c0_160, %c0_161], %270 {strides = array<i32>} : memref<32x32xf32, #tpu.memory_space<vmem>>, vector<32x32xf32>,
    %c0_162 = arith.constant 0 : index
    %c0_163 = arith.constant 0 : index
    %272 = vector.load %arg10[%c0_162, %c0_163] : memref<32x32xf32, #tpu.memory_space<vmem>>, vector<32x32xf32>
    %273 = arith.truncf %272 : vector<32x32xf32> to vector<32x32xbf16>
    %c0_164 = arith.constant 0 : index
    %c0_165 = arith.constant 0 : index
    %c0_166 = arith.constant 0 : index
    %274 = vector.load %arg4[%c0_164, %c0_165, %c0_166] : memref<9x32x32xbf16, #tpu.memory_space<vmem>>, vector<1x32x32xbf16>
    %275 = vector.shape_cast %274 : vector<1x32x32xbf16> to vector<32x32xbf16>
    %cst_167 = arith.constant dense<0.000000e+00> : vector<32x32xf32>
    %276 = tpu.matmul %273, %275, %cst_167 {dimension_numbers = #tpu.dot_dimension_numbers<[1], [0], [0], [1], [0, 0, 1, 1], [], []>} : vector<32x32xbf16>, vector<32x32xbf16>, vector<32x32xf32> -> vector<32x32xf32>
    %277 = arith.truncf %276 : vector<32x32xf32> to vector<32x32xbf16>
    %c0_168 = arith.constant 0 : index
    %c0_169 = arith.constant 0 : index
    %278 = vector.load %arg11[%c0_168, %c0_169] : memref<288x32xbf16, #tpu.memory_space<vmem>>, vector<32x32xbf16>
    tpu.vector_store %arg11[%c0_168, %c0_169], %277 {strides = array<i32>} : memref<288x32xbf16, #tpu.memory_space<vmem>>, vector<32x32xbf16>,
    %c1_170 = arith.constant 1 : index
    %c0_171 = arith.constant 0 : index
    %c0_172 = arith.constant 0 : index
    %279 = vector.load %arg4[%c1_170, %c0_171, %c0_172] : memref<9x32x32xbf16, #tpu.memory_space<vmem>>, vector<1x32x32xbf16>
    %280 = vector.shape_cast %279 : vector<1x32x32xbf16> to vector<32x32xbf16>
    %cst_173 = arith.constant dense<0.000000e+00> : vector<32x32xf32>
    %281 = tpu.matmul %273, %280, %cst_173 {dimension_numbers = #tpu.dot_dimension_numbers<[1], [0], [0], [1], [0, 0, 1, 1], [], []>} : vector<32x32xbf16>, vector<32x32xbf16>, vector<32x32xf32> -> vector<32x32xf32>
    %282 = arith.truncf %281 : vector<32x32xf32> to vector<32x32xbf16>
    %c32_174 = arith.constant 32 : index
    %c0_175 = arith.constant 0 : index
    %283 = vector.load %arg11[%c32_174, %c0_175] : memref<288x32xbf16, #tpu.memory_space<vmem>>, vector<32x32xbf16>
    tpu.vector_store %arg11[%c32_174, %c0_175], %282 {strides = array<i32>} : memref<288x32xbf16, #tpu.memory_space<vmem>>, vector<32x32xbf16>,
    %c2_176 = arith.constant 2 : index
    %c0_177 = arith.constant 0 : index
    %c0_178 = arith.constant 0 : index
    %284 = vector.load %arg4[%c2_176, %c0_177, %c0_178] : memref<9x32x32xbf16, #tpu.memory_space<vmem>>, vector<1x32x32xbf16>
    %285 = vector.shape_cast %284 : vector<1x32x32xbf16> to vector<32x32xbf16>
    %cst_179 = arith.constant dense<0.000000e+00> : vector<32x32xf32>
    %286 = tpu.matmul %273, %285, %cst_179 {dimension_numbers = #tpu.dot_dimension_numbers<[1], [0], [0], [1], [0, 0, 1, 1], [], []>} : vector<32x32xbf16>, vector<32x32xbf16>, vector<32x32xf32> -> vector<32x32xf32>
    %287 = arith.truncf %286 : vector<32x32xf32> to vector<32x32xbf16>
    %c64_180 = arith.constant 64 : index
    %c0_181 = arith.constant 0 : index
    %288 = vector.load %arg11[%c64_180, %c0_181] : memref<288x32xbf16, #tpu.memory_space<vmem>>, vector<32x32xbf16>
    tpu.vector_store %arg11[%c64_180, %c0_181], %287 {strides = array<i32>} : memref<288x32xbf16, #tpu.memory_space<vmem>>, vector<32x32xbf16>,
    %c3_182 = arith.constant 3 : index
    %c0_183 = arith.constant 0 : index
    %c0_184 = arith.constant 0 : index
    %289 = vector.load %arg4[%c3_182, %c0_183, %c0_184] : memref<9x32x32xbf16, #tpu.memory_space<vmem>>, vector<1x32x32xbf16>
    %290 = vector.shape_cast %289 : vector<1x32x32xbf16> to vector<32x32xbf16>
    %cst_185 = arith.constant dense<0.000000e+00> : vector<32x32xf32>
    %291 = tpu.matmul %273, %290, %cst_185 {dimension_numbers = #tpu.dot_dimension_numbers<[1], [0], [0], [1], [0, 0, 1, 1], [], []>} : vector<32x32xbf16>, vector<32x32xbf16>, vector<32x32xf32> -> vector<32x32xf32>
    %292 = arith.truncf %291 : vector<32x32xf32> to vector<32x32xbf16>
    %c96_186 = arith.constant 96 : index
    %c0_187 = arith.constant 0 : index
    %293 = vector.load %arg11[%c96_186, %c0_187] : memref<288x32xbf16, #tpu.memory_space<vmem>>, vector<32x32xbf16>
    tpu.vector_store %arg11[%c96_186, %c0_187], %292 {strides = array<i32>} : memref<288x32xbf16, #tpu.memory_space<vmem>>, vector<32x32xbf16>,
    %c4_188 = arith.constant 4 : index
    %c0_189 = arith.constant 0 : index
    %c0_190 = arith.constant 0 : index
    %294 = vector.load %arg4[%c4_188, %c0_189, %c0_190] : memref<9x32x32xbf16, #tpu.memory_space<vmem>>, vector<1x32x32xbf16>
    %295 = vector.shape_cast %294 : vector<1x32x32xbf16> to vector<32x32xbf16>
    %cst_191 = arith.constant dense<0.000000e+00> : vector<32x32xf32>
    %296 = tpu.matmul %273, %295, %cst_191 {dimension_numbers = #tpu.dot_dimension_numbers<[1], [0], [0], [1], [0, 0, 1, 1], [], []>} : vector<32x32xbf16>, vector<32x32xbf16>, vector<32x32xf32> -> vector<32x32xf32>
    %297 = arith.truncf %296 : vector<32x32xf32> to vector<32x32xbf16>
    %c128_192 = arith.constant 128 : index
    %c0_193 = arith.constant 0 : index
    %298 = vector.load %arg11[%c128_192, %c0_193] : memref<288x32xbf16, #tpu.memory_space<vmem>>, vector<32x32xbf16>
    tpu.vector_store %arg11[%c128_192, %c0_193], %297 {strides = array<i32>} : memref<288x32xbf16, #tpu.memory_space<vmem>>, vector<32x32xbf16>,
    %c5_194 = arith.constant 5 : index
    %c0_195 = arith.constant 0 : index
    %c0_196 = arith.constant 0 : index
    %299 = vector.load %arg4[%c5_194, %c0_195, %c0_196] : memref<9x32x32xbf16, #tpu.memory_space<vmem>>, vector<1x32x32xbf16>
    %300 = vector.shape_cast %299 : vector<1x32x32xbf16> to vector<32x32xbf16>
    %cst_197 = arith.constant dense<0.000000e+00> : vector<32x32xf32>
    %301 = tpu.matmul %273, %300, %cst_197 {dimension_numbers = #tpu.dot_dimension_numbers<[1], [0], [0], [1], [0, 0, 1, 1], [], []>} : vector<32x32xbf16>, vector<32x32xbf16>, vector<32x32xf32> -> vector<32x32xf32>
    %302 = arith.truncf %301 : vector<32x32xf32> to vector<32x32xbf16>
    %c160_198 = arith.constant 160 : index
    %c0_199 = arith.constant 0 : index
    %303 = vector.load %arg11[%c160_198, %c0_199] : memref<288x32xbf16, #tpu.memory_space<vmem>>, vector<32x32xbf16>
    tpu.vector_store %arg11[%c160_198, %c0_199], %302 {strides = array<i32>} : memref<288x32xbf16, #tpu.memory_space<vmem>>, vector<32x32xbf16>,
    %c6_200 = arith.constant 6 : index
    %c0_201 = arith.constant 0 : index
    %c0_202 = arith.constant 0 : index
    %304 = vector.load %arg4[%c6_200, %c0_201, %c0_202] : memref<9x32x32xbf16, #tpu.memory_space<vmem>>, vector<1x32x32xbf16>
    %305 = vector.shape_cast %304 : vector<1x32x32xbf16> to vector<32x32xbf16>
    %cst_203 = arith.constant dense<0.000000e+00> : vector<32x32xf32>
    %306 = tpu.matmul %273, %305, %cst_203 {dimension_numbers = #tpu.dot_dimension_numbers<[1], [0], [0], [1], [0, 0, 1, 1], [], []>} : vector<32x32xbf16>, vector<32x32xbf16>, vector<32x32xf32> -> vector<32x32xf32>
    %307 = arith.truncf %306 : vector<32x32xf32> to vector<32x32xbf16>
    %c192_204 = arith.constant 192 : index
    %c0_205 = arith.constant 0 : index
    %308 = vector.load %arg11[%c192_204, %c0_205] : memref<288x32xbf16, #tpu.memory_space<vmem>>, vector<32x32xbf16>
    tpu.vector_store %arg11[%c192_204, %c0_205], %307 {strides = array<i32>} : memref<288x32xbf16, #tpu.memory_space<vmem>>, vector<32x32xbf16>,
    %c7_206 = arith.constant 7 : index
    %c0_207 = arith.constant 0 : index
    %c0_208 = arith.constant 0 : index
    %309 = vector.load %arg4[%c7_206, %c0_207, %c0_208] : memref<9x32x32xbf16, #tpu.memory_space<vmem>>, vector<1x32x32xbf16>
    %310 = vector.shape_cast %309 : vector<1x32x32xbf16> to vector<32x32xbf16>
    %cst_209 = arith.constant dense<0.000000e+00> : vector<32x32xf32>
    %311 = tpu.matmul %273, %310, %cst_209 {dimension_numbers = #tpu.dot_dimension_numbers<[1], [0], [0], [1], [0, 0, 1, 1], [], []>} : vector<32x32xbf16>, vector<32x32xbf16>, vector<32x32xf32> -> vector<32x32xf32>
    %312 = arith.truncf %311 : vector<32x32xf32> to vector<32x32xbf16>
    %c224_210 = arith.constant 224 : index
    %c0_211 = arith.constant 0 : index
    %313 = vector.load %arg11[%c224_210, %c0_211] : memref<288x32xbf16, #tpu.memory_space<vmem>>, vector<32x32xbf16>
    tpu.vector_store %arg11[%c224_210, %c0_211], %312 {strides = array<i32>} : memref<288x32xbf16, #tpu.memory_space<vmem>>, vector<32x32xbf16>,
    %c8_212 = arith.constant 8 : index
    %c0_213 = arith.constant 0 : index
    %c0_214 = arith.constant 0 : index
    %314 = vector.load %arg4[%c8_212, %c0_213, %c0_214] : memref<9x32x32xbf16, #tpu.memory_space<vmem>>, vector<1x32x32xbf16>
    %315 = vector.shape_cast %314 : vector<1x32x32xbf16> to vector<32x32xbf16>
    %cst_215 = arith.constant dense<0.000000e+00> : vector<32x32xf32>
    %316 = tpu.matmul %273, %315, %cst_215 {dimension_numbers = #tpu.dot_dimension_numbers<[1], [0], [0], [1], [0, 0, 1, 1], [], []>} : vector<32x32xbf16>, vector<32x32xbf16>, vector<32x32xf32> -> vector<32x32xf32>
    %317 = arith.truncf %316 : vector<32x32xf32> to vector<32x32xbf16>
    %c256_216 = arith.constant 256 : index
    %c0_217 = arith.constant 0 : index
    %318 = vector.load %arg11[%c256_216, %c0_217] : memref<288x32xbf16, #tpu.memory_space<vmem>>, vector<32x32xbf16>
    tpu.vector_store %arg11[%c256_216, %c0_217], %317 {strides = array<i32>} : memref<288x32xbf16, #tpu.memory_space<vmem>>, vector<32x32xbf16>,
    %c0_218 = arith.constant 0 : index
    %c0_219 = arith.constant 0 : index
    %319 = vector.load %arg2[%c0_218, %c0_219] : memref<32x288xbf16, #tpu.memory_space<vmem>>, vector<32x288xbf16>
    %c0_220 = arith.constant 0 : index
    %c0_221 = arith.constant 0 : index
    %320 = vector.load %arg11[%c0_220, %c0_221] : memref<288x32xbf16, #tpu.memory_space<vmem>>, vector<288x32xbf16>
    %cst_222 = arith.constant dense<0.000000e+00> : vector<32x32xf32>
    %321 = tpu.matmul %319, %320, %cst_222 {dimension_numbers = #tpu.dot_dimension_numbers<[1], [0], [0], [1], [0, 0, 1, 1], [], []>} : vector<32x288xbf16>, vector<288x32xbf16>, vector<32x32xf32> -> vector<32x32xf32>
    %322 = vector.broadcast %19 : vector<32x1xf32> to vector<32x32xf32>
    %323 = arith.addf %321, %322 : vector<32x32xf32>
    %cst_223 = arith.constant 0.000000e+00 : f32
    %324 = vector.broadcast %cst_223 : f32 to vector<32x32xf32>
    %325 = arith.mulf %323, %10 : vector<32x32xf32>
    %cst_224 = arith.constant dense<0.000000e+00> : vector<32xf32>
    %326 = vector.multi_reduction <add>, %325, %cst_224 [1] : vector<32x32xf32> to vector<32xf32>
    %327 = vector.shape_cast %326 : vector<32xf32> to vector<32x1xf32>
    %cst_225 = arith.constant 6.250000e-02 : f32
    %328 = vector.broadcast %cst_225 : f32 to vector<32x1xf32>
    %329 = arith.mulf %327, %328 : vector<32x1xf32>
    %330 = vector.broadcast %329 : vector<32x1xf32> to vector<32x32xf32>
    %331 = arith.mulf %330, %10 : vector<32x32xf32>
    %332 = arith.addf %324, %331 : vector<32x32xf32>
    %333 = arith.mulf %323, %17 : vector<32x32xf32>
    %cst_226 = arith.constant dense<0.000000e+00> : vector<32xf32>
    %334 = vector.multi_reduction <add>, %333, %cst_226 [1] : vector<32x32xf32> to vector<32xf32>
    %335 = vector.shape_cast %334 : vector<32xf32> to vector<32x1xf32>
    %cst_227 = arith.constant 6.250000e-02 : f32
    %336 = vector.broadcast %cst_227 : f32 to vector<32x1xf32>
    %337 = arith.mulf %335, %336 : vector<32x1xf32>
    %338 = vector.broadcast %337 : vector<32x1xf32> to vector<32x32xf32>
    %339 = arith.mulf %338, %17 : vector<32x32xf32>
    %340 = arith.addf %332, %339 : vector<32x32xf32>
    %341 = arith.subf %323, %340 : vector<32x32xf32>
    %cst_228 = arith.constant 0.000000e+00 : f32
    %342 = vector.broadcast %cst_228 : f32 to vector<32x32xf32>
    %343 = arith.mulf %341, %341 : vector<32x32xf32>
    %344 = arith.mulf %343, %10 : vector<32x32xf32>
    %cst_229 = arith.constant dense<0.000000e+00> : vector<32xf32>
    %345 = vector.multi_reduction <add>, %344, %cst_229 [1] : vector<32x32xf32> to vector<32xf32>
    %346 = vector.shape_cast %345 : vector<32xf32> to vector<32x1xf32>
    %cst_230 = arith.constant 6.250000e-02 : f32
    %347 = vector.broadcast %cst_230 : f32 to vector<32x1xf32>
    %348 = arith.mulf %346, %347 : vector<32x1xf32>
    %349 = vector.broadcast %348 : vector<32x1xf32> to vector<32x32xf32>
    %350 = arith.mulf %349, %10 : vector<32x32xf32>
    %351 = arith.addf %342, %350 : vector<32x32xf32>
    %352 = arith.mulf %341, %341 : vector<32x32xf32>
    %353 = arith.mulf %352, %17 : vector<32x32xf32>
    %cst_231 = arith.constant dense<0.000000e+00> : vector<32xf32>
    %354 = vector.multi_reduction <add>, %353, %cst_231 [1] : vector<32x32xf32> to vector<32xf32>
    %355 = vector.shape_cast %354 : vector<32xf32> to vector<32x1xf32>
    %cst_232 = arith.constant 6.250000e-02 : f32
    %356 = vector.broadcast %cst_232 : f32 to vector<32x1xf32>
    %357 = arith.mulf %355, %356 : vector<32x1xf32>
    %358 = vector.broadcast %357 : vector<32x1xf32> to vector<32x32xf32>
    %359 = arith.mulf %358, %17 : vector<32x32xf32>
    %360 = arith.addf %351, %359 : vector<32x32xf32>
    %cst_233 = arith.constant 9.99999974E-6 : f32
    %361 = vector.broadcast %cst_233 : f32 to vector<32x32xf32>
    %362 = arith.addf %360, %361 : vector<32x32xf32>
    %363 = math.rsqrt %362 : vector<32x32xf32>
    %364 = arith.mulf %341, %363 : vector<32x32xf32>
    %cst_234 = arith.constant 0.000000e+00 : f32
    %365 = vector.broadcast %cst_234 : f32 to vector<32x32xf32>
    %366 = arith.maximumf %364, %365 : vector<32x32xf32>
    %367 = arith.truncf %366 : vector<32x32xf32> to vector<32x32xbf16>
    %c0_235 = arith.constant 0 : index
    %c0_236 = arith.constant 0 : index
    %c0_237 = arith.constant 0 : index
    %368 = vector.load %arg4[%c0_235, %c0_236, %c0_237] : memref<9x32x32xbf16, #tpu.memory_space<vmem>>, vector<1x32x32xbf16>
    %369 = vector.shape_cast %368 : vector<1x32x32xbf16> to vector<32x32xbf16>
    %cst_238 = arith.constant dense<0.000000e+00> : vector<32x32xf32>
    %370 = tpu.matmul %367, %369, %cst_238 {dimension_numbers = #tpu.dot_dimension_numbers<[1], [0], [0], [1], [0, 0, 1, 1], [], []>} : vector<32x32xbf16>, vector<32x32xbf16>, vector<32x32xf32> -> vector<32x32xf32>
    %371 = arith.truncf %370 : vector<32x32xf32> to vector<32x32xbf16>
    %c0_239 = arith.constant 0 : index
    %c0_240 = arith.constant 0 : index
    %372 = vector.load %arg11[%c0_239, %c0_240] : memref<288x32xbf16, #tpu.memory_space<vmem>>, vector<32x32xbf16>
    tpu.vector_store %arg11[%c0_239, %c0_240], %371 {strides = array<i32>} : memref<288x32xbf16, #tpu.memory_space<vmem>>, vector<32x32xbf16>,
    %c1_241 = arith.constant 1 : index
    %c0_242 = arith.constant 0 : index
    %c0_243 = arith.constant 0 : index
    %373 = vector.load %arg4[%c1_241, %c0_242, %c0_243] : memref<9x32x32xbf16, #tpu.memory_space<vmem>>, vector<1x32x32xbf16>
    %374 = vector.shape_cast %373 : vector<1x32x32xbf16> to vector<32x32xbf16>
    %cst_244 = arith.constant dense<0.000000e+00> : vector<32x32xf32>
    %375 = tpu.matmul %367, %374, %cst_244 {dimension_numbers = #tpu.dot_dimension_numbers<[1], [0], [0], [1], [0, 0, 1, 1], [], []>} : vector<32x32xbf16>, vector<32x32xbf16>, vector<32x32xf32> -> vector<32x32xf32>
    %376 = arith.truncf %375 : vector<32x32xf32> to vector<32x32xbf16>
    %c32_245 = arith.constant 32 : index
    %c0_246 = arith.constant 0 : index
    %377 = vector.load %arg11[%c32_245, %c0_246] : memref<288x32xbf16, #tpu.memory_space<vmem>>, vector<32x32xbf16>
    tpu.vector_store %arg11[%c32_245, %c0_246], %376 {strides = array<i32>} : memref<288x32xbf16, #tpu.memory_space<vmem>>, vector<32x32xbf16>,
    %c2_247 = arith.constant 2 : index
    %c0_248 = arith.constant 0 : index
    %c0_249 = arith.constant 0 : index
    %378 = vector.load %arg4[%c2_247, %c0_248, %c0_249] : memref<9x32x32xbf16, #tpu.memory_space<vmem>>, vector<1x32x32xbf16>
    %379 = vector.shape_cast %378 : vector<1x32x32xbf16> to vector<32x32xbf16>
    %cst_250 = arith.constant dense<0.000000e+00> : vector<32x32xf32>
    %380 = tpu.matmul %367, %379, %cst_250 {dimension_numbers = #tpu.dot_dimension_numbers<[1], [0], [0], [1], [0, 0, 1, 1], [], []>} : vector<32x32xbf16>, vector<32x32xbf16>, vector<32x32xf32> -> vector<32x32xf32>
    %381 = arith.truncf %380 : vector<32x32xf32> to vector<32x32xbf16>
    %c64_251 = arith.constant 64 : index
    %c0_252 = arith.constant 0 : index
    %382 = vector.load %arg11[%c64_251, %c0_252] : memref<288x32xbf16, #tpu.memory_space<vmem>>, vector<32x32xbf16>
    tpu.vector_store %arg11[%c64_251, %c0_252], %381 {strides = array<i32>} : memref<288x32xbf16, #tpu.memory_space<vmem>>, vector<32x32xbf16>,
    %c3_253 = arith.constant 3 : index
    %c0_254 = arith.constant 0 : index
    %c0_255 = arith.constant 0 : index
    %383 = vector.load %arg4[%c3_253, %c0_254, %c0_255] : memref<9x32x32xbf16, #tpu.memory_space<vmem>>, vector<1x32x32xbf16>
    %384 = vector.shape_cast %383 : vector<1x32x32xbf16> to vector<32x32xbf16>
    %cst_256 = arith.constant dense<0.000000e+00> : vector<32x32xf32>
    %385 = tpu.matmul %367, %384, %cst_256 {dimension_numbers = #tpu.dot_dimension_numbers<[1], [0], [0], [1], [0, 0, 1, 1], [], []>} : vector<32x32xbf16>, vector<32x32xbf16>, vector<32x32xf32> -> vector<32x32xf32>
    %386 = arith.truncf %385 : vector<32x32xf32> to vector<32x32xbf16>
    %c96_257 = arith.constant 96 : index
    %c0_258 = arith.constant 0 : index
    %387 = vector.load %arg11[%c96_257, %c0_258] : memref<288x32xbf16, #tpu.memory_space<vmem>>, vector<32x32xbf16>
    tpu.vector_store %arg11[%c96_257, %c0_258], %386 {strides = array<i32>} : memref<288x32xbf16, #tpu.memory_space<vmem>>, vector<32x32xbf16>,
    %c4_259 = arith.constant 4 : index
    %c0_260 = arith.constant 0 : index
    %c0_261 = arith.constant 0 : index
    %388 = vector.load %arg4[%c4_259, %c0_260, %c0_261] : memref<9x32x32xbf16, #tpu.memory_space<vmem>>, vector<1x32x32xbf16>
    %389 = vector.shape_cast %388 : vector<1x32x32xbf16> to vector<32x32xbf16>
    %cst_262 = arith.constant dense<0.000000e+00> : vector<32x32xf32>
    %390 = tpu.matmul %367, %389, %cst_262 {dimension_numbers = #tpu.dot_dimension_numbers<[1], [0], [0], [1], [0, 0, 1, 1], [], []>} : vector<32x32xbf16>, vector<32x32xbf16>, vector<32x32xf32> -> vector<32x32xf32>
    %391 = arith.truncf %390 : vector<32x32xf32> to vector<32x32xbf16>
    %c128_263 = arith.constant 128 : index
    %c0_264 = arith.constant 0 : index
    %392 = vector.load %arg11[%c128_263, %c0_264] : memref<288x32xbf16, #tpu.memory_space<vmem>>, vector<32x32xbf16>
    tpu.vector_store %arg11[%c128_263, %c0_264], %391 {strides = array<i32>} : memref<288x32xbf16, #tpu.memory_space<vmem>>, vector<32x32xbf16>,
    %c5_265 = arith.constant 5 : index
    %c0_266 = arith.constant 0 : index
    %c0_267 = arith.constant 0 : index
    %393 = vector.load %arg4[%c5_265, %c0_266, %c0_267] : memref<9x32x32xbf16, #tpu.memory_space<vmem>>, vector<1x32x32xbf16>
    %394 = vector.shape_cast %393 : vector<1x32x32xbf16> to vector<32x32xbf16>
    %cst_268 = arith.constant dense<0.000000e+00> : vector<32x32xf32>
    %395 = tpu.matmul %367, %394, %cst_268 {dimension_numbers = #tpu.dot_dimension_numbers<[1], [0], [0], [1], [0, 0, 1, 1], [], []>} : vector<32x32xbf16>, vector<32x32xbf16>, vector<32x32xf32> -> vector<32x32xf32>
    %396 = arith.truncf %395 : vector<32x32xf32> to vector<32x32xbf16>
    %c160_269 = arith.constant 160 : index
    %c0_270 = arith.constant 0 : index
    %397 = vector.load %arg11[%c160_269, %c0_270] : memref<288x32xbf16, #tpu.memory_space<vmem>>, vector<32x32xbf16>
    tpu.vector_store %arg11[%c160_269, %c0_270], %396 {strides = array<i32>} : memref<288x32xbf16, #tpu.memory_space<vmem>>, vector<32x32xbf16>,
    %c6_271 = arith.constant 6 : index
    %c0_272 = arith.constant 0 : index
    %c0_273 = arith.constant 0 : index
    %398 = vector.load %arg4[%c6_271, %c0_272, %c0_273] : memref<9x32x32xbf16, #tpu.memory_space<vmem>>, vector<1x32x32xbf16>
    %399 = vector.shape_cast %398 : vector<1x32x32xbf16> to vector<32x32xbf16>
    %cst_274 = arith.constant dense<0.000000e+00> : vector<32x32xf32>
    %400 = tpu.matmul %367, %399, %cst_274 {dimension_numbers = #tpu.dot_dimension_numbers<[1], [0], [0], [1], [0, 0, 1, 1], [], []>} : vector<32x32xbf16>, vector<32x32xbf16>, vector<32x32xf32> -> vector<32x32xf32>
    %401 = arith.truncf %400 : vector<32x32xf32> to vector<32x32xbf16>
    %c192_275 = arith.constant 192 : index
    %c0_276 = arith.constant 0 : index
    %402 = vector.load %arg11[%c192_275, %c0_276] : memref<288x32xbf16, #tpu.memory_space<vmem>>, vector<32x32xbf16>
    tpu.vector_store %arg11[%c192_275, %c0_276], %401 {strides = array<i32>} : memref<288x32xbf16, #tpu.memory_space<vmem>>, vector<32x32xbf16>,
    %c7_277 = arith.constant 7 : index
    %c0_278 = arith.constant 0 : index
    %c0_279 = arith.constant 0 : index
    %403 = vector.load %arg4[%c7_277, %c0_278, %c0_279] : memref<9x32x32xbf16, #tpu.memory_space<vmem>>, vector<1x32x32xbf16>
    %404 = vector.shape_cast %403 : vector<1x32x32xbf16> to vector<32x32xbf16>
    %cst_280 = arith.constant dense<0.000000e+00> : vector<32x32xf32>
    %405 = tpu.matmul %367, %404, %cst_280 {dimension_numbers = #tpu.dot_dimension_numbers<[1], [0], [0], [1], [0, 0, 1, 1], [], []>} : vector<32x32xbf16>, vector<32x32xbf16>, vector<32x32xf32> -> vector<32x32xf32>
    %406 = arith.truncf %405 : vector<32x32xf32> to vector<32x32xbf16>
    %c224_281 = arith.constant 224 : index
    %c0_282 = arith.constant 0 : index
    %407 = vector.load %arg11[%c224_281, %c0_282] : memref<288x32xbf16, #tpu.memory_space<vmem>>, vector<32x32xbf16>
    tpu.vector_store %arg11[%c224_281, %c0_282], %406 {strides = array<i32>} : memref<288x32xbf16, #tpu.memory_space<vmem>>, vector<32x32xbf16>,
    %c8_283 = arith.constant 8 : index
    %c0_284 = arith.constant 0 : index
    %c0_285 = arith.constant 0 : index
    %408 = vector.load %arg4[%c8_283, %c0_284, %c0_285] : memref<9x32x32xbf16, #tpu.memory_space<vmem>>, vector<1x32x32xbf16>
    %409 = vector.shape_cast %408 : vector<1x32x32xbf16> to vector<32x32xbf16>
    %cst_286 = arith.constant dense<0.000000e+00> : vector<32x32xf32>
    %410 = tpu.matmul %367, %409, %cst_286 {dimension_numbers = #tpu.dot_dimension_numbers<[1], [0], [0], [1], [0, 0, 1, 1], [], []>} : vector<32x32xbf16>, vector<32x32xbf16>, vector<32x32xf32> -> vector<32x32xf32>
    %411 = arith.truncf %410 : vector<32x32xf32> to vector<32x32xbf16>
    %c256_287 = arith.constant 256 : index
    %c0_288 = arith.constant 0 : index
    %412 = vector.load %arg11[%c256_287, %c0_288] : memref<288x32xbf16, #tpu.memory_space<vmem>>, vector<32x32xbf16>
    tpu.vector_store %arg11[%c256_287, %c0_288], %411 {strides = array<i32>} : memref<288x32xbf16, #tpu.memory_space<vmem>>, vector<32x32xbf16>,
    %c0_289 = arith.constant 0 : index
    %c0_290 = arith.constant 0 : index
    %413 = vector.load %arg3[%c0_289, %c0_290] : memref<32x288xbf16, #tpu.memory_space<vmem>>, vector<32x288xbf16>
    %c0_291 = arith.constant 0 : index
    %c0_292 = arith.constant 0 : index
    %414 = vector.load %arg11[%c0_291, %c0_292] : memref<288x32xbf16, #tpu.memory_space<vmem>>, vector<288x32xbf16>
    %cst_293 = arith.constant dense<0.000000e+00> : vector<32x32xf32>
    %415 = tpu.matmul %413, %414, %cst_293 {dimension_numbers = #tpu.dot_dimension_numbers<[1], [0], [0], [1], [0, 0, 1, 1], [], []>} : vector<32x288xbf16>, vector<288x32xbf16>, vector<32x32xf32> -> vector<32x32xf32>
    %416 = vector.broadcast %20 : vector<32x1xf32> to vector<32x32xf32>
    %417 = arith.addf %415, %416 : vector<32x32xf32>
    %cst_294 = arith.constant 0.000000e+00 : f32
    %418 = vector.broadcast %cst_294 : f32 to vector<32x32xf32>
    %419 = arith.mulf %417, %10 : vector<32x32xf32>
    %cst_295 = arith.constant dense<0.000000e+00> : vector<32xf32>
    %420 = vector.multi_reduction <add>, %419, %cst_295 [1] : vector<32x32xf32> to vector<32xf32>
    %421 = vector.shape_cast %420 : vector<32xf32> to vector<32x1xf32>
    %cst_296 = arith.constant 6.250000e-02 : f32
    %422 = vector.broadcast %cst_296 : f32 to vector<32x1xf32>
    %423 = arith.mulf %421, %422 : vector<32x1xf32>
    %424 = vector.broadcast %423 : vector<32x1xf32> to vector<32x32xf32>
    %425 = arith.mulf %424, %10 : vector<32x32xf32>
    %426 = arith.addf %418, %425 : vector<32x32xf32>
    %427 = arith.mulf %417, %17 : vector<32x32xf32>
    %cst_297 = arith.constant dense<0.000000e+00> : vector<32xf32>
    %428 = vector.multi_reduction <add>, %427, %cst_297 [1] : vector<32x32xf32> to vector<32xf32>
    %429 = vector.shape_cast %428 : vector<32xf32> to vector<32x1xf32>
    %cst_298 = arith.constant 6.250000e-02 : f32
    %430 = vector.broadcast %cst_298 : f32 to vector<32x1xf32>
    %431 = arith.mulf %429, %430 : vector<32x1xf32>
    %432 = vector.broadcast %431 : vector<32x1xf32> to vector<32x32xf32>
    %433 = arith.mulf %432, %17 : vector<32x32xf32>
    %434 = arith.addf %426, %433 : vector<32x32xf32>
    %435 = arith.subf %417, %434 : vector<32x32xf32>
    %cst_299 = arith.constant 0.000000e+00 : f32
    %436 = vector.broadcast %cst_299 : f32 to vector<32x32xf32>
    %437 = arith.mulf %435, %435 : vector<32x32xf32>
    %438 = arith.mulf %437, %10 : vector<32x32xf32>
    %cst_300 = arith.constant dense<0.000000e+00> : vector<32xf32>
    %439 = vector.multi_reduction <add>, %438, %cst_300 [1] : vector<32x32xf32> to vector<32xf32>
    %440 = vector.shape_cast %439 : vector<32xf32> to vector<32x1xf32>
    %cst_301 = arith.constant 6.250000e-02 : f32
    %441 = vector.broadcast %cst_301 : f32 to vector<32x1xf32>
    %442 = arith.mulf %440, %441 : vector<32x1xf32>
    %443 = vector.broadcast %442 : vector<32x1xf32> to vector<32x32xf32>
    %444 = arith.mulf %443, %10 : vector<32x32xf32>
    %445 = arith.addf %436, %444 : vector<32x32xf32>
    %446 = arith.mulf %435, %435 : vector<32x32xf32>
    %447 = arith.mulf %446, %17 : vector<32x32xf32>
    %cst_302 = arith.constant dense<0.000000e+00> : vector<32xf32>
    %448 = vector.multi_reduction <add>, %447, %cst_302 [1] : vector<32x32xf32> to vector<32xf32>
    %449 = vector.shape_cast %448 : vector<32xf32> to vector<32x1xf32>
    %cst_303 = arith.constant 6.250000e-02 : f32
    %450 = vector.broadcast %cst_303 : f32 to vector<32x1xf32>
    %451 = arith.mulf %449, %450 : vector<32x1xf32>
    %452 = vector.broadcast %451 : vector<32x1xf32> to vector<32x32xf32>
    %453 = arith.mulf %452, %17 : vector<32x32xf32>
    %454 = arith.addf %445, %453 : vector<32x32xf32>
    %cst_304 = arith.constant 9.99999974E-6 : f32
    %455 = vector.broadcast %cst_304 : f32 to vector<32x32xf32>
    %456 = arith.addf %454, %455 : vector<32x32xf32>
    %457 = math.rsqrt %456 : vector<32x32xf32>
    %458 = arith.mulf %435, %457 : vector<32x32xf32>
    %cst_305 = arith.constant 0.000000e+00 : f32
    %459 = vector.broadcast %cst_305 : f32 to vector<32x32xf32>
    %460 = arith.mulf %458, %10 : vector<32x32xf32>
    %cst_306 = arith.constant dense<0.000000e+00> : vector<32xf32>
    %461 = vector.multi_reduction <add>, %460, %cst_306 [1] : vector<32x32xf32> to vector<32xf32>
    %462 = vector.shape_cast %461 : vector<32xf32> to vector<32x1xf32>
    %cst_307 = arith.constant 6.250000e-02 : f32
    %463 = vector.broadcast %cst_307 : f32 to vector<32x1xf32>
    %464 = arith.mulf %462, %463 : vector<32x1xf32>
    %c0_308 = arith.constant 0 : index
    %c0_309 = arith.constant 0 : index
    %465 = vector.load %arg6[%c0_308, %c0_309] : memref<32x2xf32, #tpu.memory_space<vmem>>, vector<32x2xf32>
    %466 = vector.broadcast %464 : vector<32x1xf32> to vector<32x2xf32>
    %467 = arith.mulf %465, %466 : vector<32x2xf32>
    %cst_310 = arith.constant dense<0.000000e+00> : vector<2xf32>
    %468 = vector.multi_reduction <add>, %467, %cst_310 [0] : vector<32x2xf32> to vector<2xf32>
    %469 = vector.shape_cast %468 : vector<2xf32> to vector<1x2xf32>
    %c0_311 = arith.constant 0 : index
    %c0_312 = arith.constant 0 : index
    %470 = vector.load %arg7[%c0_311, %c0_312] : memref<1x2xf32, #tpu.memory_space<vmem>>, vector<1x2xf32>
    %471 = arith.addf %469, %470 : vector<1x2xf32>
    %cst_313 = arith.constant 0.000000e+00 : f32
    %472 = vector.broadcast %cst_313 : f32 to vector<1x2xf32>
    %473 = arith.maximumf %471, %472 : vector<1x2xf32>
    %c0_314 = arith.constant 0 : index
    %c0_315 = arith.constant 0 : index
    %474 = vector.load %arg8[%c0_314, %c0_315] : memref<32x2xf32, #tpu.memory_space<vmem>>, vector<32x2xf32>
    %475 = vector.broadcast %473 : vector<1x2xf32> to vector<32x2xf32>
    %476 = arith.mulf %474, %475 : vector<32x2xf32>
    %cst_316 = arith.constant dense<0.000000e+00> : vector<32xf32>
    %477 = vector.multi_reduction <add>, %476, %cst_316 [1] : vector<32x2xf32> to vector<32xf32>
    %478 = vector.shape_cast %477 : vector<32xf32> to vector<32x1xf32>
    %479 = arith.addf %478, %21 : vector<32x1xf32>
    %480 = arith.negf %479 : vector<32x1xf32>
    %481 = math.exp %480 : vector<32x1xf32>
    %cst_317 = arith.constant 1.000000e+00 : f32
    %482 = vector.broadcast %cst_317 : f32 to vector<32x1xf32>
    %483 = arith.addf %482, %481 : vector<32x1xf32>
    %484 = arith.divf %482, %483 : vector<32x1xf32>
    %485 = vector.broadcast %484 : vector<32x1xf32> to vector<32x32xf32>
    %486 = arith.mulf %485, %10 : vector<32x32xf32>
    %487 = arith.addf %459, %486 : vector<32x32xf32>
    %488 = arith.mulf %458, %17 : vector<32x32xf32>
    %cst_318 = arith.constant dense<0.000000e+00> : vector<32xf32>
    %489 = vector.multi_reduction <add>, %488, %cst_318 [1] : vector<32x32xf32> to vector<32xf32>
    %490 = vector.shape_cast %489 : vector<32xf32> to vector<32x1xf32>
    %cst_319 = arith.constant 6.250000e-02 : f32
    %491 = vector.broadcast %cst_319 : f32 to vector<32x1xf32>
    %492 = arith.mulf %490, %491 : vector<32x1xf32>
    %c0_320 = arith.constant 0 : index
    %c0_321 = arith.constant 0 : index
    %493 = vector.load %arg6[%c0_320, %c0_321] : memref<32x2xf32, #tpu.memory_space<vmem>>, vector<32x2xf32>
    %494 = vector.broadcast %492 : vector<32x1xf32> to vector<32x2xf32>
    %495 = arith.mulf %493, %494 : vector<32x2xf32>
    %cst_322 = arith.constant dense<0.000000e+00> : vector<2xf32>
    %496 = vector.multi_reduction <add>, %495, %cst_322 [0] : vector<32x2xf32> to vector<2xf32>
    %497 = vector.shape_cast %496 : vector<2xf32> to vector<1x2xf32>
    %c0_323 = arith.constant 0 : index
    %c0_324 = arith.constant 0 : index
    %498 = vector.load %arg7[%c0_323, %c0_324] : memref<1x2xf32, #tpu.memory_space<vmem>>, vector<1x2xf32>
    %499 = arith.addf %497, %498 : vector<1x2xf32>
    %cst_325 = arith.constant 0.000000e+00 : f32
    %500 = vector.broadcast %cst_325 : f32 to vector<1x2xf32>
    %501 = arith.maximumf %499, %500 : vector<1x2xf32>
    %c0_326 = arith.constant 0 : index
    %c0_327 = arith.constant 0 : index
    %502 = vector.load %arg8[%c0_326, %c0_327] : memref<32x2xf32, #tpu.memory_space<vmem>>, vector<32x2xf32>
    %503 = vector.broadcast %501 : vector<1x2xf32> to vector<32x2xf32>
    %504 = arith.mulf %502, %503 : vector<32x2xf32>
    %cst_328 = arith.constant dense<0.000000e+00> : vector<32xf32>
    %505 = vector.multi_reduction <add>, %504, %cst_328 [1] : vector<32x2xf32> to vector<32xf32>
    %506 = vector.shape_cast %505 : vector<32xf32> to vector<32x1xf32>
    %507 = arith.addf %506, %21 : vector<32x1xf32>
    %508 = arith.negf %507 : vector<32x1xf32>
    %509 = math.exp %508 : vector<32x1xf32>
    %cst_329 = arith.constant 1.000000e+00 : f32
    %510 = vector.broadcast %cst_329 : f32 to vector<32x1xf32>
    %511 = arith.addf %510, %509 : vector<32x1xf32>
    %512 = arith.divf %510, %511 : vector<32x1xf32>
    %513 = vector.broadcast %512 : vector<32x1xf32> to vector<32x32xf32>
    %514 = arith.mulf %513, %17 : vector<32x32xf32>
    %515 = arith.addf %487, %514 : vector<32x32xf32>
    %516 = arith.mulf %458, %515 : vector<32x32xf32>
    %c0_330 = arith.constant 0 : index
    %c0_331 = arith.constant 0 : index
    %517 = vector.load %arg10[%c0_330, %c0_331] : memref<32x32xf32, #tpu.memory_space<vmem>>, vector<32x32xf32>
    %518 = arith.addf %516, %517 : vector<32x32xf32>
    %cst_332 = arith.constant 0.000000e+00 : f32
    %519 = vector.broadcast %cst_332 : f32 to vector<32x32xf32>
    %520 = arith.maximumf %518, %519 : vector<32x32xf32>
    %c0_333 = arith.constant 0 : index
    %c0_334 = arith.constant 0 : index
    %521 = vector.load %arg10[%c0_333, %c0_334] : memref<32x32xf32, #tpu.memory_space<vmem>>, vector<32x32xf32>
    tpu.vector_store %arg10[%c0_333, %c0_334], %520 {strides = array<i32>} : memref<32x32xf32, #tpu.memory_space<vmem>>, vector<32x32xf32>,
    %c0_335 = arith.constant 0 : index
    %c0_336 = arith.constant 0 : index
    %522 = vector.load %arg10[%c0_335, %c0_336] : memref<32x32xf32, #tpu.memory_space<vmem>>, vector<32x32xf32>
    %523 = arith.truncf %522 : vector<32x32xf32> to vector<32x32xbf16>
    %c0_337 = arith.constant 0 : index
    %c0_338 = arith.constant 0 : index
    %524 = vector.load %arg9[%c0_337, %c0_338] : memref<32x32xbf16, #tpu.memory_space<vmem>>, vector<32x32xbf16>
    tpu.vector_store %arg9[%c0_337, %c0_338], %523 {strides = array<i32>} : memref<32x32xbf16, #tpu.memory_space<vmem>>, vector<32x32xbf16>,
    return
  }
  func.func @transform_0(%arg0: i32) -> (i32, i32) {
    %c0_i32 = arith.constant 0 : i32
    %c0_i32_0 = arith.constant 0 : i32
    %c0_i32_1 = arith.constant 0 : i32
    return %c0_i32, %c0_i32_0 : i32, i32
  }
  func.func @transform_1(%arg0: i32) -> (i32, i32) {
    %c0_i32 = arith.constant 0 : i32
    %c0_i32_0 = arith.constant 0 : i32
    %c0_i32_1 = arith.constant 0 : i32
    return %c0_i32, %c0_i32_0 : i32, i32
  }
  func.func @transform_2(%arg0: i32) -> (i32, i32) {
    %c0_i32 = arith.constant 0 : i32
    %c0_i32_0 = arith.constant 0 : i32
    %c0_i32_1 = arith.constant 0 : i32
    return %c0_i32, %c0_i32_0 : i32, i32
  }
  func.func @transform_3(%arg0: i32) -> (i32, i32, i32) {
    %c0_i32 = arith.constant 0 : i32
    %c0_i32_0 = arith.constant 0 : i32
    %c0_i32_1 = arith.constant 0 : i32
    %c0_i32_2 = arith.constant 0 : i32
    return %c0_i32, %c0_i32_0, %c0_i32_1 : i32, i32, i32
  }
  func.func @transform_4(%arg0: i32) -> (i32, i32) {
    %c0_i32 = arith.constant 0 : i32
    %c0_i32_0 = arith.constant 0 : i32
    %c0_i32_1 = arith.constant 0 : i32
    return %c0_i32, %c0_i32_0 : i32, i32
  }
  func.func @transform_5(%arg0: i32) -> (i32, i32) {
    %c0_i32 = arith.constant 0 : i32
    %c0_i32_0 = arith.constant 0 : i32
    %c0_i32_1 = arith.constant 0 : i32
    return %c0_i32, %c0_i32_0 : i32, i32
  }
  func.func @transform_6(%arg0: i32) -> (i32, i32) {
    %c0_i32 = arith.constant 0 : i32
    %c0_i32_0 = arith.constant 0 : i32
    %c0_i32_1 = arith.constant 0 : i32
    return %c0_i32, %c0_i32_0 : i32, i32
  }
  func.func @transform_7(%arg0: i32) -> (i32, i32) {
    %c0_i32 = arith.constant 0 : i32
    %c0_i32_0 = arith.constant 0 : i32
    %c0_i32_1 = arith.constant 0 : i32
    return %c0_i32, %c0_i32_0 : i32, i32
  }
  func.func @transform_8(%arg0: i32) -> (i32, i32) {
    %c0_i32 = arith.constant 0 : i32
    %c0_i32_0 = arith.constant 0 : i32
    %c0_i32_1 = arith.constant 0 : i32
    return %c0_i32, %c0_i32_0 : i32, i32
  }
}

module attributes {stable_mosaic.version = 11 : i64} {
  func.func @_deconv_fused_kernel(%arg0: i32, %arg1: memref<64x128xbf16, #tpu.memory_space<vmem>>, %arg2: memref<128x32xbf16, #tpu.memory_space<vmem>>, %arg3: memref<64x3xf32, #tpu.memory_space<vmem>>, %arg4: memref<64x32xbf16, #tpu.memory_space<vmem>>) attributes {dimension_semantics = [#tpu.dimension_semantics<arbitrary>], iteration_bounds = array<i64: 1>, scalar_prefetch = 0 : i64, scratch_operands = 0 : i64, tpu.core_type = #tpu.core_type<tc>, window_params = [{pipeline_mode = #tpu.pipeline_mode<synchronous>, transform_indices = @transform_0, window_bounds = array<i64: 64, 128>}, {pipeline_mode = #tpu.pipeline_mode<synchronous>, transform_indices = @transform_1, window_bounds = array<i64: 128, 32>}, {pipeline_mode = #tpu.pipeline_mode<synchronous>, transform_indices = @transform_2, window_bounds = array<i64: 64, 3>}, {pipeline_mode = #tpu.pipeline_mode<synchronous>, transform_indices = @transform_3, window_bounds = array<i64: 64, 32>}]} {
    %c0 = arith.constant 0 : index
    %c0_0 = arith.constant 0 : index
    %0 = vector.load %arg1[%c0, %c0_0] : memref<64x128xbf16, #tpu.memory_space<vmem>>, vector<64x128xbf16>
    %c0_1 = arith.constant 0 : index
    %c0_2 = arith.constant 0 : index
    %1 = vector.load %arg2[%c0_1, %c0_2] : memref<128x32xbf16, #tpu.memory_space<vmem>>, vector<128x32xbf16>
    %cst = arith.constant dense<0.000000e+00> : vector<64x32xf32>
    %2 = tpu.matmul %0, %1, %cst {dimension_numbers = #tpu.dot_dimension_numbers<[1], [0], [0], [1], [0, 0, 1, 1], [], []>} : vector<64x128xbf16>, vector<128x32xbf16>, vector<64x32xf32> -> vector<64x32xf32>
    %c0_3 = arith.constant 0 : index
    %c0_4 = arith.constant 0 : index
    %3 = vector.load %arg3[%c0_3, %c0_4] : memref<64x3xf32, #tpu.memory_space<vmem>>, vector<64x3xf32>
    %4 = vector.extract_strided_slice %3 {offsets = [0, 0], sizes = [64, 1], strides = [1, 1]} : vector<64x3xf32> to vector<64x1xf32>
    %5 = vector.broadcast %4 : vector<64x1xf32> to vector<64x32xf32>
    %6 = arith.addf %2, %5 : vector<64x32xf32>
    %7 = tpu.iota {dimensions = array<i32: 1>} : vector<64x32xi32>
    %c0_i32 = arith.constant 0 : i32
    %8 = vector.broadcast %c0_i32 : i32 to vector<64x32xi32>
    %9 = arith.cmpi sge, %7, %8 : vector<64x32xi32>
    %c16_i32 = arith.constant 16 : i32
    %10 = vector.broadcast %c16_i32 : i32 to vector<64x32xi32>
    %11 = arith.cmpi slt, %7, %10 : vector<64x32xi32>
    %12 = arith.andi %9, %11 : vector<64x32xi1>
    %13 = arith.extui %12 : vector<64x32xi1> to vector<64x32xi32>
    %14 = arith.sitofp %13 : vector<64x32xi32> to vector<64x32xf32>
    %c16_i32_5 = arith.constant 16 : i32
    %15 = vector.broadcast %c16_i32_5 : i32 to vector<64x32xi32>
    %16 = arith.cmpi sge, %7, %15 : vector<64x32xi32>
    %c32_i32 = arith.constant 32 : i32
    %17 = vector.broadcast %c32_i32 : i32 to vector<64x32xi32>
    %18 = arith.cmpi slt, %7, %17 : vector<64x32xi32>
    %19 = arith.andi %16, %18 : vector<64x32xi1>
    %20 = arith.extui %19 : vector<64x32xi1> to vector<64x32xi32>
    %21 = arith.sitofp %20 : vector<64x32xi32> to vector<64x32xf32>
    %cst_6 = arith.constant 0.000000e+00 : f32
    %22 = vector.broadcast %cst_6 : f32 to vector<64x32xf32>
    %23 = arith.mulf %6, %14 : vector<64x32xf32>
    %cst_7 = arith.constant dense<0.000000e+00> : vector<64xf32>
    %24 = vector.multi_reduction <add>, %23, %cst_7 [1] : vector<64x32xf32> to vector<64xf32>
    %25 = vector.shape_cast %24 : vector<64xf32> to vector<64x1xf32>
    %26 = vector.extract_strided_slice %25 {offsets = [0, 0], sizes = [16, 1], strides = [1, 1]} : vector<64x1xf32> to vector<16x1xf32>
    %27 = vector.extract_strided_slice %25 {offsets = [16, 0], sizes = [16, 1], strides = [1, 1]} : vector<64x1xf32> to vector<16x1xf32>
    %28 = arith.addf %26, %27 : vector<16x1xf32>
    %29 = vector.extract_strided_slice %25 {offsets = [32, 0], sizes = [16, 1], strides = [1, 1]} : vector<64x1xf32> to vector<16x1xf32>
    %30 = arith.addf %28, %29 : vector<16x1xf32>
    %31 = vector.extract_strided_slice %25 {offsets = [48, 0], sizes = [16, 1], strides = [1, 1]} : vector<64x1xf32> to vector<16x1xf32>
    %32 = arith.addf %30, %31 : vector<16x1xf32>
    %33 = tpu.concatenate %32, %32, %32, %32 in 0 : vector<16x1xf32>, vector<16x1xf32>, vector<16x1xf32>, vector<16x1xf32> -> vector<64x1xf32>
    %cst_8 = arith.constant 1.562500e-02 : f32
    %34 = vector.broadcast %cst_8 : f32 to vector<64x1xf32>
    %35 = arith.mulf %33, %34 : vector<64x1xf32>
    %36 = vector.broadcast %35 : vector<64x1xf32> to vector<64x32xf32>
    %37 = arith.mulf %36, %14 : vector<64x32xf32>
    %38 = arith.addf %22, %37 : vector<64x32xf32>
    %39 = arith.mulf %6, %21 : vector<64x32xf32>
    %cst_9 = arith.constant dense<0.000000e+00> : vector<64xf32>
    %40 = vector.multi_reduction <add>, %39, %cst_9 [1] : vector<64x32xf32> to vector<64xf32>
    %41 = vector.shape_cast %40 : vector<64xf32> to vector<64x1xf32>
    %42 = vector.extract_strided_slice %41 {offsets = [0, 0], sizes = [16, 1], strides = [1, 1]} : vector<64x1xf32> to vector<16x1xf32>
    %43 = vector.extract_strided_slice %41 {offsets = [16, 0], sizes = [16, 1], strides = [1, 1]} : vector<64x1xf32> to vector<16x1xf32>
    %44 = arith.addf %42, %43 : vector<16x1xf32>
    %45 = vector.extract_strided_slice %41 {offsets = [32, 0], sizes = [16, 1], strides = [1, 1]} : vector<64x1xf32> to vector<16x1xf32>
    %46 = arith.addf %44, %45 : vector<16x1xf32>
    %47 = vector.extract_strided_slice %41 {offsets = [48, 0], sizes = [16, 1], strides = [1, 1]} : vector<64x1xf32> to vector<16x1xf32>
    %48 = arith.addf %46, %47 : vector<16x1xf32>
    %49 = tpu.concatenate %48, %48, %48, %48 in 0 : vector<16x1xf32>, vector<16x1xf32>, vector<16x1xf32>, vector<16x1xf32> -> vector<64x1xf32>
    %cst_10 = arith.constant 1.562500e-02 : f32
    %50 = vector.broadcast %cst_10 : f32 to vector<64x1xf32>
    %51 = arith.mulf %49, %50 : vector<64x1xf32>
    %52 = vector.broadcast %51 : vector<64x1xf32> to vector<64x32xf32>
    %53 = arith.mulf %52, %21 : vector<64x32xf32>
    %54 = arith.addf %38, %53 : vector<64x32xf32>
    %55 = arith.subf %6, %54 : vector<64x32xf32>
    %cst_11 = arith.constant 0.000000e+00 : f32
    %56 = vector.broadcast %cst_11 : f32 to vector<64x32xf32>
    %57 = arith.mulf %55, %55 : vector<64x32xf32>
    %58 = arith.mulf %57, %14 : vector<64x32xf32>
    %cst_12 = arith.constant dense<0.000000e+00> : vector<64xf32>
    %59 = vector.multi_reduction <add>, %58, %cst_12 [1] : vector<64x32xf32> to vector<64xf32>
    %60 = vector.shape_cast %59 : vector<64xf32> to vector<64x1xf32>
    %61 = vector.extract_strided_slice %60 {offsets = [0, 0], sizes = [16, 1], strides = [1, 1]} : vector<64x1xf32> to vector<16x1xf32>
    %62 = vector.extract_strided_slice %60 {offsets = [16, 0], sizes = [16, 1], strides = [1, 1]} : vector<64x1xf32> to vector<16x1xf32>
    %63 = arith.addf %61, %62 : vector<16x1xf32>
    %64 = vector.extract_strided_slice %60 {offsets = [32, 0], sizes = [16, 1], strides = [1, 1]} : vector<64x1xf32> to vector<16x1xf32>
    %65 = arith.addf %63, %64 : vector<16x1xf32>
    %66 = vector.extract_strided_slice %60 {offsets = [48, 0], sizes = [16, 1], strides = [1, 1]} : vector<64x1xf32> to vector<16x1xf32>
    %67 = arith.addf %65, %66 : vector<16x1xf32>
    %68 = tpu.concatenate %67, %67, %67, %67 in 0 : vector<16x1xf32>, vector<16x1xf32>, vector<16x1xf32>, vector<16x1xf32> -> vector<64x1xf32>
    %cst_13 = arith.constant 1.562500e-02 : f32
    %69 = vector.broadcast %cst_13 : f32 to vector<64x1xf32>
    %70 = arith.mulf %68, %69 : vector<64x1xf32>
    %71 = vector.broadcast %70 : vector<64x1xf32> to vector<64x32xf32>
    %72 = arith.mulf %71, %14 : vector<64x32xf32>
    %73 = arith.addf %56, %72 : vector<64x32xf32>
    %74 = arith.mulf %55, %55 : vector<64x32xf32>
    %75 = arith.mulf %74, %21 : vector<64x32xf32>
    %cst_14 = arith.constant dense<0.000000e+00> : vector<64xf32>
    %76 = vector.multi_reduction <add>, %75, %cst_14 [1] : vector<64x32xf32> to vector<64xf32>
    %77 = vector.shape_cast %76 : vector<64xf32> to vector<64x1xf32>
    %78 = vector.extract_strided_slice %77 {offsets = [0, 0], sizes = [16, 1], strides = [1, 1]} : vector<64x1xf32> to vector<16x1xf32>
    %79 = vector.extract_strided_slice %77 {offsets = [16, 0], sizes = [16, 1], strides = [1, 1]} : vector<64x1xf32> to vector<16x1xf32>
    %80 = arith.addf %78, %79 : vector<16x1xf32>
    %81 = vector.extract_strided_slice %77 {offsets = [32, 0], sizes = [16, 1], strides = [1, 1]} : vector<64x1xf32> to vector<16x1xf32>
    %82 = arith.addf %80, %81 : vector<16x1xf32>
    %83 = vector.extract_strided_slice %77 {offsets = [48, 0], sizes = [16, 1], strides = [1, 1]} : vector<64x1xf32> to vector<16x1xf32>
    %84 = arith.addf %82, %83 : vector<16x1xf32>
    %85 = tpu.concatenate %84, %84, %84, %84 in 0 : vector<16x1xf32>, vector<16x1xf32>, vector<16x1xf32>, vector<16x1xf32> -> vector<64x1xf32>
    %cst_15 = arith.constant 1.562500e-02 : f32
    %86 = vector.broadcast %cst_15 : f32 to vector<64x1xf32>
    %87 = arith.mulf %85, %86 : vector<64x1xf32>
    %88 = vector.broadcast %87 : vector<64x1xf32> to vector<64x32xf32>
    %89 = arith.mulf %88, %21 : vector<64x32xf32>
    %90 = arith.addf %73, %89 : vector<64x32xf32>
    %cst_16 = arith.constant 9.99999974E-6 : f32
    %91 = vector.broadcast %cst_16 : f32 to vector<64x32xf32>
    %92 = arith.addf %90, %91 : vector<64x32xf32>
    %93 = math.rsqrt %92 : vector<64x32xf32>
    %94 = arith.mulf %55, %93 : vector<64x32xf32>
    %95 = vector.extract_strided_slice %3 {offsets = [0, 1], sizes = [64, 1], strides = [1, 1]} : vector<64x3xf32> to vector<64x1xf32>
    %96 = vector.broadcast %95 : vector<64x1xf32> to vector<64x32xf32>
    %97 = arith.mulf %94, %96 : vector<64x32xf32>
    %98 = vector.extract_strided_slice %3 {offsets = [0, 2], sizes = [64, 1], strides = [1, 1]} : vector<64x3xf32> to vector<64x1xf32>
    %99 = vector.broadcast %98 : vector<64x1xf32> to vector<64x32xf32>
    %100 = arith.addf %97, %99 : vector<64x32xf32>
    %cst_17 = arith.constant 0.000000e+00 : f32
    %101 = vector.broadcast %cst_17 : f32 to vector<64x32xf32>
    %102 = arith.maximumf %100, %101 : vector<64x32xf32>
    %103 = arith.truncf %102 : vector<64x32xf32> to vector<64x32xbf16>
    %c0_18 = arith.constant 0 : index
    %c0_19 = arith.constant 0 : index
    %104 = vector.load %arg4[%c0_18, %c0_19] : memref<64x32xbf16, #tpu.memory_space<vmem>>, vector<64x32xbf16>
    tpu.vector_store %arg4[%c0_18, %c0_19], %103 {strides = array<i32>} : memref<64x32xbf16, #tpu.memory_space<vmem>>, vector<64x32xbf16>,
    return
  }
  func.func @transform_0(%arg0: i32) -> (i32, i32) {
    %c0_i32 = arith.constant 0 : i32
    %c0_i32_0 = arith.constant 0 : i32
    %c0_i32_1 = arith.constant 0 : i32
    return %c0_i32, %c0_i32_0 : i32, i32
  }
  func.func @transform_1(%arg0: i32) -> (i32, i32) {
    %c0_i32 = arith.constant 0 : i32
    %c0_i32_0 = arith.constant 0 : i32
    %c0_i32_1 = arith.constant 0 : i32
    return %c0_i32, %c0_i32_0 : i32, i32
  }
  func.func @transform_2(%arg0: i32) -> (i32, i32) {
    %c0_i32 = arith.constant 0 : i32
    %c0_i32_0 = arith.constant 0 : i32
    %c0_i32_1 = arith.constant 0 : i32
    return %c0_i32, %c0_i32_0 : i32, i32
  }
  func.func @transform_3(%arg0: i32) -> (i32, i32) {
    %c0_i32 = arith.constant 0 : i32
    %c0_i32_0 = arith.constant 0 : i32
    %c0_i32_1 = arith.constant 0 : i32
    return %c0_i32, %c0_i32_0 : i32, i32
  }
}

module attributes {stable_mosaic.version = 11 : i64} {
  func.func @_deconv_fused_kernel(%arg0: i32, %arg1: memref<32x64xbf16, #tpu.memory_space<vmem>>, %arg2: memref<64x128xbf16, #tpu.memory_space<vmem>>, %arg3: memref<32x3xf32, #tpu.memory_space<vmem>>, %arg4: memref<32x128xbf16, #tpu.memory_space<vmem>>) attributes {dimension_semantics = [#tpu.dimension_semantics<arbitrary>], iteration_bounds = array<i64: 1>, scalar_prefetch = 0 : i64, scratch_operands = 0 : i64, tpu.core_type = #tpu.core_type<tc>, window_params = [{pipeline_mode = #tpu.pipeline_mode<synchronous>, transform_indices = @transform_0, window_bounds = array<i64: 32, 64>}, {pipeline_mode = #tpu.pipeline_mode<synchronous>, transform_indices = @transform_1, window_bounds = array<i64: 64, 128>}, {pipeline_mode = #tpu.pipeline_mode<synchronous>, transform_indices = @transform_2, window_bounds = array<i64: 32, 3>}, {pipeline_mode = #tpu.pipeline_mode<synchronous>, transform_indices = @transform_3, window_bounds = array<i64: 32, 128>}]} {
    %c0 = arith.constant 0 : index
    %c0_0 = arith.constant 0 : index
    %0 = vector.load %arg1[%c0, %c0_0] : memref<32x64xbf16, #tpu.memory_space<vmem>>, vector<32x64xbf16>
    %c0_1 = arith.constant 0 : index
    %c0_2 = arith.constant 0 : index
    %1 = vector.load %arg2[%c0_1, %c0_2] : memref<64x128xbf16, #tpu.memory_space<vmem>>, vector<64x128xbf16>
    %cst = arith.constant dense<0.000000e+00> : vector<32x128xf32>
    %2 = tpu.matmul %0, %1, %cst {dimension_numbers = #tpu.dot_dimension_numbers<[1], [0], [0], [1], [0, 0, 1, 1], [], []>} : vector<32x64xbf16>, vector<64x128xbf16>, vector<32x128xf32> -> vector<32x128xf32>
    %c0_3 = arith.constant 0 : index
    %c0_4 = arith.constant 0 : index
    %3 = vector.load %arg3[%c0_3, %c0_4] : memref<32x3xf32, #tpu.memory_space<vmem>>, vector<32x3xf32>
    %4 = vector.extract_strided_slice %3 {offsets = [0, 0], sizes = [32, 1], strides = [1, 1]} : vector<32x3xf32> to vector<32x1xf32>
    %5 = vector.broadcast %4 : vector<32x1xf32> to vector<32x128xf32>
    %6 = arith.addf %2, %5 : vector<32x128xf32>
    %7 = tpu.iota {dimensions = array<i32: 1>} : vector<32x128xi32>
    %c0_i32 = arith.constant 0 : i32
    %8 = vector.broadcast %c0_i32 : i32 to vector<32x128xi32>
    %9 = arith.cmpi sge, %7, %8 : vector<32x128xi32>
    %c64_i32 = arith.constant 64 : i32
    %10 = vector.broadcast %c64_i32 : i32 to vector<32x128xi32>
    %11 = arith.cmpi slt, %7, %10 : vector<32x128xi32>
    %12 = arith.andi %9, %11 : vector<32x128xi1>
    %13 = arith.extui %12 : vector<32x128xi1> to vector<32x128xi32>
    %14 = arith.sitofp %13 : vector<32x128xi32> to vector<32x128xf32>
    %c64_i32_5 = arith.constant 64 : i32
    %15 = vector.broadcast %c64_i32_5 : i32 to vector<32x128xi32>
    %16 = arith.cmpi sge, %7, %15 : vector<32x128xi32>
    %c128_i32 = arith.constant 128 : i32
    %17 = vector.broadcast %c128_i32 : i32 to vector<32x128xi32>
    %18 = arith.cmpi slt, %7, %17 : vector<32x128xi32>
    %19 = arith.andi %16, %18 : vector<32x128xi1>
    %20 = arith.extui %19 : vector<32x128xi1> to vector<32x128xi32>
    %21 = arith.sitofp %20 : vector<32x128xi32> to vector<32x128xf32>
    %cst_6 = arith.constant 0.000000e+00 : f32
    %22 = vector.broadcast %cst_6 : f32 to vector<32x128xf32>
    %23 = arith.mulf %6, %14 : vector<32x128xf32>
    %cst_7 = arith.constant dense<0.000000e+00> : vector<32xf32>
    %24 = vector.multi_reduction <add>, %23, %cst_7 [1] : vector<32x128xf32> to vector<32xf32>
    %25 = vector.shape_cast %24 : vector<32xf32> to vector<32x1xf32>
    %26 = vector.extract_strided_slice %25 {offsets = [0, 0], sizes = [8, 1], strides = [1, 1]} : vector<32x1xf32> to vector<8x1xf32>
    %27 = vector.extract_strided_slice %25 {offsets = [8, 0], sizes = [8, 1], strides = [1, 1]} : vector<32x1xf32> to vector<8x1xf32>
    %28 = arith.addf %26, %27 : vector<8x1xf32>
    %29 = vector.extract_strided_slice %25 {offsets = [16, 0], sizes = [8, 1], strides = [1, 1]} : vector<32x1xf32> to vector<8x1xf32>
    %30 = arith.addf %28, %29 : vector<8x1xf32>
    %31 = vector.extract_strided_slice %25 {offsets = [24, 0], sizes = [8, 1], strides = [1, 1]} : vector<32x1xf32> to vector<8x1xf32>
    %32 = arith.addf %30, %31 : vector<8x1xf32>
    %33 = tpu.concatenate %32, %32, %32, %32 in 0 : vector<8x1xf32>, vector<8x1xf32>, vector<8x1xf32>, vector<8x1xf32> -> vector<32x1xf32>
    %cst_8 = arith.constant 3.906250e-03 : f32
    %34 = vector.broadcast %cst_8 : f32 to vector<32x1xf32>
    %35 = arith.mulf %33, %34 : vector<32x1xf32>
    %36 = vector.broadcast %35 : vector<32x1xf32> to vector<32x128xf32>
    %37 = arith.mulf %36, %14 : vector<32x128xf32>
    %38 = arith.addf %22, %37 : vector<32x128xf32>
    %39 = arith.mulf %6, %21 : vector<32x128xf32>
    %cst_9 = arith.constant dense<0.000000e+00> : vector<32xf32>
    %40 = vector.multi_reduction <add>, %39, %cst_9 [1] : vector<32x128xf32> to vector<32xf32>
    %41 = vector.shape_cast %40 : vector<32xf32> to vector<32x1xf32>
    %42 = vector.extract_strided_slice %41 {offsets = [0, 0], sizes = [8, 1], strides = [1, 1]} : vector<32x1xf32> to vector<8x1xf32>
    %43 = vector.extract_strided_slice %41 {offsets = [8, 0], sizes = [8, 1], strides = [1, 1]} : vector<32x1xf32> to vector<8x1xf32>
    %44 = arith.addf %42, %43 : vector<8x1xf32>
    %45 = vector.extract_strided_slice %41 {offsets = [16, 0], sizes = [8, 1], strides = [1, 1]} : vector<32x1xf32> to vector<8x1xf32>
    %46 = arith.addf %44, %45 : vector<8x1xf32>
    %47 = vector.extract_strided_slice %41 {offsets = [24, 0], sizes = [8, 1], strides = [1, 1]} : vector<32x1xf32> to vector<8x1xf32>
    %48 = arith.addf %46, %47 : vector<8x1xf32>
    %49 = tpu.concatenate %48, %48, %48, %48 in 0 : vector<8x1xf32>, vector<8x1xf32>, vector<8x1xf32>, vector<8x1xf32> -> vector<32x1xf32>
    %cst_10 = arith.constant 3.906250e-03 : f32
    %50 = vector.broadcast %cst_10 : f32 to vector<32x1xf32>
    %51 = arith.mulf %49, %50 : vector<32x1xf32>
    %52 = vector.broadcast %51 : vector<32x1xf32> to vector<32x128xf32>
    %53 = arith.mulf %52, %21 : vector<32x128xf32>
    %54 = arith.addf %38, %53 : vector<32x128xf32>
    %55 = arith.subf %6, %54 : vector<32x128xf32>
    %cst_11 = arith.constant 0.000000e+00 : f32
    %56 = vector.broadcast %cst_11 : f32 to vector<32x128xf32>
    %57 = arith.mulf %55, %55 : vector<32x128xf32>
    %58 = arith.mulf %57, %14 : vector<32x128xf32>
    %cst_12 = arith.constant dense<0.000000e+00> : vector<32xf32>
    %59 = vector.multi_reduction <add>, %58, %cst_12 [1] : vector<32x128xf32> to vector<32xf32>
    %60 = vector.shape_cast %59 : vector<32xf32> to vector<32x1xf32>
    %61 = vector.extract_strided_slice %60 {offsets = [0, 0], sizes = [8, 1], strides = [1, 1]} : vector<32x1xf32> to vector<8x1xf32>
    %62 = vector.extract_strided_slice %60 {offsets = [8, 0], sizes = [8, 1], strides = [1, 1]} : vector<32x1xf32> to vector<8x1xf32>
    %63 = arith.addf %61, %62 : vector<8x1xf32>
    %64 = vector.extract_strided_slice %60 {offsets = [16, 0], sizes = [8, 1], strides = [1, 1]} : vector<32x1xf32> to vector<8x1xf32>
    %65 = arith.addf %63, %64 : vector<8x1xf32>
    %66 = vector.extract_strided_slice %60 {offsets = [24, 0], sizes = [8, 1], strides = [1, 1]} : vector<32x1xf32> to vector<8x1xf32>
    %67 = arith.addf %65, %66 : vector<8x1xf32>
    %68 = tpu.concatenate %67, %67, %67, %67 in 0 : vector<8x1xf32>, vector<8x1xf32>, vector<8x1xf32>, vector<8x1xf32> -> vector<32x1xf32>
    %cst_13 = arith.constant 3.906250e-03 : f32
    %69 = vector.broadcast %cst_13 : f32 to vector<32x1xf32>
    %70 = arith.mulf %68, %69 : vector<32x1xf32>
    %71 = vector.broadcast %70 : vector<32x1xf32> to vector<32x128xf32>
    %72 = arith.mulf %71, %14 : vector<32x128xf32>
    %73 = arith.addf %56, %72 : vector<32x128xf32>
    %74 = arith.mulf %55, %55 : vector<32x128xf32>
    %75 = arith.mulf %74, %21 : vector<32x128xf32>
    %cst_14 = arith.constant dense<0.000000e+00> : vector<32xf32>
    %76 = vector.multi_reduction <add>, %75, %cst_14 [1] : vector<32x128xf32> to vector<32xf32>
    %77 = vector.shape_cast %76 : vector<32xf32> to vector<32x1xf32>
    %78 = vector.extract_strided_slice %77 {offsets = [0, 0], sizes = [8, 1], strides = [1, 1]} : vector<32x1xf32> to vector<8x1xf32>
    %79 = vector.extract_strided_slice %77 {offsets = [8, 0], sizes = [8, 1], strides = [1, 1]} : vector<32x1xf32> to vector<8x1xf32>
    %80 = arith.addf %78, %79 : vector<8x1xf32>
    %81 = vector.extract_strided_slice %77 {offsets = [16, 0], sizes = [8, 1], strides = [1, 1]} : vector<32x1xf32> to vector<8x1xf32>
    %82 = arith.addf %80, %81 : vector<8x1xf32>
    %83 = vector.extract_strided_slice %77 {offsets = [24, 0], sizes = [8, 1], strides = [1, 1]} : vector<32x1xf32> to vector<8x1xf32>
    %84 = arith.addf %82, %83 : vector<8x1xf32>
    %85 = tpu.concatenate %84, %84, %84, %84 in 0 : vector<8x1xf32>, vector<8x1xf32>, vector<8x1xf32>, vector<8x1xf32> -> vector<32x1xf32>
    %cst_15 = arith.constant 3.906250e-03 : f32
    %86 = vector.broadcast %cst_15 : f32 to vector<32x1xf32>
    %87 = arith.mulf %85, %86 : vector<32x1xf32>
    %88 = vector.broadcast %87 : vector<32x1xf32> to vector<32x128xf32>
    %89 = arith.mulf %88, %21 : vector<32x128xf32>
    %90 = arith.addf %73, %89 : vector<32x128xf32>
    %cst_16 = arith.constant 9.99999974E-6 : f32
    %91 = vector.broadcast %cst_16 : f32 to vector<32x128xf32>
    %92 = arith.addf %90, %91 : vector<32x128xf32>
    %93 = math.rsqrt %92 : vector<32x128xf32>
    %94 = arith.mulf %55, %93 : vector<32x128xf32>
    %95 = vector.extract_strided_slice %3 {offsets = [0, 1], sizes = [32, 1], strides = [1, 1]} : vector<32x3xf32> to vector<32x1xf32>
    %96 = vector.broadcast %95 : vector<32x1xf32> to vector<32x128xf32>
    %97 = arith.mulf %94, %96 : vector<32x128xf32>
    %98 = vector.extract_strided_slice %3 {offsets = [0, 2], sizes = [32, 1], strides = [1, 1]} : vector<32x3xf32> to vector<32x1xf32>
    %99 = vector.broadcast %98 : vector<32x1xf32> to vector<32x128xf32>
    %100 = arith.addf %97, %99 : vector<32x128xf32>
    %cst_17 = arith.constant 0.000000e+00 : f32
    %101 = vector.broadcast %cst_17 : f32 to vector<32x128xf32>
    %102 = arith.maximumf %100, %101 : vector<32x128xf32>
    %103 = arith.truncf %102 : vector<32x128xf32> to vector<32x128xbf16>
    %c0_18 = arith.constant 0 : index
    %c0_19 = arith.constant 0 : index
    %104 = vector.load %arg4[%c0_18, %c0_19] : memref<32x128xbf16, #tpu.memory_space<vmem>>, vector<32x128xbf16>
    tpu.vector_store %arg4[%c0_18, %c0_19], %103 {strides = array<i32>} : memref<32x128xbf16, #tpu.memory_space<vmem>>, vector<32x128xbf16>,
    return
  }
  func.func @transform_0(%arg0: i32) -> (i32, i32) {
    %c0_i32 = arith.constant 0 : i32
    %c0_i32_0 = arith.constant 0 : i32
    %c0_i32_1 = arith.constant 0 : i32
    return %c0_i32, %c0_i32_0 : i32, i32
  }
  func.func @transform_1(%arg0: i32) -> (i32, i32) {
    %c0_i32 = arith.constant 0 : i32
    %c0_i32_0 = arith.constant 0 : i32
    %c0_i32_1 = arith.constant 0 : i32
    return %c0_i32, %c0_i32_0 : i32, i32
  }
  func.func @transform_2(%arg0: i32) -> (i32, i32) {
    %c0_i32 = arith.constant 0 : i32
    %c0_i32_0 = arith.constant 0 : i32
    %c0_i32_1 = arith.constant 0 : i32
    return %c0_i32, %c0_i32_0 : i32, i32
  }
  func.func @transform_3(%arg0: i32) -> (i32, i32) {
    %c0_i32 = arith.constant 0 : i32
    %c0_i32_0 = arith.constant 0 : i32
    %c0_i32_1 = arith.constant 0 : i32
    return %c0_i32, %c0_i32_0 : i32, i32
  }
}

module attributes {stable_mosaic.version = 11 : i64} {
  func.func @_conv_fused_kernel(%arg0: i32, %arg1: memref<3x392xbf16, #tpu.memory_space<vmem>>, %arg2: memref<392x512xbf16, #tpu.memory_space<vmem>>, %arg3: memref<3x3xf32, #tpu.memory_space<vmem>>, %arg4: memref<3x512xf32, #tpu.memory_space<vmem>>) attributes {dimension_semantics = [#tpu.dimension_semantics<arbitrary>], iteration_bounds = array<i64: 1>, scalar_prefetch = 0 : i64, scratch_operands = 0 : i64, tpu.core_type = #tpu.core_type<tc>, window_params = [{pipeline_mode = #tpu.pipeline_mode<synchronous>, transform_indices = @transform_0, window_bounds = array<i64: 3, 392>}, {pipeline_mode = #tpu.pipeline_mode<synchronous>, transform_indices = @transform_1, window_bounds = array<i64: 392, 512>}, {pipeline_mode = #tpu.pipeline_mode<synchronous>, transform_indices = @transform_2, window_bounds = array<i64: 3, 3>}, {pipeline_mode = #tpu.pipeline_mode<synchronous>, transform_indices = @transform_3, window_bounds = array<i64: 3, 512>}]} {
    %c0 = arith.constant 0 : index
    %c0_0 = arith.constant 0 : index
    %0 = vector.load %arg1[%c0, %c0_0] : memref<3x392xbf16, #tpu.memory_space<vmem>>, vector<3x392xbf16>
    %c0_1 = arith.constant 0 : index
    %c0_2 = arith.constant 0 : index
    %1 = vector.load %arg2[%c0_1, %c0_2] : memref<392x512xbf16, #tpu.memory_space<vmem>>, vector<392x512xbf16>
    %cst = arith.constant dense<0.000000e+00> : vector<3x512xf32>
    %2 = tpu.matmul %0, %1, %cst {dimension_numbers = #tpu.dot_dimension_numbers<[1], [0], [0], [1], [0, 0, 1, 1], [], []>} : vector<3x392xbf16>, vector<392x512xbf16>, vector<3x512xf32> -> vector<3x512xf32>
    %c0_3 = arith.constant 0 : index
    %c0_4 = arith.constant 0 : index
    %3 = vector.load %arg3[%c0_3, %c0_4] : memref<3x3xf32, #tpu.memory_space<vmem>>, vector<3x3xf32>
    %4 = vector.extract_strided_slice %3 {offsets = [0, 0], sizes = [3, 1], strides = [1, 1]} : vector<3x3xf32> to vector<3x1xf32>
    %5 = vector.broadcast %4 : vector<3x1xf32> to vector<3x512xf32>
    %6 = arith.addf %2, %5 : vector<3x512xf32>
    %7 = math.tanh %6 : vector<3x512xf32>
    %c0_5 = arith.constant 0 : index
    %c0_6 = arith.constant 0 : index
    %8 = vector.load %arg4[%c0_5, %c0_6] : memref<3x512xf32, #tpu.memory_space<vmem>>, vector<3x512xf32>
    tpu.vector_store %arg4[%c0_5, %c0_6], %7 {strides = array<i32>} : memref<3x512xf32, #tpu.memory_space<vmem>>, vector<3x512xf32>,
    return
  }
  func.func @transform_0(%arg0: i32) -> (i32, i32) {
    %c0_i32 = arith.constant 0 : i32
    %c0_i32_0 = arith.constant 0 : i32
    %c0_i32_1 = arith.constant 0 : i32
    return %c0_i32, %c0_i32_0 : i32, i32
  }
  func.func @transform_1(%arg0: i32) -> (i32, i32) {
    %c0_i32 = arith.constant 0 : i32
    %c0_i32_0 = arith.constant 0 : i32
    %c0_i32_1 = arith.constant 0 : i32
    return %c0_i32, %c0_i32_0 : i32, i32
  }
  func.func @transform_2(%arg0: i32) -> (i32, i32) {
    %c0_i32 = arith.constant 0 : i32
    %c0_i32_0 = arith.constant 0 : i32
    %c0_i32_1 = arith.constant 0 : i32
    return %c0_i32, %c0_i32_0 : i32, i32
  }
  func.func @transform_3(%arg0: i32) -> (i32, i32) {
    %c0_i32 = arith.constant 0 : i32
    %c0_i32_0 = arith.constant 0 : i32
    %c0_i32_1 = arith.constant 0 : i32
    return %c0_i32, %c0_i32_0 : i32, i32
  }
}

</mosaic_0001>

<bundles_post_ra>
// kernel: generator_forward.7
= control target key start
LH: loop header
LB: loop body
LE: loop exit
PB: predicated region body
PF: predicated region fallthrough
CT: control target
= control target key end

     0   :  { %v657_v2 = vmov 0   ;;  %vm260_vm0 = vcmask 1040384   ;;  %vm261_vm1 = vcmask 1041408   ;;  %v658_v36 = vmov 65535   ;;  %s813_s1 = inlined_call_operand.vmem [shape: bf16[147,512], index: 1, kind: input, shape index: {}]   ;;  %s814_s0 = inlined_call_operand.vmem [shape: bf16[8,147], index: 0, kind: input, shape index: {}]   ;;  %s815_s2 = inlined_call_operand.vmem [shape: f32[8,3], index: 2, kind: input, shape index: {}]   ;;  %s816_s3 = inlined_call_operand.vmem [shape: bf16[8,512], index: 3, kind: output, shape index: {}]  }
   0x1   :  { %v593_v0 = vld [vmem:[%s813_s1 + $0x4] ss:$16 sps:$4 sm:$0xff]   ;;  %v595_v1 = vld [vmem:[%s813_s1 + $0xc] ss:$16 sps:$4 sm:$0xff]   ;;  %589 = vset.pattern.permute.xlu0 %v657_v2  ;;  %v597_v3 = vld [vmem:[%s813_s1] ss:$16 sps:$4 sm:$0xff]  }
   0x2   :  { %276 = vmatprep.subr.bf16.mxu0 %v593_v0  ;;  %v598_v4 = vld [vmem:[%s813_s1 + $0x8] ss:$16 sps:$4 sm:$0xff]   ;;  %317 = vmatprep.subr.bf16.mxu1 %v595_v1  ;;  %v599_v5 = vld [vmem:[%s813_s1 + $0x24] ss:$16 sps:$4 sm:$0xff]   ;;  %v601_v6 = vld [vmem:[%s813_s1 + $0x2c] ss:$16 sps:$4 sm:$0xff]  }
   0x3   :  { %277 = vmatpush1.bf16.msra.mxu0 %v597_v3  ;;  %318 = vmatpush1.bf16.msra.mxu1 %v598_v4  ;;  %v603_v7 = vld [vmem:[%s813_s1 + $0x20] ss:$16 sps:$4 sm:$0xff]   ;;  %v604_v8 = vld [vmem:[%s813_s1 + $0x28] ss:$16 sps:$4 sm:$0xff]   ;;  %v605_v9 = vld [vmem:[%s813_s1 + $0x44] ss:$16 sps:$4 sm:$0xff]  }
   0x4   :  { %278 = vmatprep.subr.bf16.mxu0 %v599_v5  ;;  %319 = vmatprep.subr.bf16.mxu1 %v601_v6  ;;  %v607_v10 = vld [vmem:[%s813_s1 + $0x4c] ss:$16 sps:$4 sm:$0xff]   ;;  %v609_v11 = vld [vmem:[%s813_s1 + $0x40] ss:$16 sps:$4 sm:$0xff]   ;;  %v610_v12 = vld [vmem:[%s813_s1 + $0x48] ss:$16 sps:$4 sm:$0xff]  }
   0x5   :  { %v611_v13 = vld [vmem:[%s813_s1 + $0x64] ss:$16 sps:$4 sm:$0xff]   ;;  %v613_v14 = vld [vmem:[%s813_s1 + $0x6c] ss:$16 sps:$4 sm:$0xff]   ;;  %v615_v15 = vld [vmem:[%s813_s1 + $0x60] ss:$16 sps:$4 sm:$0xff]  }
   0x6   :  { %v616_v16 = vld [vmem:[%s813_s1 + $0x68] ss:$16 sps:$4 sm:$0xff]   ;;  %v617_v17 = vld [vmem:[%s813_s1 + $0x84] ss:$16 sps:$4 sm:$0xff]   ;;  %v619_v18 = vld [vmem:[%s813_s1 + $0x8c] ss:$16 sps:$4 sm:$0xff]  }
   0x7   :  { %279 = vmatpush1.bf16.msra.mxu0 %v603_v7  ;;  %320 = vmatpush1.bf16.msra.mxu1 %v604_v8  ;;  %v621_v19 = vld [vmem:[%s813_s1 + $0x80] ss:$16 sps:$4 sm:$0xff]   ;;  %v622_v20 = vld [vmem:[%s813_s1 + $0x88] ss:$16 sps:$4 sm:$0xff]   ;;  %v623_v21 = vld [vmem:[%s813_s1 + $0xa4] ss:$16 sps:$4 sm:$0xff]  }
   0x8   :  { %280 = vmatprep.subr.bf16.mxu0 %v605_v9  ;;  %321 = vmatprep.subr.bf16.mxu1 %v607_v10  ;;  %v625_v22 = vld [vmem:[%s813_s1 + $0xac] ss:$16 sps:$4 sm:$0xff]   ;;  %v627_v23 = vld [vmem:[%s813_s1 + $0xa0] ss:$16 sps:$4 sm:$0xff]   ;;  %v628_v24 = vld [vmem:[%s813_s1 + $0xa8] ss:$16 sps:$4 sm:$0xff]  }
   0x9   :  { %v629_v25 = vld [vmem:[%s813_s1 + $0xc4] ss:$16 sps:$4 sm:$0xff]   ;;  %v631_v26 = vld [vmem:[%s813_s1 + $0xcc] ss:$16 sps:$4 sm:$0xff]   ;;  %v633_v27 = vld [vmem:[%s813_s1 + $0xc0] ss:$16 sps:$4 sm:$0xff]  }
   0xa   :  { %v634_v28 = vld [vmem:[%s813_s1 + $0xc8] ss:$16 sps:$4 sm:$0xff]   ;;  %v15_v29 = vld [vmem:[%s814_s0] sm:$0xff]  ;;  %v637_v31 = vld [vmem:[%s813_s1 + $0xec] ss:$16 sps:$4 sm:$0xff]   ;;  %v262_v37 = vsel %vm260_vm0, 4294967295, %v658_v36 }
   0xb   :  { %281 = vmatpush1.bf16.msra.mxu0 %v609_v11  ;;  %322 = vmatpush1.bf16.msra.mxu1 %v610_v12  ;;  %v635_v30 = vld [vmem:[%s813_s1 + $0xe4] ss:$16 sps:$4 sm:$0xff]   ;;  %v53_v34 = vld [vmem:[%s813_s1 + $0x128] sm:$0x33]  ;;  %v538_v35 = vcombine.high %v15_v29, %v15_v29  ;;  %vm256_vm2 = vcmask 154624   ;;  %v263_v44 = vsel %vm261_vm1, %v262_v37, 0  ;;  %v537_v53 = vcombine.low %v15_v29, %v15_v29 }
   0xc   :  { %282 = vmatprep.subr.bf16.mxu0 %v611_v13  ;;  %323 = vmatprep.subr.bf16.mxu1 %v613_v14  ;;  %v777_v32 = vld [vmem:[%s815_s2] sm:$0xff]  ;;  %v640_v39 = vld [vmem:[%s813_s1 + $0xe8] ss:$16 sps:$4 sm:$0xff]   ;;  %v643_v41 = vld [vmem:[%s813_s1 + $0x10c] ss:$16 sps:$4 sm:$0xff]   ;;  %v578_v43 = vcombine.high %v53_v34, %v53_v34  ;;  %v577_v48 = vcombine.low %v53_v34, %v53_v34  ;;  %v659_v54 = vmov 1  }
   0xd   :  { %v52_v33 = vld [vmem:[%s813_s1 + $0x120] sm:$0x33]  ;;  %57 = vperm.xlu0 %589, %v777_v32   ;;  %579 = vmatprep.mubr.msk.bf16.mxu0 %vm256_vm2, %v538_v35  ;;  %v646_v46 = vld [vmem:[%s813_s1 + $0x108] ss:$16 sps:$4 sm:$0xff]   ;;  %v660_v14 = vmov 2  }
   0xe   :  { %v639_v38 = vld [vmem:[%s813_s1 + $0xe0] ss:$16 sps:$4 sm:$0xff]   ;;  %v641_v40 = vld [vmem:[%s813_s1 + $0x104] ss:$16 sps:$4 sm:$0xff]   ;;  %v576_v42 = vcombine.high %v52_v33, %v52_v33  ;;  %580 = vmatprep.mubr.msk.bf16.mxu1 %vm256_vm2, %v538_v35  ;;  %v575_v47 = vcombine.low %v52_v33, %v52_v33  ;;  %v274_v50 = vand.u32 %v578_v43, %v263_v44  ;;  %v271_v52 = vand.u32 %v577_v48, %v263_v44 }
   0xf   :  { %283 = vmatpush1.bf16.msra.mxu0 %v615_v15  ;;  %324 = vmatpush1.bf16.msra.mxu1 %v616_v16  ;;  %v645_v45 = vld [vmem:[%s813_s1 + $0x100] ss:$16 sps:$4 sm:$0xff]  }
  0x10   :  { %284 = vmatprep.subr.bf16.mxu0 %v617_v17  ;;  %325 = vmatprep.subr.bf16.mxu1 %v619_v18  ;;  %v268_v49 = vand.u32 %v576_v42, %v263_v44  ;;  %v265_v51 = vand.u32 %v575_v47, %v263_v44 }
  0x11   :  { %590 = vset.pattern.permute.xlu1 %v659_v54  ;;  %592 = vset.pattern.permute.xlu0 %v660_v14 }
  0x13   :  { %285 = vmatpush1.bf16.msra.mxu0 %v621_v19  ;;  %326 = vmatpush1.bf16.msra.mxu1 %v622_v20 }
  0x14   :  { %286 = vmatprep.subr.bf16.mxu0 %v623_v21  ;;  %327 = vmatprep.subr.bf16.mxu1 %v625_v22 }
  0x17   :  { %287 = vmatpush1.bf16.msra.mxu0 %v627_v23  ;;  %328 = vmatpush1.bf16.msra.mxu1 %v628_v24 }
  0x18   :  { %288 = vmatprep.subr.bf16.mxu0 %v629_v25  ;;  %329 = vmatprep.subr.bf16.mxu1 %v631_v26 }
  0x1b   :  { %289 = vmatpush1.bf16.msra.mxu0 %v633_v27  ;;  %330 = vmatpush1.bf16.msra.mxu1 %v634_v28 }
  0x1c   :  { %290 = vmatprep.subr.bf16.mxu0 %v635_v30  ;;  %331 = vmatprep.subr.bf16.mxu1 %v637_v31 }
  0x1f   :  { %291 = vmatpush1.bf16.msra.mxu0 %v639_v38  ;;  %332 = vmatpush1.bf16.msra.mxu1 %v640_v39 }
  0x20   :  { %292 = vmatprep.subr.bf16.mxu0 %v641_v40  ;;  %333 = vmatprep.subr.bf16.mxu1 %v643_v41 }
  0x23   :  { %293 = vmatpush1.bf16.msra.mxu0 %v645_v45  ;;  %334 = vmatpush1.bf16.msra.mxu1 %v646_v46 }
  0x24   :  { %294 = vmatprep.subr.bf16.mxu0 %v268_v49  ;;  %335 = vmatprep.subr.bf16.mxu1 %v274_v50 }
  0x27   :  { %295 = vmatpush1.bf16.msra.mxu0 %v265_v51  ;;  %336 = vmatpush1.bf16.msra.mxu1 %v271_v52 }
  0x2a   :  { %309 = vmatmul.mubr.bf16.vlgmr.msra.gmra.mrb[0].mxu0 %v537_v53  ;;  %350 = vmatmul.mubr.bf16.vlgmr.msra.gmra.mrb[0].mxu1 %v537_v53 }
  0x8c   :  { %v58_v55 = vpop.permute.xlu0 %57 }
  0xfd   :  { %v310_v56 = vpop.f32.mrb[0].mxu0  ;;  %v351_v57 = vpop.f32.mrb[0].mxu1 }
  0xfe   :  { %v311_v58 = vadd.f32 %v310_v56, %v58_v55  ;;  %v352_v59 = vadd.f32 %v351_v57, %v58_v55  ;;  %v312_v60 = vpop.f32.mrb[1].mxu0  ;;  %v353_v61 = vpop.f32.mrb[1].mxu1 }
  0xff   :  { %v313_v62 = vadd.f32 %v312_v60, %v58_v55  ;;  %v354_v63 = vadd.f32 %v353_v61, %v58_v55  ;;  %v314_v0 = vpop.f32.mrb[2].mxu0  ;;  %v355_v1 = vpop.f32.mrb[2].mxu1 }
 0x100   :  { %v421_v2 = vmul.f32 0.0, %v311_v58  ;;  %v315_v3 = vpop.f32.mrb[3].mxu0  ;;  %v356_v4 = vpop.f32.mrb[3].mxu1  ;;  %v405_v5 = vmul.f32 0.0, %v352_v59 }
 0x101   :  { %v422_v6 = vmul.f32 0.0, %v313_v62  ;;  %v407_v7 = vadd.f32 %v313_v62, %v311_v58  ;;  %v406_v8 = vmul.f32 0.0, %v354_v63 }
 0x103   :  { %v408_v9 = vadd.f32 %v407_v7, %v405_v5  ;;  %v425_v10 = vadd.f32 %v422_v6, %v421_v2 }
 0x105   :  { %v409_v11 = vadd.f32 %v408_v9, %v406_v8  ;;  %v426_v12 = vadd.f32 %v425_v10, %v352_v59 }
 0x107   :  { %410 = vadd.xlane.f32.xlu1 %v409_v11  ;;  %v427_v13 = vadd.f32 %v426_v12, %v354_v63 }
 0x109   :  { %428 = vadd.xlane.f32.xlu0 %v427_v13 }
 0x118   :  { %496 = vperm.xlu1 %590, %v777_v32  }
 0x11c   :  { %591 = vset.pattern.permute.xlu1 %v660_v14 }
 0x194   :  { %v411_v15 = vpop.xlane.xlu1 %410 }
 0x195   :  { %v412_v16 = vmul.f32 0.00390625, %v411_v15 }
 0x196   :  { %v429_v17 = vpop.xlane.xlu0 %428 }
 0x197   :  { %v415_v18 = vmul.f32 0.0, %v412_v16  ;;  %v430_v19 = vmul.f32 0.00390625, %v429_v17 }
 0x198   :  { %v497_v42 = vpop.permute.xlu1 %496 }
 0x199   :  { %v431_v20 = vmul.f32 0.0, %v430_v19  ;;  %v437_v21 = vadd.f32 %v430_v19, %v415_v18 }
 0x19b   :  { %v435_v22 = vadd.f32 %v431_v20, %v412_v16  ;;  %v441_v23 = vsub.f32 %v352_v59, %v437_v21  ;;  %v442_v24 = vsub.f32 %v354_v63, %v437_v21 }
 0x19d   :  { %v439_v25 = vsub.f32 %v311_v58, %v435_v22  ;;  %v440_v26 = vsub.f32 %v313_v62, %v435_v22  ;;  %v445_v27 = vmul.f32 %v441_v23, %v441_v23  ;;  %v446_v30 = vmul.f32 %v442_v24, %v442_v24 }
 0x19f   :  { %v443_v28 = vmul.f32 %v439_v25, %v439_v25  ;;  %v444_v29 = vmul.f32 %v440_v26, %v440_v26  ;;  %v449_v31 = vmul.f32 0.0, %v445_v27  ;;  %v450_v36 = vmul.f32 0.0, %v446_v30 }
 0x1a1   :  { %v451_v33 = vadd.f32 %v444_v29, %v443_v28  ;;  %v465_v34 = vmul.f32 0.0, %v443_v28  ;;  %v466_v35 = vmul.f32 0.0, %v444_v29 }
 0x1a3   :  { %v452_v37 = vadd.f32 %v451_v33, %v449_v31  ;;  %v469_v38 = vadd.f32 %v466_v35, %v465_v34 }
 0x1a5   :  { %v453_v39 = vadd.f32 %v452_v37, %v450_v36  ;;  %v470_v40 = vadd.f32 %v469_v38, %v445_v27 }
 0x1a7   :  { %454 = vadd.xlane.f32.xlu1 %v453_v39  ;;  %v471_v41 = vadd.f32 %v470_v40, %v446_v30 }
 0x1ab   :  { %472 = vadd.xlane.f32.xlu1 %v471_v41 }
 0x1bc   :  { %504 = vperm.xlu1 %591, %v777_v32  }
 0x234   :  { %v455_v43 = vpop.xlane.xlu1 %454 }
 0x235   :  { %v456_v44 = vmul.f32 0.00390625, %v455_v43 }
 0x237   :  { %v459_v46 = vmul.f32 0.0, %v456_v44 }
 0x238   :  { %v473_v45 = vpop.xlane.xlu1 %472 }
 0x239   :  { %v474_v47 = vmul.f32 0.00390625, %v473_v45 }
 0x23b   :  { %v475_v48 = vmul.f32 0.0, %v474_v47  ;;  %v481_v49 = vadd.f32 %v474_v47, %v459_v46 }
 0x23c   :  { %v505_v57 = vpop.permute.xlu1 %504 }
 0x23d   :  { %v479_v50 = vadd.f32 %v475_v48, %v456_v44  ;;  %v485_v51 = vadd.f32 1e-05, %v481_v49 }
 0x23f   :  { %v483_v52 = vadd.f32 1e-05, %v479_v50  ;;  %653 = vrsqrt.f32 %v485_v51 }
 0x241   :  { %655 = vrsqrt.f32 %v483_v52 }
 0x249   :  { %v654_v53 = vpop.eup %653 }
 0x24a   :  { %v493_v54 = vmul.f32 %v654_v53, %v441_v23  ;;  %v494_v55 = vmul.f32 %v654_v53, %v442_v24 }
 0x24b   :  { %v656_v56 = vpop.eup %655 }
 0x24c   :  { %v491_v58 = vmul.f32 %v656_v56, %v439_v25  ;;  %v492_v32 = vmul.f32 %v656_v56, %v440_v26  ;;  %v501_v59 = vmul.f32 %v497_v42, %v493_v54  ;;  %v502_v60 = vmul.f32 %v497_v42, %v494_v55 }
 0x24e   :  { %v499_v61 = vmul.f32 %v497_v42, %v491_v58  ;;  %v500_v62 = vmul.f32 %v497_v42, %v492_v32  ;;  %v509_v63 = vadd.f32 %v505_v57, %v501_v59  ;;  %v510_v0 = vadd.f32 %v505_v57, %v502_v60 }
 0x250   :  { %v507_v1 = vadd.f32 %v505_v57, %v499_v61  ;;  %v508_v2 = vadd.f32 %v505_v57, %v500_v62  ;;  %v513_v3 = vmax.f32 %v509_v63, 0.0  ;;  %v514_v4 = vmax.f32 %v510_v0, 0.0 }
 0x252   :  { %v511_v5 = vmax.f32 %v507_v1, 0.0  ;;  %v512_v6 = vmax.f32 %v508_v2, 0.0  ;;  %v584_v7 = vpack.c.bf16 %v514_v4, %v513_v3 }
 0x254   :  { %v583_v8 = vpack.c.bf16 %v512_v6, %v511_v5  ;;  %532 = vst [vmem:[%s816_s3 + $0x8] sm:$0xff] %v584_v7 }
 0x256   :  { %531 = vst [vmem:[%s816_s3] sm:$0xff] %v583_v8 }

// kernel: generator_forward.8
= control target key start
LH: loop header
LB: loop body
LE: loop exit
PB: predicated region body
PF: predicated region fallthrough
CT: control target
= control target key end

     0   :  { %v283_v0 = vmov 0.0   ;;  %vm284_vm0 = vmmov 0   ;;  %v285_v2 = vmov 0   ;;  %vm74_vm1 = vcmask 1043456   ;;  %s360_s1 = inlined_call_operand.vmem [shape: bf16[72,128], index: 1, kind: input, shape index: {}]   ;;  %s361_s2 = inlined_call_operand.vmem [shape: f32[16,3], index: 2, kind: input, shape index: {}]   ;;  %s362_s0 = inlined_call_operand.vmem [shape: bf16[16,72], index: 0, kind: input, shape index: {}]   ;;  %s363_s3 = inlined_call_operand.vmem [shape: bf16[16,128], index: 3, kind: output, shape index: {}]  }
   0x1   :  { %249 = vmatprep.subr.bf16.mxu0 %v283_v0  ;;  %v273_v1 = vld [vmem:[%s360_s1] sm:$0xff]   ;;  %259 = vmatprep.mubr.msk.bf16.mxu0 %vm284_vm0, %v283_v0  ;;  %v274_v3 = vld [vmem:[%s360_s1 + $0x8] sm:$0xff]   ;;  %v275_v5 = vld [vmem:[%s360_s1 + $0x10] sm:$0xff]   ;;  %vm70_vm2 = vcmask 588800   ;;  %v286_v11 = vmov 1   ;;  %v119_v12 = vlaneseq  ;;  %v287_v28 = vmov 2  }
   0x2   :  { %268 = vset.pattern.permute.xlu0 %v285_v2  ;;  %250 = vmatpush3.bf16.msra.mxu0 %v273_v1  ;;  %v26_v4 = vld [vmem:[%s361_s2] sm:$0xff]  ;;  %v323_v6 = vld [vmem:[%s361_s2 + $0x8] sm:$0xff]  ;;  %v276_v7 = vld [vmem:[%s360_s1 + $0x18] sm:$0xff]  }
   0x3   :  { %251 = vmatprep.subr.bf16.mxu0 %v283_v0  ;;  %30 = vperm.xlu0 %268, %v26_v4   ;;  %v277_v8 = vld [vmem:[%s360_s1 + $0x20] ss:$0 sps:$4 sm:$0xff]   ;;  %v120_v13 = vand.u32 127, %v119_v12 }
   0x4   :  { %v76_v9 = vsel %vm74_vm1, %v277_v8, 0  ;;  %v278_v10 = vld [vmem:[%s362_s0] sm:$0xff]   ;;  %269 = vset.pattern.permute.xlu1 %v286_v11 }
   0x5   :  { %vm126_vm3 = vcmp.ge.s32.totalorder %v120_v13, 64  ;;  %vm122_vm4 = vcmp.lt.s32.totalorder %v120_v13, 64 }
   0x6   :  { %252 = vmatpush3.bf16.msra.mxu0 %v274_v3  ;;  %v335_v16 = vsel %vm126_vm3, 1.0, %v283_v0  ;;  %v337_v17 = vsel %vm122_vm4, 1.0, %v283_v0 }
   0x7   :  { %253 = vmatprep.subr.bf16.mxu0 %v283_v0  ;;  %35 = vperm.xlu0 %268, %v323_v6  }
   0xa   :  { %254 = vmatpush3.bf16.msra.mxu0 %v275_v5 }
   0xb   :  { %255 = vmatprep.subr.bf16.mxu0 %v283_v0  ;;  %270 = vset.pattern.permute.xlu0 %v286_v11 }
   0xe   :  { %256 = vmatpush3.bf16.msra.mxu0 %v276_v7 }
   0xf   :  { %257 = vmatprep.subr.bf16.mxu0 %v283_v0 }
  0x12   :  { %258 = vmatpush3.bf16.msra.mxu0 %v76_v9 }
  0x15   :  { %260 = vmatmul.mubr.msk.bf16.vlgmr.msra.gmra.mrb[0].mxu0 %vm70_vm2, %v278_v10 }
  0x82   :  { %v31_v14 = vpop.permute.xlu0 %30 }
  0x86   :  { %v36_v20 = vpop.permute.xlu0 %35 }
  0xe8   :  { %v112_v15 = vpop.f32.mrb[0].mxu0 }
  0xe9   :  { %v113_v18 = vadd.f32 %v112_v15, %v31_v14  ;;  %v261_v19 = vpop.f32.mrb[1].mxu0 }
  0xea   :  { %v115_v21 = vpop.f32.mrb[2].mxu0 }
  0xeb   :  { %v116_v22 = vadd.f32 %v115_v21, %v36_v20  ;;  %v262_v23 = vpop.f32.mrb[3].mxu0  ;;  %v143_v24 = vmul.f32 %v335_v16, %v113_v18  ;;  %v131_v25 = vmul.f32 %v337_v17, %v113_v18 }
  0xed   :  { %145 = vadd.xlane.f32.xlu0 %v143_v24  ;;  %133 = vadd.xlane.f32.xlu1 %v131_v25  ;;  %v132_v26 = vmul.f32 %v337_v17, %v116_v22  ;;  %v144_v27 = vmul.f32 %v335_v16, %v116_v22 }
  0xf1   :  { %135 = vadd.xlane.f32.xlu1 %v132_v26 }
  0xf5   :  { %147 = vadd.xlane.f32.xlu1 %v144_v27 }
 0x103   :  { %194 = vperm.xlu0 %270, %v323_v6  }
 0x106   :  { %190 = vperm.xlu1 %269, %v26_v4  }
 0x107   :  { %272 = vset.pattern.permute.xlu0 %v287_v28 }
 0x10a   :  { %271 = vset.pattern.permute.xlu1 %v287_v28 }
 0x10b   :  { %200 = vperm.xlu1 %271, %v26_v4  }
 0x17a   :  { %v146_v29 = vpop.xlane.xlu0 %145  ;;  %v134_v30 = vpop.xlane.xlu1 %133 }
 0x17b   :  { %v149_v31 = vmul.f32 0.015625, %v146_v29  ;;  %v137_v32 = vmul.f32 0.015625, %v134_v30 }
 0x17d   :  { %v151_v33 = vmul.f32 %v335_v16, %v149_v31  ;;  %v139_v34 = vmul.f32 %v337_v17, %v137_v32 }
 0x17e   :  { %v136_v35 = vpop.xlane.xlu1 %135 }
 0x17f   :  { %v153_v36 = vadd.f32 %v151_v33, %v139_v34  ;;  %v138_v37 = vmul.f32 0.015625, %v136_v35 }
 0x181   :  { %v155_v38 = vsub.f32 %v113_v18, %v153_v36  ;;  %v140_v42 = vmul.f32 %v337_v17, %v138_v37 }
 0x182   :  { %v148_v39 = vpop.xlane.xlu1 %147  ;;  %v195_v9 = vpop.permute.xlu0 %194 }
 0x183   :  { %v150_v40 = vmul.f32 0.015625, %v148_v39  ;;  %v157_v41 = vmul.f32 %v155_v38, %v155_v38 }
 0x185   :  { %v152_v43 = vmul.f32 %v335_v16, %v150_v40  ;;  %v159_v44 = vmul.f32 %v337_v17, %v157_v41  ;;  %v171_v46 = vmul.f32 %v335_v16, %v157_v41 }
 0x186   :  { %v191_v51 = vpop.permute.xlu1 %190 }
 0x187   :  { %v154_v45 = vadd.f32 %v152_v43, %v140_v42  ;;  %161 = vadd.xlane.f32.xlu1 %v159_v44 }
 0x189   :  { %v156_v47 = vsub.f32 %v116_v22, %v154_v45 }
 0x18a   :  { %v201_v52 = vpop.permute.xlu1 %200 }
 0x18b   :  { %173 = vadd.xlane.f32.xlu1 %v171_v46  ;;  %v158_v48 = vmul.f32 %v156_v47, %v156_v47 }
 0x18d   :  { %v160_v49 = vmul.f32 %v337_v17, %v158_v48  ;;  %v172_v50 = vmul.f32 %v335_v16, %v158_v48 }
 0x18f   :  { %163 = vadd.xlane.f32.xlu1 %v160_v49 }
 0x193   :  { %175 = vadd.xlane.f32.xlu1 %v172_v50 }
 0x1a4   :  { %204 = vperm.xlu1 %271, %v323_v6  }
 0x214   :  { %v162_v53 = vpop.xlane.xlu1 %161 }
 0x215   :  { %v165_v54 = vmul.f32 0.015625, %v162_v53 }
 0x217   :  { %v167_v57 = vmul.f32 %v337_v17, %v165_v54 }
 0x218   :  { %v174_v55 = vpop.xlane.xlu1 %173 }
 0x219   :  { %v177_v56 = vmul.f32 0.015625, %v174_v55 }
 0x21b   :  { %v179_v58 = vmul.f32 %v335_v16, %v177_v56 }
 0x21c   :  { %v164_v59 = vpop.xlane.xlu1 %163 }
 0x21d   :  { %v181_v60 = vadd.f32 %v179_v58, %v167_v57  ;;  %v166_v62 = vmul.f32 0.015625, %v164_v59 }
 0x21f   :  { %v183_v61 = vadd.f32 1e-05, %v181_v60  ;;  %v168_v1 = vmul.f32 %v337_v17, %v166_v62 }
 0x220   :  { %v176_v63 = vpop.xlane.xlu1 %175 }
 0x221   :  { %279 = vrsqrt.f32 %v183_v61  ;;  %v178_v0 = vmul.f32 0.015625, %v176_v63 }
 0x223   :  { %v180_v2 = vmul.f32 %v335_v16, %v178_v0 }
 0x224   :  { %v205_v13 = vpop.permute.xlu1 %204 }
 0x225   :  { %v182_v3 = vadd.f32 %v180_v2, %v168_v1 }
 0x227   :  { %v184_v4 = vadd.f32 1e-05, %v182_v3 }
 0x229   :  { %281 = vrsqrt.f32 %v184_v4 }
 0x22b   :  { %v280_v5 = vpop.eup %279 }
 0x22c   :  { %v187_v6 = vmul.f32 %v280_v5, %v155_v38 }
 0x22e   :  { %v197_v7 = vmul.f32 %v191_v51, %v187_v6 }
 0x230   :  { %v207_v12 = vadd.f32 %v201_v52, %v197_v7 }
 0x232   :  { %v209_v15 = vmax.f32 %v207_v12, 0.0 }
 0x233   :  { %v282_v8 = vpop.eup %281 }
 0x234   :  { %v188_v10 = vmul.f32 %v282_v8, %v156_v47 }
 0x236   :  { %v198_v11 = vmul.f32 %v195_v9, %v188_v10 }
 0x238   :  { %v208_v14 = vadd.f32 %v205_v13, %v198_v11 }
 0x23a   :  { %v210_v18 = vmax.f32 %v208_v14, 0.0 }
 0x23c   :  { %v241_v19 = vpack.c.bf16 %v210_v18, %v209_v15 }
 0x23e   :  { %242 = vst [vmem:[%s363_s3] sm:$0xff] %v241_v19  }

// kernel: generator_forward.9
= control target key start
LH: loop header
LB: loop body
LE: loop exit
PB: predicated region body
PF: predicated region fallthrough
CT: control target
= control target key end

     0   :  { %v479_v0 = vmov 0   ;;  %vm133_vm0 = vcmask 130048   ;;  %v480_v18 = vmov 1   ;;  %v189_v19 = vlaneseq  ;;  %s667_s1 = inlined_call_operand.vmem [shape: bf16[144,32], index: 1, kind: input, shape index: {}]   ;;  %s668_s0 = inlined_call_operand.vmem [shape: bf16[32,144], index: 0, kind: input, shape index: {}]   ;;  %s669_s2 = inlined_call_operand.vmem [shape: f32[32,3], index: 2, kind: input, shape index: {}]   ;;  %s670_s3 = inlined_call_operand.vmem [shape: bf16[32,32], index: 3, kind: output, shape index: {}]  }
   0x1   :  { %140 = vmatprep.subr.bf16.mxu0 %v479_v0  ;;  %428 = vmatprep.subr.bf16.mxu1 %v479_v0  ;;  %v456_v1 = vld [vmem:[%s667_s1] sm:$0xff]   ;;  %v457_v2 = vld [vmem:[%s667_s1 + $0x8] sm:$0xff]   ;;  %v458_v3 = vld [vmem:[%s667_s1 + $0x10] sm:$0xff]   ;;  %v481_v26 = vmov 0.0   ;;  %vm205_vm5 = vcmask 261120   ;;  %vm394_vm6 = vcmask 257024  }
   0x2   :  { %450 = vset.pattern.permute.xlu0 %v479_v0  ;;  %451 = vset.pattern.permute.xlu1 %v479_v0  ;;  %v459_v4 = vld [vmem:[%s667_s1 + $0x18] sm:$0xff]   ;;  %v467_v5 = vld [vmem:[%s668_s0 + $0x4] ss:$8 sps:$4 sm:$0xff]   ;;  %v530_v8 = vld [vmem:[%s669_s2 + $0x10] sm:$0xff]  ;;  %v190_v20 = vand.u32 127, %v189_v19 }
   0x3   :  { %141 = vmatpush1.bf16.msra.mxu0 %v456_v1  ;;  %437 = vmatpush1.bf16.msra.mxu1 %v456_v1  ;;  %v470_v6 = vld [vmem:[%s668_s0 + $0x14] ss:$8 sps:$4 sm:$0xff]   ;;  %v524_v7 = vld [vmem:[%s669_s2] sm:$0xff]  ;;  %v536_v9 = vld [vmem:[%s669_s2 + $0x8] sm:$0xff] }
   0x4   :  { %142 = vmatprep.subr.bf16.mxu0 %v479_v0  ;;  %429 = vmatprep.subr.bf16.mxu1 %v479_v0  ;;  %v460_v10 = vld [vmem:[%s667_s1 + $0x20] sm:$0xff]   ;;  %v544_v11 = vld [vmem:[%s669_s2 + $0x18] sm:$0xff]  ;;  %v461_v12 = vld [vmem:[%s667_s1 + $0x28] sm:$0xff]   ;;  %vm196_vm1 = vcmp.ge.s32.totalorder %v190_v20, 16  ;;  %vm197_vm2 = vcmp.lt.s32.totalorder %v190_v20, 32  ;;  %vm192_vm4 = vcmp.lt.s32.totalorder %v190_v20, 16 }
   0x5   :  { %416 = vmatprep.mubr.msk.bf16.mxu0 %vm133_vm0, %v467_v5  ;;  %43 = vperm.xlu0 %450, %v524_v7   ;;  %v462_v13 = vld [vmem:[%s667_s1 + $0x30] sm:$0xff]   ;;  %v463_v14 = vld [vmem:[%s667_s1 + $0x38] sm:$0xff]   ;;  %v464_v15 = vld [vmem:[%s667_s1 + $0x40] sm:$0xff]   ;;  %v568_v28 = vsel %vm192_vm4, 1.0, %v481_v26 }
   0x6   :  { %417 = vmatprep.mubr.msk.bf16.mxu1 %vm133_vm0, %v470_v6  ;;  %53 = vperm.xlu1 %451, %v530_v8   ;;  %v465_v16 = vld [vmem:[%s668_s0] ss:$8 sps:$4 sm:$0xff]   ;;  %v468_v17 = vld [vmem:[%s668_s0 + $0x10] ss:$8 sps:$4 sm:$0xff]   ;;  %vm198_vm3 = vmand %vm196_vm1, %vm197_vm2 }
   0x7   :  { %143 = vmatpush1.bf16.msra.mxu0 %v457_v2  ;;  %438 = vmatpush1.bf16.msra.mxu1 %v457_v2  ;;  %v566_v27 = vsel %vm198_vm3, 1.0, %v481_v26 }
   0x8   :  { %144 = vmatprep.subr.bf16.mxu0 %v479_v0  ;;  %430 = vmatprep.subr.bf16.mxu1 %v479_v0 }
   0x9   :  { %48 = vperm.xlu0 %450, %v536_v9  }
   0xa   :  { %58 = vperm.xlu1 %451, %v544_v11  }
   0xb   :  { %145 = vmatpush1.bf16.msra.mxu0 %v458_v3  ;;  %439 = vmatpush1.bf16.msra.mxu1 %v458_v3 }
   0xc   :  { %146 = vmatprep.subr.bf16.mxu0 %v479_v0  ;;  %431 = vmatprep.subr.bf16.mxu1 %v479_v0 }
   0xd   :  { %453 = vset.pattern.permute.xlu0 %v480_v18 }
   0xe   :  { %452 = vset.pattern.permute.xlu1 %v480_v18 }
   0xf   :  { %147 = vmatpush1.bf16.msra.mxu0 %v459_v4  ;;  %440 = vmatpush1.bf16.msra.mxu1 %v459_v4 }
  0x10   :  { %148 = vmatprep.subr.bf16.mxu0 %v479_v0  ;;  %432 = vmatprep.subr.bf16.mxu1 %v479_v0 }
  0x13   :  { %149 = vmatpush1.bf16.msra.mxu0 %v460_v10  ;;  %441 = vmatpush1.bf16.msra.mxu1 %v460_v10 }
  0x14   :  { %150 = vmatprep.subr.bf16.mxu0 %v479_v0  ;;  %433 = vmatprep.subr.bf16.mxu1 %v479_v0 }
  0x17   :  { %151 = vmatpush1.bf16.msra.mxu0 %v461_v12  ;;  %442 = vmatpush1.bf16.msra.mxu1 %v461_v12 }
  0x18   :  { %152 = vmatprep.subr.bf16.mxu0 %v479_v0  ;;  %434 = vmatprep.subr.bf16.mxu1 %v479_v0 }
  0x1b   :  { %153 = vmatpush1.bf16.msra.mxu0 %v462_v13  ;;  %443 = vmatpush1.bf16.msra.mxu1 %v462_v13 }
  0x1c   :  { %154 = vmatprep.subr.bf16.mxu0 %v479_v0  ;;  %435 = vmatprep.subr.bf16.mxu1 %v479_v0 }
  0x1f   :  { %155 = vmatpush1.bf16.msra.mxu0 %v463_v14  ;;  %444 = vmatpush1.bf16.msra.mxu1 %v463_v14 }
  0x20   :  { %156 = vmatprep.subr.bf16.mxu0 %v479_v0  ;;  %436 = vmatprep.subr.bf16.mxu1 %v479_v0 }
  0x23   :  { %157 = vmatpush1.bf16.msra.mxu0 %v464_v15  ;;  %445 = vmatpush1.bf16.msra.mxu1 %v464_v15 }
  0x26   :  { %173 = vmatmul.mubr.bf16.vlgmr.msra.gmra.mrb[0].mxu0 %v465_v16  ;;  %181 = vmatmul.mubr.bf16.vlgmr.msra.gmra.mrb[0].mxu1 %v468_v17 }
  0x84   :  { %v44_v22 = vpop.permute.xlu0 %43 }
  0x85   :  { %v54_v21 = vpop.permute.xlu1 %53 }
  0x88   :  { %v49_v39 = vpop.permute.xlu0 %48 }
  0x89   :  { %v59_v23 = vpop.permute.xlu1 %58 }
  0xf9   :  { %v174_v24 = vpop.f32.mrb[0].mxu0  ;;  %v182_v25 = vpop.f32.mrb[0].mxu1 }
  0xfa   :  { %v175_v29 = vadd.f32 %v174_v24, %v44_v22  ;;  %v176_v30 = vpop.f32.mrb[1].mxu0  ;;  %v183_v31 = vadd.f32 %v182_v25, %v54_v21  ;;  %v184_v32 = vpop.f32.mrb[1].mxu1 }
  0xfb   :  { %v177_v33 = vpop.f32.mrb[2].mxu0  ;;  %v185_v34 = vpop.f32.mrb[2].mxu1 }
  0xfc   :  { %v179_v35 = vpop.f32.mrb[3].mxu0  ;;  %v187_v36 = vpop.f32.mrb[3].mxu1  ;;  %v230_v37 = vmul.f32 %v566_v27, %v175_v29  ;;  %v201_v38 = vmul.f32 %v568_v28, %v175_v29  ;;  %v232_v40 = vmul.f32 %v566_v27, %v183_v31  ;;  %v203_v41 = vmul.f32 %v568_v28, %v183_v31 }
  0xfd   :  { %v178_v42 = vadd.f32 %v177_v33, %v49_v39  ;;  %v574_v43 = vadd.f32 %v185_v34, %v59_v23 }
  0xfe   :  { %v234_v44 = vsel %vm205_vm5, %v230_v37, 0.0  ;;  %v206_v45 = vsel %vm205_vm5, %v201_v38, 0.0  ;;  %v240_v46 = vsel %vm205_vm5, %v232_v40, 0.0  ;;  %v212_v47 = vsel %vm205_vm5, %v203_v41, 0.0 }
  0xff   :  { %235 = vadd.xlane.f32.xlu1 %v234_v44  ;;  %207 = vadd.xlane.f32.xlu0 %v206_v45  ;;  %v202_v48 = vmul.f32 %v568_v28, %v178_v42  ;;  %v204_v49 = vmul.f32 %v568_v28, %v574_v43  ;;  %v231_v52 = vmul.f32 %v566_v27, %v178_v42 }
 0x100   :  { %v233_v54 = vmul.f32 %v566_v27, %v574_v43 }
 0x101   :  { %v209_v50 = vsel %vm205_vm5, %v202_v48, 0.0  ;;  %v215_v51 = vsel %vm205_vm5, %v204_v49, 0.0  ;;  %v237_v53 = vsel %vm205_vm5, %v231_v52, 0.0 }
 0x102   :  { %v243_v55 = vsel %vm205_vm5, %v233_v54, 0.0 }
 0x103   :  { %241 = vadd.xlane.f32.xlu1 %v240_v46  ;;  %213 = vadd.xlane.f32.xlu0 %v212_v47 }
 0x107   :  { %210 = vadd.xlane.f32.xlu1 %v209_v50  ;;  %216 = vadd.xlane.f32.xlu0 %v215_v51  ;;  %v482_v50 = vmov 2  }
 0x10b   :  { %238 = vadd.xlane.f32.xlu0 %v237_v53 }
 0x10f   :  { %244 = vadd.xlane.f32.xlu0 %v243_v55 }
 0x118   :  { %335 = vperm.xlu1 %452, %v524_v7  }
 0x18c   :  { %v236_v56 = vpop.xlane.xlu1 %235  ;;  %v208_v57 = vpop.xlane.xlu0 %207 }
 0x18d   :  { %v246_v58 = vmul.f32 0.0625, %v236_v56  ;;  %v218_v59 = vmul.f32 0.0625, %v208_v57 }
 0x18f   :  { %v250_v60 = vmul.f32 %v566_v27, %v246_v58  ;;  %v222_v61 = vmul.f32 %v568_v28, %v218_v59 }
 0x190   :  { %v242_v62 = vpop.xlane.xlu1 %241  ;;  %v214_v63 = vpop.xlane.xlu0 %213 }
 0x191   :  { %v254_v0 = vadd.f32 %v250_v60, %v222_v61  ;;  %v248_v1 = vmul.f32 0.0625, %v242_v62  ;;  %v220_v2 = vmul.f32 0.0625, %v214_v63 }
 0x193   :  { %v252_v3 = vmul.f32 %v566_v27, %v248_v1  ;;  %v224_v4 = vmul.f32 %v568_v28, %v220_v2  ;;  %v595_v5 = vsub.f32 %v175_v29, %v254_v0 }
 0x194   :  { %v211_v6 = vpop.xlane.xlu1 %210  ;;  %v217_v10 = vpop.xlane.xlu0 %216 }
 0x195   :  { %v256_v12 = vadd.f32 %v252_v3, %v224_v4  ;;  %v262_v13 = vmul.f32 %v595_v5, %v595_v5  ;;  %v219_v14 = vmul.f32 0.0625, %v211_v6  ;;  %v221_v22 = vmul.f32 0.0625, %v217_v10 }
 0x197   :  { %v266_v15 = vmul.f32 %v568_v28, %v262_v13  ;;  %v600_v16 = vsub.f32 %v183_v31, %v256_v12  ;;  %v223_v21 = vmul.f32 %v568_v28, %v219_v14  ;;  %v294_v31 = vmul.f32 %v566_v27, %v262_v13 }
 0x198   :  { %v239_v17 = vpop.xlane.xlu0 %238  ;;  %v225_v32 = vmul.f32 %v568_v28, %v221_v22  ;;  %v336_v51 = vpop.permute.xlu1 %335 }
 0x199   :  { %v247_v18 = vmul.f32 0.0625, %v239_v17  ;;  %v270_v19 = vsel %vm205_vm5, %v266_v15, 0.0  ;;  %v264_v20 = vmul.f32 %v600_v16, %v600_v16  ;;  %v298_v36 = vsel %vm205_vm5, %v294_v31, 0.0 }
 0x19a   :  { %271 = vadd.xlane.f32.xlu1 %v270_v19 }
 0x19b   :  { %v251_v23 = vmul.f32 %v566_v27, %v247_v18  ;;  %v268_v24 = vmul.f32 %v568_v28, %v264_v20  ;;  %v296_v37 = vmul.f32 %v566_v27, %v264_v20 }
 0x19c   :  { %v245_v25 = vpop.xlane.xlu0 %244 }
 0x19d   :  { %v255_v26 = vadd.f32 %v251_v23, %v223_v21  ;;  %v249_v29 = vmul.f32 0.0625, %v245_v25  ;;  %v276_v30 = vsel %vm205_vm5, %v268_v24, 0.0  ;;  %v304_v41 = vsel %vm205_vm5, %v296_v37, 0.0 }
 0x19e   :  { %277 = vadd.xlane.f32.xlu1 %v276_v30 }
 0x19f   :  { %v253_v33 = vmul.f32 %v566_v27, %v249_v29  ;;  %v612_v34 = vsub.f32 %v178_v42, %v255_v26 }
 0x1a1   :  { %v257_v35 = vadd.f32 %v253_v33, %v225_v32  ;;  %v263_v38 = vmul.f32 %v612_v34, %v612_v34 }
 0x1a2   :  { %299 = vadd.xlane.f32.xlu1 %v298_v36 }
 0x1a3   :  { %v267_v39 = vmul.f32 %v568_v28, %v263_v38  ;;  %v620_v40 = vsub.f32 %v574_v43, %v257_v35  ;;  %v295_v47 = vmul.f32 %v566_v27, %v263_v38 }
 0x1a5   :  { %v273_v44 = vsel %vm205_vm5, %v267_v39, 0.0  ;;  %v265_v42 = vmul.f32 %v620_v40, %v620_v40  ;;  %v301_v48 = vsel %vm205_vm5, %v295_v47, 0.0 }
 0x1a6   :  { %305 = vadd.xlane.f32.xlu1 %v304_v41  ;;  %274 = vadd.xlane.f32.xlu0 %v273_v44 }
 0x1a7   :  { %v269_v45 = vmul.f32 %v568_v28, %v265_v42  ;;  %v297_v43 = vmul.f32 %v566_v27, %v265_v42 }
 0x1a9   :  { %v279_v46 = vsel %vm205_vm5, %v269_v45, 0.0  ;;  %v307_v49 = vsel %vm205_vm5, %v297_v43, 0.0 }
 0x1aa   :  { %280 = vadd.xlane.f32.xlu0 %v279_v46 }
 0x1ae   :  { %302 = vadd.xlane.f32.xlu0 %v301_v48 }
 0x1b2   :  { %308 = vadd.xlane.f32.xlu0 %v307_v49 }
 0x1b7   :  { %343 = vperm.xlu1 %452, %v530_v8  }
 0x1bb   :  { %347 = vperm.xlu1 %452, %v544_v11  }
 0x1bf   :  { %454 = vset.pattern.permute.xlu1 %v482_v50 }
 0x1c0   :  { %355 = vperm.xlu1 %454, %v524_v7  }
 0x1c4   :  { %359 = vperm.xlu1 %454, %v536_v9  }
 0x1c8   :  { %363 = vperm.xlu1 %454, %v530_v8   ;;  %339 = vperm.xlu0 %453, %v536_v9  }
 0x1cc   :  { %367 = vperm.xlu1 %454, %v544_v11   ;;  %455 = vset.pattern.permute.xlu0 %v482_v50 }
 0x227   :  { %v272_v52 = vpop.xlane.xlu1 %271 }
 0x228   :  { %v282_v54 = vmul.f32 0.0625, %v272_v52 }
 0x22a   :  { %v286_v57 = vmul.f32 %v568_v28, %v282_v54 }
 0x22b   :  { %v278_v53 = vpop.xlane.xlu1 %277 }
 0x22c   :  { %v284_v58 = vmul.f32 0.0625, %v278_v53 }
 0x22e   :  { %v288_v9 = vmul.f32 %v568_v28, %v284_v58 }
 0x22f   :  { %v300_v55 = vpop.xlane.xlu1 %299 }
 0x230   :  { %v310_v56 = vmul.f32 0.0625, %v300_v55 }
 0x232   :  { %v314_v7 = vmul.f32 %v566_v27, %v310_v56 }
 0x233   :  { %v306_v59 = vpop.xlane.xlu1 %305  ;;  %v275_v60 = vpop.xlane.xlu0 %274 }
 0x234   :  { %v318_v61 = vadd.f32 %v314_v7, %v286_v57  ;;  %v312_v8 = vmul.f32 0.0625, %v306_v59  ;;  %v283_v3 = vmul.f32 0.0625, %v275_v60 }
 0x236   :  { %v322_v62 = vadd.f32 1e-05, %v318_v61  ;;  %v316_v11 = vmul.f32 %v566_v27, %v312_v8  ;;  %v287_v12 = vmul.f32 %v568_v28, %v283_v3 }
 0x237   :  { %v344_v63 = vpop.permute.xlu1 %343  ;;  %v281_v0 = vpop.xlane.xlu0 %280 }
 0x238   :  { %471 = vrsqrt.f32 %v322_v62  ;;  %v320_v1 = vadd.f32 %v316_v11, %v288_v9  ;;  %v285_v13 = vmul.f32 0.0625, %v281_v0 }
 0x23a   :  { %v324_v2 = vadd.f32 1e-05, %v320_v1  ;;  %v289_v21 = vmul.f32 %v568_v28, %v285_v13 }
 0x23b   :  { %v348_v4 = vpop.permute.xlu1 %347  ;;  %v303_v6 = vpop.xlane.xlu0 %302 }
 0x23c   :  { %473 = vrsqrt.f32 %v324_v2  ;;  %v311_v10 = vmul.f32 0.0625, %v303_v6 }
 0x23e   :  { %v315_v14 = vmul.f32 %v566_v27, %v311_v10 }
 0x23f   :  { %v356_v15 = vpop.permute.xlu1 %355  ;;  %v309_v17 = vpop.xlane.xlu0 %308 }
 0x240   :  { %v319_v18 = vadd.f32 %v315_v14, %v287_v12  ;;  %v313_v19 = vmul.f32 0.0625, %v309_v17 }
 0x242   :  { %v472_v20 = vpop.eup %471  ;;  %v323_v22 = vadd.f32 1e-05, %v319_v18  ;;  %v317_v23 = vmul.f32 %v566_v27, %v313_v19 }
 0x243   :  { %v330_v24 = vmul.f32 %v472_v20, %v595_v5  ;;  %v360_v26 = vpop.permute.xlu1 %359 }
 0x244   :  { %475 = vrsqrt.f32 %v323_v22  ;;  %v321_v25 = vadd.f32 %v317_v23, %v289_v21 }
 0x245   :  { %v350_v29 = vmul.f32 %v336_v51, %v330_v24 }
 0x246   :  { %v474_v30 = vpop.eup %473  ;;  %v325_v31 = vadd.f32 1e-05, %v321_v25 }
 0x247   :  { %v332_v32 = vmul.f32 %v474_v30, %v600_v16  ;;  %v370_v33 = vadd.f32 %v356_v15, %v350_v29  ;;  %v364_v37 = vpop.permute.xlu1 %363  ;;  %v340_v39 = vpop.permute.xlu0 %339 }
 0x248   :  { %477 = vrsqrt.f32 %v325_v31 }
 0x249   :  { %v352_v35 = vmul.f32 %v344_v63, %v332_v32  ;;  %v374_v36 = vmax.f32 %v370_v33, 0.0 }
 0x24b   :  { %v424_v28 = vpack.c.bf16 %v374_v36, %v374_v36  ;;  %v372_v38 = vadd.f32 %v364_v37, %v352_v35  ;;  %v368_v43 = vpop.permute.xlu1 %367 }
 0x24d   :  { %395 = vst.msk [vmem:[%s670_s3] sm:$0xf] %vm394_vm6, %v424_v28  ;;  %v376_v27 = vmax.f32 %v372_v38, 0.0 }
 0x24e   :  { %v476_v5 = vpop.eup %475 }
 0x24f   :  { %v426_v41 = vpack.c.bf16 %v376_v27, %v376_v27  ;;  %v331_v44 = vmul.f32 %v476_v5, %v612_v34 }
 0x251   :  { %397 = vst.msk [vmem:[%s670_s3 + $0x8] sm:$0xf] %vm394_vm6, %v426_v41  ;;  %v351_v16 = vmul.f32 %v340_v39, %v331_v44 }
 0x252   :  { %v478_v42 = vpop.eup %477 }
 0x253   :  { %v333_v45 = vmul.f32 %v478_v42, %v620_v40  ;;  %v371_v46 = vadd.f32 %v360_v26, %v351_v16 }
 0x255   :  { %v353_v47 = vmul.f32 %v348_v4, %v333_v45  ;;  %v375_v48 = vmax.f32 %v371_v46, 0.0 }
 0x257   :  { %v373_v49 = vadd.f32 %v368_v43, %v353_v47  ;;  %v425_v50 = vpack.c.bf16 %v375_v48, %v375_v48 }
 0x259   :  { %v377_v51 = vmax.f32 %v373_v49, 0.0  ;;  %396 = vst.msk [vmem:[%s670_s3 + $0x4] sm:$0xf] %vm394_vm6, %v425_v50 }
 0x25b   :  { %v427_v34 = vpack.c.bf16 %v377_v51, %v377_v51 }
 0x25d   :  { %398 = vst.msk [vmem:[%s670_s3 + $0xc] sm:$0xf] %vm394_vm6, %v427_v34 }

// kernel: generator_forward.11
= control target key start
LH: loop header
LB: loop body
LE: loop exit
PB: predicated region body
PF: predicated region fallthrough
CT: control target
= control target key end

     0   :  { %v726_v1 = vmov 0   ;;  %v224_v22 = vlaneseq  ;;  %v727_v31 = vmov 0.0   ;;  %vm244_vm4 = vcmask 261120   ;;  %s1046_s1 = inlined_call_operand.vmem [shape: bf16[128,32], index: 1, kind: input, shape index: {}]   ;;  %s1047_s0 = inlined_call_operand.vmem [shape: bf16[64,128], index: 0, kind: input, shape index: {}]   ;;  %s1048_s2 = inlined_call_operand.vmem [shape: f32[64,3], index: 2, kind: input, shape index: {}]   ;;  %s1049_s3 = inlined_call_operand.vmem [shape: bf16[64,32], index: 3, kind: output, shape index: {}]  }
   0x1   :  { %v710_v0 = vld [vmem:[%s1046_s1] sm:$0xff]   ;;  %700 = vset.pattern.permute.xlu0 %v726_v1  ;;  %701 = vset.pattern.permute.xlu1 %v726_v1  ;;  %v711_v2 = vld [vmem:[%s1046_s1 + $0x8] sm:$0xff]   ;;  %v712_v3 = vld [vmem:[%s1046_s1 + $0x10] sm:$0xff]   ;;  %vm601_vm5 = vcmask 257024  }
   0x2   :  { %656 = vmatprep.subr.bf16.mxu0 %v710_v0  ;;  %680 = vmatprep.subr.bf16.mxu1 %v710_v0  ;;  %v713_v4 = vld [vmem:[%s1046_s1 + $0x18] sm:$0xff]   ;;  %v718_v5 = vld [vmem:[%s1047_s0] sm:$0xff]   ;;  %v719_v6 = vld [vmem:[%s1047_s0 + $0x10] sm:$0xff]   ;;  %v225_v24 = vand.u32 127, %v224_v22 }
   0x3   :  { %657 = vmatpush3.bf16.msra.mxu0 %v710_v0  ;;  %688 = vmatpush3.bf16.msra.mxu1 %v710_v0  ;;  %v714_v7 = vld [vmem:[%s1046_s1 + $0x20] sm:$0xff]   ;;  %v781_v9 = vld [vmem:[%s1048_s2 + $0x10] sm:$0xff]  ;;  %v787_v10 = vld [vmem:[%s1048_s2 + $0x8] sm:$0xff] }
   0x4   :  { %658 = vmatprep.subr.bf16.mxu0 %v711_v2  ;;  %681 = vmatprep.subr.bf16.mxu1 %v711_v2  ;;  %v776_v8 = vld [vmem:[%s1048_s2] sm:$0xff]  ;;  %v793_v11 = vld [vmem:[%s1048_s2 + $0x18] sm:$0xff]  ;;  %v715_v12 = vld [vmem:[%s1046_s1 + $0x28] sm:$0xff]   ;;  %vm231_vm0 = vcmp.ge.s32.totalorder %v225_v24, 16  ;;  %vm232_vm1 = vcmp.lt.s32.totalorder %v225_v24, 32  ;;  %vm227_vm3 = vcmp.lt.s32.totalorder %v225_v24, 16 }
   0x5   :  { %672 = vmatprep.mubr.bf16.mxu0 %v718_v5  ;;  %676 = vmatprep.mubr.bf16.mxu1 %v719_v6  ;;  %v802_v13 = vld [vmem:[%s1048_s2 + $0x20] sm:$0xff]  ;;  %v808_v14 = vld [vmem:[%s1048_s2 + $0x28] sm:$0xff]  ;;  %v716_v15 = vld [vmem:[%s1046_s1 + $0x30] sm:$0xff]   ;;  %v838_v33 = vsel %vm227_vm3, 1.0, %v727_v31 }
   0x6   :  { %49 = vperm.xlu0 %700, %v776_v8   ;;  %59 = vperm.xlu1 %701, %v781_v9   ;;  %v817_v16 = vld [vmem:[%s1048_s2 + $0x30] sm:$0xff]  ;;  %v823_v17 = vld [vmem:[%s1048_s2 + $0x38] sm:$0xff]  ;;  %v720_v19 = vld [vmem:[%s1047_s0 + $0x8] sm:$0xff]  }
   0x7   :  { %659 = vmatpush3.bf16.msra.mxu0 %v711_v2  ;;  %689 = vmatpush3.bf16.msra.mxu1 %v711_v2  ;;  %v717_v18 = vld [vmem:[%s1046_s1 + $0x38] sm:$0xff]   ;;  %vm233_vm2 = vmand %vm231_vm0, %vm232_vm1 }
   0x8   :  { %660 = vmatprep.subr.bf16.mxu0 %v712_v3  ;;  %682 = vmatprep.subr.bf16.mxu1 %v712_v3  ;;  %v721_v20 = vld [vmem:[%s1047_s0 + $0x18] sm:$0xff]   ;;  %v836_v32 = vsel %vm233_vm2, 1.0, %v727_v31 }
   0xa   :  { %54 = vperm.xlu0 %700, %v787_v10   ;;  %64 = vperm.xlu1 %701, %v793_v11  }
   0xb   :  { %661 = vmatpush3.bf16.msra.mxu0 %v712_v3  ;;  %690 = vmatpush3.bf16.msra.mxu1 %v712_v3 }
   0xc   :  { %662 = vmatprep.subr.bf16.mxu0 %v713_v4  ;;  %683 = vmatprep.subr.bf16.mxu1 %v713_v4 }
   0xe   :  { %69 = vperm.xlu0 %700, %v802_v13   ;;  %74 = vperm.xlu1 %701, %v808_v14  }
   0xf   :  { %663 = vmatpush3.bf16.msra.mxu0 %v713_v4  ;;  %691 = vmatpush3.bf16.msra.mxu1 %v713_v4 }
  0x10   :  { %664 = vmatprep.subr.bf16.mxu0 %v714_v7  ;;  %684 = vmatprep.subr.bf16.mxu1 %v714_v7 }
  0x12   :  { %79 = vperm.xlu0 %700, %v817_v16   ;;  %84 = vperm.xlu1 %701, %v823_v17  }
  0x13   :  { %665 = vmatpush3.bf16.msra.mxu0 %v714_v7  ;;  %692 = vmatpush3.bf16.msra.mxu1 %v714_v7 }
  0x14   :  { %666 = vmatprep.subr.bf16.mxu0 %v715_v12  ;;  %685 = vmatprep.subr.bf16.mxu1 %v715_v12 }
  0x17   :  { %667 = vmatpush3.bf16.msra.mxu0 %v715_v12  ;;  %693 = vmatpush3.bf16.msra.mxu1 %v715_v12 }
  0x18   :  { %668 = vmatprep.subr.bf16.mxu0 %v716_v15  ;;  %686 = vmatprep.subr.bf16.mxu1 %v716_v15 }
  0x1b   :  { %669 = vmatpush3.bf16.msra.mxu0 %v716_v15  ;;  %694 = vmatpush3.bf16.msra.mxu1 %v716_v15 }
  0x1c   :  { %670 = vmatprep.subr.bf16.mxu0 %v717_v18  ;;  %687 = vmatprep.subr.bf16.mxu1 %v717_v18 }
  0x1f   :  { %671 = vmatpush3.bf16.msra.mxu0 %v717_v18  ;;  %695 = vmatpush3.bf16.msra.mxu1 %v717_v18 }
  0x22   :  { %673 = vmatmul.mubr.bf16.vlgmr.msra.gmra.mrb[0].mxu0 %v720_v19  ;;  %677 = vmatmul.mubr.bf16.vlgmr.msra.gmra.mrb[0].mxu1 %v721_v20 }
  0x85   :  { %v50_v21 = vpop.permute.xlu0 %49  ;;  %v60_v25 = vpop.permute.xlu1 %59 }
  0x89   :  { %v55_v23 = vpop.permute.xlu0 %54  ;;  %v65_v27 = vpop.permute.xlu1 %64 }
  0x8d   :  { %v70_v26 = vpop.permute.xlu0 %69  ;;  %v75_v46 = vpop.permute.xlu1 %74 }
  0x91   :  { %v80_v28 = vpop.permute.xlu0 %79  ;;  %v85_v56 = vpop.permute.xlu1 %84 }
  0xf5   :  { %v674_v29 = vpop.f32.mrb[0].mxu0  ;;  %v678_v30 = vpop.f32.mrb[0].mxu1 }
  0xf6   :  { %v840_v34 = vadd.f32 %v674_v29, %v60_v25  ;;  %v842_v35 = vadd.f32 %v678_v30, %v80_v28  ;;  %v193_v36 = vpop.f32.mrb[1].mxu0  ;;  %v209_v37 = vpop.f32.mrb[1].mxu1 }
  0xf7   :  { %v844_v38 = vadd.f32 %v193_v36, %v50_v21  ;;  %v675_v39 = vpop.f32.mrb[2].mxu0  ;;  %v679_v40 = vpop.f32.mrb[2].mxu1  ;;  %v858_v51 = vadd.f32 %v209_v37, %v70_v26 }
  0xf8   :  { %v196_v41 = vpop.f32.mrb[3].mxu0  ;;  %v212_v42 = vpop.f32.mrb[3].mxu1  ;;  %v293_v43 = vmul.f32 %v836_v32, %v840_v34  ;;  %v238_v44 = vmul.f32 %v838_v33, %v840_v34  ;;  %v850_v45 = vadd.f32 %v675_v39, %v65_v27  ;;  %v242_v49 = vmul.f32 %v838_v33, %v842_v35 }
  0xf9   :  { %v236_v50 = vmul.f32 %v838_v33, %v844_v38  ;;  %v291_v54 = vmul.f32 %v836_v32, %v844_v38  ;;  %v866_v57 = vadd.f32 %v679_v40, %v85_v56  ;;  %v240_v60 = vmul.f32 %v838_v33, %v858_v51 }
  0xfa   :  { %v305_v47 = vsel %vm244_vm4, %v293_v43, 0.0  ;;  %v251_v48 = vsel %vm244_vm4, %v238_v44, 0.0  ;;  %v263_v52 = vsel %vm244_vm4, %v242_v49, 0.0  ;;  %v239_v55 = vmul.f32 %v838_v33, %v850_v45 }
  0xfb   :  { %306 = vadd.xlane.f32.xlu1 %v305_v47  ;;  %252 = vadd.xlane.f32.xlu0 %v251_v48  ;;  %v245_v53 = vsel %vm244_vm4, %v236_v50, 0.0  ;;  %v299_v58 = vsel %vm244_vm4, %v291_v54, 0.0  ;;  %v294_v61 = vmul.f32 %v836_v32, %v850_v45  ;;  %v874_v62 = vadd.f32 %v196_v41, %v55_v23 }
  0xfc   :  { %v254_v59 = vsel %vm244_vm4, %v239_v55, 0.0  ;;  %v257_v63 = vsel %vm244_vm4, %v240_v60, 0.0  ;;  %v295_v2 = vmul.f32 %v836_v32, %v858_v51  ;;  %v243_v3 = vmul.f32 %v838_v33, %v866_v57 }
  0xfd   :  { %v308_v0 = vsel %vm244_vm4, %v294_v61, 0.0  ;;  %v882_v4 = vadd.f32 %v212_v42, %v75_v46  ;;  %v237_v7 = vmul.f32 %v838_v33, %v874_v62  ;;  %v292_v12 = vmul.f32 %v836_v32, %v874_v62 }
  0xfe   :  { %v311_v5 = vsel %vm244_vm4, %v295_v2, 0.0  ;;  %v266_v6 = vsel %vm244_vm4, %v243_v3, 0.0  ;;  %v297_v19 = vmul.f32 %v836_v32, %v842_v35  ;;  %v298_v25 = vmul.f32 %v836_v32, %v866_v57 }
  0xff   :  { %264 = vadd.xlane.f32.xlu1 %v263_v52  ;;  %246 = vadd.xlane.f32.xlu0 %v245_v53  ;;  %v248_v15 = vsel %vm244_vm4, %v237_v7, 0.0  ;;  %v302_v18 = vsel %vm244_vm4, %v292_v12, 0.0  ;;  %v241_v20 = vmul.f32 %v838_v33, %v882_v4  ;;  %v296_v23 = vmul.f32 %v836_v32, %v882_v4 }
 0x100   :  { %v317_v21 = vsel %vm244_vm4, %v297_v19, 0.0  ;;  %v320_v26 = vsel %vm244_vm4, %v298_v25, 0.0 }
 0x101   :  { %v260_v22 = vsel %vm244_vm4, %v241_v20, 0.0  ;;  %v314_v24 = vsel %vm244_vm4, %v296_v23, 0.0 }
 0x103   :  { %300 = vadd.xlane.f32.xlu1 %v299_v58  ;;  %255 = vadd.xlane.f32.xlu0 %v254_v59 }
 0x107   :  { %258 = vadd.xlane.f32.xlu1 %v257_v63  ;;  %309 = vadd.xlane.f32.xlu0 %v308_v0 }
 0x10b   :  { %312 = vadd.xlane.f32.xlu1 %v311_v5  ;;  %267 = vadd.xlane.f32.xlu0 %v266_v6 }
 0x10f   :  { %249 = vadd.xlane.f32.xlu1 %v248_v15  ;;  %303 = vadd.xlane.f32.xlu0 %v302_v18 }
 0x113   :  { %318 = vadd.xlane.f32.xlu1 %v317_v21  ;;  %261 = vadd.xlane.f32.xlu0 %v260_v22 }
 0x117   :  { %315 = vadd.xlane.f32.xlu0 %v314_v24 }
 0x11b   :  { %321 = vadd.xlane.f32.xlu0 %v320_v26 }
 0x188   :  { %v307_v27 = vpop.xlane.xlu1 %306  ;;  %v253_v28 = vpop.xlane.xlu0 %252 }
 0x18c   :  { %v265_v29 = vpop.xlane.xlu1 %264  ;;  %v247_v30 = vpop.xlane.xlu0 %246 }
 0x18d   :  { %v269_v37 = vadd.f32 %v253_v28, %v247_v30 }
 0x190   :  { %v301_v31 = vpop.xlane.xlu1 %300  ;;  %v256_v36 = vpop.xlane.xlu0 %255 }
 0x191   :  { %v323_v49 = vadd.f32 %v307_v27, %v301_v31 }
 0x194   :  { %v259_v39 = vpop.xlane.xlu1 %258  ;;  %v310_v40 = vpop.xlane.xlu0 %309 }
 0x195   :  { %v271_v41 = vadd.f32 %v269_v37, %v259_v39 }
 0x197   :  { %v273_v42 = vadd.f32 %v271_v41, %v265_v29 }
 0x198   :  { %v313_v43 = vpop.xlane.xlu1 %312  ;;  %v268_v44 = vpop.xlane.xlu0 %267 }
 0x199   :  { %v275_v46 = vmul.f32 0.015625, %v273_v42  ;;  %v325_v50 = vadd.f32 %v323_v49, %v313_v43 }
 0x19b   :  { %279 = vperm.xlu1 %701, %v275_v46  }
 0x19c   :  { %v250_v47 = vpop.xlane.xlu1 %249  ;;  %v304_v48 = vpop.xlane.xlu0 %303 }
 0x19d   :  { %v270_v52 = vadd.f32 %v256_v36, %v250_v47  ;;  %v324_v61 = vadd.f32 %v310_v40, %v304_v48 }
 0x1a0   :  { %v319_v53 = vpop.xlane.xlu1 %318  ;;  %v262_v54 = vpop.xlane.xlu0 %261 }
 0x1a1   :  { %v327_v55 = vadd.f32 %v325_v50, %v319_v53  ;;  %v272_v56 = vadd.f32 %v270_v52, %v262_v54 }
 0x1a3   :  { %v329_v58 = vmul.f32 0.015625, %v327_v55  ;;  %v274_v59 = vadd.f32 %v272_v56, %v268_v44  ;;  %v728_v56 = vmov 1  }
 0x1a4   :  { %v316_v60 = vpop.xlane.xlu0 %315 }
 0x1a5   :  { %v276_v63 = vmul.f32 0.015625, %v274_v59  ;;  %333 = vperm.xlu1 %701, %v329_v58   ;;  %v326_v0 = vadd.f32 %v324_v61, %v316_v60 }
 0x1a7   :  { %284 = vperm.xlu0 %700, %v276_v63  }
 0x1a8   :  { %v322_v2 = vpop.xlane.xlu0 %321 }
 0x1a9   :  { %v328_v3 = vadd.f32 %v326_v0, %v322_v2 }
 0x1ab   :  { %v330_v5 = vmul.f32 0.015625, %v328_v3  ;;  %702 = vset.pattern.permute.xlu0 %v728_v56 }
 0x1ad   :  { %338 = vperm.xlu1 %701, %v330_v5  }
 0x1b1   :  { %703 = vset.pattern.permute.xlu1 %v728_v56 }
 0x21a   :  { %v280_v6 = vpop.permute.xlu1 %279 }
 0x21b   :  { %v287_v12 = vmul.f32 %v838_v33, %v280_v6 }
 0x224   :  { %v334_v7 = vpop.permute.xlu1 %333 }
 0x225   :  { %v341_v15 = vmul.f32 %v836_v32, %v334_v7 }
 0x226   :  { %v285_v23 = vpop.permute.xlu0 %284 }
 0x227   :  { %v343_v18 = vadd.f32 %v341_v15, %v287_v12 }
 0x229   :  { %v907_v19 = vsub.f32 %v844_v38, %v343_v18  ;;  %v910_v20 = vsub.f32 %v858_v51, %v343_v18  ;;  %v913_v21 = vsub.f32 %v840_v34, %v343_v18  ;;  %v916_v22 = vsub.f32 %v842_v35, %v343_v18 }
 0x22a   :  { %v288_v34 = vmul.f32 %v838_v33, %v285_v23 }
 0x22b   :  { %v353_v24 = vmul.f32 %v907_v19, %v907_v19  ;;  %v357_v25 = vmul.f32 %v910_v20, %v910_v20  ;;  %v355_v38 = vmul.f32 %v913_v21, %v913_v21  ;;  %v359_v51 = vmul.f32 %v916_v22, %v916_v22 }
 0x22c   :  { %v339_v26 = vpop.permute.xlu1 %338 }
 0x22d   :  { %v342_v27 = vmul.f32 %v836_v32, %v339_v26  ;;  %v361_v35 = vmul.f32 %v838_v33, %v353_v24  ;;  %v365_v28 = vmul.f32 %v838_v33, %v357_v25  ;;  %v363_v29 = vmul.f32 %v838_v33, %v355_v38 }
 0x22e   :  { %v367_v37 = vmul.f32 %v838_v33, %v359_v51  ;;  %v415_v42 = vmul.f32 %v836_v32, %v353_v24  ;;  %v417_v46 = vmul.f32 %v836_v32, %v355_v38  ;;  %v419_v48 = vmul.f32 %v836_v32, %v357_v25 }
 0x22f   :  { %v344_v30 = vadd.f32 %v342_v27, %v288_v34  ;;  %v369_v31 = vsel %vm244_vm4, %v361_v35, 0.0  ;;  %v381_v36 = vsel %vm244_vm4, %v365_v28, 0.0  ;;  %v375_v40 = vsel %vm244_vm4, %v363_v29, 0.0 }
 0x230   :  { %370 = vadd.xlane.f32.xlu0 %v369_v31  ;;  %382 = vadd.xlane.f32.xlu1 %v381_v36  ;;  %v387_v41 = vsel %vm244_vm4, %v367_v37, 0.0  ;;  %v423_v47 = vsel %vm244_vm4, %v415_v42, 0.0  ;;  %v429_v50 = vsel %vm244_vm4, %v417_v46, 0.0  ;;  %v435_v52 = vsel %vm244_vm4, %v419_v48, 0.0 }
 0x231   :  { %v935_v39 = vsub.f32 %v874_v62, %v344_v30  ;;  %v948_v49 = vsub.f32 %v850_v45, %v344_v30  ;;  %v421_v53 = vmul.f32 %v836_v32, %v359_v51  ;;  %v956_v55 = vsub.f32 %v882_v4, %v344_v30 }
 0x232   :  { %v965_v60 = vsub.f32 %v866_v57, %v344_v30 }
 0x233   :  { %v354_v43 = vmul.f32 %v935_v39, %v935_v39  ;;  %v356_v54 = vmul.f32 %v948_v49, %v948_v49  ;;  %v441_v45 = vsel %vm244_vm4, %v421_v53, 0.0  ;;  %v358_v59 = vmul.f32 %v956_v55, %v956_v55 }
 0x234   :  { %376 = vadd.xlane.f32.xlu0 %v375_v40  ;;  %388 = vadd.xlane.f32.xlu1 %v387_v41  ;;  %v360_v63 = vmul.f32 %v965_v60, %v965_v60 }
 0x235   :  { %v362_v44 = vmul.f32 %v838_v33, %v354_v43  ;;  %v364_v58 = vmul.f32 %v838_v33, %v356_v54  ;;  %v366_v61 = vmul.f32 %v838_v33, %v358_v59  ;;  %v416_v5 = vmul.f32 %v836_v32, %v354_v43 }
 0x236   :  { %v368_v2 = vmul.f32 %v838_v33, %v360_v63  ;;  %v418_v6 = vmul.f32 %v836_v32, %v356_v54  ;;  %v420_v12 = vmul.f32 %v836_v32, %v358_v59  ;;  %v422_v18 = vmul.f32 %v836_v32, %v360_v63 }
 0x237   :  { %v372_v62 = vsel %vm244_vm4, %v362_v44, 0.0  ;;  %v378_v4 = vsel %vm244_vm4, %v364_v58, 0.0  ;;  %v384_v0 = vsel %vm244_vm4, %v366_v61, 0.0  ;;  %v426_v57 = vsel %vm244_vm4, %v416_v5, 0.0 }
 0x238   :  { %424 = vadd.xlane.f32.xlu0 %v423_v47  ;;  %373 = vadd.xlane.f32.xlu1 %v372_v62  ;;  %v390_v3 = vsel %vm244_vm4, %v368_v2, 0.0  ;;  %v432_v7 = vsel %vm244_vm4, %v418_v6, 0.0  ;;  %v438_v15 = vsel %vm244_vm4, %v420_v12, 0.0  ;;  %v444_v23 = vsel %vm244_vm4, %v422_v18, 0.0 }
 0x23c   :  { %430 = vadd.xlane.f32.xlu0 %v429_v50  ;;  %436 = vadd.xlane.f32.xlu1 %v435_v52 }
 0x240   :  { %442 = vadd.xlane.f32.xlu0 %v441_v45  ;;  %v729_v45 = vmov 2  }
 0x244   :  { %379 = vadd.xlane.f32.xlu0 %v378_v4 }
 0x248   :  { %385 = vadd.xlane.f32.xlu0 %v384_v0 }
 0x24c   :  { %391 = vadd.xlane.f32.xlu0 %v390_v3 }
 0x24d   :  { %494 = vperm.xlu1 %703, %v793_v11  }
 0x250   :  { %427 = vadd.xlane.f32.xlu0 %v426_v57 }
 0x251   :  { %704 = vset.pattern.permute.xlu1 %v726_v1 }
 0x254   :  { %433 = vadd.xlane.f32.xlu0 %v432_v7 }
 0x258   :  { %439 = vadd.xlane.f32.xlu0 %v438_v15 }
 0x25c   :  { %445 = vadd.xlane.f32.xlu0 %v444_v23 }
 0x272   :  { %482 = vperm.xlu0 %702, %v776_v8  }
 0x276   :  { %486 = vperm.xlu0 %702, %v787_v10  }
 0x27a   :  { %490 = vperm.xlu0 %702, %v781_v9  }
 0x27e   :  { %498 = vperm.xlu0 %702, %v802_v13  }
 0x282   :  { %705 = vset.pattern.permute.xlu0 %v726_v1 }
 0x2bd   :  { %v383_v24 = vpop.xlane.xlu1 %382  ;;  %v371_v25 = vpop.xlane.xlu0 %370 }
 0x2c1   :  { %v389_v38 = vpop.xlane.xlu1 %388  ;;  %v377_v51 = vpop.xlane.xlu0 %376 }
 0x2c2   :  { %v393_v26 = vadd.f32 %v377_v51, %v371_v25 }
 0x2c4   :  { %v395_v34 = vadd.f32 %v393_v26, %v383_v24 }
 0x2c5   :  { %v374_v27 = vpop.xlane.xlu1 %373  ;;  %v425_v35 = vpop.xlane.xlu0 %424 }
 0x2c6   :  { %v397_v28 = vadd.f32 %v395_v34, %v389_v38 }
 0x2c8   :  { %v399_v29 = vmul.f32 0.015625, %v397_v28 }
 0x2c9   :  { %v431_v30 = vpop.xlane.xlu0 %430  ;;  %v437_v36 = vpop.xlane.xlu1 %436 }
 0x2ca   :  { %v447_v31 = vadd.f32 %v431_v30, %v425_v35  ;;  %403 = vperm.xlu1 %704, %v399_v29  }
 0x2cc   :  { %v449_v37 = vadd.f32 %v447_v31, %v437_v36 }
 0x2cd   :  { %v443_v40 = vpop.xlane.xlu0 %442  ;;  %v495_v0 = vpop.permute.xlu1 %494 }
 0x2ce   :  { %v451_v41 = vadd.f32 %v449_v37, %v443_v40 }
 0x2d0   :  { %v453_v42 = vmul.f32 0.015625, %v451_v41 }
 0x2d1   :  { %v380_v43 = vpop.xlane.xlu0 %379 }
 0x2d2   :  { %457 = vperm.xlu0 %705, %v453_v42   ;;  %v394_v44 = vadd.f32 %v380_v43, %v374_v27 }
 0x2d5   :  { %v386_v1 = vpop.xlane.xlu0 %385 }
 0x2d6   :  { %v396_v46 = vadd.f32 %v394_v44, %v386_v1 }
 0x2d9   :  { %v392_v47 = vpop.xlane.xlu0 %391 }
 0x2da   :  { %v398_v62 = vadd.f32 %v396_v46, %v392_v47 }
 0x2dc   :  { %v400_v48 = vmul.f32 0.015625, %v398_v62 }
 0x2dd   :  { %v428_v50 = vpop.xlane.xlu0 %427 }
 0x2de   :  { %408 = vperm.xlu0 %705, %v400_v48  }
 0x2e1   :  { %v434_v52 = vpop.xlane.xlu0 %433 }
 0x2e2   :  { %707 = vset.pattern.permute.xlu0 %v728_v56  ;;  %v448_v54 = vadd.f32 %v434_v52, %v428_v50 }
 0x2e3   :  { %506 = vperm.xlu0 %707, %v817_v16  }
 0x2e5   :  { %v440_v53 = vpop.xlane.xlu0 %439 }
 0x2e6   :  { %v450_v58 = vadd.f32 %v448_v54, %v440_v53 }
 0x2e7   :  { %708 = vset.pattern.permute.xlu0 %v729_v45 }
 0x2e8   :  { %522 = vperm.xlu0 %708, %v776_v8  }
 0x2e9   :  { %v446_v59 = vpop.xlane.xlu0 %445 }
 0x2ea   :  { %v452_v4 = vadd.f32 %v450_v58, %v446_v59 }
 0x2ec   :  { %v454_v61 = vmul.f32 0.015625, %v452_v4  ;;  %534 = vperm.xlu0 %708, %v793_v11  }
 0x2ee   :  { %462 = vperm.xlu1 %704, %v454_v61  }
 0x2f0   :  { %542 = vperm.xlu0 %708, %v808_v14  }
 0x2f1   :  { %v483_v8 = vpop.permute.xlu0 %482 }
 0x2f2   :  { %706 = vset.pattern.permute.xlu1 %v728_v56 }
 0x2f3   :  { %502 = vperm.xlu1 %706, %v808_v14  }
 0x2f4   :  { %550 = vperm.xlu0 %708, %v823_v17  }
 0x2f5   :  { %v487_v11 = vpop.permute.xlu0 %486 }
 0x2f7   :  { %510 = vperm.xlu1 %706, %v823_v17  }
 0x2f9   :  { %v491_v63 = vpop.permute.xlu0 %490 }
 0x2fb   :  { %709 = vset.pattern.permute.xlu1 %v729_v45 }
 0x2fc   :  { %526 = vperm.xlu1 %709, %v787_v10  }
 0x2fd   :  { %v499_v56 = vpop.permute.xlu0 %498 }
 0x300   :  { %530 = vperm.xlu1 %709, %v781_v9  }
 0x304   :  { %538 = vperm.xlu1 %709, %v802_v13  }
 0x308   :  { %546 = vperm.xlu1 %709, %v817_v16  }
 0x349   :  { %v404_v2 = vpop.permute.xlu1 %403 }
 0x34a   :  { %v411_v3 = vmul.f32 %v838_v33, %v404_v2 }
 0x351   :  { %v458_v14 = vpop.permute.xlu0 %457 }
 0x352   :  { %v465_v17 = vmul.f32 %v836_v32, %v458_v14 }
 0x354   :  { %v467_v5 = vadd.f32 %v465_v17, %v411_v3 }
 0x356   :  { %v469_v57 = vadd.f32 1e-05, %v467_v5 }
 0x358   :  { %722 = vrsqrt.f32 %v469_v57 }
 0x35d   :  { %v409_v10 = vpop.permute.xlu0 %408 }
 0x35e   :  { %v412_v24 = vmul.f32 %v838_v33, %v409_v10 }
 0x362   :  { %v723_v9 = vpop.eup %722  ;;  %v507_v6 = vpop.permute.xlu0 %506 }
 0x363   :  { %v473_v13 = vmul.f32 %v723_v9, %v907_v19  ;;  %v475_v27 = vmul.f32 %v723_v9, %v913_v21  ;;  %v477_v33 = vmul.f32 %v723_v9, %v910_v20  ;;  %v479_v44 = vmul.f32 %v723_v9, %v916_v22 }
 0x365   :  { %v513_v16 = vmul.f32 %v483_v8, %v473_v13  ;;  %v515_v30 = vmul.f32 %v491_v63, %v475_v27  ;;  %v517_v62 = vmul.f32 %v499_v56, %v477_v33  ;;  %v519_v58 = vmul.f32 %v507_v6, %v479_v44 }
 0x367   :  { %v523_v7 = vpop.permute.xlu0 %522 }
 0x368   :  { %v553_v12 = vadd.f32 %v523_v7, %v513_v16 }
 0x36a   :  { %v561_v15 = vmax.f32 %v553_v12, 0.0 }
 0x36b   :  { %v535_v19 = vpop.permute.xlu0 %534 }
 0x36c   :  { %v636_v18 = vpack.c.bf16 %v561_v15, %v561_v15 }
 0x36d   :  { %v463_v23 = vpop.permute.xlu1 %462 }
 0x36e   :  { %602 = vst.msk [vmem:[%s1049_s3] sm:$0xf] %vm601_vm5, %v636_v18  ;;  %v466_v25 = vmul.f32 %v836_v32, %v463_v23 }
 0x36f   :  { %v543_v28 = vpop.permute.xlu0 %542 }
 0x370   :  { %v468_v38 = vadd.f32 %v466_v25, %v412_v24 }
 0x372   :  { %v470_v51 = vadd.f32 1e-05, %v468_v38  ;;  %v503_v26 = vpop.permute.xlu1 %502 }
 0x373   :  { %v551_v46 = vpop.permute.xlu0 %550 }
 0x374   :  { %724 = vrsqrt.f32 %v470_v51 }
 0x376   :  { %v511_v34 = vpop.permute.xlu1 %510 }
 0x37b   :  { %v527_v35 = vpop.permute.xlu1 %526 }
 0x37e   :  { %v725_v29 = vpop.eup %724 }
 0x37f   :  { %v478_v31 = vmul.f32 %v725_v29, %v956_v55  ;;  %v476_v36 = vmul.f32 %v725_v29, %v948_v49  ;;  %v480_v32 = vmul.f32 %v725_v29, %v965_v60  ;;  %v474_v37 = vmul.f32 %v725_v29, %v935_v39  ;;  %v531_v40 = vpop.permute.xlu1 %530 }
 0x380   :  { %v555_v41 = vadd.f32 %v531_v40, %v515_v30 }
 0x381   :  { %v518_v42 = vmul.f32 %v503_v26, %v478_v31  ;;  %v516_v43 = vmul.f32 %v495_v0, %v476_v36  ;;  %v520_v1 = vmul.f32 %v511_v34, %v480_v32  ;;  %v514_v21 = vmul.f32 %v487_v11, %v474_v37 }
 0x382   :  { %v563_v47 = vmax.f32 %v555_v41, 0.0 }
 0x383   :  { %v556_v20 = vadd.f32 %v535_v19, %v516_v43  ;;  %v558_v48 = vadd.f32 %v543_v28, %v518_v42  ;;  %v554_v55 = vadd.f32 %v527_v35, %v514_v21  ;;  %v560_v50 = vadd.f32 %v551_v46, %v520_v1  ;;  %v539_v49 = vpop.permute.xlu1 %538 }
 0x384   :  { %v638_v52 = vpack.c.bf16 %v563_v47, %v563_v47  ;;  %v557_v60 = vadd.f32 %v539_v49, %v517_v62 }
 0x385   :  { %v564_v53 = vmax.f32 %v556_v20, 0.0  ;;  %v566_v39 = vmax.f32 %v558_v48, 0.0  ;;  %v562_v54 = vmax.f32 %v554_v55, 0.0  ;;  %v568_v45 = vmax.f32 %v560_v50, 0.0 }
 0x386   :  { %604 = vst.msk [vmem:[%s1049_s3 + $0x8] sm:$0xf] %vm601_vm5, %v638_v52  ;;  %v565_v22 = vmax.f32 %v557_v60, 0.0 }
 0x387   :  { %v639_v59 = vpack.c.bf16 %v564_v53, %v564_v53  ;;  %v641_v4 = vpack.c.bf16 %v566_v39, %v566_v39  ;;  %v637_v61 = vpack.c.bf16 %v562_v54, %v562_v54  ;;  %v643_v8 = vpack.c.bf16 %v568_v45, %v568_v45  ;;  %v547_v11 = vpop.permute.xlu1 %546 }
 0x388   :  { %v640_v63 = vpack.c.bf16 %v565_v22, %v565_v22  ;;  %v559_v0 = vadd.f32 %v547_v11, %v519_v58 }
 0x389   :  { %605 = vst.msk [vmem:[%s1049_s3 + $0xc] sm:$0xf] %vm601_vm5, %v639_v59  ;;  %607 = vst.msk [vmem:[%s1049_s3 + $0x14] sm:$0xf] %vm601_vm5, %v641_v4 }
 0x38a   :  { %603 = vst.msk [vmem:[%s1049_s3 + $0x4] sm:$0xf] %vm601_vm5, %v637_v61  ;;  %609 = vst.msk [vmem:[%s1049_s3 + $0x1c] sm:$0xf] %vm601_vm5, %v643_v8  ;;  %v567_v56 = vmax.f32 %v559_v0, 0.0 }
 0x38b   :  { %606 = vst.msk [vmem:[%s1049_s3 + $0x10] sm:$0xf] %vm601_vm5, %v640_v63 }
 0x38c   :  { %v642_v2 = vpack.c.bf16 %v567_v56, %v567_v56 }
 0x38e   :  { %608 = vst.msk [vmem:[%s1049_s3 + $0x18] sm:$0xf] %vm601_vm5, %v642_v2 }

// kernel: generator_forward.10
= control target key start
LH: loop header
LB: loop body
LE: loop exit
PB: predicated region body
PF: predicated region fallthrough
CT: control target
= control target key end

     0   :  { %vm38_vm0 = vcmask 261120   ;;  %v5500_v32 = vmov 0   ;;  %vm1981_vm5 = vcmask 15360   ;;  %vm4342_vm6 = vcmask 257024   ;;  %s6581_s3 = inlined_call_operand.vmem [shape: bf16[9,32,32], index: 3, kind: input, shape index: {}]   ;;  %s6582_s0 = inlined_call_operand.vmem [shape: bf16[32,32], index: 0, kind: input, shape index: {}]   ;;  %s6583_s1 = inlined_call_operand.vmem [shape: bf16[32,288], index: 1, kind: input, shape index: {}]   ;;  %s6584_s4 = inlined_call_operand.vmem [shape: f32[32,3], index: 4, kind: input, shape index: {}]   ;;  %s6585_s2 = inlined_call_operand.vmem [shape: bf16[32,288], index: 2, kind: input, shape index: {}]   ;;  %s6586_s5 = inlined_call_operand.vmem [shape: f32[32,2], index: 5, kind: input, shape index: {}]   ;;  %s6587_s6 = inlined_call_operand.vmem [shape: f32[1,2], index: 6, kind: input, shape index: {}]   ;;  %s6588_s7 = inlined_call_operand.vmem [shape: f32[32,2], index: 7, kind: input, shape index: {}]   ;;  %s6589_s8 = inlined_call_operand.vmem [shape: bf16[32,32], index: 8, kind: output, shape index: {}]  }
   0x1   :  { %v5292_v0 = vld [vmem:[%s6581_s3] sm:$0xff]   ;;  %v5294_v2 = vld [vmem:[%s6581_s3 + $0x8] sm:$0xff]   ;;  %v5296_v7 = vld [vmem:[%s6581_s3 + $0x10] sm:$0xff]   ;;  %5286 = vset.pattern.permute.xlu0 %v5500_v32  ;;  %5287 = vset.pattern.permute.xlu1 %v5500_v32 }
   0x2   :  { %v5293_v1 = vld [vmem:[%s6581_s3 + $0x40] sm:$0xff]   ;;  %4962 = vmatprep.subr.bf16.mxu1 %v5292_v0  ;;  %v5295_v3 = vld [vmem:[%s6581_s3 + $0x48] sm:$0xff]   ;;  %v5297_v18 = vld [vmem:[%s6581_s3 + $0x18] sm:$0xff]  }
   0x3   :  { %4963 = vmatpush3.bf16.msra.mxu1 %v5292_v0  ;;  %4994 = vmatprep.subr.bf16.mxu0 %v5293_v1  ;;  %v4682_v4 = vld [vmem:[%s6582_s0] sm:$0xff]   ;;  %v4689_v8 = vld [vmem:[%s6582_s0 + $0x8] sm:$0xff]   ;;  %v5300_v24 = vld [vmem:[%s6581_s3 + $0x30] sm:$0xff]  }
   0x4   :  { %4995 = vmatpush3.bf16.msra.mxu0 %v5293_v1  ;;  %4964 = vmatprep.subr.bf16.mxu1 %v5294_v2  ;;  %v4683_v5 = vunpack.c.l.bf16 %v4682_v4  ;;  %v4684_v6 = vunpack.c.h.bf16 %v4682_v4  ;;  %v4687_v9 = vunpack.c.l.bf16 %v4689_v8  ;;  %v4688_v10 = vunpack.c.h.bf16 %v4689_v8  ;;  %v5304_v11 = vld [vmem:[%s6581_s3 + $0x60] sm:$0xff]   ;;  %v5305_v19 = vld [vmem:[%s6581_s3 + $0x68] sm:$0xff]   ;;  %v5301_v25 = vld [vmem:[%s6581_s3 + $0x38] sm:$0xff]  }
   0x5   :  { %4996 = vmatprep.subr.bf16.mxu0 %v5295_v3  ;;  %v5298_v20 = vld [vmem:[%s6581_s3 + $0x20] sm:$0xff]   ;;  %v5299_v22 = vld [vmem:[%s6581_s3 + $0x28] sm:$0xff]   ;;  %v5302_v26 = vld [vmem:[%s6581_s3 + $0x50] sm:$0xff]  }
   0x6   :  { %39 = vst.msk [vmem:[#allocation2] sm:$0xff] %vm38_vm0, %v4683_v5  ;;  %40 = vst.msk [vmem:[#allocation2 + $0x8] sm:$0xff] %vm38_vm0, %v4684_v6  ;;  %v5306_v21 = vld [vmem:[%s6581_s3 + $0x80] sm:$0xff]   ;;  %v5308_v23 = vld [vmem:[%s6581_s3 + $0x88] sm:$0xff]  }
   0x7   :  { %4965 = vmatpush3.bf16.msra.mxu1 %v5294_v2  ;;  %41 = vst.msk [vmem:[#allocation2 + $0x10] sm:$0xff] %vm38_vm0, %v4687_v9  ;;  %42 = vst.msk [vmem:[#allocation2 + $0x18] sm:$0xff] %vm38_vm0, %v4688_v10  ;;  %v5303_v27 = vld [vmem:[%s6581_s3 + $0x58] sm:$0xff]   ;;  %v5307_v28 = vld [vmem:[%s6581_s3 + $0x70] sm:$0xff]  }
   0x8   :  { %4997 = vmatpush3.bf16.msra.mxu0 %v5295_v3  ;;  %4970 = vmatprep.subr.bf16.mxu1 %v5296_v7  ;;  %v5309_v29 = vld [vmem:[%s6581_s3 + $0x78] sm:$0xff]   ;;  %v5312_v30 = vld [vmem:[%s6583_s1 + $0x4] ss:$12 sps:$4 sm:$0xff]   ;;  %v5313_v31 = vld [vmem:[%s6583_s1 + $0x8] ss:$12 sps:$4 sm:$0xff]  }
   0x9   :  { %5010 = vmatprep.subr.bf16.mxu0 %v5304_v11  ;;  %v5641_v33 = vld [vmem:[%s6584_s4] sm:$0xff]  ;;  %v5646_v34 = vld [vmem:[%s6584_s4 + $0x10] sm:$0xff]  ;;  %v5653_v35 = vld [vmem:[%s6584_s4 + $0x8] sm:$0xff] }
   0xa   :  { %728 = vperm.xlu0 %5286, %v5641_v33   ;;  %738 = vperm.xlu1 %5287, %v5646_v34   ;;  %v5658_v36 = vld [vmem:[%s6584_s4 + $0x18] sm:$0xff] }
   0xd   :  { %v59_v12 = vld [vmem:[#allocation2] sm:$0xff]  ;;  %v60_v13 = vld [vmem:[#allocation2 + $0x8] sm:$0xff] }
   0xe   :  { %v63_v14 = vpack.c.bf16 %v60_v13, %v59_v12  ;;  %v61_v15 = vld [vmem:[#allocation2 + $0x10] sm:$0xff]  ;;  %v62_v16 = vld [vmem:[#allocation2 + $0x18] sm:$0xff]  ;;  %733 = vperm.xlu0 %5286, %v5653_v35   ;;  %743 = vperm.xlu1 %5287, %v5658_v36  }
   0xf   :  { %v64_v17 = vpack.c.bf16 %v62_v16, %v61_v15 }
  0x10   :  { %4966 = vmatprep.mubr.msk.bf16.mxu1 %vm38_vm0, %v63_v14  ;;  %4998 = vmatprep.mubr.msk.bf16.mxu0 %vm38_vm0, %v63_v14 }
  0x11   :  { %4967 = vmatmul.mubr.msk.bf16.vlgmr.msra.gmra.mrb[0].mxu1 %vm38_vm0, %v64_v17  ;;  %4999 = vmatmul.mubr.msk.bf16.vlgmr.msra.gmra.mrb[0].mxu0 %vm38_vm0, %v64_v17 }
  0x12   :  { %4971 = vmatpush3.bf16.msra.mxu1 %v5296_v7  ;;  %4974 = vmatprep.mubr.msk.bf16.mxu1 %vm38_vm0, %v63_v14 }
  0x13   :  { %4972 = vmatprep.subr.bf16.mxu1 %v5297_v18  ;;  %5011 = vmatpush3.bf16.msra.mxu0 %v5304_v11 }
  0x14   :  { %5012 = vmatprep.subr.bf16.mxu0 %v5305_v19  ;;  %5014 = vmatprep.mubr.msk.bf16.mxu0 %vm38_vm0, %v63_v14 }
  0x16   :  { %4973 = vmatpush3.bf16.msra.mxu1 %v5297_v18 }
  0x17   :  { %4978 = vmatprep.subr.bf16.mxu1 %v5298_v20  ;;  %5013 = vmatpush3.bf16.msra.mxu0 %v5305_v19 }
  0x18   :  { %5026 = vmatprep.subr.bf16.mxu0 %v5306_v21 }
  0x19   :  { %4975 = vmatmul.mubr.msk.bf16.vlgmr.msra.gmra.mrb[4].mxu1 %vm38_vm0, %v64_v17 }
  0x1a   :  { %4979 = vmatpush3.bf16.msra.mxu1 %v5298_v20  ;;  %4982 = vmatprep.mubr.msk.bf16.mxu1 %vm38_vm0, %v63_v14 }
  0x1b   :  { %4980 = vmatprep.subr.bf16.mxu1 %v5299_v22  ;;  %5015 = vmatmul.mubr.msk.bf16.vlgmr.msra.gmra.mrb[4].mxu0 %vm38_vm0, %v64_v17 }
  0x1c   :  { %5027 = vmatpush3.bf16.msra.mxu0 %v5306_v21  ;;  %5030 = vmatprep.mubr.msk.bf16.mxu0 %vm38_vm0, %v63_v14 }
  0x1d   :  { %5028 = vmatprep.subr.bf16.mxu0 %v5308_v23 }
  0x1e   :  { %4981 = vmatpush3.bf16.msra.mxu1 %v5299_v22 }
  0x1f   :  { %4986 = vmatprep.subr.bf16.mxu1 %v5300_v24 }
  0x20   :  { %5029 = vmatpush3.bf16.msra.mxu0 %v5308_v23 }
  0x21   :  { %4983 = vmatmul.mubr.msk.bf16.vlgmr.msra.gmra.mrb[8].mxu1 %vm38_vm0, %v64_v17 }
  0x22   :  { %4987 = vmatpush3.bf16.msra.mxu1 %v5300_v24  ;;  %4990 = vmatprep.mubr.msk.bf16.mxu1 %vm38_vm0, %v63_v14 }
  0x23   :  { %4988 = vmatprep.subr.bf16.mxu1 %v5301_v25  ;;  %5031 = vmatmul.mubr.msk.bf16.vlgmr.msra.gmra.mrb[8].mxu0 %vm38_vm0, %v64_v17 }
  0x24   :  { %5038 = vmatprep.mubr.msk.bf16.mxu0 %vm38_vm0, %v5313_v31 }
  0x26   :  { %4989 = vmatpush3.bf16.msra.mxu1 %v5301_v25 }
  0x27   :  { %5002 = vmatprep.subr.bf16.mxu1 %v5302_v26 }
  0x29   :  { %4991 = vmatmul.mubr.msk.bf16.vlgmr.msra.gmra.mrb[12].mxu1 %vm38_vm0, %v64_v17 }
  0x2a   :  { %5003 = vmatpush3.bf16.msra.mxu1 %v5302_v26  ;;  %5006 = vmatprep.mubr.msk.bf16.mxu1 %vm38_vm0, %v63_v14 }
  0x2b   :  { %5004 = vmatprep.subr.bf16.mxu1 %v5303_v27 }
  0x2e   :  { %5005 = vmatpush3.bf16.msra.mxu1 %v5303_v27  ;;  %v5314_v27 = vld [vmem:[%s6583_s1 + $0x20] ss:$12 sps:$4 sm:$0xff]  }
  0x2f   :  { %5018 = vmatprep.subr.bf16.mxu1 %v5307_v28 }
  0x31   :  { %5007 = vmatmul.mubr.msk.bf16.vlgmr.msra.gmra.mrb[16].mxu1 %vm38_vm0, %v64_v17 }
  0x32   :  { %5019 = vmatpush3.bf16.msra.mxu1 %v5307_v28  ;;  %5022 = vmatprep.mubr.msk.bf16.mxu1 %vm38_vm0, %v63_v14 }
  0x33   :  { %5020 = vmatprep.subr.bf16.mxu1 %v5309_v29 }
  0x36   :  { %5021 = vmatpush3.bf16.msra.mxu1 %v5309_v29 }
  0x39   :  { %5023 = vmatmul.mubr.msk.bf16.vlgmr.msra.gmra.mrb[20].mxu1 %vm38_vm0, %v64_v17 }
  0x3a   :  { %814 = vmatprep.mubr.bf16.mxu1 %v5312_v30 }
  0xe4   :  { %v4968_v37 = vpop.f32.mrb[0].mxu1  ;;  %v5000_v38 = vpop.f32.mrb[0].mxu0 }
  0xe5   :  { %v121_v39 = vpop.f32.mrb[1].mxu1  ;;  %v401_v40 = vpop.f32.mrb[1].mxu0 }
  0xe6   :  { %v4969_v41 = vpop.f32.mrb[2].mxu1  ;;  %v5001_v42 = vpop.f32.mrb[2].mxu0 }
  0xe7   :  { %v137_v43 = vpack.c.bf16 %v4969_v41, %v4968_v37  ;;  %v417_v44 = vpack.c.bf16 %v5001_v42, %v5000_v38  ;;  %v124_v45 = vpop.f32.mrb[3].mxu1  ;;  %v404_v46 = vpop.f32.mrb[3].mxu0 }
  0xe8   :  { %v136_v47 = vpack.c.bf16 %v124_v45, %v121_v39  ;;  %v416_v48 = vpack.c.bf16 %v404_v46, %v401_v40 }
  0xe9   :  { %139 = vst.msk [vmem:[#allocation3 + $0x8] sm:$0xff] %vm38_vm0, %v137_v43  ;;  %419 = vst.msk [vmem:[#allocation3 + $0x48] sm:$0xff] %vm38_vm0, %v417_v44 }
  0xea   :  { %138 = vst.msk [vmem:[#allocation3] sm:$0xff] %vm38_vm0, %v136_v47  ;;  %418 = vst.msk [vmem:[#allocation3 + $0x40] sm:$0xff] %vm38_vm0, %v416_v48 }
  0xec   :  { %v4976_v49 = vpop.f32.mrb[4].mxu1 }
  0xed   :  { %v191_v50 = vpop.f32.mrb[5].mxu1 }
  0xee   :  { %v4977_v51 = vpop.f32.mrb[6].mxu1  ;;  %v5016_v52 = vpop.f32.mrb[4].mxu0 }
  0xef   :  { %v207_v53 = vpack.c.bf16 %v4977_v51, %v4976_v49  ;;  %v194_v54 = vpop.f32.mrb[7].mxu1  ;;  %v541_v55 = vpop.f32.mrb[5].mxu0  ;;  %v5315_v51 = vld [vmem:[%s6583_s1 + $0x1c] ss:$12 sps:$4 sm:$0xff]  }
  0xf0   :  { %v206_v56 = vpack.c.bf16 %v194_v54, %v191_v50  ;;  %v5017_v57 = vpop.f32.mrb[6].mxu0  ;;  %v717_v60 = vld [vmem:[#allocation3 + $0x48] sm:$0xff] }
  0xf1   :  { %209 = vst.msk [vmem:[#allocation3 + $0x18] sm:$0xff] %vm38_vm0, %v207_v53  ;;  %v716_v58 = vld [vmem:[#allocation3 + $0x40] sm:$0xff]  ;;  %v557_v61 = vpack.c.bf16 %v5017_v57, %v5016_v52  ;;  %v544_v62 = vpop.f32.mrb[7].mxu0  ;;  %v709_v3 = vld [vmem:[#allocation3 + $0x8] sm:$0xff]  ;;  %v43_v57 = vlaneseq }
  0xf2   :  { %v708_v59 = vld [vmem:[#allocation3] sm:$0xff]  ;;  %208 = vst.msk [vmem:[#allocation3 + $0x10] sm:$0xff] %vm38_vm0, %v206_v56  ;;  %4726 = vmatprep.subr.bf16.mxu1 %v716_v58  ;;  %v556_v63 = vpack.c.bf16 %v544_v62, %v541_v55 }
  0xf3   :  { %4727 = vmatpush3.bf16.msra.mxu1 %v708_v59  ;;  %559 = vst.msk [vmem:[#allocation3 + $0x68] sm:$0xff] %vm38_vm0, %v557_v61  ;;  %v5310_v50 = vld [vmem:[%s6583_s1] ss:$12 sps:$4 sm:$0xff]   ;;  %v5317_v52 = vld [vmem:[%s6583_s1 + $0x18] ss:$12 sps:$4 sm:$0xff]   ;;  %v44_v58 = vand.u32 127, %v43_v57  ;;  %v5694_v59 = vpop.permute.xlu0 %728 }
  0xf4   :  { %v4984_v0 = vpop.f32.mrb[8].mxu1  ;;  %4728 = vmatprep.subr.bf16.mxu1 %v717_v60  ;;  %558 = vst.msk [vmem:[#allocation3 + $0x60] sm:$0xff] %vm38_vm0, %v556_v63 }
  0xf5   :  { %v261_v1 = vpop.f32.mrb[9].mxu1  ;;  %vm50_vm1 = vcmp.ge.s32.totalorder %v44_v58, 16  ;;  %vm51_vm2 = vcmp.lt.s32.totalorder %v44_v58, 32  ;;  %vm46_vm3 = vcmp.lt.s32.totalorder %v44_v58, 16 }
  0xf6   :  { %v4985_v2 = vpop.f32.mrb[10].mxu1  ;;  %v5032_v4 = vpop.f32.mrb[8].mxu0  ;;  %vm52_vm4 = vmand %vm50_vm1, %vm51_vm2 }
  0xf7   :  { %v277_v5 = vpack.c.bf16 %v4985_v2, %v4984_v0  ;;  %v264_v6 = vpop.f32.mrb[11].mxu1  ;;  %4729 = vmatpush3.bf16.msra.mxu1 %v709_v3  ;;  %v681_v7 = vpop.f32.mrb[9].mxu0 }
  0xf8   :  { %v276_v8 = vpack.c.bf16 %v264_v6, %v261_v1  ;;  %v5033_v9 = vpop.f32.mrb[10].mxu0  ;;  %v711_v42 = vld [vmem:[#allocation3 + $0x18] sm:$0xff]  ;;  %v5697_v3 = vpop.permute.xlu0 %733 }
  0xf9   :  { %279 = vst.msk [vmem:[#allocation3 + $0x28] sm:$0xff] %vm38_vm0, %v277_v5  ;;  %v697_v10 = vpack.c.bf16 %v5033_v9, %v5032_v4  ;;  %v684_v11 = vpop.f32.mrb[11].mxu0  ;;  %v710_v39 = vld [vmem:[#allocation3 + $0x10] sm:$0xff]  ;;  %v5501_v4 = vmov 0.0  }
  0xfa   :  { %278 = vst.msk [vmem:[#allocation3 + $0x20] sm:$0xff] %vm38_vm0, %v276_v8  ;;  %v696_v12 = vpack.c.bf16 %v684_v11, %v681_v7  ;;  %v721_v44 = vld [vmem:[#allocation3 + $0x68] sm:$0xff]  ;;  %v5699_v5 = vsel %vm46_vm3, 1.0, %v5501_v4  ;;  %v5702_v8 = vpop.permute.xlu1 %738  ;;  %v5704_v9 = vsel %vm52_vm4, 1.0, %v5501_v4 }
  0xfb   :  { %699 = vst.msk [vmem:[#allocation3 + $0x88] sm:$0xff] %vm38_vm0, %v697_v10  ;;  %v720_v41 = vld [vmem:[#allocation3 + $0x60] sm:$0xff] }
  0xfc   :  { %v4992_v13 = vpop.f32.mrb[12].mxu1  ;;  %698 = vst.msk [vmem:[#allocation3 + $0x80] sm:$0xff] %vm38_vm0, %v696_v12 }
  0xfd   :  { %v331_v14 = vpop.f32.mrb[13].mxu1 }
  0xfe   :  { %v4993_v15 = vpop.f32.mrb[14].mxu1 }
  0xff   :  { %v347_v16 = vpack.c.bf16 %v4993_v15, %v4992_v13  ;;  %v334_v17 = vpop.f32.mrb[15].mxu1 }
 0x100   :  { %v346_v18 = vpack.c.bf16 %v334_v17, %v331_v14  ;;  %v713_v46 = vld [vmem:[#allocation3 + $0x28] sm:$0xff] }
 0x101   :  { %349 = vst.msk [vmem:[#allocation3 + $0x38] sm:$0xff] %vm38_vm0, %v347_v16  ;;  %v712_v43 = vld [vmem:[#allocation3 + $0x20] sm:$0xff] }
 0x102   :  { %348 = vst.msk [vmem:[#allocation3 + $0x30] sm:$0xff] %vm38_vm0, %v346_v18  ;;  %v725_v20 = vld [vmem:[#allocation3 + $0x88] sm:$0xff] }
 0x103   :  { %v724_v19 = vld [vmem:[#allocation3 + $0x80] sm:$0xff] }
 0x104   :  { %v5008_v21 = vpop.f32.mrb[16].mxu1  ;;  %5034 = vmatprep.subr.bf16.mxu0 %v724_v19 }
 0x105   :  { %v471_v22 = vpop.f32.mrb[17].mxu1  ;;  %5035 = vmatpush3.bf16.msra.mxu0 %v724_v19 }
 0x106   :  { %v5009_v23 = vpop.f32.mrb[18].mxu1  ;;  %5036 = vmatprep.subr.bf16.mxu0 %v725_v20 }
 0x107   :  { %v487_v24 = vpack.c.bf16 %v5009_v23, %v5008_v21  ;;  %v474_v25 = vpop.f32.mrb[19].mxu1  ;;  %v5712_v23 = vpop.permute.xlu1 %743 }
 0x108   :  { %v486_v26 = vpack.c.bf16 %v474_v25, %v471_v22  ;;  %v715_v49 = vld [vmem:[#allocation3 + $0x38] sm:$0xff] }
 0x109   :  { %489 = vst.msk [vmem:[#allocation3 + $0x58] sm:$0xff] %vm38_vm0, %v487_v24  ;;  %5037 = vmatpush3.bf16.msra.mxu0 %v725_v20  ;;  %v714_v47 = vld [vmem:[#allocation3 + $0x30] sm:$0xff] }
 0x10a   :  { %488 = vst.msk [vmem:[#allocation3 + $0x50] sm:$0xff] %vm38_vm0, %v486_v26 }
 0x10c   :  { %v5024_v28 = vpop.f32.mrb[20].mxu1  ;;  %5039 = vmatmul.mubr.msk.bf16.vlgmr.msra.gmra.mrb[12].mxu0 %vm38_vm0, %v5314_v27 }
 0x10d   :  { %v611_v29 = vpop.f32.mrb[21].mxu1 }
 0x10e   :  { %v5025_v30 = vpop.f32.mrb[22].mxu1 }
 0x10f   :  { %v627_v31 = vpack.c.bf16 %v5025_v30, %v5024_v28  ;;  %v614_v32 = vpop.f32.mrb[23].mxu1 }
 0x110   :  { %v626_v37 = vpack.c.bf16 %v614_v32, %v611_v29  ;;  %v719_v40 = vld [vmem:[#allocation3 + $0x58] sm:$0xff] }
 0x111   :  { %v718_v38 = vld [vmem:[#allocation3 + $0x50] sm:$0xff]  ;;  %629 = vst.msk [vmem:[#allocation3 + $0x78] sm:$0xff] %vm38_vm0, %v627_v31 }
 0x112   :  { %4730 = vmatprep.subr.bf16.mxu1 %v718_v38  ;;  %628 = vst.msk [vmem:[#allocation3 + $0x70] sm:$0xff] %vm38_vm0, %v626_v37 }
 0x113   :  { %4731 = vmatpush3.bf16.msra.mxu1 %v710_v39 }
 0x114   :  { %4732 = vmatprep.subr.bf16.mxu1 %v719_v40 }
 0x117   :  { %4733 = vmatpush3.bf16.msra.mxu1 %v711_v42 }
 0x118   :  { %4734 = vmatprep.subr.bf16.mxu1 %v720_v41  ;;  %v723_v48 = vld [vmem:[#allocation3 + $0x78] sm:$0xff] }
 0x119   :  { %v722_v45 = vld [vmem:[#allocation3 + $0x70] sm:$0xff] }
 0x11b   :  { %4735 = vmatpush3.bf16.msra.mxu1 %v712_v43 }
 0x11c   :  { %4736 = vmatprep.subr.bf16.mxu1 %v721_v44 }
 0x11f   :  { %4737 = vmatpush3.bf16.msra.mxu1 %v713_v46 }
 0x120   :  { %4738 = vmatprep.subr.bf16.mxu1 %v722_v45 }
 0x123   :  { %4739 = vmatpush3.bf16.msra.mxu1 %v714_v47 }
 0x124   :  { %4740 = vmatprep.subr.bf16.mxu1 %v723_v48 }
 0x127   :  { %4741 = vmatpush3.bf16.msra.mxu1 %v715_v49 }
 0x12a   :  { %815 = vmatmul.mubr.bf16.vlgmr.msra.gmra.mrb[24].mxu1 %v5310_v50 }
 0x12b   :  { %822 = vmatprep.mubr.bf16.mxu1 %v5315_v51 }
 0x132   :  { %823 = vmatmul.mubr.bf16.gmra.mrb[28].mxu1 %v5317_v52 }
 0x1df   :  { %v5040_v53 = vpop.f32.mrb[12].mxu0 }
 0x1e0   :  { %v865_v54 = vpop.f32.mrb[13].mxu0 }
 0x1e1   :  { %v5041_v55 = vpop.f32.mrb[14].mxu0 }
 0x1e2   :  { %v868_v56 = vpop.f32.mrb[15].mxu0 }
 0x1fd   :  { %v4742_v60 = vpop.f32.mrb[24].mxu1 }
 0x1fe   :  { %v4743_v61 = vpop.f32.mrb[25].mxu1 }
 0x1ff   :  { %v4744_v62 = vadd.f32 %v4743_v61, %v4742_v60  ;;  %v4745_v63 = vpop.f32.mrb[26].mxu1 }
 0x200   :  { %v4746_v0 = vpop.f32.mrb[27].mxu1 }
 0x201   :  { %v817_v1 = vadd.f32 %v4744_v62, %v5694_v59  ;;  %v4747_v2 = vadd.f32 %v4746_v0, %v4745_v63 }
 0x203   :  { %v866_v6 = vadd.f32 %v865_v54, %v817_v1  ;;  %v820_v7 = vadd.f32 %v4747_v2, %v5697_v3 }
 0x205   :  { %v869_v10 = vadd.f32 %v868_v56, %v820_v7  ;;  %v4748_v11 = vpop.f32.mrb[28].mxu1  ;;  %v880_v12 = vmul.f32 %v5699_v5, %v866_v6  ;;  %v908_v18 = vmul.f32 %v5704_v9, %v866_v6 }
 0x206   :  { %v4749_v13 = vpop.f32.mrb[29].mxu1 }
 0x207   :  { %v4750_v14 = vadd.f32 %v4749_v13, %v4748_v11  ;;  %v4751_v15 = vpop.f32.mrb[30].mxu1  ;;  %v884_v16 = vsel %vm38_vm0, %v880_v12, 0.0  ;;  %v881_v17 = vmul.f32 %v5699_v5, %v869_v10  ;;  %v912_v26 = vsel %vm38_vm0, %v908_v18, 0.0 }
 0x208   :  { %v4752_v19 = vpop.f32.mrb[31].mxu1  ;;  %885 = vadd.xlane.f32.xlu0 %v884_v16  ;;  %v909_v27 = vmul.f32 %v5704_v9, %v869_v10 }
 0x209   :  { %v825_v20 = vadd.f32 %v4750_v14, %v5702_v8  ;;  %v4753_v21 = vadd.f32 %v4752_v19, %v4751_v15  ;;  %v887_v22 = vsel %vm38_vm0, %v881_v17, 0.0 }
 0x20a   :  { %888 = vadd.xlane.f32.xlu1 %v887_v22  ;;  %v915_v31 = vsel %vm38_vm0, %v909_v27, 0.0 }
 0x20b   :  { %v874_v24 = vadd.f32 %v5040_v53, %v825_v20  ;;  %v828_v25 = vadd.f32 %v4753_v21, %v5712_v23 }
 0x20c   :  { %913 = vadd.xlane.f32.xlu0 %v912_v26 }
 0x20d   :  { %v877_v28 = vadd.f32 %v5041_v55, %v828_v25  ;;  %v882_v29 = vmul.f32 %v5699_v5, %v874_v24  ;;  %v910_v32 = vmul.f32 %v5704_v9, %v874_v24 }
 0x20f   :  { %v890_v30 = vsel %vm38_vm0, %v882_v29, 0.0  ;;  %v883_v37 = vmul.f32 %v5699_v5, %v877_v28  ;;  %v918_v38 = vsel %vm38_vm0, %v910_v32, 0.0  ;;  %v911_v40 = vmul.f32 %v5704_v9, %v877_v28 }
 0x210   :  { %891 = vadd.xlane.f32.xlu1 %v890_v30  ;;  %916 = vadd.xlane.f32.xlu0 %v915_v31 }
 0x211   :  { %v893_v39 = vsel %vm38_vm0, %v883_v37, 0.0  ;;  %v921_v41 = vsel %vm38_vm0, %v911_v40, 0.0 }
 0x214   :  { %919 = vadd.xlane.f32.xlu1 %v918_v38  ;;  %894 = vadd.xlane.f32.xlu0 %v893_v39 }
 0x218   :  { %922 = vadd.xlane.f32.xlu0 %v921_v41  ;;  %v5318_v41 = vld [vmem:[%s6581_s3] sm:$0xff]  }
 0x219   :  { %5042 = vmatprep.subr.bf16.mxu0 %v5318_v41 }
 0x21a   :  { %5043 = vmatpush3.bf16.msra.mxu0 %v5318_v41 }
 0x295   :  { %v886_v42 = vpop.xlane.xlu0 %885 }
 0x296   :  { %v896_v43 = vmul.f32 0.0625, %v886_v42  ;;  %v5319_v42 = vld [vmem:[%s6581_s3 + $0x40] sm:$0xff]  }
 0x297   :  { %v889_v44 = vpop.xlane.xlu1 %888  ;;  %5074 = vmatprep.subr.bf16.mxu1 %v5319_v42 }
 0x298   :  { %v900_v47 = vmul.f32 %v5699_v5, %v896_v43  ;;  %v897_v48 = vmul.f32 0.0625, %v889_v44  ;;  %5075 = vmatpush3.bf16.msra.mxu1 %v5319_v42  ;;  %v5320_v43 = vld [vmem:[%s6581_s3 + $0x8] sm:$0xff]  }
 0x299   :  { %v914_v45 = vpop.xlane.xlu0 %913  ;;  %v5321_v44 = vld [vmem:[%s6581_s3 + $0x48] sm:$0xff]   ;;  %5044 = vmatprep.subr.bf16.mxu0 %v5320_v43 }
 0x29a   :  { %v924_v46 = vmul.f32 0.0625, %v914_v45  ;;  %v901_v54 = vmul.f32 %v5699_v5, %v897_v48  ;;  %5076 = vmatprep.subr.bf16.mxu1 %v5321_v44  ;;  %5045 = vmatpush3.bf16.msra.mxu0 %v5320_v43  ;;  %v5322_v45 = vld [vmem:[%s6581_s3 + $0x10] sm:$0xff]  }
 0x29b   :  { %5050 = vmatprep.subr.bf16.mxu0 %v5322_v45 }
 0x29c   :  { %v928_v49 = vmul.f32 %v5704_v9, %v924_v46  ;;  %5077 = vmatpush3.bf16.msra.mxu1 %v5321_v44  ;;  %v5323_v46 = vld [vmem:[%s6581_s3 + $0x60] sm:$0xff]   ;;  %v5328_v44 = vld [vmem:[%s6581_s3 + $0x28] sm:$0xff]  }
 0x29d   :  { %v892_v50 = vpop.xlane.xlu1 %891  ;;  %v917_v51 = vpop.xlane.xlu0 %916  ;;  %5090 = vmatprep.subr.bf16.mxu1 %v5323_v46 }
 0x29e   :  { %v932_v52 = vadd.f32 %v928_v49, %v900_v47  ;;  %v925_v53 = vmul.f32 0.0625, %v917_v51  ;;  %v898_v55 = vmul.f32 0.0625, %v892_v50 }
 0x2a0   :  { %v929_v56 = vmul.f32 %v5704_v9, %v925_v53  ;;  %v5730_v58 = vsub.f32 %v866_v6, %v932_v52  ;;  %v902_v1 = vmul.f32 %v5699_v5, %v898_v55 }
 0x2a1   :  { %v920_v60 = vpop.xlane.xlu1 %919  ;;  %v895_v61 = vpop.xlane.xlu0 %894 }
 0x2a2   :  { %v933_v62 = vadd.f32 %v929_v56, %v901_v54  ;;  %v926_v63 = vmul.f32 0.0625, %v920_v60  ;;  %v940_v0 = vmul.f32 %v5730_v58, %v5730_v58  ;;  %v899_v4 = vmul.f32 0.0625, %v895_v61 }
 0x2a4   :  { %v930_v2 = vmul.f32 %v5704_v9, %v926_v63  ;;  %v944_v7 = vmul.f32 %v5699_v5, %v940_v0  ;;  %v5737_v12 = vsub.f32 %v869_v10, %v933_v62  ;;  %v972_v15 = vmul.f32 %v5704_v9, %v940_v0 }
 0x2a5   :  { %v923_v11 = vpop.xlane.xlu0 %922  ;;  %v903_v17 = vmul.f32 %v5699_v5, %v899_v4 }
 0x2a6   :  { %v934_v13 = vadd.f32 %v930_v2, %v902_v1  ;;  %v927_v6 = vmul.f32 0.0625, %v923_v11  ;;  %v948_v14 = vsel %vm38_vm0, %v944_v7, 0.0  ;;  %v941_v16 = vmul.f32 %v5737_v12, %v5737_v12 }
 0x2a7   :  { %949 = vadd.xlane.f32.xlu1 %v948_v14  ;;  %v976_v21 = vsel %vm38_vm0, %v972_v15, 0.0 }
 0x2a8   :  { %v931_v18 = vmul.f32 %v5704_v9, %v927_v6  ;;  %v5745_v19 = vsub.f32 %v874_v24, %v934_v13  ;;  %v945_v20 = vmul.f32 %v5699_v5, %v941_v16  ;;  %v973_v26 = vmul.f32 %v5704_v9, %v941_v16 }
 0x2aa   :  { %v935_v10 = vadd.f32 %v931_v18, %v903_v17  ;;  %v942_v22 = vmul.f32 %v5745_v19, %v5745_v19  ;;  %v951_v25 = vsel %vm38_vm0, %v945_v20, 0.0  ;;  %v979_v32 = vsel %vm38_vm0, %v973_v26, 0.0 }
 0x2ab   :  { %977 = vadd.xlane.f32.xlu1 %v976_v21  ;;  %952 = vadd.xlane.f32.xlu0 %v951_v25 }
 0x2ac   :  { %v946_v27 = vmul.f32 %v5699_v5, %v942_v22  ;;  %v5754_v29 = vsub.f32 %v877_v28, %v935_v10  ;;  %v974_v30 = vmul.f32 %v5704_v9, %v942_v22 }
 0x2ae   :  { %v954_v24 = vsel %vm38_vm0, %v946_v27, 0.0  ;;  %v943_v31 = vmul.f32 %v5754_v29, %v5754_v29  ;;  %v982_v38 = vsel %vm38_vm0, %v974_v30, 0.0 }
 0x2af   :  { %955 = vadd.xlane.f32.xlu1 %v954_v24  ;;  %980 = vadd.xlane.f32.xlu0 %v979_v32 }
 0x2b0   :  { %v947_v37 = vmul.f32 %v5699_v5, %v943_v31  ;;  %v975_v28 = vmul.f32 %v5704_v9, %v943_v31 }
 0x2b2   :  { %v957_v39 = vsel %vm38_vm0, %v947_v37, 0.0  ;;  %v985_v40 = vsel %vm38_vm0, %v975_v28, 0.0 }
 0x2b3   :  { %983 = vadd.xlane.f32.xlu1 %v982_v38  ;;  %958 = vadd.xlane.f32.xlu0 %v957_v39 }
 0x2b7   :  { %986 = vadd.xlane.f32.xlu0 %v985_v40 }
 0x334   :  { %v950_v47 = vpop.xlane.xlu1 %949 }
 0x335   :  { %v960_v48 = vmul.f32 0.0625, %v950_v47  ;;  %v5331_v47 = vld [vmem:[%s6581_s3 + $0x38] sm:$0xff]  }
 0x337   :  { %v964_v52 = vmul.f32 %v5699_v5, %v960_v48  ;;  %v5332_v48 = vld [vmem:[%s6581_s3 + $0x50] sm:$0xff]  }
 0x338   :  { %v978_v49 = vpop.xlane.xlu1 %977  ;;  %v953_v51 = vpop.xlane.xlu0 %952 }
 0x339   :  { %v988_v50 = vmul.f32 0.0625, %v978_v49  ;;  %v961_v54 = vmul.f32 0.0625, %v953_v51  ;;  %v5333_v49 = vld [vmem:[%s6581_s3 + $0x58] sm:$0xff]  }
 0x33a   :  { %v5335_v51 = vld [vmem:[%s6581_s3 + $0x78] sm:$0xff]  }
 0x33b   :  { %v992_v53 = vmul.f32 %v5704_v9, %v988_v50  ;;  %v965_v0 = vmul.f32 %v5699_v5, %v961_v54  ;;  %v5334_v50 = vld [vmem:[%s6581_s3 + $0x70] sm:$0xff]   ;;  %v5502_v54 = vmov 1  }
 0x33c   :  { %v956_v55 = vpop.xlane.xlu1 %955  ;;  %v981_v60 = vpop.xlane.xlu0 %980  ;;  %5288 = vset.pattern.permute.xlu1 %v5502_v54  ;;  %5289 = vset.pattern.permute.xlu0 %v5502_v54 }
 0x33d   :  { %v996_v56 = vadd.f32 %v992_v53, %v964_v52  ;;  %v989_v61 = vmul.f32 0.0625, %v981_v60  ;;  %v962_v63 = vmul.f32 0.0625, %v956_v55  ;;  %v5338_v52 = vld [vmem:[%s6585_s2 + $0x4] ss:$12 sps:$4 sm:$0xff]   ;;  %v5339_v53 = vld [vmem:[%s6585_s2 + $0x8] ss:$12 sps:$4 sm:$0xff]   ;;  %1672 = vperm.xlu1 %5288, %v5641_v33   ;;  %1676 = vperm.xlu0 %5289, %v5653_v35  }
 0x33f   :  { %v1000_v62 = vadd.f32 1e-05, %v996_v56  ;;  %v993_v1 = vmul.f32 %v5704_v9, %v989_v61  ;;  %v966_v13 = vmul.f32 %v5699_v5, %v962_v63 }
 0x340   :  { %v984_v2 = vpop.xlane.xlu1 %983  ;;  %v959_v7 = vpop.xlane.xlu0 %958 }
 0x341   :  { %v990_v4 = vmul.f32 0.0625, %v984_v2  ;;  %5396 = vrsqrt.f32 %v1000_v62  ;;  %v997_v11 = vadd.f32 %v993_v1, %v965_v0  ;;  %v963_v15 = vmul.f32 0.0625, %v959_v7  ;;  %1680 = vperm.xlu1 %5288, %v5646_v34  }
 0x343   :  { %v994_v6 = vmul.f32 %v5704_v9, %v990_v4  ;;  %v1001_v14 = vadd.f32 1e-05, %v997_v11  ;;  %v967_v10 = vmul.f32 %v5699_v5, %v963_v15 }
 0x344   :  { %v987_v17 = vpop.xlane.xlu0 %986 }
 0x345   :  { %v998_v16 = vadd.f32 %v994_v6, %v966_v13  ;;  %5398 = vrsqrt.f32 %v1001_v14  ;;  %v991_v18 = vmul.f32 0.0625, %v987_v17  ;;  %1684 = vperm.xlu1 %5288, %v5658_v36  }
 0x347   :  { %v1002_v20 = vadd.f32 1e-05, %v998_v16  ;;  %v995_v21 = vmul.f32 %v5704_v9, %v991_v18 }
 0x349   :  { %5400 = vrsqrt.f32 %v1002_v20  ;;  %v999_v22 = vadd.f32 %v995_v21, %v967_v10 }
 0x34b   :  { %v5397_v25 = vpop.eup %5396  ;;  %v1003_v26 = vadd.f32 1e-05, %v999_v22 }
 0x34c   :  { %v1008_v27 = vmul.f32 %v5397_v25, %v5730_v58  ;;  %v5324_v58 = vld [vmem:[%s6581_s3 + $0x18] sm:$0xff]  }
 0x34d   :  { %5402 = vrsqrt.f32 %v1003_v26 }
 0x34e   :  { %v1012_v31 = vmax.f32 %v1008_v27, 0.0 }
 0x34f   :  { %v5399_v24 = vpop.eup %5398 }
 0x350   :  { %v1009_v30 = vmul.f32 %v5399_v24, %v5737_v12  ;;  %v5325_v12 = vld [vmem:[%s6581_s3 + $0x68] sm:$0xff]  }
 0x352   :  { %v1013_v32 = vmax.f32 %v1009_v30, 0.0 }
 0x353   :  { %v5401_v37 = vpop.eup %5400 }
 0x354   :  { %v1016_v38 = vpack.c.bf16 %v1013_v32, %v1012_v31  ;;  %v1010_v39 = vmul.f32 %v5401_v37, %v5745_v19  ;;  %v5326_v19 = vld [vmem:[%s6581_s3 + $0x20] sm:$0xff]  }
 0x356   :  { %5046 = vmatprep.mubr.msk.bf16.mxu0 %vm38_vm0, %v1016_v38  ;;  %5078 = vmatprep.mubr.msk.bf16.mxu1 %vm38_vm0, %v1016_v38  ;;  %v1014_v41 = vmax.f32 %v1010_v39, 0.0 }
 0x357   :  { %v5403_v28 = vpop.eup %5402 }
 0x358   :  { %v1011_v40 = vmul.f32 %v5403_v28, %v5754_v29  ;;  %v5327_v29 = vld [vmem:[%s6581_s3 + $0x80] sm:$0xff]  }
 0x35a   :  { %v1015_v42 = vmax.f32 %v1011_v40, 0.0 }
 0x35c   :  { %v1017_v43 = vpack.c.bf16 %v1015_v42, %v1014_v41 }
 0x35e   :  { %5047 = vmatmul.mubr.msk.bf16.vlgmr.msra.gmra.mrb[16].mxu0 %vm38_vm0, %v1017_v43  ;;  %5079 = vmatmul.mubr.msk.bf16.vlgmr.msra.gmra.mrb[32].mxu1 %vm38_vm0, %v1017_v43 }
 0x35f   :  { %5051 = vmatpush3.bf16.msra.mxu0 %v5322_v45  ;;  %5054 = vmatprep.mubr.msk.bf16.mxu0 %vm38_vm0, %v1016_v38  ;;  %v5329_v45 = vld [vmem:[%s6581_s3 + $0x88] sm:$0xff]  }
 0x360   :  { %5091 = vmatpush3.bf16.msra.mxu1 %v5323_v46  ;;  %5094 = vmatprep.mubr.msk.bf16.mxu1 %vm38_vm0, %v1016_v38  ;;  %v5330_v46 = vld [vmem:[%s6581_s3 + $0x30] sm:$0xff]  }
 0x361   :  { %5052 = vmatprep.subr.bf16.mxu0 %v5324_v58  ;;  %5092 = vmatprep.subr.bf16.mxu1 %v5325_v12 }
 0x363   :  { %5053 = vmatpush3.bf16.msra.mxu0 %v5324_v58 }
 0x364   :  { %5093 = vmatpush3.bf16.msra.mxu1 %v5325_v12  ;;  %5058 = vmatprep.subr.bf16.mxu0 %v5326_v19 }
 0x365   :  { %5106 = vmatprep.subr.bf16.mxu1 %v5327_v29 }
 0x366   :  { %5055 = vmatmul.mubr.msk.bf16.vlgmr.msra.gmra.mrb[20].mxu0 %vm38_vm0, %v1017_v43 }
 0x367   :  { %5059 = vmatpush3.bf16.msra.mxu0 %v5326_v19  ;;  %5095 = vmatmul.mubr.msk.bf16.vlgmr.msra.gmra.mrb[36].mxu1 %vm38_vm0, %v1017_v43 }
 0x368   :  { %5062 = vmatprep.mubr.msk.bf16.mxu0 %vm38_vm0, %v1016_v38  ;;  %5107 = vmatpush3.bf16.msra.mxu1 %v5327_v29 }
 0x369   :  { %5110 = vmatprep.mubr.msk.bf16.mxu1 %vm38_vm0, %v1016_v38  ;;  %5060 = vmatprep.subr.bf16.mxu0 %v5328_v44 }
 0x36a   :  { %5108 = vmatprep.subr.bf16.mxu1 %v5329_v45 }
 0x36b   :  { %5061 = vmatpush3.bf16.msra.mxu0 %v5328_v44 }
 0x36c   :  { %5109 = vmatpush3.bf16.msra.mxu1 %v5329_v45  ;;  %5066 = vmatprep.subr.bf16.mxu0 %v5330_v46 }
 0x36e   :  { %5063 = vmatmul.mubr.msk.bf16.vlgmr.msra.gmra.mrb[24].mxu0 %vm38_vm0, %v1017_v43 }
 0x36f   :  { %5067 = vmatpush3.bf16.msra.mxu0 %v5330_v46  ;;  %5111 = vmatmul.mubr.msk.bf16.vlgmr.msra.gmra.mrb[40].mxu1 %vm38_vm0, %v1017_v43 }
 0x370   :  { %5070 = vmatprep.mubr.msk.bf16.mxu0 %vm38_vm0, %v1016_v38  ;;  %5068 = vmatprep.subr.bf16.mxu0 %v5331_v47 }
 0x371   :  { %5118 = vmatprep.mubr.msk.bf16.mxu1 %vm38_vm0, %v5339_v53 }
 0x373   :  { %5069 = vmatpush3.bf16.msra.mxu0 %v5331_v47 }
 0x374   :  { %5082 = vmatprep.subr.bf16.mxu0 %v5332_v48 }
 0x376   :  { %5071 = vmatmul.mubr.msk.bf16.vlgmr.msra.gmra.mrb[28].mxu0 %vm38_vm0, %v1017_v43 }
 0x377   :  { %5083 = vmatpush3.bf16.msra.mxu0 %v5332_v48  ;;  %5086 = vmatprep.mubr.msk.bf16.mxu0 %vm38_vm0, %v1016_v38 }
 0x378   :  { %5084 = vmatprep.subr.bf16.mxu0 %v5333_v49 }
 0x37b   :  { %5085 = vmatpush3.bf16.msra.mxu0 %v5333_v49 }
 0x37c   :  { %5098 = vmatprep.subr.bf16.mxu0 %v5334_v50 }
 0x37e   :  { %5087 = vmatmul.mubr.msk.bf16.vlgmr.msra.gmra.mrb[32].mxu0 %vm38_vm0, %v1017_v43 }
 0x37f   :  { %5099 = vmatpush3.bf16.msra.mxu0 %v5334_v50  ;;  %5102 = vmatprep.mubr.msk.bf16.mxu0 %vm38_vm0, %v1016_v38 }
 0x380   :  { %5100 = vmatprep.subr.bf16.mxu0 %v5335_v51 }
 0x383   :  { %5101 = vmatpush3.bf16.msra.mxu0 %v5335_v51  ;;  %v5340_v51 = vld [vmem:[%s6585_s2 + $0x20] ss:$12 sps:$4 sm:$0xff]  }
 0x386   :  { %5103 = vmatmul.mubr.msk.bf16.vlgmr.msra.gmra.mrb[36].mxu0 %vm38_vm0, %v1017_v43 }
 0x387   :  { %1755 = vmatprep.mubr.bf16.mxu0 %v5338_v52 }
 0x431   :  { %v5048_v55 = vpop.f32.mrb[16].mxu0  ;;  %v5080_v56 = vpop.f32.mrb[32].mxu1 }
 0x432   :  { %v1074_v60 = vpop.f32.mrb[17].mxu0  ;;  %v1350_v61 = vpop.f32.mrb[33].mxu1 }
 0x433   :  { %v5049_v62 = vpop.f32.mrb[18].mxu0  ;;  %v5081_v63 = vpop.f32.mrb[34].mxu1 }
 0x434   :  { %v1090_v0 = vpack.c.bf16 %v5049_v62, %v5048_v55  ;;  %v1366_v1 = vpack.c.bf16 %v5081_v63, %v5080_v56  ;;  %v1077_v2 = vpop.f32.mrb[19].mxu0  ;;  %v1353_v4 = vpop.f32.mrb[35].mxu1 }
 0x435   :  { %v1089_v7 = vpack.c.bf16 %v1077_v2, %v1074_v60  ;;  %v1365_v11 = vpack.c.bf16 %v1353_v4, %v1350_v61 }
 0x436   :  { %1092 = vst.msk [vmem:[#allocation3 + $0x8] sm:$0xff] %vm38_vm0, %v1090_v0  ;;  %1368 = vst.msk [vmem:[#allocation3 + $0x48] sm:$0xff] %vm38_vm0, %v1366_v1 }
 0x437   :  { %1091 = vst.msk [vmem:[#allocation3] sm:$0xff] %vm38_vm0, %v1089_v7  ;;  %1367 = vst.msk [vmem:[#allocation3 + $0x40] sm:$0xff] %vm38_vm0, %v1365_v11 }
 0x439   :  { %v5056_v33 = vpop.f32.mrb[20].mxu0 }
 0x43a   :  { %v5096_v34 = vpop.f32.mrb[36].mxu1  ;;  %v1143_v35 = vpop.f32.mrb[21].mxu0 }
 0x43b   :  { %v1488_v36 = vpop.f32.mrb[37].mxu1  ;;  %v5057_v13 = vpop.f32.mrb[22].mxu0 }
 0x43c   :  { %v1159_v6 = vpack.c.bf16 %v5057_v13, %v5056_v33  ;;  %v5097_v14 = vpop.f32.mrb[38].mxu1  ;;  %v1146_v15 = vpop.f32.mrb[23].mxu0  ;;  %v5336_v13 = vld [vmem:[%s6585_s2] ss:$12 sps:$4 sm:$0xff]  }
 0x43d   :  { %v1504_v16 = vpack.c.bf16 %v5097_v14, %v5096_v34  ;;  %v1158_v17 = vpack.c.bf16 %v1146_v15, %v1143_v35  ;;  %v1491_v18 = vpop.f32.mrb[39].mxu1  ;;  %v1662_v22 = vld [vmem:[#allocation3 + $0x48] sm:$0xff]  ;;  %v5343_v14 = vld [vmem:[%s6585_s2 + $0x18] ss:$12 sps:$4 sm:$0xff]  }
 0x43e   :  { %1161 = vst.msk [vmem:[#allocation3 + $0x18] sm:$0xff] %vm38_vm0, %v1159_v6  ;;  %v1503_v20 = vpack.c.bf16 %v1491_v18, %v1488_v36  ;;  %v1661_v10 = vld [vmem:[#allocation3 + $0x40] sm:$0xff]  ;;  %v1654_v31 = vld [vmem:[#allocation3 + $0x8] sm:$0xff] }
 0x43f   :  { %v1653_v21 = vld [vmem:[#allocation3] sm:$0xff]  ;;  %1506 = vst.msk [vmem:[#allocation3 + $0x68] sm:$0xff] %vm38_vm0, %v1504_v16  ;;  %1160 = vst.msk [vmem:[#allocation3 + $0x10] sm:$0xff] %vm38_vm0, %v1158_v17  ;;  %4794 = vmatprep.subr.bf16.mxu0 %v1661_v10  ;;  %v5341_v6 = vld [vmem:[%s6585_s2 + $0x1c] ss:$12 sps:$4 sm:$0xff]   ;;  %v5892_v10 = vpop.permute.xlu1 %1672 }
 0x440   :  { %1505 = vst.msk [vmem:[#allocation3 + $0x60] sm:$0xff] %vm38_vm0, %v1503_v20  ;;  %4795 = vmatpush3.bf16.msra.mxu0 %v1653_v21 }
 0x441   :  { %v5064_v25 = vpop.f32.mrb[24].mxu0  ;;  %4796 = vmatprep.subr.bf16.mxu0 %v1662_v22 }
 0x442   :  { %v5112_v26 = vpop.f32.mrb[40].mxu1  ;;  %v1212_v27 = vpop.f32.mrb[25].mxu0 }
 0x443   :  { %v1626_v24 = vpop.f32.mrb[41].mxu1  ;;  %v5065_v30 = vpop.f32.mrb[26].mxu0 }
 0x444   :  { %v1228_v32 = vpack.c.bf16 %v5065_v30, %v5064_v25  ;;  %v5113_v37 = vpop.f32.mrb[42].mxu1  ;;  %v1215_v38 = vpop.f32.mrb[27].mxu0  ;;  %4797 = vmatpush3.bf16.msra.mxu0 %v1654_v31 }
 0x445   :  { %v1642_v39 = vpack.c.bf16 %v5113_v37, %v5112_v26  ;;  %v1227_v28 = vpack.c.bf16 %v1215_v38, %v1212_v27  ;;  %v1629_v40 = vpop.f32.mrb[43].mxu1  ;;  %v1656_v1 = vld [vmem:[#allocation3 + $0x18] sm:$0xff]  ;;  %v5894_v27 = vpop.permute.xlu0 %1676 }
 0x446   :  { %1230 = vst.msk [vmem:[#allocation3 + $0x28] sm:$0xff] %vm38_vm0, %v1228_v32  ;;  %v1641_v41 = vpack.c.bf16 %v1629_v40, %v1626_v24  ;;  %v1655_v63 = vld [vmem:[#allocation3 + $0x10] sm:$0xff]  ;;  %v1666_v7 = vld [vmem:[#allocation3 + $0x68] sm:$0xff]  ;;  %v5898_v37 = vpop.permute.xlu1 %1680 }
 0x447   :  { %1644 = vst.msk [vmem:[#allocation3 + $0x88] sm:$0xff] %vm38_vm0, %v1642_v39  ;;  %1229 = vst.msk [vmem:[#allocation3 + $0x20] sm:$0xff] %vm38_vm0, %v1227_v28  ;;  %v1665_v2 = vld [vmem:[#allocation3 + $0x60] sm:$0xff] }
 0x448   :  { %1643 = vst.msk [vmem:[#allocation3 + $0x80] sm:$0xff] %vm38_vm0, %v1641_v41 }
 0x449   :  { %v5072_v42 = vpop.f32.mrb[28].mxu0 }
 0x44a   :  { %v1281_v43 = vpop.f32.mrb[29].mxu0 }
 0x44b   :  { %v5073_v58 = vpop.f32.mrb[30].mxu0 }
 0x44c   :  { %v1297_v12 = vpack.c.bf16 %v5073_v58, %v5072_v42  ;;  %v1284_v19 = vpop.f32.mrb[31].mxu0 }
 0x44d   :  { %v1296_v29 = vpack.c.bf16 %v1284_v19, %v1281_v43  ;;  %v1658_v11 = vld [vmem:[#allocation3 + $0x28] sm:$0xff] }
 0x44e   :  { %1299 = vst.msk [vmem:[#allocation3 + $0x38] sm:$0xff] %vm38_vm0, %v1297_v12  ;;  %v1670_v46 = vld [vmem:[#allocation3 + $0x88] sm:$0xff]  ;;  %v1657_v4 = vld [vmem:[#allocation3 + $0x20] sm:$0xff] }
 0x44f   :  { %1298 = vst.msk [vmem:[#allocation3 + $0x30] sm:$0xff] %vm38_vm0, %v1296_v29  ;;  %v1669_v44 = vld [vmem:[#allocation3 + $0x80] sm:$0xff] }
 0x450   :  { %5114 = vmatprep.subr.bf16.mxu1 %v1669_v44 }
 0x451   :  { %5115 = vmatpush3.bf16.msra.mxu1 %v1669_v44  ;;  %v5088_v45 = vpop.f32.mrb[32].mxu0 }
 0x452   :  { %5116 = vmatprep.subr.bf16.mxu1 %v1670_v46  ;;  %v1419_v47 = vpop.f32.mrb[33].mxu0 }
 0x453   :  { %v5089_v48 = vpop.f32.mrb[34].mxu0 }
 0x454   :  { %v1435_v49 = vpack.c.bf16 %v5089_v48, %v5088_v45  ;;  %v1422_v50 = vpop.f32.mrb[35].mxu0 }
 0x455   :  { %v1434_v52 = vpack.c.bf16 %v1422_v50, %v1419_v47  ;;  %5117 = vmatpush3.bf16.msra.mxu1 %v1670_v46  ;;  %v1660_v36 = vld [vmem:[#allocation3 + $0x38] sm:$0xff]  ;;  %v5906_v46 = vpop.permute.xlu1 %1684 }
 0x456   :  { %1437 = vst.msk [vmem:[#allocation3 + $0x58] sm:$0xff] %vm38_vm0, %v1435_v49  ;;  %v1659_v34 = vld [vmem:[#allocation3 + $0x30] sm:$0xff] }
 0x457   :  { %1436 = vst.msk [vmem:[#allocation3 + $0x50] sm:$0xff] %vm38_vm0, %v1434_v52 }
 0x458   :  { %5119 = vmatmul.mubr.msk.bf16.vlgmr.msra.gmra.mrb[44].mxu1 %vm38_vm0, %v5340_v51 }
 0x459   :  { %v5104_v53 = vpop.f32.mrb[36].mxu0 }
 0x45a   :  { %v1557_v54 = vpop.f32.mrb[37].mxu0 }
 0x45b   :  { %v5105_v55 = vpop.f32.mrb[38].mxu0 }
 0x45c   :  { %v1573_v56 = vpack.c.bf16 %v5105_v55, %v5104_v53  ;;  %v1560_v60 = vpop.f32.mrb[39].mxu0 }
 0x45d   :  { %v1572_v61 = vpack.c.bf16 %v1560_v60, %v1557_v54  ;;  %v1664_v0 = vld [vmem:[#allocation3 + $0x58] sm:$0xff] }
 0x45e   :  { %1575 = vst.msk [vmem:[#allocation3 + $0x78] sm:$0xff] %vm38_vm0, %v1573_v56  ;;  %v1663_v62 = vld [vmem:[#allocation3 + $0x50] sm:$0xff] }
 0x45f   :  { %1574 = vst.msk [vmem:[#allocation3 + $0x70] sm:$0xff] %vm38_vm0, %v1572_v61  ;;  %4798 = vmatprep.subr.bf16.mxu0 %v1663_v62 }
 0x460   :  { %4799 = vmatpush3.bf16.msra.mxu0 %v1655_v63 }
 0x461   :  { %4800 = vmatprep.subr.bf16.mxu0 %v1664_v0 }
 0x464   :  { %4801 = vmatpush3.bf16.msra.mxu0 %v1656_v1 }
 0x465   :  { %4802 = vmatprep.subr.bf16.mxu0 %v1665_v2  ;;  %v1668_v35 = vld [vmem:[#allocation3 + $0x78] sm:$0xff] }
 0x466   :  { %v1667_v33 = vld [vmem:[#allocation3 + $0x70] sm:$0xff] }
 0x468   :  { %4803 = vmatpush3.bf16.msra.mxu0 %v1657_v4 }
 0x469   :  { %4804 = vmatprep.subr.bf16.mxu0 %v1666_v7 }
 0x46c   :  { %4805 = vmatpush3.bf16.msra.mxu0 %v1658_v11 }
 0x46d   :  { %4806 = vmatprep.subr.bf16.mxu0 %v1667_v33 }
 0x470   :  { %4807 = vmatpush3.bf16.msra.mxu0 %v1659_v34 }
 0x471   :  { %4808 = vmatprep.subr.bf16.mxu0 %v1668_v35 }
 0x474   :  { %4809 = vmatpush3.bf16.msra.mxu0 %v1660_v36 }
 0x477   :  { %1756 = vmatmul.mubr.bf16.vlgmr.msra.gmra.mrb[40].mxu0 %v5336_v13 }
 0x478   :  { %1763 = vmatprep.mubr.bf16.mxu0 %v5341_v6 }
 0x47f   :  { %1764 = vmatmul.mubr.bf16.gmra.mrb[44].mxu0 %v5343_v14 }
 0x52b   :  { %v5120_v15 = vpop.f32.mrb[44].mxu1 }
 0x52c   :  { %v1806_v16 = vpop.f32.mrb[45].mxu1 }
 0x52d   :  { %v5121_v17 = vpop.f32.mrb[46].mxu1 }
 0x52e   :  { %v1809_v18 = vpop.f32.mrb[47].mxu1 }
 0x54a   :  { %v4810_v20 = vpop.f32.mrb[40].mxu0 }
 0x54b   :  { %v4811_v21 = vpop.f32.mrb[41].mxu0 }
 0x54c   :  { %v4812_v22 = vadd.f32 %v4811_v21, %v4810_v20  ;;  %v4813_v25 = vpop.f32.mrb[42].mxu0 }
 0x54d   :  { %v4814_v26 = vpop.f32.mrb[43].mxu0 }
 0x54e   :  { %v1758_v24 = vadd.f32 %v4812_v22, %v5892_v10  ;;  %v4815_v30 = vadd.f32 %v4814_v26, %v4813_v25 }
 0x550   :  { %v1807_v31 = vadd.f32 %v1806_v16, %v1758_v24  ;;  %v1761_v32 = vadd.f32 %v4815_v30, %v5894_v27 }
 0x552   :  { %v1810_v38 = vadd.f32 %v1809_v18, %v1761_v32  ;;  %v4816_v39 = vpop.f32.mrb[44].mxu0  ;;  %v1821_v28 = vmul.f32 %v5699_v5, %v1807_v31  ;;  %v1849_v12 = vmul.f32 %v5704_v9, %v1807_v31 }
 0x553   :  { %v4817_v40 = vpop.f32.mrb[45].mxu0 }
 0x554   :  { %v4818_v41 = vadd.f32 %v4817_v40, %v4816_v39  ;;  %v4819_v42 = vpop.f32.mrb[46].mxu0  ;;  %v1825_v43 = vsel %vm38_vm0, %v1821_v28, 0.0  ;;  %v1822_v58 = vmul.f32 %v5699_v5, %v1810_v38  ;;  %v1853_v49 = vsel %vm38_vm0, %v1849_v12, 0.0 }
 0x555   :  { %v4820_v19 = vpop.f32.mrb[47].mxu0  ;;  %1826 = vadd.xlane.f32.xlu1 %v1825_v43  ;;  %v1850_v50 = vmul.f32 %v5704_v9, %v1810_v38 }
 0x556   :  { %v1766_v29 = vadd.f32 %v4818_v41, %v5898_v37  ;;  %v4821_v44 = vadd.f32 %v4820_v19, %v4819_v42  ;;  %v1828_v45 = vsel %vm38_vm0, %v1822_v58, 0.0 }
 0x557   :  { %1829 = vadd.xlane.f32.xlu0 %v1828_v45  ;;  %v1856_v52 = vsel %vm38_vm0, %v1850_v50, 0.0 }
 0x558   :  { %v1815_v47 = vadd.f32 %v5120_v15, %v1766_v29  ;;  %v1769_v48 = vadd.f32 %v4821_v44, %v5906_v46 }
 0x559   :  { %1854 = vadd.xlane.f32.xlu1 %v1853_v49 }
 0x55a   :  { %v5911_v51 = vadd.f32 %v5121_v17, %v1769_v48  ;;  %v1823_v54 = vmul.f32 %v5699_v5, %v1815_v47  ;;  %v1851_v60 = vmul.f32 %v5704_v9, %v1815_v47 }
 0x55c   :  { %v1852_v53 = vmul.f32 %v5704_v9, %v5911_v51  ;;  %v1831_v56 = vsel %vm38_vm0, %v1823_v54, 0.0  ;;  %v1859_v61 = vsel %vm38_vm0, %v1851_v60, 0.0  ;;  %v1824_v62 = vmul.f32 %v5699_v5, %v5911_v51 }
 0x55d   :  { %1857 = vadd.xlane.f32.xlu1 %v1856_v52 }
 0x55e   :  { %v1862_v55 = vsel %vm38_vm0, %v1852_v53, 0.0  ;;  %v1834_v63 = vsel %vm38_vm0, %v1824_v62, 0.0 }
 0x55f   :  { %1863 = vadd.xlane.f32.xlu0 %v1862_v55 }
 0x561   :  { %1832 = vadd.xlane.f32.xlu1 %v1831_v56 }
 0x565   :  { %1860 = vadd.xlane.f32.xlu1 %v1859_v61 }
 0x569   :  { %1835 = vadd.xlane.f32.xlu1 %v1834_v63 }
 0x5e2   :  { %v1827_v0 = vpop.xlane.xlu1 %1826 }
 0x5e3   :  { %v1837_v1 = vmul.f32 0.0625, %v1827_v0 }
 0x5e4   :  { %v1830_v2 = vpop.xlane.xlu0 %1829 }
 0x5e5   :  { %v1841_v11 = vmul.f32 %v5699_v5, %v1837_v1  ;;  %v1838_v33 = vmul.f32 0.0625, %v1830_v2 }
 0x5e6   :  { %v1855_v4 = vpop.xlane.xlu1 %1854 }
 0x5e7   :  { %v1865_v7 = vmul.f32 0.0625, %v1855_v4  ;;  %v1842_v6 = vmul.f32 %v5699_v5, %v1838_v33 }
 0x5e9   :  { %v1869_v34 = vmul.f32 %v5704_v9, %v1865_v7 }
 0x5ea   :  { %v1858_v35 = vpop.xlane.xlu1 %1857 }
 0x5eb   :  { %v1873_v36 = vadd.f32 %v1869_v34, %v1841_v11  ;;  %v1866_v13 = vmul.f32 0.0625, %v1858_v35 }
 0x5ec   :  { %v1864_v25 = vpop.xlane.xlu0 %1863 }
 0x5ed   :  { %v1870_v14 = vmul.f32 %v5704_v9, %v1866_v13  ;;  %v5928_v15 = vsub.f32 %v1807_v31, %v1873_v36  ;;  %v1868_v39 = vmul.f32 0.0625, %v1864_v25 }
 0x5ee   :  { %v1833_v16 = vpop.xlane.xlu1 %1832 }
 0x5ef   :  { %v1874_v17 = vadd.f32 %v1870_v14, %v1842_v6  ;;  %v1881_v18 = vmul.f32 %v5928_v15, %v5928_v15  ;;  %v1839_v20 = vmul.f32 0.0625, %v1833_v16  ;;  %v1872_v29 = vmul.f32 %v5704_v9, %v1868_v39 }
 0x5f1   :  { %v1885_v21 = vmul.f32 %v5699_v5, %v1881_v18  ;;  %v5933_v22 = vsub.f32 %v1810_v38, %v1874_v17  ;;  %v1913_v24 = vmul.f32 %v5704_v9, %v1881_v18  ;;  %v1843_v28 = vmul.f32 %v5699_v5, %v1839_v20 }
 0x5f2   :  { %v1861_v26 = vpop.xlane.xlu1 %1860 }
 0x5f3   :  { %v1867_v30 = vmul.f32 0.0625, %v1861_v26  ;;  %v1889_v32 = vsel %vm38_vm0, %v1885_v21, 0.0  ;;  %v1882_v31 = vmul.f32 %v5933_v22, %v5933_v22  ;;  %v1917_v42 = vsel %vm38_vm0, %v1913_v24, 0.0 }
 0x5f4   :  { %1890 = vadd.xlane.f32.xlu1 %v1889_v32 }
 0x5f5   :  { %v1871_v40 = vmul.f32 %v5704_v9, %v1867_v30  ;;  %v1886_v41 = vmul.f32 %v5699_v5, %v1882_v31  ;;  %v1914_v19 = vmul.f32 %v5704_v9, %v1882_v31 }
 0x5f6   :  { %v1836_v38 = vpop.xlane.xlu1 %1835 }
 0x5f7   :  { %v1875_v43 = vadd.f32 %v1871_v40, %v1843_v28  ;;  %v1840_v58 = vmul.f32 0.0625, %v1836_v38  ;;  %v1892_v12 = vsel %vm38_vm0, %v1886_v41, 0.0  ;;  %v1920_v49 = vsel %vm38_vm0, %v1914_v19, 0.0 }
 0x5f8   :  { %1918 = vadd.xlane.f32.xlu1 %v1917_v42  ;;  %1893 = vadd.xlane.f32.xlu0 %v1892_v12 }
 0x5f9   :  { %v1844_v44 = vmul.f32 %v5699_v5, %v1840_v58  ;;  %v5947_v45 = vsub.f32 %v1815_v47, %v1875_v43 }
 0x5fb   :  { %v1876_v48 = vadd.f32 %v1872_v29, %v1844_v44  ;;  %v1883_v50 = vmul.f32 %v5947_v45, %v5947_v45 }
 0x5fc   :  { %1921 = vadd.xlane.f32.xlu0 %v1920_v49 }
 0x5fd   :  { %v1887_v52 = vmul.f32 %v5699_v5, %v1883_v50  ;;  %v1915_v53 = vmul.f32 %v5704_v9, %v1883_v50  ;;  %v5955_v54 = vsub.f32 %v5911_v51, %v1876_v48 }
 0x5ff   :  { %v1895_v55 = vsel %vm38_vm0, %v1887_v52, 0.0  ;;  %v1923_v56 = vsel %vm38_vm0, %v1915_v53, 0.0  ;;  %v1884_v47 = vmul.f32 %v5955_v54, %v5955_v54 }
 0x600   :  { %1896 = vadd.xlane.f32.xlu1 %v1895_v55  ;;  %1924 = vadd.xlane.f32.xlu0 %v1923_v56 }
 0x601   :  { %v1916_v60 = vmul.f32 %v5704_v9, %v1884_v47  ;;  %v1888_v61 = vmul.f32 %v5699_v5, %v1884_v47 }
 0x603   :  { %v1926_v62 = vsel %vm38_vm0, %v1916_v60, 0.0  ;;  %v1898_v63 = vsel %vm38_vm0, %v1888_v61, 0.0 }
 0x604   :  { %1927 = vadd.xlane.f32.xlu0 %v1926_v62  ;;  %1899 = vadd.xlane.f32.xlu1 %v1898_v63 }
 0x681   :  { %v1891_v51 = vpop.xlane.xlu1 %1890 }
 0x682   :  { %v1901_v0 = vmul.f32 0.0625, %v1891_v51 }
 0x684   :  { %v1905_v7 = vmul.f32 %v5699_v5, %v1901_v0 }
 0x685   :  { %v1919_v1 = vpop.xlane.xlu1 %1918  ;;  %v1894_v2 = vpop.xlane.xlu0 %1893 }
 0x686   :  { %v1929_v4 = vmul.f32 0.0625, %v1919_v1  ;;  %v1902_v33 = vmul.f32 0.0625, %v1894_v2 }
 0x688   :  { %v1933_v11 = vmul.f32 %v5704_v9, %v1929_v4  ;;  %v1906_v6 = vmul.f32 %v5699_v5, %v1902_v33 }
 0x689   :  { %v1922_v34 = vpop.xlane.xlu0 %1921 }
 0x68a   :  { %v1937_v35 = vadd.f32 %v1933_v11, %v1905_v7  ;;  %v1930_v36 = vmul.f32 0.0625, %v1922_v34  ;;  %v1974_v11 = vld [vmem:[%s6586_s5 + $0x8] sm:$0xff]  ;;  %v1973_v34 = vld [vmem:[%s6586_s5] sm:$0xff] }
 0x68c   :  { %v1941_v13 = vadd.f32 1e-05, %v1937_v35  ;;  %v1934_v14 = vmul.f32 %v5704_v9, %v1930_v36 }
 0x68d   :  { %v1897_v16 = vpop.xlane.xlu1 %1896  ;;  %v1925_v17 = vpop.xlane.xlu0 %1924 }
 0x68e   :  { %5404 = vrsqrt.f32 %v1941_v13  ;;  %v1938_v18 = vadd.f32 %v1934_v14, %v1906_v6  ;;  %v1903_v20 = vmul.f32 0.0625, %v1897_v16  ;;  %v1931_v21 = vmul.f32 0.0625, %v1925_v17  ;;  %v1975_v6 = vld [vmem:[%s6586_s5 + $0x10] sm:$0xff] }
 0x690   :  { %v1942_v25 = vadd.f32 1e-05, %v1938_v18  ;;  %v1907_v26 = vmul.f32 %v5699_v5, %v1903_v20  ;;  %v1935_v24 = vmul.f32 %v5704_v9, %v1931_v21 }
 0x691   :  { %v1900_v30 = vpop.xlane.xlu1 %1899  ;;  %v1928_v32 = vpop.xlane.xlu0 %1927 }
 0x692   :  { %5406 = vrsqrt.f32 %v1942_v25  ;;  %v1939_v31 = vadd.f32 %v1935_v24, %v1907_v26  ;;  %v1904_v39 = vmul.f32 0.0625, %v1900_v30  ;;  %v1932_v28 = vmul.f32 0.0625, %v1928_v32  ;;  %v1976_v30 = vld [vmem:[%s6586_s5 + $0x18] sm:$0xff] }
 0x694   :  { %v1943_v40 = vadd.f32 1e-05, %v1939_v31  ;;  %v1908_v41 = vmul.f32 %v5699_v5, %v1904_v39  ;;  %v1936_v38 = vmul.f32 %v5704_v9, %v1932_v28 }
 0x696   :  { %5408 = vrsqrt.f32 %v1943_v40  ;;  %v1940_v42 = vadd.f32 %v1936_v38, %v1908_v41 }
 0x698   :  { %v5405_v43 = vpop.eup %5404  ;;  %v1944_v58 = vadd.f32 1e-05, %v1940_v42 }
 0x699   :  { %v5974_v12 = vmul.f32 %v5405_v43, %v5928_v15 }
 0x69a   :  { %5410 = vrsqrt.f32 %v1944_v58 }
 0x69b   :  { %v1953_v19 = vmul.f32 %v5699_v5, %v5974_v12  ;;  %v2078_v48 = vmul.f32 %v5704_v9, %v5974_v12 }
 0x69c   :  { %v5407_v29 = vpop.eup %5406 }
 0x69d   :  { %v1957_v44 = vsel %vm38_vm0, %v1953_v19, 0.0  ;;  %v5982_v49 = vmul.f32 %v5407_v29, %v5933_v22  ;;  %v2082_v15 = vsel %vm38_vm0, %v2078_v48, 0.0 }
 0x69e   :  { %1958 = vadd.xlane.f32.xlu1 %v1957_v44 }
 0x69f   :  { %v1954_v50 = vmul.f32 %v5699_v5, %v5982_v49  ;;  %v2079_v55 = vmul.f32 %v5704_v9, %v5982_v49 }
 0x6a0   :  { %v5409_v52 = vpop.eup %5408 }
 0x6a1   :  { %v1960_v53 = vsel %vm38_vm0, %v1954_v50, 0.0  ;;  %v5991_v56 = vmul.f32 %v5409_v52, %v5947_v45  ;;  %v2085_v60 = vsel %vm38_vm0, %v2079_v55, 0.0 }
 0x6a2   :  { %2083 = vadd.xlane.f32.xlu1 %v2082_v15  ;;  %1961 = vadd.xlane.f32.xlu0 %v1960_v53 }
 0x6a3   :  { %v1955_v22 = vmul.f32 %v5699_v5, %v5991_v56  ;;  %v2080_v62 = vmul.f32 %v5704_v9, %v5991_v56 }
 0x6a4   :  { %v5411_v47 = vpop.eup %5410 }
 0x6a5   :  { %v1963_v61 = vsel %vm38_vm0, %v1955_v22, 0.0  ;;  %v6000_v63 = vmul.f32 %v5411_v47, %v5955_v54  ;;  %v2088_v51 = vsel %vm38_vm0, %v2080_v62, 0.0 }
 0x6a6   :  { %2086 = vadd.xlane.f32.xlu0 %v2085_v60  ;;  %1964 = vadd.xlane.f32.xlu1 %v1963_v61 }
 0x6a7   :  { %v1956_v45 = vmul.f32 %v5699_v5, %v6000_v63  ;;  %v2081_v1 = vmul.f32 %v5704_v9, %v6000_v63 }
 0x6a9   :  { %v1966_v0 = vsel %vm38_vm0, %v1956_v45, 0.0  ;;  %v2091_v2 = vsel %vm38_vm0, %v2081_v1, 0.0 }
 0x6aa   :  { %2089 = vadd.xlane.f32.xlu0 %v2088_v51  ;;  %1967 = vadd.xlane.f32.xlu1 %v1966_v0 }
 0x6ae   :  { %2092 = vadd.xlane.f32.xlu0 %v2091_v2 }
 0x72b   :  { %v1959_v4 = vpop.xlane.xlu1 %1958 }
 0x72c   :  { %v1969_v54 = vmul.f32 0.0625, %v1959_v4 }
 0x72e   :  { %v1977_v13 = vmul.f32 %v1973_v34, %v1969_v54  ;;  %v2003_v54 = vshrl.u32 %v43_v57, 7  ;;  %v1998_v57 = vld [vmem:[%s6588_s7] sm:$0xff] }
 0x72f   :  { %v2084_v7 = vpop.xlane.xlu1 %2083  ;;  %v1962_v33 = vpop.xlane.xlu0 %1961 }
 0x730   :  { %v1970_v35 = vmul.f32 0.0625, %v1962_v33  ;;  %v2094_v17 = vmul.f32 0.0625, %v2084_v7  ;;  %v1982_v24 = vsel %vm1981_vm5, %v1977_v13, 0.0  ;;  %v1995_v7 = vld [vmem:[%s6587_s6] sm:$0x1] }
 0x732   :  { %v1978_v36 = vmul.f32 %v1974_v11, %v1970_v35  ;;  %v2098_v39 = vmul.f32 %v2094_v17, %v1973_v34 }
 0x733   :  { %v1965_v14 = vpop.xlane.xlu1 %1964  ;;  %v2087_v16 = vpop.xlane.xlu0 %2086 }
 0x734   :  { %v1971_v18 = vmul.f32 0.0625, %v1965_v14  ;;  %v2095_v20 = vmul.f32 0.0625, %v2087_v16  ;;  %v1983_v21 = vsel %vm1981_vm5, %v1978_v36, 0.0  ;;  %v2102_v44 = vsel %vm1981_vm5, %v2098_v39, 0.0  ;;  %v1999_v14 = vld [vmem:[%s6588_s7 + $0x8] sm:$0xff] }
 0x735   :  { %v1984_v38 = vadd.f32 %v1983_v21, %v1982_v24  ;;  %v6033_v36 = vsub.s32 0, %v2003_v54  ;;  %v5494_v54 = vld [vmem:[%s6584_s4 + $0x10] sm:$0xff] }
 0x736   :  { %v1979_v25 = vmul.f32 %v1975_v6, %v1971_v18  ;;  %v2099_v26 = vmul.f32 %v2095_v20, %v1974_v11 }
 0x737   :  { %v1968_v32 = vpop.xlane.xlu1 %1967  ;;  %v2090_v31 = vpop.xlane.xlu0 %2089 }
 0x738   :  { %v1985_v28 = vsel %vm1981_vm5, %v1979_v25, 0.0  ;;  %v1972_v40 = vmul.f32 0.0625, %v1968_v32  ;;  %v2096_v41 = vmul.f32 0.0625, %v2090_v31  ;;  %v2103_v42 = vsel %vm1981_vm5, %v2099_v26, 0.0  ;;  %v2000_v32 = vld [vmem:[%s6588_s7 + $0x10] sm:$0xff] }
 0x739   :  { %v1986_v19 = vadd.f32 %v1985_v28, %v1984_v38  ;;  %v2104_v15 = vadd.f32 %v2103_v42, %v2102_v44 }
 0x73a   :  { %v1980_v43 = vmul.f32 %v1976_v30, %v1972_v40  ;;  %v2100_v58 = vmul.f32 %v2096_v41, %v1975_v6 }
 0x73b   :  { %v2093_v29 = vpop.xlane.xlu0 %2092 }
 0x73c   :  { %v1987_v48 = vsel %vm1981_vm5, %v1980_v43, 0.0  ;;  %v2105_v50 = vsel %vm1981_vm5, %v2100_v58, 0.0  ;;  %v2097_v52 = vmul.f32 0.0625, %v2093_v29 }
 0x73d   :  { %v1988_v53 = vadd.f32 %v1987_v48, %v1986_v19  ;;  %v2106_v47 = vadd.f32 %v2105_v50, %v2104_v15  ;;  %v5503_v48 = vmov 2   ;;  %v5492_v15 = vld [vmem:[%s6584_s4] sm:$0xff] }
 0x73e   :  { %v2101_v55 = vmul.f32 %v2097_v52, %v1976_v30  ;;  %v2001_v30 = vld [vmem:[%s6588_s7 + $0x18] sm:$0xff]  ;;  %5290 = vset.pattern.permute.xlu1 %v5503_v48  ;;  %5291 = vset.pattern.permute.xlu0 %v5503_v48 }
 0x73f   :  { %v1989_v22 = vrot.slane %v1988_v53, 4 }
 0x740   :  { %v2107_v60 = vsel %vm1981_vm5, %v2101_v55, 0.0  ;;  %v5493_v55 = vld [vmem:[%s6584_s4 + $0x8] sm:$0xff] }
 0x741   :  { %v1990_v61 = vadd.f32 %v1989_v22, %v1988_v53  ;;  %v2108_v62 = vadd.f32 %v2107_v60, %v2106_v47 }
 0x743   :  { %v1991_v45 = vrot.slane %v1990_v61, 2  ;;  %v2109_v51 = vrot.slane %v2108_v62, 4 }
 0x745   :  { %v1992_v0 = vadd.f32 %v1991_v45, %v1990_v61  ;;  %v2110_v1 = vadd.f32 %v2109_v51, %v2108_v62 }
 0x747   :  { %v1993_v2 = vrot.slane %v1992_v0, 1  ;;  %v2111_v4 = vrot.slane %v2110_v1, 2 }
 0x749   :  { %v1994_v11 = vadd.f32 %v1993_v2, %v1992_v0  ;;  %v2112_v33 = vadd.f32 %v2111_v4, %v2110_v1 }
 0x74b   :  { %v2113_v34 = vrot.slane %v2112_v33, 1  ;;  %v1996_v35 = vadd.f32 %v1995_v7, %v1994_v11  ;;  %v5495_v11 = vld [vmem:[%s6584_s4 + $0x18] sm:$0xff] }
 0x74d   :  { %v2114_v13 = vadd.f32 %v2113_v34, %v2112_v33  ;;  %v1997_v6 = vmax.f32 %v1996_v35, 0.0 }
 0x74f   :  { %v2005_v16 = vrot.slane %v1997_v6, %v6033_v36  ;;  %v2115_v17 = vadd.f32 %v2114_v13, %v1995_v7 }
 0x751   :  { %v2007_v18 = vmul.f32 %v2005_v16, %v1999_v14  ;;  %v2006_v20 = vmul.f32 %v2005_v16, %v1998_v57  ;;  %v2116_v21 = vmax.f32 %v2115_v17, 0.0  ;;  %v2009_v41 = vmul.f32 %v2005_v16, %v2001_v30 }
 0x752   :  { %v2008_v38 = vmul.f32 %v2005_v16, %v2000_v32 }
 0x753   :  { %v2013_v25 = vsel %vm1981_vm5, %v2007_v18, 0.0  ;;  %v2010_v26 = vsel %vm1981_vm5, %v2006_v20, 0.0  ;;  %v2120_v24 = vrot.slane %v2116_v21, %v6033_v36  ;;  %v2019_v42 = vsel %vm1981_vm5, %v2009_v41, 0.0 }
 0x754   :  { %2014 = vadd.xlane.f32.xlu0 %v2013_v25  ;;  %2011 = vadd.xlane.f32.xlu1 %v2010_v26  ;;  %v2016_v43 = vsel %vm1981_vm5, %v2008_v38, 0.0 }
 0x755   :  { %v2122_v31 = vmul.f32 %v2120_v24, %v1999_v14  ;;  %v2121_v39 = vmul.f32 %v2120_v24, %v1998_v57  ;;  %v2124_v58 = vmul.f32 %v2120_v24, %v2001_v30  ;;  %v2123_v19 = vmul.f32 %v2120_v24, %v2000_v32 }
 0x757   :  { %v2128_v28 = vsel %vm1981_vm5, %v2122_v31, 0.0  ;;  %v2125_v40 = vsel %vm1981_vm5, %v2121_v39, 0.0  ;;  %v2134_v29 = vsel %vm1981_vm5, %v2124_v58, 0.0  ;;  %v2131_v44 = vsel %vm1981_vm5, %v2123_v19, 0.0 }
 0x758   :  { %2129 = vadd.xlane.f32.xlu0 %v2128_v28  ;;  %2126 = vadd.xlane.f32.xlu1 %v2125_v40 }
 0x75c   :  { %2020 = vadd.xlane.f32.xlu0 %v2019_v42  ;;  %2017 = vadd.xlane.f32.xlu1 %v2016_v43 }
 0x760   :  { %2135 = vadd.xlane.f32.xlu0 %v2134_v29  ;;  %2132 = vadd.xlane.f32.xlu1 %v2131_v44 }
 0x7e1   :  { %v2012_v50 = vpop.xlane.xlu1 %2011  ;;  %v2015_v52 = vpop.xlane.xlu0 %2014 }
 0x7e2   :  { %v2022_v53 = vadd.f32 %v5492_v15, %v2012_v50  ;;  %v2023_v22 = vadd.f32 %v5493_v55, %v2015_v52 }
 0x7e4   :  { %v4505_v47 = vmul.f32 -1.442695, %v2022_v53  ;;  %v4506_v60 = vmul.f32 -1.442695, %v2023_v22  ;;  %v5344_v53 = vld [vmem:[%s6581_s3] sm:$0xff]   ;;  %v5346_v22 = vld [vmem:[%s6581_s3 + $0x8] sm:$0xff]  }
 0x7e5   :  { %v2127_v61 = vpop.xlane.xlu1 %2126  ;;  %v2130_v62 = vpop.xlane.xlu0 %2129  ;;  %5122 = vmatprep.subr.bf16.mxu1 %v5344_v53 }
 0x7e6   :  { %5412 = vpow2.f32 %v4505_v47  ;;  %v2137_v45 = vadd.f32 %v5492_v15, %v2127_v61  ;;  %v2138_v51 = vadd.f32 %v5493_v55, %v2130_v62  ;;  %v5345_v55 = vld [vmem:[%s6581_s3 + $0x40] sm:$0xff]   ;;  %v5347_v47 = vld [vmem:[%s6581_s3 + $0x48] sm:$0xff]   ;;  %5123 = vmatpush3.bf16.msra.mxu1 %v5344_v53 }
 0x7e7   :  { %5414 = vpow2.f32 %v4506_v60  ;;  %5154 = vmatprep.subr.bf16.mxu0 %v5345_v55  ;;  %5124 = vmatprep.subr.bf16.mxu1 %v5346_v22  ;;  %v5348_v60 = vld [vmem:[%s6581_s3 + $0x10] sm:$0xff]   ;;  %v5349_v61 = vld [vmem:[%s6581_s3 + $0x60] sm:$0xff]   ;;  %v5355_v53 = vld [vmem:[%s6581_s3 + $0x88] sm:$0xff]  }
 0x7e8   :  { %v4509_v0 = vmul.f32 -1.442695, %v2137_v45  ;;  %v4510_v1 = vmul.f32 -1.442695, %v2138_v51  ;;  %5155 = vmatpush3.bf16.msra.mxu0 %v5345_v55  ;;  %v5356_v55 = vld [vmem:[%s6581_s3 + $0x30] sm:$0xff]  }
 0x7e9   :  { %v2018_v2 = vpop.xlane.xlu1 %2017  ;;  %v2021_v4 = vpop.xlane.xlu0 %2020  ;;  %5156 = vmatprep.subr.bf16.mxu0 %v5347_v47 }
 0x7ea   :  { %5416 = vpow2.f32 %v4509_v0  ;;  %v2024_v7 = vadd.f32 %v5494_v54, %v2018_v2  ;;  %v2025_v33 = vadd.f32 %v5495_v11, %v2021_v4  ;;  %5125 = vmatpush3.bf16.msra.mxu1 %v5346_v22  ;;  %v2197_v4 = vld [vmem:[#allocation2] sm:$0xff]  ;;  %v5357_v22 = vld [vmem:[%s6581_s3 + $0x38] sm:$0xff]  }
 0x7eb   :  { %5418 = vpow2.f32 %v4510_v1  ;;  %5130 = vmatprep.subr.bf16.mxu1 %v5348_v60 }
 0x7ec   :  { %v4507_v34 = vmul.f32 -1.442695, %v2024_v7  ;;  %v4508_v13 = vmul.f32 -1.442695, %v2025_v33  ;;  %5157 = vmatpush3.bf16.msra.mxu0 %v5347_v47  ;;  %v5358_v47 = vld [vmem:[%s6581_s3 + $0x50] sm:$0xff]  }
 0x7ed   :  { %v2133_v35 = vpop.xlane.xlu1 %2132  ;;  %v2136_v14 = vpop.xlane.xlu0 %2135  ;;  %5170 = vmatprep.subr.bf16.mxu0 %v5349_v61 }
 0x7ee   :  { %5420 = vpow2.f32 %v4507_v34  ;;  %v2139_v6 = vadd.f32 %v5494_v54, %v2133_v35  ;;  %v2140_v21 = vadd.f32 %v5495_v11, %v2136_v14 }
 0x7ef   :  { %5422 = vpow2.f32 %v4508_v13  ;;  %v2198_v13 = vld [vmem:[#allocation2 + $0x8] sm:$0xff] }
 0x7f0   :  { %v5413_v57 = vpop.eup %5412  ;;  %v4511_v20 = vmul.f32 -1.442695, %v2139_v6  ;;  %v4512_v30 = vmul.f32 -1.442695, %v2140_v21 }
 0x7f1   :  { %v5415_v16 = vpop.eup %5414  ;;  %v2038_v17 = vadd.f32 1.0, %v5413_v57 }
 0x7f2   :  { %v2039_v18 = vadd.f32 1.0, %v5415_v16 }
 0x7f3   :  { %5424 = vrcp.f32 %v2038_v17 }
 0x7f4   :  { %v5417_v25 = vpop.eup %5416  ;;  %5426 = vrcp.f32 %v2039_v18 }
 0x7f5   :  { %v5419_v26 = vpop.eup %5418  ;;  %v2153_v24 = vadd.f32 1.0, %v5417_v25  ;;  %5428 = vpow2.f32 %v4511_v20 }
 0x7f6   :  { %v2154_v32 = vadd.f32 1.0, %v5419_v26  ;;  %v2199_v26 = vld [vmem:[#allocation2 + $0x10] sm:$0xff] }
 0x7f7   :  { %5430 = vrcp.f32 %v2153_v24 }
 0x7f8   :  { %v5421_v31 = vpop.eup %5420  ;;  %5432 = vpow2.f32 %v4512_v30 }
 0x7f9   :  { %5434 = vrcp.f32 %v2154_v32  ;;  %v2040_v39 = vadd.f32 1.0, %v5421_v31  ;;  %v5423_v28 = vpop.eup %5422 }
 0x7fa   :  { %v2041_v38 = vadd.f32 1.0, %v5423_v28 }
 0x7fb   :  { %5436 = vrcp.f32 %v2040_v39 }
 0x7fc   :  { %5438 = vrcp.f32 %v2041_v38  ;;  %v2200_v38 = vld [vmem:[#allocation2 + $0x18] sm:$0xff] }
 0x7fd   :  { %v5425_v40 = vpop.eup %5424 }
 0x7fe   :  { %v5427_v41 = vpop.eup %5426  ;;  %2052 = vperm.xlu1 %5290, %v5425_v40  }
 0x7ff   :  { %2057 = vperm.xlu0 %5291, %v5427_v41   ;;  %v5429_v42 = vpop.eup %5428 }
 0x800   :  { %v2155_v58 = vadd.f32 1.0, %v5429_v42 }
 0x801   :  { %v5431_v43 = vpop.eup %5430 }
 0x802   :  { %2167 = vperm.xlu1 %5290, %v5431_v43   ;;  %v5433_v19 = vpop.eup %5432  ;;  %5440 = vrcp.f32 %v2155_v58 }
 0x803   :  { %v5435_v29 = vpop.eup %5434  ;;  %v2156_v44 = vadd.f32 1.0, %v5433_v19 }
 0x805   :  { %v5437_v48 = vpop.eup %5436  ;;  %5442 = vrcp.f32 %v2156_v44 }
 0x806   :  { %2172 = vperm.xlu1 %5290, %v5435_v29   ;;  %v5439_v50 = vpop.eup %5438 }
 0x80a   :  { %2062 = vperm.xlu1 %5290, %v5437_v48   ;;  %v5350_v48 = vld [vmem:[%s6581_s3 + $0x18] sm:$0xff]  }
 0x80c   :  { %v5441_v52 = vpop.eup %5440 }
 0x80e   :  { %2067 = vperm.xlu1 %5290, %v5439_v50   ;;  %v5352_v50 = vld [vmem:[%s6581_s3 + $0x20] sm:$0xff]  }
 0x80f   :  { %v5443_v15 = vpop.eup %5442 }
 0x812   :  { %2177 = vperm.xlu1 %5290, %v5441_v52   ;;  %v5353_v52 = vld [vmem:[%s6581_s3 + $0x80] sm:$0xff]  }
 0x816   :  { %2182 = vperm.xlu1 %5290, %v5443_v15   ;;  %v5354_v15 = vld [vmem:[%s6581_s3 + $0x28] sm:$0xff]  }
 0x87d   :  { %v2053_v62 = vpop.permute.xlu1 %2052 }
 0x87e   :  { %v2070_v51 = vmul.f32 %v5699_v5, %v2053_v62  ;;  %v2058_v1 = vpop.permute.xlu0 %2057  ;;  %v5361_v62 = vld [vmem:[%s6581_s3 + $0x78] sm:$0xff]  }
 0x87f   :  { %v2071_v7 = vmul.f32 %v5699_v5, %v2058_v1 }
 0x881   :  { %v2168_v45 = vpop.permute.xlu1 %2167 }
 0x882   :  { %v2185_v0 = vmul.f32 %v5704_v9, %v2168_v45  ;;  %v5364_v45 = vld [vmem:[%s6583_s1 + $0x4] ss:$12 sps:$4 sm:$0xff]  }
 0x884   :  { %v2189_v2 = vadd.f32 %v2185_v0, %v2070_v51  ;;  %v5365_v51 = vld [vmem:[%s6583_s1 + $0x8] ss:$12 sps:$4 sm:$0xff]  }
 0x885   :  { %v2173_v54 = vpop.permute.xlu1 %2172 }
 0x886   :  { %v2193_v11 = vmul.f32 %v2189_v2, %v5974_v12  ;;  %v2186_v33 = vmul.f32 %v5704_v9, %v2173_v54 }
 0x888   :  { %v2201_v34 = vadd.f32 %v2197_v4, %v2193_v11  ;;  %v2190_v35 = vadd.f32 %v2186_v33, %v2071_v7 }
 0x889   :  { %v2063_v6 = vpop.permute.xlu1 %2062 }
 0x88a   :  { %v2205_v14 = vmax.f32 %v2201_v34, 0.0  ;;  %v2194_v57 = vmul.f32 %v2190_v35, %v5982_v49  ;;  %v2072_v21 = vmul.f32 %v5699_v5, %v2063_v6 }
 0x88c   :  { %2209 = vst.msk [vmem:[#allocation2] sm:$0xff] %vm38_vm0, %v2205_v14  ;;  %v2202_v16 = vadd.f32 %v2198_v13, %v2194_v57 }
 0x88d   :  { %v2068_v17 = vpop.permute.xlu1 %2067 }
 0x88e   :  { %v2206_v18 = vmax.f32 %v2202_v16, 0.0  ;;  %v2073_v30 = vmul.f32 %v5699_v5, %v2068_v17 }
 0x890   :  { %2210 = vst.msk [vmem:[#allocation2 + $0x8] sm:$0xff] %vm38_vm0, %v2206_v18 }
 0x891   :  { %v2178_v20 = vpop.permute.xlu1 %2177 }
 0x892   :  { %v2187_v12 = vmul.f32 %v5704_v9, %v2178_v20 }
 0x893   :  { %v2213_v31 = vld [vmem:[#allocation2] sm:$0xff] }
 0x894   :  { %v2191_v25 = vadd.f32 %v2187_v12, %v2072_v21 }
 0x895   :  { %v2183_v24 = vpop.permute.xlu1 %2182 }
 0x896   :  { %v2195_v32 = vmul.f32 %v2191_v25, %v5991_v56  ;;  %v2188_v49 = vmul.f32 %v5704_v9, %v2183_v24 }
 0x897   :  { %v2214_v39 = vld [vmem:[#allocation2 + $0x8] sm:$0xff] }
 0x898   :  { %v2203_v28 = vadd.f32 %v2199_v26, %v2195_v32  ;;  %v2192_v40 = vadd.f32 %v2188_v49, %v2073_v30  ;;  %v6100_v41 = vpack.c.bf16 %v2214_v39, %v2213_v31 }
 0x89a   :  { %v2207_v42 = vmax.f32 %v2203_v28, 0.0  ;;  %v2196_v43 = vmul.f32 %v2192_v40, %v6000_v63  ;;  %5126 = vmatprep.mubr.msk.bf16.mxu1 %vm38_vm0, %v6100_v41  ;;  %5158 = vmatprep.mubr.msk.bf16.mxu0 %vm38_vm0, %v6100_v41  ;;  %v5351_v63 = vld [vmem:[%s6581_s3 + $0x68] sm:$0xff]  }
 0x89c   :  { %2211 = vst.msk [vmem:[#allocation2 + $0x10] sm:$0xff] %vm38_vm0, %v2207_v42  ;;  %v2204_v56 = vadd.f32 %v2200_v38, %v2196_v43 }
 0x89e   :  { %v2208_v58 = vmax.f32 %v2204_v56, 0.0 }
 0x8a0   :  { %2212 = vst.msk [vmem:[#allocation2 + $0x18] sm:$0xff] %vm38_vm0, %v2208_v58 }
 0x8a3   :  { %v2215_v19 = vld [vmem:[#allocation2 + $0x10] sm:$0xff] }
 0x8a7   :  { %v2216_v29 = vld [vmem:[#allocation2 + $0x18] sm:$0xff] }
 0x8a8   :  { %v2218_v44 = vpack.c.bf16 %v2216_v29, %v2215_v19 }
 0x8aa   :  { %5127 = vmatmul.mubr.msk.bf16.vlgmr.msra.gmra.mrb[48].mxu1 %vm38_vm0, %v2218_v44  ;;  %5159 = vmatmul.mubr.msk.bf16.vlgmr.msra.gmra.mrb[48].mxu0 %vm38_vm0, %v2218_v44 }
 0x8ab   :  { %5131 = vmatpush3.bf16.msra.mxu1 %v5348_v60  ;;  %5134 = vmatprep.mubr.msk.bf16.mxu1 %vm38_vm0, %v6100_v41  ;;  %v5359_v60 = vld [vmem:[%s6581_s3 + $0x58] sm:$0xff]  }
 0x8ac   :  { %5171 = vmatpush3.bf16.msra.mxu0 %v5349_v61  ;;  %5174 = vmatprep.mubr.msk.bf16.mxu0 %vm38_vm0, %v6100_v41  ;;  %v5360_v61 = vld [vmem:[%s6581_s3 + $0x70] sm:$0xff]  }
 0x8ad   :  { %5132 = vmatprep.subr.bf16.mxu1 %v5350_v48  ;;  %5172 = vmatprep.subr.bf16.mxu0 %v5351_v63 }
 0x8af   :  { %5133 = vmatpush3.bf16.msra.mxu1 %v5350_v48 }
 0x8b0   :  { %5173 = vmatpush3.bf16.msra.mxu0 %v5351_v63  ;;  %5138 = vmatprep.subr.bf16.mxu1 %v5352_v50 }
 0x8b1   :  { %5186 = vmatprep.subr.bf16.mxu0 %v5353_v52 }
 0x8b2   :  { %5135 = vmatmul.mubr.msk.bf16.vlgmr.msra.gmra.mrb[52].mxu1 %vm38_vm0, %v2218_v44 }
 0x8b3   :  { %5139 = vmatpush3.bf16.msra.mxu1 %v5352_v50  ;;  %5175 = vmatmul.mubr.msk.bf16.vlgmr.msra.gmra.mrb[52].mxu0 %vm38_vm0, %v2218_v44 }
 0x8b4   :  { %5142 = vmatprep.mubr.msk.bf16.mxu1 %vm38_vm0, %v6100_v41  ;;  %5187 = vmatpush3.bf16.msra.mxu0 %v5353_v52 }
 0x8b5   :  { %5190 = vmatprep.mubr.msk.bf16.mxu0 %vm38_vm0, %v6100_v41  ;;  %5140 = vmatprep.subr.bf16.mxu1 %v5354_v15 }
 0x8b6   :  { %5188 = vmatprep.subr.bf16.mxu0 %v5355_v53 }
 0x8b7   :  { %5141 = vmatpush3.bf16.msra.mxu1 %v5354_v15 }
 0x8b8   :  { %5189 = vmatpush3.bf16.msra.mxu0 %v5355_v53  ;;  %5146 = vmatprep.subr.bf16.mxu1 %v5356_v55 }
 0x8ba   :  { %5143 = vmatmul.mubr.msk.bf16.vlgmr.msra.gmra.mrb[56].mxu1 %vm38_vm0, %v2218_v44 }
 0x8bb   :  { %5147 = vmatpush3.bf16.msra.mxu1 %v5356_v55  ;;  %5191 = vmatmul.mubr.msk.bf16.vlgmr.msra.gmra.mrb[56].mxu0 %vm38_vm0, %v2218_v44 }
 0x8bc   :  { %5150 = vmatprep.mubr.msk.bf16.mxu1 %vm38_vm0, %v6100_v41  ;;  %5148 = vmatprep.subr.bf16.mxu1 %v5357_v22 }
 0x8bd   :  { %5198 = vmatprep.mubr.msk.bf16.mxu0 %vm38_vm0, %v5365_v51 }
 0x8bf   :  { %5149 = vmatpush3.bf16.msra.mxu1 %v5357_v22 }
 0x8c0   :  { %5162 = vmatprep.subr.bf16.mxu1 %v5358_v47 }
 0x8c2   :  { %5151 = vmatmul.mubr.msk.bf16.vlgmr.msra.gmra.mrb[60].mxu1 %vm38_vm0, %v2218_v44 }
 0x8c3   :  { %5163 = vmatpush3.bf16.msra.mxu1 %v5358_v47  ;;  %5166 = vmatprep.mubr.msk.bf16.mxu1 %vm38_vm0, %v6100_v41 }
 0x8c4   :  { %5164 = vmatprep.subr.bf16.mxu1 %v5359_v60 }
 0x8c7   :  { %5165 = vmatpush3.bf16.msra.mxu1 %v5359_v60 }
 0x8c8   :  { %5178 = vmatprep.subr.bf16.mxu1 %v5360_v61 }
 0x8ca   :  { %5167 = vmatmul.mubr.msk.bf16.vlgmr.msra.gmra.mrb[64].mxu1 %vm38_vm0, %v2218_v44 }
 0x8cb   :  { %5179 = vmatpush3.bf16.msra.mxu1 %v5360_v61  ;;  %5182 = vmatprep.mubr.msk.bf16.mxu1 %vm38_vm0, %v6100_v41 }
 0x8cc   :  { %5180 = vmatprep.subr.bf16.mxu1 %v5361_v62 }
 0x8cf   :  { %5181 = vmatpush3.bf16.msra.mxu1 %v5361_v62 }
 0x8d2   :  { %5183 = vmatmul.mubr.msk.bf16.vlgmr.msra.gmra.mrb[68].mxu1 %vm38_vm0, %v2218_v44 }
 0x8d3   :  { %2940 = vmatprep.mubr.bf16.mxu1 %v5364_v45 }
 0x97d   :  { %v5128_v0 = vpop.f32.mrb[48].mxu1  ;;  %v5160_v1 = vpop.f32.mrb[48].mxu0 }
 0x97e   :  { %v2275_v2 = vpop.f32.mrb[49].mxu1  ;;  %v2551_v4 = vpop.f32.mrb[49].mxu0 }
 0x97f   :  { %v5129_v54 = vpop.f32.mrb[50].mxu1  ;;  %v5161_v7 = vpop.f32.mrb[50].mxu0 }
 0x980   :  { %v2291_v11 = vpack.c.bf16 %v5129_v54, %v5128_v0  ;;  %v2567_v33 = vpack.c.bf16 %v5161_v7, %v5160_v1  ;;  %v2278_v34 = vpop.f32.mrb[51].mxu1  ;;  %v2554_v35 = vpop.f32.mrb[51].mxu0  ;;  %v5366_v0 = vld [vmem:[%s6583_s1 + $0x20] ss:$12 sps:$4 sm:$0xff]  }
 0x981   :  { %v2290_v13 = vpack.c.bf16 %v2278_v34, %v2275_v2  ;;  %v2566_v6 = vpack.c.bf16 %v2554_v35, %v2551_v4 }
 0x982   :  { %2293 = vst.msk [vmem:[#allocation3 + $0x8] sm:$0xff] %vm38_vm0, %v2291_v11  ;;  %2569 = vst.msk [vmem:[#allocation3 + $0x48] sm:$0xff] %vm38_vm0, %v2567_v33 }
 0x983   :  { %2292 = vst.msk [vmem:[#allocation3] sm:$0xff] %vm38_vm0, %v2290_v13  ;;  %2568 = vst.msk [vmem:[#allocation3 + $0x40] sm:$0xff] %vm38_vm0, %v2566_v6 }
 0x985   :  { %v5136_v14 = vpop.f32.mrb[52].mxu1 }
 0x986   :  { %v5176_v57 = vpop.f32.mrb[52].mxu0  ;;  %v2344_v16 = vpop.f32.mrb[53].mxu1 }
 0x987   :  { %v2689_v17 = vpop.f32.mrb[53].mxu0  ;;  %v5137_v18 = vpop.f32.mrb[54].mxu1 }
 0x988   :  { %v2360_v20 = vpack.c.bf16 %v5137_v18, %v5136_v14  ;;  %v5177_v21 = vpop.f32.mrb[54].mxu0  ;;  %v2347_v12 = vpop.f32.mrb[55].mxu1 }
 0x989   :  { %v2705_v25 = vpack.c.bf16 %v5177_v21, %v5176_v57  ;;  %v2359_v26 = vpack.c.bf16 %v2347_v12, %v2344_v16  ;;  %v2692_v24 = vpop.f32.mrb[55].mxu0  ;;  %v2863_v31 = vld [vmem:[#allocation3 + $0x48] sm:$0xff] }
 0x98a   :  { %2362 = vst.msk [vmem:[#allocation3 + $0x18] sm:$0xff] %vm38_vm0, %v2360_v20  ;;  %v2704_v30 = vpack.c.bf16 %v2692_v24, %v2689_v17  ;;  %v2862_v32 = vld [vmem:[#allocation3 + $0x40] sm:$0xff]  ;;  %v2855_v42 = vld [vmem:[#allocation3 + $0x8] sm:$0xff] }
 0x98b   :  { %v2854_v49 = vld [vmem:[#allocation3] sm:$0xff]  ;;  %2707 = vst.msk [vmem:[#allocation3 + $0x68] sm:$0xff] %vm38_vm0, %v2705_v25  ;;  %2361 = vst.msk [vmem:[#allocation3 + $0x10] sm:$0xff] %vm38_vm0, %v2359_v26  ;;  %4862 = vmatprep.subr.bf16.mxu1 %v2862_v32  ;;  %v5367_v26 = vld [vmem:[%s6583_s1 + $0x1c] ss:$12 sps:$4 sm:$0xff]  }
 0x98c   :  { %2706 = vst.msk [vmem:[#allocation3 + $0x60] sm:$0xff] %vm38_vm0, %v2704_v30  ;;  %4863 = vmatpush3.bf16.msra.mxu1 %v2854_v49  ;;  %v5362_v25 = vld [vmem:[%s6583_s1] ss:$12 sps:$4 sm:$0xff]   ;;  %v5369_v24 = vld [vmem:[%s6583_s1 + $0x18] ss:$12 sps:$4 sm:$0xff]  }
 0x98d   :  { %v5144_v39 = vpop.f32.mrb[56].mxu1  ;;  %4864 = vmatprep.subr.bf16.mxu1 %v2863_v31 }
 0x98e   :  { %v5192_v28 = vpop.f32.mrb[56].mxu0  ;;  %v2413_v40 = vpop.f32.mrb[57].mxu1 }
 0x98f   :  { %v2827_v41 = vpop.f32.mrb[57].mxu0  ;;  %v5145_v38 = vpop.f32.mrb[58].mxu1 }
 0x990   :  { %v2429_v43 = vpack.c.bf16 %v5145_v38, %v5144_v39  ;;  %v5193_v56 = vpop.f32.mrb[58].mxu0  ;;  %v2416_v58 = vpop.f32.mrb[59].mxu1  ;;  %4865 = vmatpush3.bf16.msra.mxu1 %v2855_v42 }
 0x991   :  { %v2843_v19 = vpack.c.bf16 %v5193_v56, %v5192_v28  ;;  %v2428_v29 = vpack.c.bf16 %v2416_v58, %v2413_v40  ;;  %v2830_v44 = vpop.f32.mrb[59].mxu0  ;;  %v2857_v6 = vld [vmem:[#allocation3 + $0x18] sm:$0xff] }
 0x992   :  { %2431 = vst.msk [vmem:[#allocation3 + $0x28] sm:$0xff] %vm38_vm0, %v2429_v43  ;;  %v2842_v48 = vpack.c.bf16 %v2830_v44, %v2827_v41  ;;  %v2856_v35 = vld [vmem:[#allocation3 + $0x10] sm:$0xff]  ;;  %v2867_v16 = vld [vmem:[#allocation3 + $0x68] sm:$0xff] }
 0x993   :  { %2845 = vst.msk [vmem:[#allocation3 + $0x88] sm:$0xff] %vm38_vm0, %v2843_v19  ;;  %2430 = vst.msk [vmem:[#allocation3 + $0x20] sm:$0xff] %vm38_vm0, %v2428_v29  ;;  %v2866_v14 = vld [vmem:[#allocation3 + $0x60] sm:$0xff] }
 0x994   :  { %2844 = vst.msk [vmem:[#allocation3 + $0x80] sm:$0xff] %vm38_vm0, %v2842_v48 }
 0x995   :  { %v5152_v63 = vpop.f32.mrb[60].mxu1 }
 0x996   :  { %v2482_v50 = vpop.f32.mrb[61].mxu1 }
 0x997   :  { %v5153_v52 = vpop.f32.mrb[62].mxu1 }
 0x998   :  { %v2498_v15 = vpack.c.bf16 %v5153_v52, %v5152_v63  ;;  %v2485_v53 = vpop.f32.mrb[63].mxu1 }
 0x999   :  { %v2497_v55 = vpack.c.bf16 %v2485_v53, %v2482_v50  ;;  %v2859_v17 = vld [vmem:[#allocation3 + $0x28] sm:$0xff] }
 0x99a   :  { %2500 = vst.msk [vmem:[#allocation3 + $0x38] sm:$0xff] %vm38_vm0, %v2498_v15  ;;  %v2871_v60 = vld [vmem:[#allocation3 + $0x88] sm:$0xff]  ;;  %v2858_v57 = vld [vmem:[#allocation3 + $0x20] sm:$0xff] }
 0x99b   :  { %2499 = vst.msk [vmem:[#allocation3 + $0x30] sm:$0xff] %vm38_vm0, %v2497_v55  ;;  %v2870_v22 = vld [vmem:[#allocation3 + $0x80] sm:$0xff] }
 0x99c   :  { %5194 = vmatprep.subr.bf16.mxu0 %v2870_v22 }
 0x99d   :  { %5195 = vmatpush3.bf16.msra.mxu0 %v2870_v22  ;;  %v5168_v47 = vpop.f32.mrb[64].mxu1 }
 0x99e   :  { %5196 = vmatprep.subr.bf16.mxu0 %v2871_v60  ;;  %v2620_v61 = vpop.f32.mrb[65].mxu1 }
 0x99f   :  { %v5169_v62 = vpop.f32.mrb[66].mxu1 }
 0x9a0   :  { %v2636_v45 = vpack.c.bf16 %v5169_v62, %v5168_v47  ;;  %v2623_v51 = vpop.f32.mrb[67].mxu1 }
 0x9a1   :  { %v2635_v1 = vpack.c.bf16 %v2623_v51, %v2620_v61  ;;  %5197 = vmatpush3.bf16.msra.mxu0 %v2871_v60  ;;  %v2861_v12 = vld [vmem:[#allocation3 + $0x38] sm:$0xff] }
 0x9a2   :  { %2638 = vst.msk [vmem:[#allocation3 + $0x58] sm:$0xff] %vm38_vm0, %v2636_v45  ;;  %v2860_v20 = vld [vmem:[#allocation3 + $0x30] sm:$0xff] }
 0x9a3   :  { %2637 = vst.msk [vmem:[#allocation3 + $0x50] sm:$0xff] %vm38_vm0, %v2635_v1 }
 0x9a4   :  { %5199 = vmatmul.mubr.msk.bf16.vlgmr.msra.gmra.mrb[60].mxu0 %vm38_vm0, %v5366_v0 }
 0x9a5   :  { %v5184_v2 = vpop.f32.mrb[68].mxu1 }
 0x9a6   :  { %v2758_v4 = vpop.f32.mrb[69].mxu1 }
 0x9a7   :  { %v5185_v54 = vpop.f32.mrb[70].mxu1 }
 0x9a8   :  { %v2774_v7 = vpack.c.bf16 %v5185_v54, %v5184_v2  ;;  %v2761_v11 = vpop.f32.mrb[71].mxu1 }
 0x9a9   :  { %v2773_v33 = vpack.c.bf16 %v2761_v11, %v2758_v4  ;;  %v2865_v13 = vld [vmem:[#allocation3 + $0x58] sm:$0xff] }
 0x9aa   :  { %2776 = vst.msk [vmem:[#allocation3 + $0x78] sm:$0xff] %vm38_vm0, %v2774_v7  ;;  %v2864_v34 = vld [vmem:[#allocation3 + $0x50] sm:$0xff] }
 0x9ab   :  { %2775 = vst.msk [vmem:[#allocation3 + $0x70] sm:$0xff] %vm38_vm0, %v2773_v33  ;;  %4866 = vmatprep.subr.bf16.mxu1 %v2864_v34 }
 0x9ac   :  { %4867 = vmatpush3.bf16.msra.mxu1 %v2856_v35 }
 0x9ad   :  { %4868 = vmatprep.subr.bf16.mxu1 %v2865_v13 }
 0x9b0   :  { %4869 = vmatpush3.bf16.msra.mxu1 %v2857_v6 }
 0x9b1   :  { %4870 = vmatprep.subr.bf16.mxu1 %v2866_v14  ;;  %v2869_v21 = vld [vmem:[#allocation3 + $0x78] sm:$0xff] }
 0x9b2   :  { %v2868_v18 = vld [vmem:[#allocation3 + $0x70] sm:$0xff] }
 0x9b4   :  { %4871 = vmatpush3.bf16.msra.mxu1 %v2858_v57 }
 0x9b5   :  { %4872 = vmatprep.subr.bf16.mxu1 %v2867_v16 }
 0x9b8   :  { %4873 = vmatpush3.bf16.msra.mxu1 %v2859_v17 }
 0x9b9   :  { %4874 = vmatprep.subr.bf16.mxu1 %v2868_v18 }
 0x9bc   :  { %4875 = vmatpush3.bf16.msra.mxu1 %v2860_v20 }
 0x9bd   :  { %4876 = vmatprep.subr.bf16.mxu1 %v2869_v21 }
 0x9c0   :  { %4877 = vmatpush3.bf16.msra.mxu1 %v2861_v12 }
 0x9c3   :  { %2941 = vmatmul.mubr.bf16.vlgmr.msra.gmra.mrb[72].mxu1 %v5362_v25 }
 0x9c4   :  { %2948 = vmatprep.mubr.bf16.mxu1 %v5367_v26 }
 0x9cb   :  { %2949 = vmatmul.mubr.bf16.gmra.mrb[76].mxu1 %v5369_v24 }
 0xa77   :  { %v5200_v30 = vpop.f32.mrb[60].mxu0 }
 0xa78   :  { %v2991_v32 = vpop.f32.mrb[61].mxu0 }
 0xa79   :  { %v5201_v49 = vpop.f32.mrb[62].mxu0 }
 0xa7a   :  { %v2994_v31 = vpop.f32.mrb[63].mxu0 }
 0xa96   :  { %v4878_v39 = vpop.f32.mrb[72].mxu1 }
 0xa97   :  { %v4879_v28 = vpop.f32.mrb[73].mxu1 }
 0xa98   :  { %v4880_v40 = vadd.f32 %v4879_v28, %v4878_v39  ;;  %v4881_v41 = vpop.f32.mrb[74].mxu1 }
 0xa99   :  { %v4882_v38 = vpop.f32.mrb[75].mxu1 }
 0xa9a   :  { %v4883_v42 = vadd.f32 %v4882_v38, %v4881_v41  ;;  %v2943_v43 = vadd.f32 %v4880_v40, %v5694_v59 }
 0xa9c   :  { %v2992_v56 = vadd.f32 %v2991_v32, %v2943_v43  ;;  %v2946_v58 = vadd.f32 %v4883_v42, %v5697_v3 }
 0xa9e   :  { %v2995_v19 = vadd.f32 %v2994_v31, %v2946_v58  ;;  %v4884_v29 = vpop.f32.mrb[76].mxu1  ;;  %v3034_v44 = vmul.f32 %v5704_v9, %v2992_v56  ;;  %v3006_v48 = vmul.f32 %v5699_v5, %v2992_v56 }
 0xa9f   :  { %v4885_v63 = vpop.f32.mrb[77].mxu1 }
 0xaa0   :  { %v4886_v50 = vadd.f32 %v4885_v63, %v4884_v29  ;;  %v4887_v52 = vpop.f32.mrb[78].mxu1  ;;  %v3038_v15 = vsel %vm38_vm0, %v3034_v44, 0.0  ;;  %v3010_v53 = vsel %vm38_vm0, %v3006_v48, 0.0  ;;  %v3007_v55 = vmul.f32 %v5699_v5, %v2995_v19 }
 0xaa1   :  { %v4888_v22 = vpop.f32.mrb[79].mxu1  ;;  %3039 = vadd.xlane.f32.xlu0 %v3038_v15  ;;  %3011 = vadd.xlane.f32.xlu1 %v3010_v53  ;;  %v3035_v59 = vmul.f32 %v5704_v9, %v2995_v19 }
 0xaa2   :  { %v2951_v3 = vadd.f32 %v4886_v50, %v5702_v8  ;;  %v4889_v47 = vadd.f32 %v4888_v22, %v4887_v52  ;;  %v3013_v62 = vsel %vm38_vm0, %v3007_v55, 0.0 }
 0xaa3   :  { %v3041_v45 = vsel %vm38_vm0, %v3035_v59, 0.0 }
 0xaa4   :  { %v3000_v60 = vadd.f32 %v5200_v30, %v2951_v3  ;;  %v2954_v61 = vadd.f32 %v4889_v47, %v5712_v23 }
 0xaa5   :  { %3014 = vadd.xlane.f32.xlu0 %v3013_v62  ;;  %3042 = vadd.xlane.f32.xlu1 %v3041_v45 }
 0xaa6   :  { %v3003_v51 = vadd.f32 %v5201_v49, %v2954_v61  ;;  %v3008_v0 = vmul.f32 %v5699_v5, %v3000_v60  ;;  %v3036_v4 = vmul.f32 %v5704_v9, %v3000_v60 }
 0xaa8   :  { %v3016_v1 = vsel %vm38_vm0, %v3008_v0, 0.0  ;;  %v3009_v2 = vmul.f32 %v5699_v5, %v3003_v51  ;;  %v3037_v23 = vmul.f32 %v5704_v9, %v3003_v51  ;;  %v3044_v54 = vsel %vm38_vm0, %v3036_v4, 0.0  ;;  %v5370_v4 = vld [vmem:[%s6581_s3] sm:$0xff]  }
 0xaa9   :  { %3017 = vadd.xlane.f32.xlu0 %v3016_v1  ;;  %5202 = vmatprep.subr.bf16.mxu0 %v5370_v4 }
 0xaaa   :  { %v3019_v8 = vsel %vm38_vm0, %v3009_v2, 0.0  ;;  %v3047_v7 = vsel %vm38_vm0, %v3037_v23, 0.0  ;;  %5203 = vmatpush3.bf16.msra.mxu0 %v5370_v4  ;;  %v5372_v23 = vld [vmem:[%s6581_s3 + $0x8] sm:$0xff]  }
 0xaab   :  { %3020 = vadd.xlane.f32.xlu1 %v3019_v8  ;;  %v5371_v8 = vld [vmem:[%s6581_s3 + $0x40] sm:$0xff]   ;;  %5204 = vmatprep.subr.bf16.mxu0 %v5372_v23  ;;  %v5381_v4 = vld [vmem:[%s6581_s3 + $0x88] sm:$0xff]  }
 0xaac   :  { %5234 = vmatprep.subr.bf16.mxu1 %v5371_v8 }
 0xaad   :  { %3045 = vadd.xlane.f32.xlu0 %v3044_v54  ;;  %5235 = vmatpush3.bf16.msra.mxu1 %v5371_v8  ;;  %v5373_v54 = vld [vmem:[%s6581_s3 + $0x48] sm:$0xff]   ;;  %v5382_v8 = vld [vmem:[%s6581_s3 + $0x30] sm:$0xff]  }
 0xaae   :  { %5236 = vmatprep.subr.bf16.mxu1 %v5373_v54  ;;  %5205 = vmatpush3.bf16.msra.mxu0 %v5372_v23  ;;  %v5383_v23 = vld [vmem:[%s6581_s3 + $0x38] sm:$0xff]  }
 0xaaf   :  { %3048 = vadd.xlane.f32.xlu1 %v3047_v7  ;;  %v6281_v7 = vld [vmem:[%s6581_s3 + $0x10] sm:$0xff]  }
 0xab0   :  { %5210 = vmatprep.subr.bf16.mxu0 %v6281_v7 }
 0xab1   :  { %5237 = vmatpush3.bf16.msra.mxu1 %v5373_v54  ;;  %v5384_v54 = vld [vmem:[%s6581_s3 + $0x50] sm:$0xff]  }
 0xb2e   :  { %v3040_v11 = vpop.xlane.xlu0 %3039  ;;  %v3012_v33 = vpop.xlane.xlu1 %3011 }
 0xb2f   :  { %v3050_v34 = vmul.f32 0.0625, %v3040_v11  ;;  %v3022_v35 = vmul.f32 0.0625, %v3012_v33  ;;  %v5375_v11 = vld [vmem:[%s6581_s3 + $0x60] sm:$0xff]  }
 0xb30   :  { %5250 = vmatprep.subr.bf16.mxu1 %v5375_v11 }
 0xb31   :  { %v3054_v13 = vmul.f32 %v5704_v9, %v3050_v34  ;;  %v3026_v6 = vmul.f32 %v5699_v5, %v3022_v35 }
 0xb32   :  { %v3015_v14 = vpop.xlane.xlu0 %3014  ;;  %v3043_v57 = vpop.xlane.xlu1 %3042 }
 0xb33   :  { %v3058_v16 = vadd.f32 %v3054_v13, %v3026_v6  ;;  %v3023_v17 = vmul.f32 0.0625, %v3015_v14  ;;  %v3051_v18 = vmul.f32 0.0625, %v3043_v57 }
 0xb35   :  { %v3027_v20 = vmul.f32 %v5699_v5, %v3023_v17  ;;  %v3055_v21 = vmul.f32 %v5704_v9, %v3051_v18  ;;  %v6230_v12 = vsub.f32 %v2992_v56, %v3058_v16 }
 0xb36   :  { %v3018_v25 = vpop.xlane.xlu0 %3017 }
 0xb37   :  { %v3059_v26 = vadd.f32 %v3055_v21, %v3027_v20  ;;  %v3066_v24 = vmul.f32 %v6230_v12, %v6230_v12  ;;  %v3024_v32 = vmul.f32 0.0625, %v3018_v25 }
 0xb38   :  { %v3021_v30 = vpop.xlane.xlu1 %3020 }
 0xb39   :  { %v3070_v49 = vmul.f32 %v5699_v5, %v3066_v24  ;;  %v6235_v39 = vsub.f32 %v2995_v19, %v3059_v26  ;;  %v3025_v28 = vmul.f32 0.0625, %v3021_v30  ;;  %v3098_v38 = vmul.f32 %v5704_v9, %v3066_v24 }
 0xb3a   :  { %v3046_v31 = vpop.xlane.xlu0 %3045  ;;  %v3028_v56 = vmul.f32 %v5699_v5, %v3024_v32 }
 0xb3b   :  { %v3052_v40 = vmul.f32 0.0625, %v3046_v31  ;;  %v3074_v41 = vsel %vm38_vm0, %v3070_v49, 0.0  ;;  %v3067_v43 = vmul.f32 %v6235_v39, %v6235_v39  ;;  %v3029_v19 = vmul.f32 %v5699_v5, %v3025_v28 }
 0xb3c   :  { %3075 = vadd.xlane.f32.xlu0 %v3074_v41  ;;  %v3049_v42 = vpop.xlane.xlu1 %3048  ;;  %v3102_v50 = vsel %vm38_vm0, %v3098_v38, 0.0 }
 0xb3d   :  { %v3056_v58 = vmul.f32 %v5704_v9, %v3052_v40  ;;  %v3053_v29 = vmul.f32 0.0625, %v3049_v42  ;;  %v3071_v44 = vmul.f32 %v5699_v5, %v3067_v43  ;;  %v3099_v15 = vmul.f32 %v5704_v9, %v3067_v43 }
 0xb3f   :  { %v3060_v48 = vadd.f32 %v3056_v58, %v3028_v56  ;;  %v3057_v63 = vmul.f32 %v5704_v9, %v3053_v29  ;;  %v3077_v52 = vsel %vm38_vm0, %v3071_v44, 0.0  ;;  %v3105_v3 = vsel %vm38_vm0, %v3099_v15, 0.0 }
 0xb40   :  { %3103 = vadd.xlane.f32.xlu0 %v3102_v50  ;;  %3078 = vadd.xlane.f32.xlu1 %v3077_v52 }
 0xb41   :  { %v3061_v53 = vadd.f32 %v3057_v63, %v3029_v19  ;;  %v6249_v55 = vsub.f32 %v3000_v60, %v3060_v48 }
 0xb43   :  { %v3068_v22 = vmul.f32 %v6249_v55, %v6249_v55  ;;  %v6253_v59 = vsub.f32 %v3003_v51, %v3061_v53 }
 0xb44   :  { %3106 = vadd.xlane.f32.xlu1 %v3105_v3 }
 0xb45   :  { %v3072_v47 = vmul.f32 %v5699_v5, %v3068_v22  ;;  %v3069_v61 = vmul.f32 %v6253_v59, %v6253_v59  ;;  %v3100_v60 = vmul.f32 %v5704_v9, %v3068_v22 }
 0xb47   :  { %v3080_v62 = vsel %vm38_vm0, %v3072_v47, 0.0  ;;  %v3073_v45 = vmul.f32 %v5699_v5, %v3069_v61  ;;  %v3101_v51 = vmul.f32 %v5704_v9, %v3069_v61  ;;  %v3108_v1 = vsel %vm38_vm0, %v3100_v60, 0.0 }
 0xb48   :  { %3081 = vadd.xlane.f32.xlu0 %v3080_v62 }
 0xb49   :  { %v3083_v0 = vsel %vm38_vm0, %v3073_v45, 0.0  ;;  %v3111_v2 = vsel %vm38_vm0, %v3101_v51, 0.0 }
 0xb4a   :  { %3084 = vadd.xlane.f32.xlu1 %v3083_v0 }
 0xb4c   :  { %3109 = vadd.xlane.f32.xlu0 %v3108_v1  ;;  %v5377_v1 = vld [vmem:[%s6581_s3 + $0x68] sm:$0xff]  }
 0xb4e   :  { %3112 = vadd.xlane.f32.xlu1 %v3111_v2  ;;  %v5380_v2 = vld [vmem:[%s6581_s3 + $0x28] sm:$0xff]  }
 0xbc9   :  { %v3076_v33 = vpop.xlane.xlu0 %3075 }
 0xbca   :  { %v3086_v34 = vmul.f32 0.0625, %v3076_v33  ;;  %v5387_v33 = vld [vmem:[%s6581_s3 + $0x78] sm:$0xff]  }
 0xbcc   :  { %v3090_v14 = vmul.f32 %v5699_v5, %v3086_v34  ;;  %v5390_v34 = vld [vmem:[%s6585_s2 + $0x4] ss:$12 sps:$4 sm:$0xff]  }
 0xbcd   :  { %v3104_v35 = vpop.xlane.xlu0 %3103  ;;  %v3079_v6 = vpop.xlane.xlu1 %3078 }
 0xbce   :  { %v3114_v13 = vmul.f32 0.0625, %v3104_v35  ;;  %v3087_v16 = vmul.f32 0.0625, %v3079_v6  ;;  %v5391_v35 = vld [vmem:[%s6585_s2 + $0x8] ss:$12 sps:$4 sm:$0xff]  }
 0xbd0   :  { %v3118_v57 = vmul.f32 %v5704_v9, %v3114_v13  ;;  %v3091_v25 = vmul.f32 %v5699_v5, %v3087_v16 }
 0xbd1   :  { %v3107_v18 = vpop.xlane.xlu1 %3106 }
 0xbd2   :  { %v3122_v17 = vadd.f32 %v3118_v57, %v3090_v14  ;;  %v3115_v20 = vmul.f32 0.0625, %v3107_v18 }
 0xbd4   :  { %v3126_v21 = vadd.f32 1e-05, %v3122_v17  ;;  %v3119_v26 = vmul.f32 %v5704_v9, %v3115_v20 }
 0xbd5   :  { %v3082_v24 = vpop.xlane.xlu0 %3081 }
 0xbd6   :  { %5444 = vrsqrt.f32 %v3126_v21  ;;  %v3123_v30 = vadd.f32 %v3119_v26, %v3091_v25  ;;  %v3088_v49 = vmul.f32 0.0625, %v3082_v24 }
 0xbd7   :  { %v3085_v32 = vpop.xlane.xlu1 %3084 }
 0xbd8   :  { %v3127_v31 = vadd.f32 1e-05, %v3123_v30  ;;  %v3089_v40 = vmul.f32 0.0625, %v3085_v32  ;;  %v3092_v42 = vmul.f32 %v5699_v5, %v3088_v49 }
 0xbd9   :  { %v3110_v28 = vpop.xlane.xlu0 %3109 }
 0xbda   :  { %v3116_v41 = vmul.f32 0.0625, %v3110_v28  ;;  %5446 = vrsqrt.f32 %v3127_v31  ;;  %v3093_v58 = vmul.f32 %v5699_v5, %v3089_v40 }
 0xbdb   :  { %v3113_v38 = vpop.xlane.xlu1 %3112 }
 0xbdc   :  { %v3120_v43 = vmul.f32 %v5704_v9, %v3116_v41  ;;  %v3117_v56 = vmul.f32 0.0625, %v3113_v38 }
 0xbde   :  { %v3124_v29 = vadd.f32 %v3120_v43, %v3092_v42  ;;  %v3121_v44 = vmul.f32 %v5704_v9, %v3117_v56 }
 0xbe0   :  { %v3128_v19 = vadd.f32 1e-05, %v3124_v29  ;;  %v3125_v48 = vadd.f32 %v3121_v44, %v3093_v58  ;;  %v5445_v63 = vpop.eup %5444 }
 0xbe1   :  { %v3134_v52 = vmul.f32 %v5445_v63, %v6230_v12 }
 0xbe2   :  { %5448 = vrsqrt.f32 %v3128_v19  ;;  %v3129_v50 = vadd.f32 1e-05, %v3125_v48 }
 0xbe3   :  { %v3138_v22 = vmax.f32 %v3134_v52, 0.0 }
 0xbe4   :  { %5450 = vrsqrt.f32 %v3129_v50  ;;  %v5447_v15 = vpop.eup %5446 }
 0xbe5   :  { %v3135_v53 = vmul.f32 %v5447_v15, %v6235_v39  ;;  %v5376_v39 = vld [vmem:[%s6581_s3 + $0x18] sm:$0xff]  }
 0xbe7   :  { %v3139_v3 = vmax.f32 %v3135_v53, 0.0 }
 0xbe9   :  { %v3142_v47 = vpack.c.bf16 %v3139_v3, %v3138_v22 }
 0xbeb   :  { %5206 = vmatprep.mubr.msk.bf16.mxu0 %vm38_vm0, %v3142_v47  ;;  %5238 = vmatprep.mubr.msk.bf16.mxu1 %vm38_vm0, %v3142_v47 }
 0xbec   :  { %v5449_v61 = vpop.eup %5448 }
 0xbed   :  { %v3136_v62 = vmul.f32 %v5449_v61, %v6249_v55  ;;  %v5378_v55 = vld [vmem:[%s6581_s3 + $0x20] sm:$0xff]  }
 0xbee   :  { %v5451_v45 = vpop.eup %5450 }
 0xbef   :  { %v3137_v60 = vmul.f32 %v5451_v45, %v6253_v59  ;;  %v3140_v0 = vmax.f32 %v3136_v62, 0.0  ;;  %v5379_v59 = vld [vmem:[%s6581_s3 + $0x80] sm:$0xff]  }
 0xbf1   :  { %v3141_v51 = vmax.f32 %v3137_v60, 0.0 }
 0xbf3   :  { %v3143_v12 = vpack.c.bf16 %v3141_v51, %v3140_v0 }
 0xbf5   :  { %5207 = vmatmul.mubr.msk.bf16.vlgmr.msra.gmra.mrb[64].mxu0 %vm38_vm0, %v3143_v12  ;;  %5239 = vmatmul.mubr.msk.bf16.vlgmr.msra.gmra.mrb[80].mxu1 %vm38_vm0, %v3143_v12 }
 0xbf6   :  { %5211 = vmatpush3.bf16.msra.mxu0 %v6281_v7  ;;  %5214 = vmatprep.mubr.msk.bf16.mxu0 %vm38_vm0, %v3142_v47  ;;  %v5385_v7 = vld [vmem:[%s6581_s3 + $0x58] sm:$0xff]  }
 0xbf7   :  { %5251 = vmatpush3.bf16.msra.mxu1 %v5375_v11  ;;  %5254 = vmatprep.mubr.msk.bf16.mxu1 %vm38_vm0, %v3142_v47  ;;  %v5386_v11 = vld [vmem:[%s6581_s3 + $0x70] sm:$0xff]  }
 0xbf8   :  { %5212 = vmatprep.subr.bf16.mxu0 %v5376_v39  ;;  %5252 = vmatprep.subr.bf16.mxu1 %v5377_v1 }
 0xbfa   :  { %5213 = vmatpush3.bf16.msra.mxu0 %v5376_v39 }
 0xbfb   :  { %5253 = vmatpush3.bf16.msra.mxu1 %v5377_v1  ;;  %5218 = vmatprep.subr.bf16.mxu0 %v5378_v55 }
 0xbfc   :  { %5266 = vmatprep.subr.bf16.mxu1 %v5379_v59 }
 0xbfd   :  { %5215 = vmatmul.mubr.msk.bf16.vlgmr.msra.gmra.mrb[68].mxu0 %vm38_vm0, %v3143_v12 }
 0xbfe   :  { %5219 = vmatpush3.bf16.msra.mxu0 %v5378_v55  ;;  %5255 = vmatmul.mubr.msk.bf16.vlgmr.msra.gmra.mrb[84].mxu1 %vm38_vm0, %v3143_v12 }
 0xbff   :  { %5222 = vmatprep.mubr.msk.bf16.mxu0 %vm38_vm0, %v3142_v47  ;;  %5267 = vmatpush3.bf16.msra.mxu1 %v5379_v59 }
 0xc00   :  { %5270 = vmatprep.mubr.msk.bf16.mxu1 %vm38_vm0, %v3142_v47  ;;  %5220 = vmatprep.subr.bf16.mxu0 %v5380_v2 }
 0xc01   :  { %5268 = vmatprep.subr.bf16.mxu1 %v5381_v4 }
 0xc02   :  { %5221 = vmatpush3.bf16.msra.mxu0 %v5380_v2 }
 0xc03   :  { %5269 = vmatpush3.bf16.msra.mxu1 %v5381_v4  ;;  %5226 = vmatprep.subr.bf16.mxu0 %v5382_v8 }
 0xc05   :  { %5223 = vmatmul.mubr.msk.bf16.vlgmr.msra.gmra.mrb[72].mxu0 %vm38_vm0, %v3143_v12 }
 0xc06   :  { %5227 = vmatpush3.bf16.msra.mxu0 %v5382_v8  ;;  %5271 = vmatmul.mubr.msk.bf16.vlgmr.msra.gmra.mrb[88].mxu1 %vm38_vm0, %v3143_v12 }
 0xc07   :  { %5230 = vmatprep.mubr.msk.bf16.mxu0 %vm38_vm0, %v3142_v47  ;;  %5228 = vmatprep.subr.bf16.mxu0 %v5383_v23 }
 0xc08   :  { %5278 = vmatprep.mubr.msk.bf16.mxu1 %vm38_vm0, %v5391_v35 }
 0xc0a   :  { %5229 = vmatpush3.bf16.msra.mxu0 %v5383_v23 }
 0xc0b   :  { %5242 = vmatprep.subr.bf16.mxu0 %v5384_v54 }
 0xc0d   :  { %5231 = vmatmul.mubr.msk.bf16.vlgmr.msra.gmra.mrb[76].mxu0 %vm38_vm0, %v3143_v12 }
 0xc0e   :  { %5243 = vmatpush3.bf16.msra.mxu0 %v5384_v54  ;;  %5246 = vmatprep.mubr.msk.bf16.mxu0 %vm38_vm0, %v3142_v47 }
 0xc0f   :  { %5244 = vmatprep.subr.bf16.mxu0 %v5385_v7 }
 0xc12   :  { %5245 = vmatpush3.bf16.msra.mxu0 %v5385_v7 }
 0xc13   :  { %5258 = vmatprep.subr.bf16.mxu0 %v5386_v11 }
 0xc15   :  { %5247 = vmatmul.mubr.msk.bf16.vlgmr.msra.gmra.mrb[80].mxu0 %vm38_vm0, %v3143_v12 }
 0xc16   :  { %5259 = vmatpush3.bf16.msra.mxu0 %v5386_v11  ;;  %5262 = vmatprep.mubr.msk.bf16.mxu0 %vm38_vm0, %v3142_v47  ;;  %v5392_v11 = vld [vmem:[%s6585_s2 + $0x20] ss:$12 sps:$4 sm:$0xff]  }
 0xc17   :  { %5260 = vmatprep.subr.bf16.mxu0 %v5387_v33 }
 0xc1a   :  { %5261 = vmatpush3.bf16.msra.mxu0 %v5387_v33 }
 0xc1d   :  { %5263 = vmatmul.mubr.msk.bf16.vlgmr.msra.gmra.mrb[84].mxu0 %vm38_vm0, %v3143_v12 }
 0xc1e   :  { %3865 = vmatprep.mubr.bf16.mxu0 %v5390_v34 }
 0xcc8   :  { %v5208_v13 = vpop.f32.mrb[64].mxu0  ;;  %v5240_v6 = vpop.f32.mrb[80].mxu1 }
 0xcc9   :  { %v3200_v14 = vpop.f32.mrb[65].mxu0  ;;  %v3476_v57 = vpop.f32.mrb[81].mxu1 }
 0xcca   :  { %v5209_v16 = vpop.f32.mrb[66].mxu0  ;;  %v5241_v17 = vpop.f32.mrb[82].mxu1 }
 0xccb   :  { %v3216_v18 = vpack.c.bf16 %v5209_v16, %v5208_v13  ;;  %v3492_v20 = vpack.c.bf16 %v5241_v17, %v5240_v6  ;;  %v3203_v21 = vpop.f32.mrb[67].mxu0  ;;  %v3479_v25 = vpop.f32.mrb[83].mxu1 }
 0xccc   :  { %v3215_v26 = vpack.c.bf16 %v3203_v21, %v3200_v14  ;;  %v3491_v24 = vpack.c.bf16 %v3479_v25, %v3476_v57 }
 0xccd   :  { %3218 = vst.msk [vmem:[#allocation3 + $0x8] sm:$0xff] %vm38_vm0, %v3216_v18  ;;  %3494 = vst.msk [vmem:[#allocation3 + $0x48] sm:$0xff] %vm38_vm0, %v3492_v20 }
 0xcce   :  { %3217 = vst.msk [vmem:[#allocation3] sm:$0xff] %vm38_vm0, %v3215_v26  ;;  %3493 = vst.msk [vmem:[#allocation3 + $0x40] sm:$0xff] %vm38_vm0, %v3491_v24 }
 0xcd0   :  { %v5216_v30 = vpop.f32.mrb[68].mxu0 }
 0xcd1   :  { %v5256_v32 = vpop.f32.mrb[84].mxu1  ;;  %v3269_v49 = vpop.f32.mrb[69].mxu0 }
 0xcd2   :  { %v3614_v31 = vpop.f32.mrb[85].mxu1  ;;  %v5217_v28 = vpop.f32.mrb[70].mxu0 }
 0xcd3   :  { %v3285_v40 = vpack.c.bf16 %v5217_v28, %v5216_v30  ;;  %v5257_v41 = vpop.f32.mrb[86].mxu1  ;;  %v3272_v38 = vpop.f32.mrb[71].mxu0  ;;  %v5388_v28 = vld [vmem:[%s6585_s2] ss:$12 sps:$4 sm:$0xff]  }
 0xcd4   :  { %v3630_v42 = vpack.c.bf16 %v5257_v41, %v5256_v32  ;;  %v3284_v43 = vpack.c.bf16 %v3272_v38, %v3269_v49  ;;  %v3617_v56 = vpop.f32.mrb[87].mxu1  ;;  %v3788_v19 = vld [vmem:[#allocation3 + $0x48] sm:$0xff]  ;;  %v5395_v41 = vld [vmem:[%s6585_s2 + $0x18] ss:$12 sps:$4 sm:$0xff]  }
 0xcd5   :  { %3287 = vst.msk [vmem:[#allocation3 + $0x18] sm:$0xff] %vm38_vm0, %v3285_v40  ;;  %v3629_v58 = vpack.c.bf16 %v3617_v56, %v3614_v31  ;;  %v3787_v29 = vld [vmem:[#allocation3 + $0x40] sm:$0xff]  ;;  %v3780_v53 = vld [vmem:[#allocation3 + $0x8] sm:$0xff] }
 0xcd6   :  { %v3779_v44 = vld [vmem:[#allocation3] sm:$0xff]  ;;  %3632 = vst.msk [vmem:[#allocation3 + $0x68] sm:$0xff] %vm38_vm0, %v3630_v42  ;;  %3286 = vst.msk [vmem:[#allocation3 + $0x10] sm:$0xff] %vm38_vm0, %v3284_v43  ;;  %4930 = vmatprep.subr.bf16.mxu0 %v3787_v29  ;;  %v5393_v40 = vld [vmem:[%s6585_s2 + $0x1c] ss:$12 sps:$4 sm:$0xff]  }
 0xcd7   :  { %3631 = vst.msk [vmem:[#allocation3 + $0x60] sm:$0xff] %vm38_vm0, %v3629_v58  ;;  %4931 = vmatpush3.bf16.msra.mxu0 %v3779_v44 }
 0xcd8   :  { %v5224_v48 = vpop.f32.mrb[72].mxu0  ;;  %4932 = vmatprep.subr.bf16.mxu0 %v3788_v19 }
 0xcd9   :  { %v5272_v63 = vpop.f32.mrb[88].mxu1  ;;  %v3338_v50 = vpop.f32.mrb[73].mxu0 }
 0xcda   :  { %v3752_v52 = vpop.f32.mrb[89].mxu1  ;;  %v5225_v15 = vpop.f32.mrb[74].mxu0 }
 0xcdb   :  { %v3354_v22 = vpack.c.bf16 %v5225_v15, %v5224_v48  ;;  %v5273_v3 = vpop.f32.mrb[90].mxu1  ;;  %v3341_v47 = vpop.f32.mrb[75].mxu0  ;;  %4933 = vmatpush3.bf16.msra.mxu0 %v3780_v53 }
 0xcdc   :  { %v3768_v61 = vpack.c.bf16 %v5273_v3, %v5272_v63  ;;  %v3353_v62 = vpack.c.bf16 %v3341_v47, %v3338_v50  ;;  %v3755_v45 = vpop.f32.mrb[91].mxu1  ;;  %v3782_v20 = vld [vmem:[#allocation3 + $0x18] sm:$0xff] }
 0xcdd   :  { %3356 = vst.msk [vmem:[#allocation3 + $0x28] sm:$0xff] %vm38_vm0, %v3354_v22  ;;  %v3767_v60 = vpack.c.bf16 %v3755_v45, %v3752_v52  ;;  %v3781_v17 = vld [vmem:[#allocation3 + $0x10] sm:$0xff]  ;;  %v3792_v26 = vld [vmem:[#allocation3 + $0x68] sm:$0xff] }
 0xcde   :  { %3770 = vst.msk [vmem:[#allocation3 + $0x88] sm:$0xff] %vm38_vm0, %v3768_v61  ;;  %3355 = vst.msk [vmem:[#allocation3 + $0x20] sm:$0xff] %vm38_vm0, %v3353_v62  ;;  %v3791_v21 = vld [vmem:[#allocation3 + $0x60] sm:$0xff] }
 0xcdf   :  { %3769 = vst.msk [vmem:[#allocation3 + $0x80] sm:$0xff] %vm38_vm0, %v3767_v60 }
 0xce0   :  { %v5232_v0 = vpop.f32.mrb[76].mxu0 }
 0xce1   :  { %v3407_v51 = vpop.f32.mrb[77].mxu0 }
 0xce2   :  { %v5233_v12 = vpop.f32.mrb[78].mxu0 }
 0xce3   :  { %v3423_v39 = vpack.c.bf16 %v5233_v12, %v5232_v0  ;;  %v3410_v1 = vpop.f32.mrb[79].mxu0 }
 0xce4   :  { %v3422_v55 = vpack.c.bf16 %v3410_v1, %v3407_v51  ;;  %v3784_v24 = vld [vmem:[#allocation3 + $0x28] sm:$0xff] }
 0xce5   :  { %3425 = vst.msk [vmem:[#allocation3 + $0x38] sm:$0xff] %vm38_vm0, %v3423_v39  ;;  %v3796_v4 = vld [vmem:[#allocation3 + $0x88] sm:$0xff]  ;;  %v3783_v25 = vld [vmem:[#allocation3 + $0x20] sm:$0xff] }
 0xce6   :  { %3424 = vst.msk [vmem:[#allocation3 + $0x30] sm:$0xff] %vm38_vm0, %v3422_v55  ;;  %v3795_v59 = vld [vmem:[#allocation3 + $0x80] sm:$0xff] }
 0xce7   :  { %5274 = vmatprep.subr.bf16.mxu1 %v3795_v59 }
 0xce8   :  { %5275 = vmatpush3.bf16.msra.mxu1 %v3795_v59  ;;  %v5248_v2 = vpop.f32.mrb[80].mxu0 }
 0xce9   :  { %5276 = vmatprep.subr.bf16.mxu1 %v3796_v4  ;;  %v3545_v8 = vpop.f32.mrb[81].mxu0 }
 0xcea   :  { %v5249_v23 = vpop.f32.mrb[82].mxu0 }
 0xceb   :  { %v3561_v54 = vpack.c.bf16 %v5249_v23, %v5248_v2  ;;  %v3548_v7 = vpop.f32.mrb[83].mxu0 }
 0xcec   :  { %v3560_v33 = vpack.c.bf16 %v3548_v7, %v3545_v8  ;;  %5277 = vmatpush3.bf16.msra.mxu1 %v3796_v4  ;;  %v3786_v31 = vld [vmem:[#allocation3 + $0x38] sm:$0xff] }
 0xced   :  { %3563 = vst.msk [vmem:[#allocation3 + $0x58] sm:$0xff] %vm38_vm0, %v3561_v54  ;;  %v3785_v32 = vld [vmem:[#allocation3 + $0x30] sm:$0xff] }
 0xcee   :  { %3562 = vst.msk [vmem:[#allocation3 + $0x50] sm:$0xff] %vm38_vm0, %v3560_v33 }
 0xcef   :  { %5279 = vmatmul.mubr.msk.bf16.vlgmr.msra.gmra.mrb[92].mxu1 %vm38_vm0, %v5392_v11 }
 0xcf0   :  { %v5264_v34 = vpop.f32.mrb[84].mxu0 }
 0xcf1   :  { %v3683_v35 = vpop.f32.mrb[85].mxu0 }
 0xcf2   :  { %v5265_v13 = vpop.f32.mrb[86].mxu0 }
 0xcf3   :  { %v3699_v6 = vpack.c.bf16 %v5265_v13, %v5264_v34  ;;  %v3686_v14 = vpop.f32.mrb[87].mxu0 }
 0xcf4   :  { %v3698_v57 = vpack.c.bf16 %v3686_v14, %v3683_v35  ;;  %v3790_v18 = vld [vmem:[#allocation3 + $0x58] sm:$0xff] }
 0xcf5   :  { %3701 = vst.msk [vmem:[#allocation3 + $0x78] sm:$0xff] %vm38_vm0, %v3699_v6  ;;  %v3789_v16 = vld [vmem:[#allocation3 + $0x50] sm:$0xff] }
 0xcf6   :  { %3700 = vst.msk [vmem:[#allocation3 + $0x70] sm:$0xff] %vm38_vm0, %v3698_v57  ;;  %4934 = vmatprep.subr.bf16.mxu0 %v3789_v16 }
 0xcf7   :  { %4935 = vmatpush3.bf16.msra.mxu0 %v3781_v17 }
 0xcf8   :  { %4936 = vmatprep.subr.bf16.mxu0 %v3790_v18 }
 0xcfb   :  { %4937 = vmatpush3.bf16.msra.mxu0 %v3782_v20 }
 0xcfc   :  { %4938 = vmatprep.subr.bf16.mxu0 %v3791_v21  ;;  %v3794_v49 = vld [vmem:[#allocation3 + $0x78] sm:$0xff] }
 0xcfd   :  { %v3793_v30 = vld [vmem:[#allocation3 + $0x70] sm:$0xff] }
 0xcff   :  { %4939 = vmatpush3.bf16.msra.mxu0 %v3783_v25 }
 0xd00   :  { %4940 = vmatprep.subr.bf16.mxu0 %v3792_v26 }
 0xd03   :  { %4941 = vmatpush3.bf16.msra.mxu0 %v3784_v24 }
 0xd04   :  { %4942 = vmatprep.subr.bf16.mxu0 %v3793_v30 }
 0xd07   :  { %4943 = vmatpush3.bf16.msra.mxu0 %v3785_v32 }
 0xd08   :  { %4944 = vmatprep.subr.bf16.mxu0 %v3794_v49 }
 0xd0b   :  { %4945 = vmatpush3.bf16.msra.mxu0 %v3786_v31 }
 0xd0e   :  { %3866 = vmatmul.mubr.bf16.vlgmr.msra.gmra.mrb[88].mxu0 %v5388_v28 }
 0xd0f   :  { %3873 = vmatprep.mubr.bf16.mxu0 %v5393_v40 }
 0xd16   :  { %3874 = vmatmul.mubr.bf16.gmra.mrb[92].mxu0 %v5395_v41 }
 0xdc2   :  { %v5280_v38 = vpop.f32.mrb[92].mxu1 }
 0xdc3   :  { %v3916_v42 = vpop.f32.mrb[93].mxu1 }
 0xdc4   :  { %v5281_v43 = vpop.f32.mrb[94].mxu1 }
 0xdc5   :  { %v3919_v56 = vpop.f32.mrb[95].mxu1 }
 0xde1   :  { %v4946_v58 = vpop.f32.mrb[88].mxu0 }
 0xde2   :  { %v4947_v29 = vpop.f32.mrb[89].mxu0 }
 0xde3   :  { %v4948_v44 = vadd.f32 %v4947_v29, %v4946_v58  ;;  %v4949_v19 = vpop.f32.mrb[90].mxu0 }
 0xde4   :  { %v4950_v48 = vpop.f32.mrb[91].mxu0 }
 0xde5   :  { %v3868_v63 = vadd.f32 %v4948_v44, %v5892_v10  ;;  %v4951_v50 = vadd.f32 %v4950_v48, %v4949_v19 }
 0xde7   :  { %v3917_v52 = vadd.f32 %v3916_v42, %v3868_v63  ;;  %v3871_v15 = vadd.f32 %v4951_v50, %v5894_v27 }
 0xde9   :  { %v3920_v53 = vadd.f32 %v3919_v56, %v3871_v15  ;;  %v4952_v22 = vpop.f32.mrb[92].mxu0  ;;  %v3931_v3 = vmul.f32 %v5699_v5, %v3917_v52  ;;  %v3959_v0 = vmul.f32 %v5704_v9, %v3917_v52 }
 0xdea   :  { %v4953_v47 = vpop.f32.mrb[93].mxu0 }
 0xdeb   :  { %v4954_v61 = vadd.f32 %v4953_v47, %v4952_v22  ;;  %v4955_v62 = vpop.f32.mrb[94].mxu0  ;;  %v3935_v45 = vsel %vm38_vm0, %v3931_v3, 0.0  ;;  %v3932_v60 = vmul.f32 %v5699_v5, %v3920_v53  ;;  %v3960_v39 = vmul.f32 %v5704_v9, %v3920_v53 }
 0xdec   :  { %v4956_v51 = vpop.f32.mrb[95].mxu0  ;;  %3936 = vadd.xlane.f32.xlu0 %v3935_v45  ;;  %v3963_v59 = vsel %vm38_vm0, %v3959_v0, 0.0 }
 0xded   :  { %v3876_v10 = vadd.f32 %v4954_v61, %v5898_v37  ;;  %v4957_v12 = vadd.f32 %v4956_v51, %v4955_v62  ;;  %v3938_v27 = vsel %vm38_vm0, %v3932_v60, 0.0  ;;  %v3966_v4 = vsel %vm38_vm0, %v3960_v39, 0.0 }
 0xdee   :  { %3939 = vadd.xlane.f32.xlu1 %v3938_v27 }
 0xdef   :  { %v3925_v1 = vadd.f32 %v5280_v38, %v3876_v10  ;;  %v3879_v55 = vadd.f32 %v4957_v12, %v5906_v46 }
 0xdf0   :  { %3964 = vadd.xlane.f32.xlu0 %v3963_v59 }
 0xdf1   :  { %v3928_v2 = vadd.f32 %v5281_v43, %v3879_v55  ;;  %v3933_v8 = vmul.f32 %v5699_v5, %v3925_v1  ;;  %v3961_v23 = vmul.f32 %v5704_v9, %v3925_v1 }
 0xdf2   :  { %3967 = vadd.xlane.f32.xlu1 %v3966_v4 }
 0xdf3   :  { %v3941_v37 = vsel %vm38_vm0, %v3933_v8, 0.0  ;;  %v3934_v54 = vmul.f32 %v5699_v5, %v3928_v2  ;;  %v3969_v7 = vsel %vm38_vm0, %v3961_v23, 0.0  ;;  %v3962_v46 = vmul.f32 %v5704_v9, %v3928_v2 }
 0xdf4   :  { %3942 = vadd.xlane.f32.xlu0 %v3941_v37 }
 0xdf5   :  { %v3944_v11 = vsel %vm38_vm0, %v3934_v54, 0.0  ;;  %v3972_v33 = vsel %vm38_vm0, %v3962_v46, 0.0 }
 0xdf6   :  { %3970 = vadd.xlane.f32.xlu1 %v3969_v7 }
 0xdf8   :  { %3945 = vadd.xlane.f32.xlu0 %v3944_v11 }
 0xdfa   :  { %3973 = vadd.xlane.f32.xlu1 %v3972_v33 }
 0xe79   :  { %v3937_v34 = vpop.xlane.xlu0 %3936 }
 0xe7a   :  { %v3947_v13 = vmul.f32 0.0625, %v3937_v34 }
 0xe7b   :  { %v3940_v35 = vpop.xlane.xlu1 %3939 }
 0xe7c   :  { %v3948_v14 = vmul.f32 0.0625, %v3940_v35  ;;  %v3951_v17 = vmul.f32 %v5699_v5, %v3947_v13 }
 0xe7d   :  { %v3965_v6 = vpop.xlane.xlu0 %3964 }
 0xe7e   :  { %v3975_v57 = vmul.f32 0.0625, %v3965_v6  ;;  %v3952_v25 = vmul.f32 %v5699_v5, %v3948_v14 }
 0xe7f   :  { %v3968_v16 = vpop.xlane.xlu1 %3967 }
 0xe80   :  { %v3979_v18 = vmul.f32 %v5704_v9, %v3975_v57  ;;  %v3976_v20 = vmul.f32 0.0625, %v3968_v16 }
 0xe81   :  { %v3943_v21 = vpop.xlane.xlu0 %3942 }
 0xe82   :  { %v3983_v26 = vadd.f32 %v3979_v18, %v3951_v17  ;;  %v3980_v24 = vmul.f32 %v5704_v9, %v3976_v20  ;;  %v3949_v30 = vmul.f32 0.0625, %v3943_v21 }
 0xe83   :  { %v3971_v32 = vpop.xlane.xlu1 %3970 }
 0xe84   :  { %v3984_v49 = vadd.f32 %v3980_v24, %v3952_v25  ;;  %v3977_v31 = vmul.f32 0.0625, %v3971_v32  ;;  %v6416_v28 = vsub.f32 %v3917_v52, %v3983_v26  ;;  %v3953_v40 = vmul.f32 %v5699_v5, %v3949_v30 }
 0xe85   :  { %v3946_v41 = vpop.xlane.xlu0 %3945 }
 0xe86   :  { %v6419_v38 = vsub.f32 %v3920_v53, %v3984_v49  ;;  %v3981_v42 = vmul.f32 %v5704_v9, %v3977_v31  ;;  %v3950_v43 = vmul.f32 0.0625, %v3946_v41  ;;  %v3991_v56 = vmul.f32 %v6416_v28, %v6416_v28 }
 0xe87   :  { %v3974_v58 = vpop.xlane.xlu1 %3973 }
 0xe88   :  { %v3985_v29 = vadd.f32 %v3981_v42, %v3953_v40  ;;  %v3978_v44 = vmul.f32 0.0625, %v3974_v58  ;;  %v3995_v19 = vmul.f32 %v5699_v5, %v3991_v56  ;;  %v3954_v48 = vmul.f32 %v5699_v5, %v3950_v43 }
 0xe89   :  { %v3992_v63 = vmul.f32 %v6419_v38, %v6419_v38  ;;  %v4023_v15 = vmul.f32 %v5704_v9, %v3991_v56 }
 0xe8a   :  { %v3982_v50 = vmul.f32 %v5704_v9, %v3978_v44  ;;  %v3999_v52 = vsel %vm38_vm0, %v3995_v19, 0.0  ;;  %v6431_v53 = vsub.f32 %v3925_v1, %v3985_v29 }
 0xe8b   :  { %4000 = vadd.xlane.f32.xlu0 %v3999_v52  ;;  %v3996_v22 = vmul.f32 %v5699_v5, %v3992_v63  ;;  %v4024_v62 = vmul.f32 %v5704_v9, %v3992_v63  ;;  %v4027_v45 = vsel %vm38_vm0, %v4023_v15, 0.0 }
 0xe8c   :  { %v3986_v3 = vadd.f32 %v3982_v50, %v3954_v48  ;;  %v3993_v47 = vmul.f32 %v6431_v53, %v6431_v53 }
 0xe8d   :  { %v4002_v61 = vsel %vm38_vm0, %v3996_v22, 0.0  ;;  %v4030_v10 = vsel %vm38_vm0, %v4024_v62, 0.0 }
 0xe8e   :  { %4003 = vadd.xlane.f32.xlu1 %v4002_v61  ;;  %v3997_v60 = vmul.f32 %v5699_v5, %v3993_v47  ;;  %v6440_v0 = vsub.f32 %v3928_v2, %v3986_v3  ;;  %v4025_v12 = vmul.f32 %v5704_v9, %v3993_v47 }
 0xe8f   :  { %4028 = vadd.xlane.f32.xlu0 %v4027_v45 }
 0xe90   :  { %v3994_v51 = vmul.f32 %v6440_v0, %v6440_v0  ;;  %v4005_v27 = vsel %vm38_vm0, %v3997_v60, 0.0  ;;  %v4033_v1 = vsel %vm38_vm0, %v4025_v12, 0.0 }
 0xe92   :  { %4031 = vadd.xlane.f32.xlu1 %v4030_v10  ;;  %v3998_v39 = vmul.f32 %v5699_v5, %v3994_v51  ;;  %v4026_v55 = vmul.f32 %v5704_v9, %v3994_v51 }
 0xe93   :  { %4006 = vadd.xlane.f32.xlu0 %v4005_v27 }
 0xe94   :  { %v4008_v59 = vsel %vm38_vm0, %v3998_v39, 0.0  ;;  %v4036_v2 = vsel %vm38_vm0, %v4026_v55, 0.0  ;;  %v4084_v55 = vld [vmem:[%s6586_s5 + $0x8] sm:$0xff] }
 0xe96   :  { %4034 = vadd.xlane.f32.xlu1 %v4033_v1 }
 0xe97   :  { %4009 = vadd.xlane.f32.xlu0 %v4008_v59 }
 0xe9a   :  { %4037 = vadd.xlane.f32.xlu1 %v4036_v2 }
 0xf18   :  { %v4001_v4 = vpop.xlane.xlu0 %4000 }
 0xf19   :  { %v4011_v8 = vmul.f32 0.0625, %v4001_v4 }
 0xf1b   :  { %v4004_v23 = vpop.xlane.xlu1 %4003  ;;  %v4015_v46 = vmul.f32 %v5699_v5, %v4011_v8  ;;  %v4083_v8 = vld [vmem:[%s6586_s5] sm:$0xff] }
 0xf1c   :  { %v4029_v37 = vpop.xlane.xlu0 %4028  ;;  %v4012_v7 = vmul.f32 0.0625, %v4004_v23 }
 0xf1d   :  { %v4039_v54 = vmul.f32 0.0625, %v4029_v37 }
 0xf1e   :  { %v4016_v6 = vmul.f32 %v5699_v5, %v4012_v7 }
 0xf1f   :  { %v4043_v11 = vmul.f32 %v5704_v9, %v4039_v54  ;;  %v4032_v33 = vpop.xlane.xlu1 %4031 }
 0xf20   :  { %v4040_v34 = vmul.f32 0.0625, %v4032_v33  ;;  %v4007_v35 = vpop.xlane.xlu0 %4006 }
 0xf21   :  { %v4047_v13 = vadd.f32 %v4043_v11, %v4015_v46  ;;  %v4013_v57 = vmul.f32 0.0625, %v4007_v35  ;;  %v4085_v46 = vld [vmem:[%s6586_s5 + $0x10] sm:$0xff] }
 0xf22   :  { %v4044_v14 = vmul.f32 %v5704_v9, %v4040_v34 }
 0xf23   :  { %v4051_v16 = vadd.f32 1e-05, %v4047_v13  ;;  %v4035_v17 = vpop.xlane.xlu1 %4034  ;;  %v4017_v26 = vmul.f32 %v5699_v5, %v4013_v57 }
 0xf24   :  { %v4048_v18 = vadd.f32 %v4044_v14, %v4016_v6  ;;  %v4041_v20 = vmul.f32 0.0625, %v4035_v17  ;;  %v4010_v21 = vpop.xlane.xlu0 %4009  ;;  %v4086_v17 = vld [vmem:[%s6586_s5 + $0x18] sm:$0xff] }
 0xf25   :  { %5452 = vrsqrt.f32 %v4051_v16  ;;  %v4014_v30 = vmul.f32 0.0625, %v4010_v21 }
 0xf26   :  { %v4052_v25 = vadd.f32 1e-05, %v4048_v18  ;;  %v4045_v24 = vmul.f32 %v5704_v9, %v4041_v20 }
 0xf27   :  { %v4038_v32 = vpop.xlane.xlu1 %4037  ;;  %v4018_v41 = vmul.f32 %v5699_v5, %v4014_v30 }
 0xf28   :  { %5454 = vrsqrt.f32 %v4052_v25  ;;  %v4049_v49 = vadd.f32 %v4045_v24, %v4017_v26  ;;  %v4042_v31 = vmul.f32 0.0625, %v4038_v32 }
 0xf2a   :  { %v4053_v40 = vadd.f32 1e-05, %v4049_v49  ;;  %v4046_v42 = vmul.f32 %v5704_v9, %v4042_v31 }
 0xf2c   :  { %5456 = vrsqrt.f32 %v4053_v40  ;;  %v4050_v43 = vadd.f32 %v4046_v42, %v4018_v41 }
 0xf2e   :  { %v4054_v56 = vadd.f32 1e-05, %v4050_v43 }
 0xf2f   :  { %v5453_v58 = vpop.eup %5452 }
 0xf30   :  { %5458 = vrsqrt.f32 %v4054_v56  ;;  %v6461_v29 = vmul.f32 %v5453_v58, %v6416_v28 }
 0xf32   :  { %v5455_v44 = vpop.eup %5454  ;;  %v4063_v19 = vmul.f32 %v5699_v5, %v6461_v29  ;;  %v4187_v50 = vmul.f32 %v5704_v9, %v6461_v29 }
 0xf33   :  { %v6466_v48 = vmul.f32 %v5455_v44, %v6419_v38 }
 0xf34   :  { %v4067_v63 = vsel %vm38_vm0, %v4063_v19, 0.0  ;;  %v4191_v38 = vsel %vm38_vm0, %v4187_v50, 0.0 }
 0xf35   :  { %4068 = vadd.xlane.f32.xlu0 %v4067_v63  ;;  %v4064_v52 = vmul.f32 %v5699_v5, %v6466_v48  ;;  %v4188_v22 = vmul.f32 %v5704_v9, %v6466_v48 }
 0xf36   :  { %v5457_v15 = vpop.eup %5456 }
 0xf37   :  { %v4070_v28 = vsel %vm38_vm0, %v4064_v52, 0.0  ;;  %v6477_v3 = vmul.f32 %v5457_v15, %v6431_v53  ;;  %v4194_v62 = vsel %vm38_vm0, %v4188_v22, 0.0 }
 0xf38   :  { %4071 = vadd.xlane.f32.xlu1 %v4070_v28 }
 0xf39   :  { %4192 = vadd.xlane.f32.xlu0 %v4191_v38  ;;  %v4065_v47 = vmul.f32 %v5699_v5, %v6477_v3  ;;  %v4189_v45 = vmul.f32 %v5704_v9, %v6477_v3 }
 0xf3a   :  { %v5459_v61 = vpop.eup %5458 }
 0xf3b   :  { %v6486_v60 = vmul.f32 %v5459_v61, %v6440_v0  ;;  %v4073_v53 = vsel %vm38_vm0, %v4065_v47, 0.0  ;;  %v4197_v10 = vsel %vm38_vm0, %v4189_v45, 0.0  ;;  %v4104_v45 = vld [vmem:[%s6587_s6] sm:$0x1] }
 0xf3c   :  { %4195 = vadd.xlane.f32.xlu1 %v4194_v62 }
 0xf3d   :  { %4074 = vadd.xlane.f32.xlu0 %v4073_v53  ;;  %v4066_v51 = vmul.f32 %v5699_v5, %v6486_v60  ;;  %v4190_v12 = vmul.f32 %v5704_v9, %v6486_v60 }
 0xf3f   :  { %v4076_v27 = vsel %vm38_vm0, %v4066_v51, 0.0  ;;  %v4200_v39 = vsel %vm38_vm0, %v4190_v12, 0.0 }
 0xf40   :  { %4198 = vadd.xlane.f32.xlu1 %v4197_v10 }
 0xf41   :  { %4077 = vadd.xlane.f32.xlu0 %v4076_v27 }
 0xf44   :  { %4201 = vadd.xlane.f32.xlu1 %v4200_v39 }
 0xfc2   :  { %v4069_v0 = vpop.xlane.xlu0 %4068 }
 0xfc3   :  { %v4079_v4 = vmul.f32 0.0625, %v4069_v0 }
 0xfc5   :  { %v4072_v1 = vpop.xlane.xlu1 %4071  ;;  %v4087_v33 = vmul.f32 %v4083_v8, %v4079_v4  ;;  %v4109_v4 = vld [vmem:[%s6588_s7 + $0x10] sm:$0xff] }
 0xfc6   :  { %v4080_v59 = vmul.f32 0.0625, %v4072_v1  ;;  %v4193_v2 = vpop.xlane.xlu0 %4192  ;;  %v4108_v1 = vld [vmem:[%s6588_s7 + $0x8] sm:$0xff] }
 0xfc7   :  { %v4203_v54 = vmul.f32 0.0625, %v4193_v2  ;;  %v4091_v20 = vsel %vm1981_vm5, %v4087_v33, 0.0  ;;  %v4110_v2 = vld [vmem:[%s6588_s7 + $0x18] sm:$0xff] }
 0xfc8   :  { %v4088_v23 = vmul.f32 %v4084_v55, %v4080_v59 }
 0xfc9   :  { %v4196_v37 = vpop.xlane.xlu1 %4195  ;;  %v4207_v57 = vmul.f32 %v4203_v54, %v4083_v8 }
 0xfca   :  { %v4204_v7 = vmul.f32 0.0625, %v4196_v37  ;;  %v4075_v11 = vpop.xlane.xlu0 %4074  ;;  %v4092_v13 = vsel %vm1981_vm5, %v4088_v23, 0.0 }
 0xfcb   :  { %v4081_v34 = vmul.f32 0.0625, %v4075_v11  ;;  %v4093_v26 = vadd.f32 %v4092_v13, %v4091_v20  ;;  %v4211_v31 = vsel %vm1981_vm5, %v4207_v57, 0.0 }
 0xfcc   :  { %v4208_v35 = vmul.f32 %v4204_v7, %v4084_v55  ;;  %v4107_v55 = vld [vmem:[%s6588_s7] sm:$0xff] }
 0xfcd   :  { %v4089_v6 = vmul.f32 %v4085_v46, %v4081_v34  ;;  %v4199_v14 = vpop.xlane.xlu1 %4198 }
 0xfce   :  { %v4205_v16 = vmul.f32 0.0625, %v4199_v14  ;;  %v4078_v18 = vpop.xlane.xlu0 %4077  ;;  %v4212_v24 = vsel %vm1981_vm5, %v4208_v35, 0.0 }
 0xfcf   :  { %v4094_v21 = vsel %vm1981_vm5, %v4089_v6, 0.0  ;;  %v4082_v25 = vmul.f32 0.0625, %v4078_v18  ;;  %v4213_v43 = vadd.f32 %v4212_v24, %v4211_v31  ;;  %v5497_v24 = vld [vmem:[%s6584_s4] sm:$0xff] }
 0xfd0   :  { %v4209_v30 = vmul.f32 %v4205_v16, %v4085_v46  ;;  %v4095_v40 = vadd.f32 %v4094_v21, %v4093_v26 }
 0xfd1   :  { %v4090_v32 = vmul.f32 %v4086_v17, %v4082_v25  ;;  %v4202_v49 = vpop.xlane.xlu1 %4201  ;;  %v5496_v25 = vld [vmem:[%s6584_s4 + $0x8] sm:$0xff] }
 0xfd2   :  { %v4214_v41 = vsel %vm1981_vm5, %v4209_v30, 0.0  ;;  %v4206_v42 = vmul.f32 0.0625, %v4202_v49 }
 0xfd3   :  { %v4096_v56 = vsel %vm1981_vm5, %v4090_v32, 0.0  ;;  %v4215_v19 = vadd.f32 %v4214_v41, %v4213_v43  ;;  %v5498_v41 = vld [vmem:[%s6584_s4 + $0x18] sm:$0xff]  ;;  %v5499_v43 = vld [vmem:[%s6584_s4 + $0x10] sm:$0xff] }
 0xfd4   :  { %v4097_v58 = vadd.f32 %v4096_v56, %v4095_v40  ;;  %v4210_v44 = vmul.f32 %v4206_v42, %v4086_v17 }
 0xfd6   :  { %v4098_v63 = vrot.slane %v4097_v58, 4  ;;  %v4216_v50 = vsel %vm1981_vm5, %v4210_v44, 0.0 }
 0xfd7   :  { %v4217_v52 = vadd.f32 %v4216_v50, %v4215_v19 }
 0xfd8   :  { %v4099_v15 = vadd.f32 %v4098_v63, %v4097_v58 }
 0xfd9   :  { %v4218_v28 = vrot.slane %v4217_v52, 4 }
 0xfda   :  { %v4100_v22 = vrot.slane %v4099_v15, 2 }
 0xfdb   :  { %v4219_v38 = vadd.f32 %v4218_v28, %v4217_v52 }
 0xfdc   :  { %v4101_v47 = vadd.f32 %v4100_v22, %v4099_v15 }
 0xfdd   :  { %v4220_v61 = vrot.slane %v4219_v38, 2 }
 0xfde   :  { %v4102_v62 = vrot.slane %v4101_v47, 1 }
 0xfdf   :  { %v4221_v53 = vadd.f32 %v4220_v61, %v4219_v38 }
 0xfe0   :  { %v4103_v51 = vadd.f32 %v4102_v62, %v4101_v47 }
 0xfe1   :  { %v4222_v10 = vrot.slane %v4221_v53, 1 }
 0xfe2   :  { %v4105_v12 = vadd.f32 %v4104_v45, %v4103_v51 }
 0xfe3   :  { %v4223_v27 = vadd.f32 %v4222_v10, %v4221_v53 }
 0xfe4   :  { %v4106_v39 = vmax.f32 %v4105_v12, 0.0 }
 0xfe5   :  { %v4224_v0 = vadd.f32 %v4223_v27, %v4104_v45 }
 0xfe6   :  { %v4114_v59 = vrot.slane %v4106_v39, %v6033_v36 }
 0xfe7   :  { %v4225_v8 = vmax.f32 %v4224_v0, 0.0 }
 0xfe8   :  { %v4116_v23 = vmul.f32 %v4114_v59, %v4108_v1  ;;  %v4115_v37 = vmul.f32 %v4114_v59, %v4107_v55  ;;  %v4118_v54 = vmul.f32 %v4114_v59, %v4110_v2  ;;  %v4117_v11 = vmul.f32 %v4114_v59, %v4109_v4 }
 0xfe9   :  { %v4229_v33 = vrot.slane %v4225_v8, %v6033_v36 }
 0xfea   :  { %v4122_v7 = vsel %vm1981_vm5, %v4116_v23, 0.0  ;;  %v4119_v46 = vsel %vm1981_vm5, %v4115_v37, 0.0  ;;  %v4128_v34 = vsel %vm1981_vm5, %v4118_v54, 0.0  ;;  %v4125_v35 = vsel %vm1981_vm5, %v4117_v11, 0.0 }
 0xfeb   :  { %4123 = vadd.xlane.f32.xlu1 %v4122_v7  ;;  %4120 = vadd.xlane.f32.xlu0 %v4119_v46  ;;  %v4231_v13 = vmul.f32 %v4229_v33, %v4108_v1  ;;  %v4230_v6 = vmul.f32 %v4229_v33, %v4107_v55  ;;  %v4233_v16 = vmul.f32 %v4229_v33, %v4110_v2 }
 0xfec   :  { %v4232_v17 = vmul.f32 %v4229_v33, %v4109_v4 }
 0xfed   :  { %v4237_v14 = vsel %vm1981_vm5, %v4231_v13, 0.0  ;;  %v4234_v57 = vsel %vm1981_vm5, %v4230_v6, 0.0  ;;  %v4243_v36 = vsel %vm1981_vm5, %v4233_v16, 0.0 }
 0xfee   :  { %v4240_v18 = vsel %vm1981_vm5, %v4232_v17, 0.0 }
 0xfef   :  { %4129 = vadd.xlane.f32.xlu1 %v4128_v34  ;;  %4126 = vadd.xlane.f32.xlu0 %v4125_v35 }
 0xff3   :  { %4238 = vadd.xlane.f32.xlu1 %v4237_v14  ;;  %4235 = vadd.xlane.f32.xlu0 %v4234_v57 }
 0xff7   :  { %4244 = vadd.xlane.f32.xlu1 %v4243_v36  ;;  %4241 = vadd.xlane.f32.xlu0 %v4240_v18 }
0x1078   :  { %v4124_v20 = vpop.xlane.xlu1 %4123  ;;  %v4121_v21 = vpop.xlane.xlu0 %4120 }
0x1079   :  { %v4132_v26 = vadd.f32 %v5496_v25, %v4124_v20  ;;  %v4131_v30 = vadd.f32 %v5497_v24, %v4121_v21 }
0x107b   :  { %v4666_v32 = vmul.f32 -1.442695, %v4132_v26  ;;  %v4665_v49 = vmul.f32 -1.442695, %v4131_v30 }
0x107c   :  { %v4130_v31 = vpop.xlane.xlu1 %4129  ;;  %v4127_v40 = vpop.xlane.xlu0 %4126 }
0x107d   :  { %5460 = vpow2.f32 %v4666_v32  ;;  %v4134_v42 = vadd.f32 %v5498_v41, %v4130_v31  ;;  %v4133_v56 = vadd.f32 %v5499_v43, %v4127_v40 }
0x107e   :  { %5462 = vpow2.f32 %v4665_v49 }
0x107f   :  { %v4668_v58 = vmul.f32 -1.442695, %v4134_v42  ;;  %v4667_v44 = vmul.f32 -1.442695, %v4133_v56  ;;  %v4307_v56 = vld [vmem:[#allocation2 + $0x8] sm:$0xff] }
0x1080   :  { %v4239_v19 = vpop.xlane.xlu1 %4238  ;;  %v4236_v63 = vpop.xlane.xlu0 %4235 }
0x1081   :  { %5464 = vpow2.f32 %v4668_v58  ;;  %v4247_v50 = vadd.f32 %v5496_v25, %v4239_v19  ;;  %v4246_v52 = vadd.f32 %v5497_v24, %v4236_v63 }
0x1082   :  { %5466 = vpow2.f32 %v4667_v44 }
0x1083   :  { %v4670_v15 = vmul.f32 -1.442695, %v4247_v50  ;;  %v4669_v28 = vmul.f32 -1.442695, %v4246_v52 }
0x1084   :  { %v4245_v22 = vpop.xlane.xlu1 %4244  ;;  %v4242_v38 = vpop.xlane.xlu0 %4241 }
0x1085   :  { %5468 = vpow2.f32 %v4670_v15  ;;  %v4249_v47 = vadd.f32 %v5498_v41, %v4245_v22  ;;  %v4248_v61 = vadd.f32 %v5499_v43, %v4242_v38  ;;  %v4306_v43 = vld [vmem:[#allocation2] sm:$0xff]  ;;  %v4308_v38 = vld [vmem:[#allocation2 + $0x10] sm:$0xff] }
0x1086   :  { %5470 = vpow2.f32 %v4669_v28 }
0x1087   :  { %v5461_v62 = vpop.eup %5460  ;;  %v4672_v45 = vmul.f32 -1.442695, %v4249_v47  ;;  %v4671_v10 = vmul.f32 -1.442695, %v4248_v61 }
0x1088   :  { %v5463_v53 = vpop.eup %5462  ;;  %v4148_v51 = vadd.f32 1.0, %v5461_v62 }
0x1089   :  { %v4147_v12 = vadd.f32 1.0, %v5463_v53  ;;  %5472 = vpow2.f32 %v4672_v45 }
0x108a   :  { %5474 = vrcp.f32 %v4148_v51 }
0x108b   :  { %v5465_v27 = vpop.eup %5464  ;;  %5476 = vrcp.f32 %v4147_v12 }
0x108c   :  { %v5467_v39 = vpop.eup %5466  ;;  %v4150_v0 = vadd.f32 1.0, %v5465_v27  ;;  %5478 = vpow2.f32 %v4671_v10 }
0x108d   :  { %v4149_v1 = vadd.f32 1.0, %v5467_v39 }
0x108e   :  { %5480 = vrcp.f32 %v4150_v0 }
0x108f   :  { %v5469_v55 = vpop.eup %5468  ;;  %5482 = vrcp.f32 %v4149_v1 }
0x1090   :  { %v5471_v59 = vpop.eup %5470  ;;  %v4263_v2 = vadd.f32 1.0, %v5469_v55 }
0x1091   :  { %v4262_v4 = vadd.f32 1.0, %v5471_v59 }
0x1092   :  { %5484 = vrcp.f32 %v4263_v2 }
0x1093   :  { %v5473_v8 = vpop.eup %5472  ;;  %5486 = vrcp.f32 %v4262_v4 }
0x1094   :  { %v5475_v23 = vpop.eup %5474  ;;  %v4265_v37 = vadd.f32 1.0, %v5473_v8 }
0x1095   :  { %v5477_v54 = vpop.eup %5476  ;;  %4166 = vperm.xlu1 %5290, %v5475_v23  }
0x1096   :  { %v5479_v7 = vpop.eup %5478  ;;  %5488 = vrcp.f32 %v4265_v37  ;;  %4161 = vperm.xlu0 %5291, %v5477_v54  }
0x1097   :  { %v4264_v46 = vadd.f32 1.0, %v5479_v7 }
0x1098   :  { %v5481_v11 = vpop.eup %5480 }
0x1099   :  { %v5483_v33 = vpop.eup %5482  ;;  %5490 = vrcp.f32 %v4264_v46 }
0x109a   :  { %4176 = vperm.xlu0 %5291, %v5481_v11   ;;  %4171 = vperm.xlu1 %5290, %v5483_v33  }
0x109c   :  { %v5485_v34 = vpop.eup %5484 }
0x109d   :  { %v5487_v35 = vpop.eup %5486 }
0x109e   :  { %4281 = vperm.xlu0 %5291, %v5485_v34   ;;  %4276 = vperm.xlu1 %5290, %v5487_v35  }
0x10a0   :  { %v5489_v13 = vpop.eup %5488 }
0x10a2   :  { %4291 = vperm.xlu0 %5291, %v5489_v13  }
0x10a3   :  { %v5491_v6 = vpop.eup %5490 }
0x10a4   :  { %4286 = vperm.xlu1 %5290, %v5491_v6  }
0x1114   :  { %v4167_v14 = vpop.permute.xlu1 %4166 }
0x1115   :  { %v4162_v57 = vpop.permute.xlu0 %4161  ;;  %v4180_v20 = vmul.f32 %v5699_v5, %v4167_v14 }
0x1116   :  { %v4179_v21 = vmul.f32 %v5699_v5, %v4162_v57 }
0x1119   :  { %v4172_v16 = vpop.permute.xlu1 %4171  ;;  %v4177_v17 = vpop.permute.xlu0 %4176 }
0x111a   :  { %v4182_v49 = vmul.f32 %v5699_v5, %v4177_v17  ;;  %v4181_v42 = vmul.f32 %v5699_v5, %v4172_v16 }
0x111d   :  { %v4277_v36 = vpop.permute.xlu1 %4276  ;;  %v4282_v18 = vpop.permute.xlu0 %4281 }
0x111e   :  { %v4294_v25 = vmul.f32 %v5704_v9, %v4277_v36  ;;  %v4295_v26 = vmul.f32 %v5704_v9, %v4282_v18 }
0x1120   :  { %v4298_v24 = vadd.f32 %v4294_v25, %v4179_v21  ;;  %v4299_v30 = vadd.f32 %v4295_v26, %v4180_v20 }
0x1121   :  { %v4292_v32 = vpop.permute.xlu0 %4291 }
0x1122   :  { %v4302_v31 = vmul.f32 %v4298_v24, %v6461_v29  ;;  %v4303_v40 = vmul.f32 %v4299_v30, %v6466_v48  ;;  %v4297_v41 = vmul.f32 %v5704_v9, %v4292_v32  ;;  %v4309_v29 = vld [vmem:[#allocation2 + $0x18] sm:$0xff] }
0x1123   :  { %v4287_v58 = vpop.permute.xlu1 %4286 }
0x1124   :  { %v4310_v44 = vadd.f32 %v4306_v43, %v4302_v31  ;;  %v4311_v19 = vadd.f32 %v4307_v56, %v4303_v40  ;;  %v4296_v63 = vmul.f32 %v5704_v9, %v4287_v58  ;;  %v4301_v50 = vadd.f32 %v4297_v41, %v4182_v49 }
0x1126   :  { %v4314_v52 = vmax.f32 %v4310_v44, 0.0  ;;  %v4315_v15 = vmax.f32 %v4311_v19, 0.0  ;;  %v4300_v28 = vadd.f32 %v4296_v63, %v4181_v42  ;;  %v4305_v22 = vmul.f32 %v4301_v50, %v6486_v60 }
0x1128   :  { %4318 = vst.msk [vmem:[#allocation2] sm:$0xff] %vm38_vm0, %v4314_v52  ;;  %4319 = vst.msk [vmem:[#allocation2 + $0x8] sm:$0xff] %vm38_vm0, %v4315_v15  ;;  %v4304_v5 = vmul.f32 %v4300_v28, %v6477_v3  ;;  %v4313_v48 = vadd.f32 %v4309_v29, %v4305_v22 }
0x112a   :  { %v4312_v47 = vadd.f32 %v4308_v38, %v4304_v5  ;;  %v4317_v61 = vmax.f32 %v4313_v48, 0.0 }
0x112c   :  { %v4316_v62 = vmax.f32 %v4312_v47, 0.0  ;;  %4321 = vst.msk [vmem:[#allocation2 + $0x18] sm:$0xff] %vm38_vm0, %v4317_v61 }
0x112e   :  { %4320 = vst.msk [vmem:[#allocation2 + $0x10] sm:$0xff] %vm38_vm0, %v4316_v62 }
0x112f   :  { %v4322_v9 = vld [vmem:[#allocation2] sm:$0xff]  ;;  %v4323_v45 = vld [vmem:[#allocation2 + $0x8] sm:$0xff] }
0x1130   :  { %v4677_v60 = vpack.c.bf16 %v4322_v9, %v4322_v9  ;;  %v4678_v53 = vpack.c.bf16 %v4323_v45, %v4323_v45 }
0x1132   :  { %4343 = vst.msk [vmem:[%s6589_s8] sm:$0xf] %vm4342_vm6, %v4677_v60  ;;  %4344 = vst.msk [vmem:[%s6589_s8 + $0x4] sm:$0xf] %vm4342_vm6, %v4678_v53 }
0x1133   :  { %v4325_v3 = vld [vmem:[#allocation2 + $0x18] sm:$0xff] }
0x1134   :  { %v4680_v51 = vpack.c.bf16 %v4325_v3, %v4325_v3 }
0x1135   :  { %v4324_v10 = vld [vmem:[#allocation2 + $0x10] sm:$0xff] }
0x1136   :  { %v4679_v12 = vpack.c.bf16 %v4324_v10, %v4324_v10  ;;  %4346 = vst.msk [vmem:[%s6589_s8 + $0xc] sm:$0xf] %vm4342_vm6, %v4680_v51 }
0x1138   :  { %4345 = vst.msk [vmem:[%s6589_s8 + $0x8] sm:$0xf] %vm4342_vm6, %v4679_v12 }

// kernel: generator_forward.12
= control target key start
LH: loop header
LB: loop body
LE: loop exit
PB: predicated region body
PF: predicated region fallthrough
CT: control target
= control target key end

     0   :  { %v392_v1 = vmov 0   ;;  %vm85_vm0 = vcmask 523264   ;;  %v141_v11 = vlaneseq  ;;  %v393_v16 = vmov 0.0   ;;  %s518_s1 = inlined_call_operand.vmem [shape: bf16[64,128], index: 1, kind: input, shape index: {}]   ;;  %s519_s0 = inlined_call_operand.vmem [shape: bf16[32,64], index: 0, kind: input, shape index: {}]   ;;  %s520_s2 = inlined_call_operand.vmem [shape: f32[32,3], index: 2, kind: input, shape index: {}]   ;;  %s521_s3 = inlined_call_operand.vmem [shape: bf16[32,128], index: 3, kind: output, shape index: {}]  }
   0x1   :  { %v384_v0 = vld [vmem:[%s518_s1] sm:$0xff]   ;;  %379 = vset.pattern.permute.xlu1 %v392_v1  ;;  %378 = vset.pattern.permute.xlu0 %v392_v1  ;;  %v385_v2 = vld [vmem:[%s518_s1 + $0x8] sm:$0xff]   ;;  %v386_v3 = vld [vmem:[%s518_s1 + $0x10] sm:$0xff]  }
   0x2   :  { %362 = vmatprep.subr.bf16.mxu0 %v384_v0  ;;  %v388_v4 = vld [vmem:[%s519_s0] sm:$0xff]   ;;  %v432_v5 = vld [vmem:[%s520_s2 + $0x10] sm:$0xff]  ;;  %v387_v7 = vld [vmem:[%s518_s1 + $0x18] sm:$0xff]   ;;  %v142_v12 = vand.u32 127, %v141_v11 }
   0x3   :  { %363 = vmatpush3.bf16.msra.mxu0 %v384_v0  ;;  %370 = vmatprep.mubr.msk.bf16.mxu0 %vm85_vm0, %v388_v4  ;;  %v437_v6 = vld [vmem:[%s520_s2] sm:$0xff]  ;;  %v447_v8 = vld [vmem:[%s520_s2 + $0x18] sm:$0xff]  ;;  %v452_v9 = vld [vmem:[%s520_s2 + $0x8] sm:$0xff] }
   0x4   :  { %364 = vmatprep.subr.bf16.mxu0 %v385_v2  ;;  %43 = vperm.xlu1 %379, %v432_v5   ;;  %v389_v10 = vld [vmem:[%s519_s0 + $0x8] sm:$0xff]   ;;  %vm148_vm1 = vcmp.ge.s32.totalorder %v142_v12, 64  ;;  %vm144_vm2 = vcmp.lt.s32.totalorder %v142_v12, 64 }
   0x5   :  { %33 = vperm.xlu0 %378, %v437_v6   ;;  %v460_v17 = vsel %vm148_vm1, 1.0, %v393_v16  ;;  %v462_v18 = vsel %vm144_vm2, 1.0, %v393_v16 }
   0x7   :  { %365 = vmatpush3.bf16.msra.mxu0 %v385_v2 }
   0x8   :  { %366 = vmatprep.subr.bf16.mxu0 %v386_v3  ;;  %48 = vperm.xlu1 %379, %v447_v8  }
   0x9   :  { %38 = vperm.xlu0 %378, %v452_v9  }
   0xb   :  { %367 = vmatpush3.bf16.msra.mxu0 %v386_v3 }
   0xc   :  { %368 = vmatprep.subr.bf16.mxu0 %v387_v7 }
   0xf   :  { %369 = vmatpush3.bf16.msra.mxu0 %v387_v7 }
  0x12   :  { %371 = vmatmul.mubr.msk.bf16.vlgmr.msra.gmra.mrb[0].mxu0 %vm85_vm0, %v389_v10 }
  0x83   :  { %v44_v14 = vpop.permute.xlu1 %43 }
  0x84   :  { %v34_v13 = vpop.permute.xlu0 %33 }
  0x87   :  { %v49_v28 = vpop.permute.xlu1 %48 }
  0x88   :  { %v39_v21 = vpop.permute.xlu0 %38 }
  0xe5   :  { %v372_v15 = vpop.f32.mrb[0].mxu0 }
  0xe6   :  { %v135_v19 = vadd.f32 %v372_v15, %v44_v14  ;;  %v126_v20 = vpop.f32.mrb[1].mxu0 }
  0xe7   :  { %v373_v22 = vpop.f32.mrb[2].mxu0  ;;  %v127_v23 = vadd.f32 %v126_v20, %v34_v13 }
  0xe8   :  { %v129_v24 = vpop.f32.mrb[3].mxu0  ;;  %v178_v25 = vmul.f32 %v460_v17, %v135_v19  ;;  %v155_v26 = vmul.f32 %v462_v18, %v135_v19  ;;  %v138_v30 = vadd.f32 %v373_v22, %v49_v28 }
  0xe9   :  { %v130_v27 = vadd.f32 %v129_v24, %v39_v21  ;;  %v153_v31 = vmul.f32 %v462_v18, %v127_v23  ;;  %v176_v33 = vmul.f32 %v460_v17, %v127_v23 }
  0xea   :  { %184 = vadd.xlane.f32.xlu0 %v178_v25  ;;  %161 = vadd.xlane.f32.xlu1 %v155_v26  ;;  %v156_v32 = vmul.f32 %v462_v18, %v138_v30  ;;  %v179_v35 = vmul.f32 %v460_v17, %v138_v30 }
  0xeb   :  { %v154_v29 = vmul.f32 %v462_v18, %v130_v27  ;;  %v177_v34 = vmul.f32 %v460_v17, %v130_v27 }
  0xee   :  { %159 = vadd.xlane.f32.xlu1 %v154_v29  ;;  %157 = vadd.xlane.f32.xlu0 %v153_v31  ;;  %v394_v31 = vmov 1  }
  0xf2   :  { %163 = vadd.xlane.f32.xlu1 %v156_v32  ;;  %180 = vadd.xlane.f32.xlu0 %v176_v33  ;;  %v395_v32 = vmov 2  }
  0xf6   :  { %182 = vadd.xlane.f32.xlu0 %v177_v34 }
  0xfa   :  { %186 = vadd.xlane.f32.xlu0 %v179_v35 }
 0x177   :  { %v185_v36 = vpop.xlane.xlu0 %184  ;;  %v162_v37 = vpop.xlane.xlu1 %161 }
 0x17b   :  { %v160_v38 = vpop.xlane.xlu1 %159  ;;  %v158_v39 = vpop.xlane.xlu0 %157 }
 0x17c   :  { %v165_v40 = vadd.f32 %v160_v38, %v158_v39 }
 0x17e   :  { %v166_v41 = vadd.f32 %v165_v40, %v162_v37 }
 0x17f   :  { %v164_v42 = vpop.xlane.xlu1 %163  ;;  %v181_v43 = vpop.xlane.xlu0 %180 }
 0x180   :  { %v167_v44 = vadd.f32 %v166_v41, %v164_v42 }
 0x182   :  { %v168_v45 = vmul.f32 0.00390625, %v167_v44 }
 0x183   :  { %v183_v46 = vpop.xlane.xlu0 %182 }
 0x184   :  { %v188_v47 = vadd.f32 %v183_v46, %v181_v43  ;;  %171 = vperm.xlu1 %379, %v168_v45  }
 0x186   :  { %v189_v48 = vadd.f32 %v188_v47, %v185_v36 }
 0x187   :  { %v187_v49 = vpop.xlane.xlu0 %186 }
 0x188   :  { %v190_v50 = vadd.f32 %v189_v48, %v187_v49 }
 0x18a   :  { %v191_v51 = vmul.f32 0.00390625, %v190_v50 }
 0x18c   :  { %194 = vperm.xlu0 %378, %v191_v51  }
 0x203   :  { %v172_v52 = vpop.permute.xlu1 %171 }
 0x204   :  { %v174_v54 = vmul.f32 %v462_v18, %v172_v52 }
 0x20b   :  { %v195_v53 = vpop.permute.xlu0 %194 }
 0x20c   :  { %v197_v55 = vmul.f32 %v460_v17, %v195_v53 }
 0x20e   :  { %v198_v56 = vadd.f32 %v197_v55, %v174_v54 }
 0x210   :  { %v474_v57 = vsub.f32 %v130_v27, %v198_v56  ;;  %v476_v58 = vsub.f32 %v127_v23, %v198_v56  ;;  %v484_v63 = vsub.f32 %v135_v19, %v198_v56  ;;  %v490_v3 = vsub.f32 %v138_v30, %v198_v56 }
 0x212   :  { %v204_v59 = vmul.f32 %v474_v57, %v474_v57  ;;  %v203_v60 = vmul.f32 %v476_v58, %v476_v58  ;;  %v205_v2 = vmul.f32 %v484_v63, %v484_v63  ;;  %v206_v10 = vmul.f32 %v490_v3, %v490_v3 }
 0x214   :  { %v208_v61 = vmul.f32 %v462_v18, %v204_v59  ;;  %v207_v62 = vmul.f32 %v462_v18, %v203_v60  ;;  %v231_v0 = vmul.f32 %v460_v17, %v204_v59  ;;  %v230_v1 = vmul.f32 %v460_v17, %v203_v60 }
 0x215   :  { %v232_v4 = vmul.f32 %v460_v17, %v205_v2  ;;  %v209_v7 = vmul.f32 %v462_v18, %v205_v2  ;;  %v233_v11 = vmul.f32 %v460_v17, %v206_v10  ;;  %v210_v12 = vmul.f32 %v462_v18, %v206_v10 }
 0x216   :  { %213 = vadd.xlane.f32.xlu0 %v208_v61  ;;  %211 = vadd.xlane.f32.xlu1 %v207_v62 }
 0x21a   :  { %236 = vadd.xlane.f32.xlu0 %v231_v0  ;;  %234 = vadd.xlane.f32.xlu1 %v230_v1 }
 0x21e   :  { %238 = vadd.xlane.f32.xlu0 %v232_v4  ;;  %215 = vadd.xlane.f32.xlu1 %v209_v7 }
 0x222   :  { %240 = vadd.xlane.f32.xlu0 %v233_v11  ;;  %217 = vadd.xlane.f32.xlu1 %v210_v12 }
 0x2a3   :  { %v214_v13 = vpop.xlane.xlu0 %213  ;;  %v212_v14 = vpop.xlane.xlu1 %211 }
 0x2a4   :  { %v219_v21 = vadd.f32 %v214_v13, %v212_v14 }
 0x2a7   :  { %v237_v15 = vpop.xlane.xlu0 %236  ;;  %v235_v16 = vpop.xlane.xlu1 %234 }
 0x2a8   :  { %v242_v22 = vadd.f32 %v237_v15, %v235_v16 }
 0x2ab   :  { %v239_v19 = vpop.xlane.xlu0 %238  ;;  %v216_v20 = vpop.xlane.xlu1 %215 }
 0x2ac   :  { %v243_v23 = vadd.f32 %v242_v22, %v239_v19  ;;  %v220_v24 = vadd.f32 %v219_v21, %v216_v20 }
 0x2af   :  { %v241_v25 = vpop.xlane.xlu0 %240  ;;  %v218_v26 = vpop.xlane.xlu1 %217 }
 0x2b0   :  { %v244_v27 = vadd.f32 %v243_v23, %v241_v25  ;;  %v221_v28 = vadd.f32 %v220_v24, %v218_v26 }
 0x2b2   :  { %v245_v29 = vmul.f32 0.00390625, %v244_v27  ;;  %v222_v30 = vmul.f32 0.00390625, %v221_v28 }
 0x2b4   :  { %248 = vperm.xlu0 %378, %v245_v29   ;;  %225 = vperm.xlu1 %379, %v222_v30  }
 0x2b8   :  { %380 = vset.pattern.permute.xlu1 %v394_v31  ;;  %381 = vset.pattern.permute.xlu0 %v394_v31 }
 0x2b9   :  { %260 = vperm.xlu1 %380, %v437_v6   ;;  %268 = vperm.xlu0 %381, %v432_v5  }
 0x2bd   :  { %264 = vperm.xlu1 %380, %v452_v9   ;;  %383 = vset.pattern.permute.xlu0 %v395_v32 }
 0x2be   :  { %284 = vperm.xlu0 %383, %v452_v9  }
 0x2c1   :  { %272 = vperm.xlu1 %380, %v447_v8  }
 0x2c5   :  { %382 = vset.pattern.permute.xlu1 %v395_v32 }
 0x2c6   :  { %280 = vperm.xlu1 %382, %v437_v6  }
 0x2ca   :  { %288 = vperm.xlu1 %382, %v432_v5  }
 0x2ce   :  { %292 = vperm.xlu1 %382, %v447_v8  }
 0x333   :  { %v249_v33 = vpop.permute.xlu0 %248  ;;  %v226_v34 = vpop.permute.xlu1 %225 }
 0x334   :  { %v251_v35 = vmul.f32 %v460_v17, %v249_v33  ;;  %v228_v36 = vmul.f32 %v462_v18, %v226_v34 }
 0x336   :  { %v252_v37 = vadd.f32 %v251_v35, %v228_v36 }
 0x338   :  { %v253_v38 = vadd.f32 1e-05, %v252_v37  ;;  %v261_v39 = vpop.permute.xlu1 %260  ;;  %v269_v41 = vpop.permute.xlu0 %268 }
 0x33a   :  { %390 = vrsqrt.f32 %v253_v38 }
 0x33c   :  { %v265_v9 = vpop.permute.xlu1 %264 }
 0x33d   :  { %v285_v44 = vpop.permute.xlu0 %284 }
 0x340   :  { %v273_v40 = vpop.permute.xlu1 %272 }
 0x344   :  { %v391_v42 = vpop.eup %390 }
 0x345   :  { %v255_v6 = vmul.f32 %v391_v42, %v476_v58  ;;  %v256_v5 = vmul.f32 %v391_v42, %v474_v57  ;;  %v257_v8 = vmul.f32 %v391_v42, %v484_v63  ;;  %v281_v43 = vpop.permute.xlu1 %280  ;;  %v258_v18 = vmul.f32 %v391_v42, %v490_v3 }
 0x347   :  { %v275_v45 = vmul.f32 %v261_v39, %v255_v6  ;;  %v276_v17 = vmul.f32 %v265_v9, %v256_v5  ;;  %v277_v46 = vmul.f32 %v269_v41, %v257_v8  ;;  %v278_v52 = vmul.f32 %v273_v40, %v258_v18 }
 0x349   :  { %v295_v47 = vadd.f32 %v281_v43, %v275_v45  ;;  %v296_v48 = vadd.f32 %v285_v44, %v276_v17  ;;  %v289_v49 = vpop.permute.xlu1 %288 }
 0x34a   :  { %v297_v53 = vadd.f32 %v289_v49, %v277_v46 }
 0x34b   :  { %v299_v50 = vmax.f32 %v295_v47, 0.0  ;;  %v300_v51 = vmax.f32 %v296_v48, 0.0 }
 0x34c   :  { %v301_v57 = vmax.f32 %v297_v53, 0.0 }
 0x34d   :  { %v348_v54 = vpack.c.bf16 %v300_v51, %v299_v50  ;;  %v293_v55 = vpop.permute.xlu1 %292 }
 0x34e   :  { %v298_v56 = vadd.f32 %v293_v55, %v278_v52 }
 0x34f   :  { %349 = vst [vmem:[%s521_s3] sm:$0xff] %v348_v54  }
 0x350   :  { %v302_v58 = vmax.f32 %v298_v56, 0.0 }
 0x352   :  { %v353_v59 = vpack.c.bf16 %v302_v58, %v301_v57 }
 0x354   :  { %355 = vst [vmem:[%s521_s3 + $0x8] sm:$0xff] %v353_v59  }

// kernel: generator_forward.13
= control target key start
LH: loop header
LB: loop body
LE: loop exit
PB: predicated region body
PF: predicated region fallthrough
CT: control target
= control target key end

     0   :  { %v1106_v2 = vmov 0   ;;  %v1107_v37 = vmov 1983009808   ;;  %v125_v39 = vlaneseq  ;;  %vm631_vm0 = vcmask 64512   ;;  %s1440_s1 = inlined_call_operand.vmem [shape: bf16[392,512], index: 1, kind: input, shape index: {}]   ;;  %s1441_s0 = inlined_call_operand.vmem [shape: bf16[3,392], index: 0, kind: input, shape index: {}]   ;;  %s1442_s2 = inlined_call_operand.vmem [shape: f32[3,3], index: 2, kind: input, shape index: {}]   ;;  %s1443_s3 = inlined_call_operand.vmem [shape: f32[3,512], index: 3, kind: output, shape index: {}]  }
   0x1   :  { %v949_v0 = vld [vmem:[%s1440_s1 + $0x4] ss:$16 sps:$4 sm:$0xff]   ;;  %v951_v1 = vld [vmem:[%s1440_s1 + $0xc] ss:$16 sps:$4 sm:$0xff]   ;;  %948 = vset.pattern.permute.xlu0 %v1106_v2  ;;  %v953_v3 = vld [vmem:[%s1440_s1] ss:$16 sps:$4 sm:$0xff]   ;;  %v123_v38 = vunpack.c.l.s4 %v1107_v37 }
   0x2   :  { %648 = vmatprep.subr.bf16.mxu0 %v949_v0  ;;  %v954_v4 = vld [vmem:[%s1440_s1 + $0x8] ss:$16 sps:$4 sm:$0xff]   ;;  %730 = vmatprep.subr.bf16.mxu1 %v951_v1  ;;  %v955_v5 = vld [vmem:[%s1440_s1 + $0x24] ss:$16 sps:$4 sm:$0xff]   ;;  %v957_v6 = vld [vmem:[%s1440_s1 + $0x2c] ss:$16 sps:$4 sm:$0xff]  }
   0x3   :  { %649 = vmatpush1.bf16.msra.mxu0 %v953_v3  ;;  %731 = vmatpush1.bf16.msra.mxu1 %v954_v4  ;;  %v959_v7 = vld [vmem:[%s1440_s1 + $0x20] ss:$16 sps:$4 sm:$0xff]   ;;  %v960_v8 = vld [vmem:[%s1440_s1 + $0x28] ss:$16 sps:$4 sm:$0xff]   ;;  %v961_v9 = vld [vmem:[%s1440_s1 + $0x44] ss:$16 sps:$4 sm:$0xff]   ;;  %v124_v43 = vunpack.c.0.s8 %v123_v38 }
   0x4   :  { %650 = vmatprep.subr.bf16.mxu0 %v955_v5  ;;  %732 = vmatprep.subr.bf16.mxu1 %v957_v6  ;;  %v963_v10 = vld [vmem:[%s1440_s1 + $0x4c] ss:$16 sps:$4 sm:$0xff]   ;;  %v965_v11 = vld [vmem:[%s1440_s1 + $0x40] ss:$16 sps:$4 sm:$0xff]   ;;  %v966_v12 = vld [vmem:[%s1440_s1 + $0x48] ss:$16 sps:$4 sm:$0xff]  }
   0x5   :  { %v967_v13 = vld [vmem:[%s1440_s1 + $0x64] ss:$16 sps:$4 sm:$0xff]   ;;  %v969_v14 = vld [vmem:[%s1440_s1 + $0x6c] ss:$16 sps:$4 sm:$0xff]   ;;  %v971_v15 = vld [vmem:[%s1440_s1 + $0x60] ss:$16 sps:$4 sm:$0xff]  }
   0x6   :  { %v972_v16 = vld [vmem:[%s1440_s1 + $0x68] ss:$16 sps:$4 sm:$0xff]   ;;  %v973_v17 = vld [vmem:[%s1440_s1 + $0x84] ss:$16 sps:$4 sm:$0xff]   ;;  %v975_v18 = vld [vmem:[%s1440_s1 + $0x8c] ss:$16 sps:$4 sm:$0xff]  }
   0x7   :  { %651 = vmatpush1.bf16.msra.mxu0 %v959_v7  ;;  %733 = vmatpush1.bf16.msra.mxu1 %v960_v8  ;;  %v977_v19 = vld [vmem:[%s1440_s1 + $0x80] ss:$16 sps:$4 sm:$0xff]   ;;  %v978_v20 = vld [vmem:[%s1440_s1 + $0x88] ss:$16 sps:$4 sm:$0xff]   ;;  %v979_v21 = vld [vmem:[%s1440_s1 + $0xa4] ss:$16 sps:$4 sm:$0xff]  }
   0x8   :  { %652 = vmatprep.subr.bf16.mxu0 %v961_v9  ;;  %734 = vmatprep.subr.bf16.mxu1 %v963_v10  ;;  %v981_v22 = vld [vmem:[%s1440_s1 + $0xac] ss:$16 sps:$4 sm:$0xff]   ;;  %v983_v23 = vld [vmem:[%s1440_s1 + $0xa0] ss:$16 sps:$4 sm:$0xff]   ;;  %v984_v24 = vld [vmem:[%s1440_s1 + $0xa8] ss:$16 sps:$4 sm:$0xff]  }
   0x9   :  { %v985_v25 = vld [vmem:[%s1440_s1 + $0xc4] ss:$16 sps:$4 sm:$0xff]   ;;  %v987_v26 = vld [vmem:[%s1440_s1 + $0xcc] ss:$16 sps:$4 sm:$0xff]   ;;  %v989_v27 = vld [vmem:[%s1440_s1 + $0xc0] ss:$16 sps:$4 sm:$0xff]  }
   0xa   :  { %v990_v28 = vld [vmem:[%s1440_s1 + $0xc8] ss:$16 sps:$4 sm:$0xff]   ;;  %v991_v29 = vld [vmem:[%s1440_s1 + $0xe4] ss:$16 sps:$4 sm:$0xff]   ;;  %v993_v30 = vld [vmem:[%s1440_s1 + $0xec] ss:$16 sps:$4 sm:$0xff]  }
   0xb   :  { %653 = vmatpush1.bf16.msra.mxu0 %v965_v11  ;;  %735 = vmatpush1.bf16.msra.mxu1 %v966_v12  ;;  %v995_v31 = vld [vmem:[%s1440_s1 + $0xe0] ss:$16 sps:$4 sm:$0xff]   ;;  %v996_v32 = vld [vmem:[%s1440_s1 + $0xe8] ss:$16 sps:$4 sm:$0xff]   ;;  %v997_v33 = vld [vmem:[%s1440_s1 + $0x104] ss:$16 sps:$4 sm:$0xff]  }
   0xc   :  { %654 = vmatprep.subr.bf16.mxu0 %v967_v13  ;;  %736 = vmatprep.subr.bf16.mxu1 %v969_v14  ;;  %v999_v34 = vld [vmem:[%s1440_s1 + $0x10c] ss:$16 sps:$4 sm:$0xff]   ;;  %v1001_v35 = vld [vmem:[%s1440_s1 + $0x100] ss:$16 sps:$4 sm:$0xff]   ;;  %v1002_v36 = vld [vmem:[%s1440_s1 + $0x108] ss:$16 sps:$4 sm:$0xff]  }
   0xd   :  { %v1003_v40 = vld [vmem:[%s1440_s1 + $0x124] ss:$16 sps:$4 sm:$0xff]   ;;  %v1005_v41 = vld [vmem:[%s1440_s1 + $0x12c] ss:$16 sps:$4 sm:$0xff]   ;;  %v1007_v42 = vld [vmem:[%s1440_s1 + $0x120] ss:$16 sps:$4 sm:$0xff]  }
   0xe   :  { %v126_v44 = vshrl.u32 %v125_v39, 7  ;;  %v1008_v45 = vld [vmem:[%s1440_s1 + $0x128] ss:$16 sps:$4 sm:$0xff]   ;;  %v1009_v46 = vld [vmem:[%s1440_s1 + $0x144] ss:$16 sps:$4 sm:$0xff]   ;;  %vm635_vm1 = vcmask 1043456  }
   0xf   :  { %655 = vmatpush1.bf16.msra.mxu0 %v971_v15  ;;  %737 = vmatpush1.bf16.msra.mxu1 %v972_v16  ;;  %v1011_v47 = vld [vmem:[%s1440_s1 + $0x14c] ss:$16 sps:$4 sm:$0xff]   ;;  %v1013_v48 = vld [vmem:[%s1440_s1 + $0x140] ss:$16 sps:$4 sm:$0xff]   ;;  %v1014_v49 = vld [vmem:[%s1440_s1 + $0x148] ss:$16 sps:$4 sm:$0xff]  }
  0x10   :  { %656 = vmatprep.subr.bf16.mxu0 %v973_v17  ;;  %738 = vmatprep.subr.bf16.mxu1 %v975_v18  ;;  %v127_v50 = vsub.s32 %v124_v43, %v126_v44  ;;  %v1015_v51 = vld [vmem:[%s1440_s1 + $0x164] ss:$16 sps:$4 sm:$0xff]   ;;  %v1017_v52 = vld [vmem:[%s1440_s1 + $0x16c] ss:$16 sps:$4 sm:$0xff]   ;;  %v1019_v54 = vld [vmem:[%s1440_s1 + $0x160] ss:$16 sps:$4 sm:$0xff]  }
  0x11   :  { %v15_v53 = vld [vmem:[%s1441_s0] sm:$0xff]  ;;  %v1020_v56 = vld [vmem:[%s1440_s1 + $0x168] ss:$16 sps:$4 sm:$0xff]   ;;  %v1023_v58 = vld [vmem:[%s1440_s1 + $0x18c] ss:$16 sps:$4 sm:$0xff]  }
  0x12   :  { %v128_v55 = vrot.slane %v15_v53, %v127_v50  ;;  %v1021_v57 = vld [vmem:[%s1440_s1 + $0x184] ss:$16 sps:$4 sm:$0xff]   ;;  %v1025_v60 = vld [vmem:[%s1440_s1 + $0x180] ss:$16 sps:$4 sm:$0xff]   ;;  %v1026_v61 = vld [vmem:[%s1440_s1 + $0x188] ss:$16 sps:$4 sm:$0xff]   ;;  %v121_v8 = vcombine.high %v15_v53, %v15_v53 }
  0x13   :  { %657 = vmatpush1.bf16.msra.mxu0 %v977_v19  ;;  %739 = vmatpush1.bf16.msra.mxu1 %v978_v20  ;;  %v1027_v62 = vld [vmem:[%s1440_s1 + $0x1a4] ss:$16 sps:$4 sm:$0xff]   ;;  %v1029_v63 = vld [vmem:[%s1440_s1 + $0x1ac] ss:$16 sps:$4 sm:$0xff]   ;;  %v1031_v0 = vld [vmem:[%s1440_s1 + $0x1a0] ss:$16 sps:$4 sm:$0xff]  }
  0x14   :  { %658 = vmatprep.subr.bf16.mxu0 %v979_v21  ;;  %740 = vmatprep.subr.bf16.mxu1 %v981_v22  ;;  %v136_v59 = vcombine.high %v128_v55, %v128_v55  ;;  %v1032_v1 = vld [vmem:[%s1440_s1 + $0x1a8] ss:$16 sps:$4 sm:$0xff]   ;;  %v1033_v2 = vld [vmem:[%s1440_s1 + $0x1c4] ss:$16 sps:$4 sm:$0xff]   ;;  %v1035_v3 = vld [vmem:[%s1440_s1 + $0x1cc] ss:$16 sps:$4 sm:$0xff]   ;;  %v1329_v13 = vrot.slane %v121_v8, %v127_v50 }
  0x15   :  { %v1037_v4 = vld [vmem:[%s1440_s1 + $0x1c0] ss:$16 sps:$4 sm:$0xff]   ;;  %v1038_v5 = vld [vmem:[%s1440_s1 + $0x1c8] ss:$16 sps:$4 sm:$0xff]   ;;  %v1039_v6 = vld [vmem:[%s1440_s1 + $0x1e4] ss:$16 sps:$4 sm:$0xff]  }
  0x16   :  { %680 = vmatprep.mubr.bf16.mxu0 %v136_v59  ;;  %762 = vmatprep.mubr.bf16.mxu1 %v136_v59  ;;  %v1041_v7 = vld [vmem:[%s1440_s1 + $0x1ec] ss:$16 sps:$4 sm:$0xff]   ;;  %v1043_v9 = vld [vmem:[%s1440_s1 + $0x1e0] ss:$16 sps:$4 sm:$0xff]   ;;  %v1044_v10 = vld [vmem:[%s1440_s1 + $0x1e8] ss:$16 sps:$4 sm:$0xff]   ;;  %v137_v19 = vcombine.high %v1329_v13, %v1329_v13 }
  0x17   :  { %659 = vmatpush1.bf16.msra.mxu0 %v983_v23  ;;  %741 = vmatpush1.bf16.msra.mxu1 %v984_v24  ;;  %v1048_v11 = vld [vmem:[%s1440_s1 + $0x204] ss:$16 sps:$4 sm:$0xff]   ;;  %v1051_v12 = vld [vmem:[%s1440_s1 + $0x20c] ss:$16 sps:$4 sm:$0xff]   ;;  %v1046_v14 = vld [vmem:[%s1440_s1 + $0x200] ss:$16 sps:$4 sm:$0xff]  }
  0x18   :  { %660 = vmatprep.subr.bf16.mxu0 %v985_v25  ;;  %742 = vmatprep.subr.bf16.mxu1 %v987_v26  ;;  %v1049_v15 = vld [vmem:[%s1440_s1 + $0x208] ss:$16 sps:$4 sm:$0xff]   ;;  %v1054_v16 = vld [vmem:[%s1440_s1 + $0x224] ss:$16 sps:$4 sm:$0xff]   ;;  %v1057_v17 = vld [vmem:[%s1440_s1 + $0x22c] ss:$16 sps:$4 sm:$0xff]  }
  0x19   :  { %v114_v18 = vld [vmem:[%s1442_s2] sm:$0x7]  ;;  %v1055_v21 = vld [vmem:[%s1440_s1 + $0x228] ss:$16 sps:$4 sm:$0xff]   ;;  %v1060_v22 = vld [vmem:[%s1440_s1 + $0x244] ss:$16 sps:$4 sm:$0xff]  }
  0x1a   :  { %117 = vperm.xlu0 %948, %v114_v18   ;;  %v1052_v20 = vld [vmem:[%s1440_s1 + $0x220] ss:$16 sps:$4 sm:$0xff]   ;;  %v1063_v23 = vld [vmem:[%s1440_s1 + $0x24c] ss:$16 sps:$4 sm:$0xff]   ;;  %v1061_v25 = vld [vmem:[%s1440_s1 + $0x248] ss:$16 sps:$4 sm:$0xff]  }
  0x1b   :  { %661 = vmatpush1.bf16.msra.mxu0 %v989_v27  ;;  %743 = vmatpush1.bf16.msra.mxu1 %v990_v28  ;;  %v1058_v24 = vld [vmem:[%s1440_s1 + $0x240] ss:$16 sps:$4 sm:$0xff]   ;;  %v1066_v26 = vld [vmem:[%s1440_s1 + $0x264] ss:$16 sps:$4 sm:$0xff]   ;;  %v1069_v27 = vld [vmem:[%s1440_s1 + $0x26c] ss:$16 sps:$4 sm:$0xff]  }
  0x1c   :  { %662 = vmatprep.subr.bf16.mxu0 %v991_v29  ;;  %744 = vmatprep.subr.bf16.mxu1 %v993_v30  ;;  %v1064_v28 = vld [vmem:[%s1440_s1 + $0x260] ss:$16 sps:$4 sm:$0xff]   ;;  %v1067_v29 = vld [vmem:[%s1440_s1 + $0x268] ss:$16 sps:$4 sm:$0xff]   ;;  %v1072_v30 = vld [vmem:[%s1440_s1 + $0x284] ss:$16 sps:$4 sm:$0xff]  }
  0x1d   :  { %v1079_v37 = vld [vmem:[%s1440_s1 + $0x2a8] ss:$16 sps:$4 sm:$0xff]   ;;  %v1084_v38 = vld [vmem:[%s1440_s1 + $0x2c4] ss:$16 sps:$4 sm:$0xff]   ;;  %v1087_v39 = vld [vmem:[%s1440_s1 + $0x2cc] ss:$16 sps:$4 sm:$0xff]  }
  0x1e   :  { %v1093_v43 = vld [vmem:[%s1440_s1 + $0x2ec] ss:$16 sps:$4 sm:$0xff]   ;;  %v112_v44 = vld [vmem:[%s1440_s1 + $0x300] sm:$0xff] }
  0x1f   :  { %663 = vmatpush1.bf16.msra.mxu0 %v995_v31  ;;  %745 = vmatpush1.bf16.msra.mxu1 %v996_v32  ;;  %v1075_v31 = vld [vmem:[%s1440_s1 + $0x28c] ss:$16 sps:$4 sm:$0xff]   ;;  %v1070_v32 = vld [vmem:[%s1440_s1 + $0x280] ss:$16 sps:$4 sm:$0xff]   ;;  %v926_v50 = vcombine.low %v112_v44, %v112_v44 }
  0x20   :  { %664 = vmatprep.subr.bf16.mxu0 %v997_v33  ;;  %746 = vmatprep.subr.bf16.mxu1 %v999_v34  ;;  %v1073_v33 = vld [vmem:[%s1440_s1 + $0x288] ss:$16 sps:$4 sm:$0xff]   ;;  %v1078_v34 = vld [vmem:[%s1440_s1 + $0x2a4] ss:$16 sps:$4 sm:$0xff]  }
  0x23   :  { %665 = vmatpush1.bf16.msra.mxu0 %v1001_v35  ;;  %747 = vmatpush1.bf16.msra.mxu1 %v1002_v36  ;;  %v1081_v35 = vld [vmem:[%s1440_s1 + $0x2ac] ss:$16 sps:$4 sm:$0xff]   ;;  %v1076_v36 = vld [vmem:[%s1440_s1 + $0x2a0] ss:$16 sps:$4 sm:$0xff]  }
  0x24   :  { %666 = vmatprep.subr.bf16.mxu0 %v1003_v40  ;;  %748 = vmatprep.subr.bf16.mxu1 %v1005_v41  ;;  %v1082_v40 = vld [vmem:[%s1440_s1 + $0x2c0] ss:$16 sps:$4 sm:$0xff]   ;;  %v1085_v41 = vld [vmem:[%s1440_s1 + $0x2c8] ss:$16 sps:$4 sm:$0xff]  }
  0x27   :  { %667 = vmatpush1.bf16.msra.mxu0 %v1007_v42  ;;  %749 = vmatpush1.bf16.msra.mxu1 %v1008_v45  ;;  %v1090_v42 = vld [vmem:[%s1440_s1 + $0x2e4] ss:$16 sps:$4 sm:$0xff]   ;;  %v113_v45 = vld [vmem:[%s1440_s1 + $0x308] sm:$0xff] }
  0x28   :  { %668 = vmatprep.subr.bf16.mxu0 %v1009_v46  ;;  %750 = vmatprep.subr.bf16.mxu1 %v1011_v47  ;;  %v1088_v46 = vld [vmem:[%s1440_s1 + $0x2e0] ss:$16 sps:$4 sm:$0xff]   ;;  %v1091_v47 = vld [vmem:[%s1440_s1 + $0x2e8] ss:$16 sps:$4 sm:$0xff]  }
  0x2b   :  { %669 = vmatpush1.bf16.msra.mxu0 %v1013_v48  ;;  %751 = vmatpush1.bf16.msra.mxu1 %v1014_v49  ;;  %v927_v48 = vcombine.high %v112_v44, %v112_v44  ;;  %v929_v49 = vcombine.high %v113_v45, %v113_v45 }
  0x2c   :  { %670 = vmatprep.subr.bf16.mxu0 %v1015_v51  ;;  %752 = vmatprep.subr.bf16.mxu1 %v1017_v52  ;;  %v928_v51 = vcombine.low %v113_v45, %v113_v45  ;;  %v637_v52 = vsel %vm635_vm1, %v926_v50, 0 }
  0x2e   :  { %v643_v53 = vsel %vm635_vm1, %v928_v51, 0 }
  0x2f   :  { %671 = vmatpush1.bf16.msra.mxu0 %v1019_v54  ;;  %753 = vmatpush1.bf16.msra.mxu1 %v1020_v56 }
  0x30   :  { %672 = vmatprep.subr.bf16.mxu0 %v1021_v57  ;;  %754 = vmatprep.subr.bf16.mxu1 %v1023_v58 }
  0x33   :  { %673 = vmatpush1.bf16.msra.mxu0 %v1025_v60  ;;  %755 = vmatpush1.bf16.msra.mxu1 %v1026_v61 }
  0x34   :  { %674 = vmatprep.subr.bf16.mxu0 %v1027_v62  ;;  %756 = vmatprep.subr.bf16.mxu1 %v1029_v63 }
  0x37   :  { %675 = vmatpush1.bf16.msra.mxu0 %v1031_v0  ;;  %757 = vmatpush1.bf16.msra.mxu1 %v1032_v1 }
  0x38   :  { %676 = vmatprep.subr.bf16.mxu0 %v1033_v2  ;;  %758 = vmatprep.subr.bf16.mxu1 %v1035_v3 }
  0x3b   :  { %677 = vmatpush1.bf16.msra.mxu0 %v1037_v4  ;;  %759 = vmatpush1.bf16.msra.mxu1 %v1038_v5 }
  0x3c   :  { %678 = vmatprep.subr.bf16.mxu0 %v1039_v6  ;;  %760 = vmatprep.subr.bf16.mxu1 %v1041_v7 }
  0x3f   :  { %679 = vmatpush1.bf16.msra.mxu0 %v1043_v9  ;;  %761 = vmatpush1.bf16.msra.mxu1 %v1044_v10 }
  0x40   :  { %689 = vmatprep.subr.bf16.mxu0 %v1048_v11  ;;  %771 = vmatprep.subr.bf16.mxu1 %v1051_v12 }
  0x42   :  { %681 = vmatmul.mubr.bf16.vlgmr.msra.gmra.mrb[0].mxu0 %v128_v55  ;;  %763 = vmatmul.mubr.bf16.vlgmr.msra.gmra.mrb[0].mxu1 %v128_v55 }
  0x43   :  { %690 = vmatpush1.bf16.msra.mxu0 %v1046_v14  ;;  %772 = vmatpush1.bf16.msra.mxu1 %v1049_v15 }
  0x44   :  { %691 = vmatprep.subr.bf16.mxu0 %v1054_v16  ;;  %773 = vmatprep.subr.bf16.mxu1 %v1057_v17 }
  0x45   :  { %931 = vmatprep.mubr.msk.bf16.mxu0 %vm631_vm0, %v137_v19  ;;  %933 = vmatprep.mubr.msk.bf16.mxu1 %vm631_vm0, %v137_v19 }
  0x47   :  { %692 = vmatpush1.bf16.msra.mxu0 %v1052_v20  ;;  %774 = vmatpush1.bf16.msra.mxu1 %v1055_v21 }
  0x48   :  { %693 = vmatprep.subr.bf16.mxu0 %v1060_v22  ;;  %775 = vmatprep.subr.bf16.mxu1 %v1063_v23 }
  0x4b   :  { %694 = vmatpush1.bf16.msra.mxu0 %v1058_v24  ;;  %776 = vmatpush1.bf16.msra.mxu1 %v1061_v25 }
  0x4c   :  { %695 = vmatprep.subr.bf16.mxu0 %v1066_v26  ;;  %777 = vmatprep.subr.bf16.mxu1 %v1069_v27 }
  0x4f   :  { %696 = vmatpush1.bf16.msra.mxu0 %v1064_v28  ;;  %778 = vmatpush1.bf16.msra.mxu1 %v1067_v29 }
  0x50   :  { %697 = vmatprep.subr.bf16.mxu0 %v1072_v30  ;;  %779 = vmatprep.subr.bf16.mxu1 %v1075_v31 }
  0x53   :  { %698 = vmatpush1.bf16.msra.mxu0 %v1070_v32  ;;  %780 = vmatpush1.bf16.msra.mxu1 %v1073_v33 }
  0x54   :  { %699 = vmatprep.subr.bf16.mxu0 %v1078_v34  ;;  %781 = vmatprep.subr.bf16.mxu1 %v1081_v35 }
  0x57   :  { %700 = vmatpush1.bf16.msra.mxu0 %v1076_v36  ;;  %782 = vmatpush1.bf16.msra.mxu1 %v1079_v37 }
  0x58   :  { %701 = vmatprep.subr.bf16.mxu0 %v1084_v38  ;;  %783 = vmatprep.subr.bf16.mxu1 %v1087_v39 }
  0x5b   :  { %702 = vmatpush1.bf16.msra.mxu0 %v1082_v40  ;;  %784 = vmatpush1.bf16.msra.mxu1 %v1085_v41 }
  0x5c   :  { %703 = vmatprep.subr.bf16.mxu0 %v1090_v42  ;;  %785 = vmatprep.subr.bf16.mxu1 %v1093_v43 }
  0x5f   :  { %704 = vmatpush1.bf16.msra.mxu0 %v1088_v46  ;;  %786 = vmatpush1.bf16.msra.mxu1 %v1091_v47 }
  0x60   :  { %930 = vmatprep.subr.msk.bf16.mxu0 %vm635_vm1, %v927_v48  ;;  %932 = vmatprep.subr.msk.bf16.mxu1 %vm635_vm1, %v929_v49 }
  0x63   :  { %706 = vmatpush1.bf16.msra.mxu0 %v637_v52  ;;  %788 = vmatpush1.bf16.msra.mxu1 %v643_v53 }
  0x66   :  { %722 = vmatmul.mubr.bf16.vlgmr.msra.gmra.mrb[0].mxu0 %v1329_v13  ;;  %804 = vmatmul.mubr.bf16.vlgmr.msra.gmra.mrb[0].mxu1 %v1329_v13 }
  0x99   :  { %v118_v54 = vpop.permute.xlu0 %117 }
 0x139   :  { %v723_v55 = vpop.f32.mrb[0].mxu0  ;;  %v805_v56 = vpop.f32.mrb[0].mxu1 }
 0x13a   :  { %v934_v57 = vadd.f32 %v723_v55, %v118_v54  ;;  %v936_v58 = vadd.f32 %v805_v56, %v118_v54  ;;  %v725_v59 = vpop.f32.mrb[1].mxu0  ;;  %v807_v60 = vpop.f32.mrb[1].mxu1 }
 0x13b   :  { %v935_v61 = vadd.f32 %v725_v59, %v118_v54  ;;  %v937_v62 = vadd.f32 %v807_v60, %v118_v54  ;;  %v727_v63 = vpop.f32.mrb[2].mxu0  ;;  %v809_v0 = vpop.f32.mrb[2].mxu1 }
 0x13c   :  { %1098 = vtanh.f32 %v934_v57  ;;  %v728_v1 = vpop.f32.mrb[3].mxu0  ;;  %v810_v2 = vpop.f32.mrb[3].mxu1 }
 0x13d   :  { %1100 = vtanh.f32 %v936_v58 }
 0x13e   :  { %1102 = vtanh.f32 %v935_v61 }
 0x13f   :  { %1104 = vtanh.f32 %v937_v62 }
 0x146   :  { %v1099_v3 = vpop.eup %1098 }
 0x147   :  { %v1101_v4 = vpop.eup %1100 }
 0x148   :  { %v1103_v5 = vpop.eup %1102 }
 0x149   :  { %v1105_v6 = vpop.eup %1104  ;;  %v820_v7 = vcombine.low %v1099_v3, %v1103_v5 }
 0x14a   :  { %v821_v8 = vcombine.low %v1101_v4, %v1105_v6 }
 0x14b   :  { %824 = vst [vmem:[%s1443_s3] sm:$0x77] %v820_v7 }
 0x14c   :  { %825 = vst [vmem:[%s1443_s3 + $0x8] sm:$0x77] %v821_v8 }

</bundles_post_ra>
